<compile_context>
chip_gen: v6e
topology: v6e:2x2x1
jax: 0.10.0
libtpu: 0.0.40
codegen_flags: <defaults>
</compile_context>

<pallas_src>
import jax
import jax.numpy as jnp
from jax.experimental import pallas as pl
from jax.experimental.pallas import tpu as pltpu

NEG_SLOPE = 0.2


# ----------------------------------------------------------------------------
# Fused ResBlockDown kernel (one grid step = one batch element)
# ----------------------------------------------------------------------------
def _resblockdown_kernel(x_ref, pool_ref, w1_ref, b1_ref, w2_ref, b2_ref,
                         w3_ref, b3_ref, o_ref, xpad_ref, ypad_ref):
    _, H, W, Cin = x_ref.shape
    Chid = w2_ref.shape[3]
    HW = H * W

    x = x_ref[0]              # (H, W, Cin)
    P = pool_ref[...]         # (Hh*Wh, H*W) pooling matrix (entries 0.25 / 0)

    # ---- shortcut path: avgpool2x2(x) -> 1x1 conv (no activation) ----------
    x_flat = x.reshape(HW, Cin)
    pooled_x = jnp.dot(P, x_flat, preferred_element_type=jnp.float32)     # (HhWh, Cin)
    shortcut = jnp.dot(pooled_x, w1_ref[...],
                       preferred_element_type=jnp.float32) + b1_ref[...]  # (HhWh, Chid)

    # ---- main path: conv2 (3x3, pad 1) + LeakyReLU --------------------------
    # in-kernel zero padding into VMEM scratch (no jnp.pad in the wrapper)
    xpad_ref[...] = jnp.zeros(xpad_ref.shape, xpad_ref.dtype)
    xpad_ref[1:H + 1, 1:W + 1, :] = x
    acc = jnp.zeros((HW, Chid), jnp.float32)
    for kh in range(3):
        for kw in range(3):
            patch = xpad_ref[kh:kh + H, kw:kw + W, :].reshape(HW, Cin)
            acc = acc + jnp.dot(patch, w2_ref[kh, kw],
                                preferred_element_type=jnp.float32)
    y = acc + b2_ref[...]
    y = jnp.where(y >= 0, y, NEG_SLOPE * y)

    # ---- conv3 (3x3, pad 1) + LeakyReLU -------------------------------------
    ypad_ref[...] = jnp.zeros(ypad_ref.shape, ypad_ref.dtype)
    ypad_ref[1:H + 1, 1:W + 1, :] = y.reshape(H, W, Chid)
    acc2 = jnp.zeros((HW, Chid), jnp.float32)
    for kh in range(3):
        for kw in range(3):
            patch = ypad_ref[kh:kh + H, kw:kw + W, :].reshape(HW, Chid)
            acc2 = acc2 + jnp.dot(patch, w3_ref[kh, kw],
                                  preferred_element_type=jnp.float32)
    z = acc2 + b3_ref[...]
    z = jnp.where(z >= 0, z, NEG_SLOPE * z)

    # ---- fused avgpool2x2 epilogue + residual add ---------------------------
    out = jnp.dot(P, z, preferred_element_type=jnp.float32) + shortcut
    o_ref[0] = out.astype(o_ref.dtype)


def _make_pool_matrix(H, W):
    """(Hh*Wh, H*W) matrix: out[i*Wh+j] = mean of the 2x2 window at (i, j)."""
    Hh, Wh = H // 2, W // 2
    rows = jnp.arange(Hh * Wh)
    ri, rj = rows // Wh, rows % Wh
    cols = jnp.arange(H * W)
    ci, cj = cols // W, cols % W
    mask = ((ci[None, :] // 2) == ri[:, None]) & ((cj[None, :] // 2) == rj[:, None])
    return mask.astype(jnp.float32) * 0.25


def res_block_down(x_nchw, params):
    """x_nchw: (B, Cin, H, W) f32.  Returns (B, Chid, H//2, W//2) (PyTorch layout)."""
    B, Cin, H, W = x_nchw.shape
    assert H % 2 == 0 and W % 2 == 0
    Chid = params["w2"].shape[3]
    Hh, Wh = H // 2, W // 2

    x = jnp.transpose(x_nchw, (0, 2, 3, 1))           # NCHW -> NHWC
    P = _make_pool_matrix(H, W)

    out_flat = pl.pallas_call(
        _resblockdown_kernel,
        out_shape=jax.ShapeDtypeStruct((B, Hh * Wh, Chid), jnp.float32),
        grid=(B,),
        in_specs=[
            pl.BlockSpec((1, H, W, Cin), lambda i: (i, 0, 0, 0)),
            pl.BlockSpec((Hh * Wh, H * W), lambda i: (0, 0)),
            pl.BlockSpec((Cin, Chid), lambda i: (0, 0)),
            pl.BlockSpec((1, Chid), lambda i: (0, 0)),
            pl.BlockSpec((3, 3, Cin, Chid), lambda i: (0, 0, 0, 0)),
            pl.BlockSpec((1, Chid), lambda i: (0, 0)),
            pl.BlockSpec((3, 3, Chid, Chid), lambda i: (0, 0, 0, 0)),
            pl.BlockSpec((1, Chid), lambda i: (0, 0)),
        ],
        out_specs=pl.BlockSpec((1, Hh * Wh, Chid), lambda i: (i, 0, 0)),
        scratch_shapes=[
            pltpu.VMEM((H + 2, W + 2, Cin), jnp.float32),   # padded x
            pltpu.VMEM((H + 2, W + 2, Chid), jnp.float32),  # padded conv2 output
        ],
        compiler_params=pltpu.CompilerParams(
            dimension_semantics=("parallel",)),
    )(x, P,
      params["w1"].reshape(Cin, Chid), params["b1"].reshape(1, Chid),
      params["w2"], params["b2"].reshape(1, Chid),
      params["w3"], params["b3"].reshape(1, Chid))

    out = out_flat.reshape(B, Hh, Wh, Chid)
    return jnp.transpose(out, (0, 3, 1, 2))            # NHWC -> NCHW


# ----------------------------------------------------------------------------
# Pure-JAX reference (for a correctness check)
# ----------------------------------------------------------------------------
def ref_res_block_down(x_nchw, params):
    x = jnp.transpose(x_nchw, (0, 2, 3, 1))

    def conv(v, w, b, padding):
        out = jax.lax.conv_general_dilated(
            v, w, window_strides=(1, 1), padding=padding,
            dimension_numbers=("NHWC", "HWIO", "NHWC"))
        return out + b.reshape(1, 1, 1, -1)

    def avgpool(v):
        b_, h_, w_, c_ = v.shape
        return v.reshape(b_, h_ // 2, 2, w_ // 2, 2, c_).mean(axis=(2, 4))

    def lrelu(v):
        return jnp.where(v >= 0, v, NEG_SLOPE * v)

    shortcut = conv(avgpool(x), params["w1"], params["b1"], "VALID")
    y = lrelu(conv(x, params["w2"], params["b2"], "SAME"))
    y = lrelu(conv(y, params["w3"], params["b3"], "SAME"))
    y = avgpool(y) + shortcut
    return jnp.transpose(y, (0, 3, 1, 2))


# ----------------------------------------------------------------------------
# Deterministic synthetic parameters (HWIO conv weights)
# ----------------------------------------------------------------------------
def init_params(key, in_dim, hidden_dim):
    keys = jax.random.split(key, 6)

    def conv_init(kw_key, kb_key, kh, kw, cin, cout):
        fan_in = kh * kw * cin
        w = jax.random.normal(kw_key, (kh, kw, cin, cout), jnp.float32) / jnp.sqrt(float(fan_in))
        b = 0.01 * jax.random.normal(kb_key, (cout,), jnp.float32)
        return w, b

    w1, b1 = conv_init(keys[0], keys[1], 1, 1, in_dim, hidden_dim)
    w2, b2 = conv_init(keys[2], keys[3], 3, 3, in_dim, hidden_dim)
    w3, b3 = conv_init(keys[4], keys[5], 3, 3, hidden_dim, hidden_dim)
    return dict(w1=w1, b1=b1, w2=w2, b2=b2, w3=w3, b3=b3)


if __name__ == "__main__":
    B, IN_DIM, HID_DIM, H, W = 2, 64, 128, 16, 16
    key = jax.random.PRNGKey(0)
    k_param, k_x = jax.random.split(key)

    params = init_params(k_param, IN_DIM, HID_DIM)
    x = jax.random.normal(k_x, (B, IN_DIM, H, W), jnp.float32)

    fwd = jax.jit(res_block_down)
    out = fwd(x, params)
    jax.block_until_ready(out)

    assert out.shape == (B, HID_DIM, H // 2, W // 2)

    ref = ref_res_block_down(x, params)
    max_err = jnp.max(jnp.abs(out - ref))
    assert jnp.allclose(out, ref, rtol=5e-2, atol=5e-2), f"max abs err {max_err}"

    print("KERNEL_OK")
</pallas_src>

<mosaic_0001>
module attributes {stable_mosaic.version = 11 : i64} {
  func.func @_resblockdown_kernel(%arg0: i32, %arg1: memref<1x16x16x64xf32, #tpu.memory_space<vmem>>, %arg2: memref<64x256xf32, #tpu.memory_space<vmem>>, %arg3: memref<64x128xf32, #tpu.memory_space<vmem>>, %arg4: memref<1x128xf32, #tpu.memory_space<vmem>>, %arg5: memref<3x3x64x128xf32, #tpu.memory_space<vmem>>, %arg6: memref<1x128xf32, #tpu.memory_space<vmem>>, %arg7: memref<3x3x128x128xf32, #tpu.memory_space<vmem>>, %arg8: memref<1x128xf32, #tpu.memory_space<vmem>>, %arg9: memref<1x64x128xf32, #tpu.memory_space<vmem>>, %arg10: memref<18x18x64xf32, #tpu.memory_space<vmem>>, %arg11: memref<18x18x128xf32, #tpu.memory_space<vmem>>) attributes {dimension_semantics = [#tpu.dimension_semantics<parallel>], iteration_bounds = array<i64: 2>, scalar_prefetch = 0 : i64, scratch_operands = 2 : i64, tpu.core_type = #tpu.core_type<tc>, window_params = [{transform_indices = @transform_0, window_bounds = array<i64: 1, 16, 16, 64>}, {pipeline_mode = #tpu.pipeline_mode<synchronous>, transform_indices = @transform_1, window_bounds = array<i64: 64, 256>}, {pipeline_mode = #tpu.pipeline_mode<synchronous>, transform_indices = @transform_2, window_bounds = array<i64: 64, 128>}, {pipeline_mode = #tpu.pipeline_mode<synchronous>, transform_indices = @transform_3, window_bounds = array<i64: 1, 128>}, {pipeline_mode = #tpu.pipeline_mode<synchronous>, transform_indices = @transform_4, window_bounds = array<i64: 3, 3, 64, 128>}, {pipeline_mode = #tpu.pipeline_mode<synchronous>, transform_indices = @transform_5, window_bounds = array<i64: 1, 128>}, {pipeline_mode = #tpu.pipeline_mode<synchronous>, transform_indices = @transform_6, window_bounds = array<i64: 3, 3, 128, 128>}, {pipeline_mode = #tpu.pipeline_mode<synchronous>, transform_indices = @transform_7, window_bounds = array<i64: 1, 128>}, {transform_indices = @transform_8, window_bounds = array<i64: 1, 64, 128>}]} {
    %c0 = arith.constant 0 : index
    %c0_0 = arith.constant 0 : index
    %c0_1 = arith.constant 0 : index
    %c0_2 = arith.constant 0 : index
    %0 = vector.load %arg1[%c0, %c0_0, %c0_1, %c0_2] : memref<1x16x16x64xf32, #tpu.memory_space<vmem>>, vector<1x16x16x64xf32>
    %1 = vector.shape_cast %0 : vector<1x16x16x64xf32> to vector<16x16x64xf32>
    %c0_3 = arith.constant 0 : index
    %c0_4 = arith.constant 0 : index
    %2 = vector.load %arg2[%c0_3, %c0_4] : memref<64x256xf32, #tpu.memory_space<vmem>>, vector<64x256xf32>
    %3 = vector.shape_cast %1 : vector<16x16x64xf32> to vector<256x64xf32>
    %cst = arith.constant dense<0.000000e+00> : vector<64x64xf32>
    %4 = tpu.matmul %2, %3, %cst {dimension_numbers = #tpu.dot_dimension_numbers<[1], [0], [0], [1], [0, 0, 1, 1], [], []>} : vector<64x256xf32>, vector<256x64xf32>, vector<64x64xf32> -> vector<64x64xf32>
    %c0_5 = arith.constant 0 : index
    %c0_6 = arith.constant 0 : index
    %5 = vector.load %arg3[%c0_5, %c0_6] : memref<64x128xf32, #tpu.memory_space<vmem>>, vector<64x128xf32>
    %cst_7 = arith.constant dense<0.000000e+00> : vector<64x128xf32>
    %6 = tpu.matmul %4, %5, %cst_7 {dimension_numbers = #tpu.dot_dimension_numbers<[1], [0], [0], [1], [0, 0, 1, 1], [], []>} : vector<64x64xf32>, vector<64x128xf32>, vector<64x128xf32> -> vector<64x128xf32>
    %c0_8 = arith.constant 0 : index
    %c0_9 = arith.constant 0 : index
    %7 = vector.load %arg4[%c0_8, %c0_9] : memref<1x128xf32, #tpu.memory_space<vmem>>, vector<1x128xf32>
    %8 = vector.broadcast %7 : vector<1x128xf32> to vector<64x128xf32>
    %9 = arith.addf %6, %8 : vector<64x128xf32>
    %cst_10 = arith.constant 0.000000e+00 : f32
    %10 = vector.broadcast %cst_10 : f32 to vector<18x18x64xf32>
    %c0_11 = arith.constant 0 : index
    %c0_12 = arith.constant 0 : index
    %c0_13 = arith.constant 0 : index
    %11 = vector.load %arg10[%c0_11, %c0_12, %c0_13] : memref<18x18x64xf32, #tpu.memory_space<vmem>>, vector<18x18x64xf32>
    tpu.vector_store %arg10[%c0_11, %c0_12, %c0_13], %10 {strides = array<i32>} : memref<18x18x64xf32, #tpu.memory_space<vmem>>, vector<18x18x64xf32>,
    %c1 = arith.constant 1 : index
    %c1_14 = arith.constant 1 : index
    %c0_15 = arith.constant 0 : index
    %12 = vector.load %arg10[%c1, %c1_14, %c0_15] : memref<18x18x64xf32, #tpu.memory_space<vmem>>, vector<16x16x64xf32>
    tpu.vector_store %arg10[%c1, %c1_14, %c0_15], %1 {strides = array<i32>} : memref<18x18x64xf32, #tpu.memory_space<vmem>>, vector<16x16x64xf32>,
    %cst_16 = arith.constant 0.000000e+00 : f32
    %13 = vector.broadcast %cst_16 : f32 to vector<256x128xf32>
    %c0_17 = arith.constant 0 : index
    %c0_18 = arith.constant 0 : index
    %c0_19 = arith.constant 0 : index
    %14 = vector.load %arg10[%c0_17, %c0_18, %c0_19] : memref<18x18x64xf32, #tpu.memory_space<vmem>>, vector<16x16x64xf32>
    %15 = vector.shape_cast %14 : vector<16x16x64xf32> to vector<256x64xf32>
    %c0_20 = arith.constant 0 : index
    %c0_21 = arith.constant 0 : index
    %c0_22 = arith.constant 0 : index
    %c0_23 = arith.constant 0 : index
    %16 = vector.load %arg5[%c0_20, %c0_21, %c0_22, %c0_23] : memref<3x3x64x128xf32, #tpu.memory_space<vmem>>, vector<1x1x64x128xf32>
    %17 = vector.shape_cast %16 : vector<1x1x64x128xf32> to vector<64x128xf32>
    %cst_24 = arith.constant dense<0.000000e+00> : vector<256x128xf32>
    %18 = tpu.matmul %15, %17, %cst_24 {dimension_numbers = #tpu.dot_dimension_numbers<[1], [0], [0], [1], [0, 0, 1, 1], [], []>} : vector<256x64xf32>, vector<64x128xf32>, vector<256x128xf32> -> vector<256x128xf32>
    %19 = arith.addf %13, %18 : vector<256x128xf32>
    %c0_25 = arith.constant 0 : index
    %c1_26 = arith.constant 1 : index
    %c0_27 = arith.constant 0 : index
    %20 = vector.load %arg10[%c0_25, %c1_26, %c0_27] : memref<18x18x64xf32, #tpu.memory_space<vmem>>, vector<16x16x64xf32>
    %21 = vector.shape_cast %20 : vector<16x16x64xf32> to vector<256x64xf32>
    %c0_28 = arith.constant 0 : index
    %c1_29 = arith.constant 1 : index
    %c0_30 = arith.constant 0 : index
    %c0_31 = arith.constant 0 : index
    %22 = vector.load %arg5[%c0_28, %c1_29, %c0_30, %c0_31] : memref<3x3x64x128xf32, #tpu.memory_space<vmem>>, vector<1x1x64x128xf32>
    %23 = vector.shape_cast %22 : vector<1x1x64x128xf32> to vector<64x128xf32>
    %cst_32 = arith.constant dense<0.000000e+00> : vector<256x128xf32>
    %24 = tpu.matmul %21, %23, %cst_32 {dimension_numbers = #tpu.dot_dimension_numbers<[1], [0], [0], [1], [0, 0, 1, 1], [], []>} : vector<256x64xf32>, vector<64x128xf32>, vector<256x128xf32> -> vector<256x128xf32>
    %25 = arith.addf %19, %24 : vector<256x128xf32>
    %c0_33 = arith.constant 0 : index
    %c2 = arith.constant 2 : index
    %c0_34 = arith.constant 0 : index
    %26 = vector.load %arg10[%c0_33, %c2, %c0_34] : memref<18x18x64xf32, #tpu.memory_space<vmem>>, vector<16x16x64xf32>
    %27 = vector.shape_cast %26 : vector<16x16x64xf32> to vector<256x64xf32>
    %c0_35 = arith.constant 0 : index
    %c2_36 = arith.constant 2 : index
    %c0_37 = arith.constant 0 : index
    %c0_38 = arith.constant 0 : index
    %28 = vector.load %arg5[%c0_35, %c2_36, %c0_37, %c0_38] : memref<3x3x64x128xf32, #tpu.memory_space<vmem>>, vector<1x1x64x128xf32>
    %29 = vector.shape_cast %28 : vector<1x1x64x128xf32> to vector<64x128xf32>
    %cst_39 = arith.constant dense<0.000000e+00> : vector<256x128xf32>
    %30 = tpu.matmul %27, %29, %cst_39 {dimension_numbers = #tpu.dot_dimension_numbers<[1], [0], [0], [1], [0, 0, 1, 1], [], []>} : vector<256x64xf32>, vector<64x128xf32>, vector<256x128xf32> -> vector<256x128xf32>
    %31 = arith.addf %25, %30 : vector<256x128xf32>
    %c1_40 = arith.constant 1 : index
    %c0_41 = arith.constant 0 : index
    %c0_42 = arith.constant 0 : index
    %32 = vector.load %arg10[%c1_40, %c0_41, %c0_42] : memref<18x18x64xf32, #tpu.memory_space<vmem>>, vector<16x16x64xf32>
    %33 = vector.shape_cast %32 : vector<16x16x64xf32> to vector<256x64xf32>
    %c1_43 = arith.constant 1 : index
    %c0_44 = arith.constant 0 : index
    %c0_45 = arith.constant 0 : index
    %c0_46 = arith.constant 0 : index
    %34 = vector.load %arg5[%c1_43, %c0_44, %c0_45, %c0_46] : memref<3x3x64x128xf32, #tpu.memory_space<vmem>>, vector<1x1x64x128xf32>
    %35 = vector.shape_cast %34 : vector<1x1x64x128xf32> to vector<64x128xf32>
    %cst_47 = arith.constant dense<0.000000e+00> : vector<256x128xf32>
    %36 = tpu.matmul %33, %35, %cst_47 {dimension_numbers = #tpu.dot_dimension_numbers<[1], [0], [0], [1], [0, 0, 1, 1], [], []>} : vector<256x64xf32>, vector<64x128xf32>, vector<256x128xf32> -> vector<256x128xf32>
    %37 = arith.addf %31, %36 : vector<256x128xf32>
    %c1_48 = arith.constant 1 : index
    %c1_49 = arith.constant 1 : index
    %c0_50 = arith.constant 0 : index
    %38 = vector.load %arg10[%c1_48, %c1_49, %c0_50] : memref<18x18x64xf32, #tpu.memory_space<vmem>>, vector<16x16x64xf32>
    %39 = vector.shape_cast %38 : vector<16x16x64xf32> to vector<256x64xf32>
    %c1_51 = arith.constant 1 : index
    %c1_52 = arith.constant 1 : index
    %c0_53 = arith.constant 0 : index
    %c0_54 = arith.constant 0 : index
    %40 = vector.load %arg5[%c1_51, %c1_52, %c0_53, %c0_54] : memref<3x3x64x128xf32, #tpu.memory_space<vmem>>, vector<1x1x64x128xf32>
    %41 = vector.shape_cast %40 : vector<1x1x64x128xf32> to vector<64x128xf32>
    %cst_55 = arith.constant dense<0.000000e+00> : vector<256x128xf32>
    %42 = tpu.matmul %39, %41, %cst_55 {dimension_numbers = #tpu.dot_dimension_numbers<[1], [0], [0], [1], [0, 0, 1, 1], [], []>} : vector<256x64xf32>, vector<64x128xf32>, vector<256x128xf32> -> vector<256x128xf32>
    %43 = arith.addf %37, %42 : vector<256x128xf32>
    %c1_56 = arith.constant 1 : index
    %c2_57 = arith.constant 2 : index
    %c0_58 = arith.constant 0 : index
    %44 = vector.load %arg10[%c1_56, %c2_57, %c0_58] : memref<18x18x64xf32, #tpu.memory_space<vmem>>, vector<16x16x64xf32>
    %45 = vector.shape_cast %44 : vector<16x16x64xf32> to vector<256x64xf32>
    %c1_59 = arith.constant 1 : index
    %c2_60 = arith.constant 2 : index
    %c0_61 = arith.constant 0 : index
    %c0_62 = arith.constant 0 : index
    %46 = vector.load %arg5[%c1_59, %c2_60, %c0_61, %c0_62] : memref<3x3x64x128xf32, #tpu.memory_space<vmem>>, vector<1x1x64x128xf32>
    %47 = vector.shape_cast %46 : vector<1x1x64x128xf32> to vector<64x128xf32>
    %cst_63 = arith.constant dense<0.000000e+00> : vector<256x128xf32>
    %48 = tpu.matmul %45, %47, %cst_63 {dimension_numbers = #tpu.dot_dimension_numbers<[1], [0], [0], [1], [0, 0, 1, 1], [], []>} : vector<256x64xf32>, vector<64x128xf32>, vector<256x128xf32> -> vector<256x128xf32>
    %49 = arith.addf %43, %48 : vector<256x128xf32>
    %c2_64 = arith.constant 2 : index
    %c0_65 = arith.constant 0 : index
    %c0_66 = arith.constant 0 : index
    %50 = vector.load %arg10[%c2_64, %c0_65, %c0_66] : memref<18x18x64xf32, #tpu.memory_space<vmem>>, vector<16x16x64xf32>
    %51 = vector.shape_cast %50 : vector<16x16x64xf32> to vector<256x64xf32>
    %c2_67 = arith.constant 2 : index
    %c0_68 = arith.constant 0 : index
    %c0_69 = arith.constant 0 : index
    %c0_70 = arith.constant 0 : index
    %52 = vector.load %arg5[%c2_67, %c0_68, %c0_69, %c0_70] : memref<3x3x64x128xf32, #tpu.memory_space<vmem>>, vector<1x1x64x128xf32>
    %53 = vector.shape_cast %52 : vector<1x1x64x128xf32> to vector<64x128xf32>
    %cst_71 = arith.constant dense<0.000000e+00> : vector<256x128xf32>
    %54 = tpu.matmul %51, %53, %cst_71 {dimension_numbers = #tpu.dot_dimension_numbers<[1], [0], [0], [1], [0, 0, 1, 1], [], []>} : vector<256x64xf32>, vector<64x128xf32>, vector<256x128xf32> -> vector<256x128xf32>
    %55 = arith.addf %49, %54 : vector<256x128xf32>
    %c2_72 = arith.constant 2 : index
    %c1_73 = arith.constant 1 : index
    %c0_74 = arith.constant 0 : index
    %56 = vector.load %arg10[%c2_72, %c1_73, %c0_74] : memref<18x18x64xf32, #tpu.memory_space<vmem>>, vector<16x16x64xf32>
    %57 = vector.shape_cast %56 : vector<16x16x64xf32> to vector<256x64xf32>
    %c2_75 = arith.constant 2 : index
    %c1_76 = arith.constant 1 : index
    %c0_77 = arith.constant 0 : index
    %c0_78 = arith.constant 0 : index
    %58 = vector.load %arg5[%c2_75, %c1_76, %c0_77, %c0_78] : memref<3x3x64x128xf32, #tpu.memory_space<vmem>>, vector<1x1x64x128xf32>
    %59 = vector.shape_cast %58 : vector<1x1x64x128xf32> to vector<64x128xf32>
    %cst_79 = arith.constant dense<0.000000e+00> : vector<256x128xf32>
    %60 = tpu.matmul %57, %59, %cst_79 {dimension_numbers = #tpu.dot_dimension_numbers<[1], [0], [0], [1], [0, 0, 1, 1], [], []>} : vector<256x64xf32>, vector<64x128xf32>, vector<256x128xf32> -> vector<256x128xf32>
    %61 = arith.addf %55, %60 : vector<256x128xf32>
    %c2_80 = arith.constant 2 : index
    %c2_81 = arith.constant 2 : index
    %c0_82 = arith.constant 0 : index
    %62 = vector.load %arg10[%c2_80, %c2_81, %c0_82] : memref<18x18x64xf32, #tpu.memory_space<vmem>>, vector<16x16x64xf32>
    %63 = vector.shape_cast %62 : vector<16x16x64xf32> to vector<256x64xf32>
    %c2_83 = arith.constant 2 : index
    %c2_84 = arith.constant 2 : index
    %c0_85 = arith.constant 0 : index
    %c0_86 = arith.constant 0 : index
    %64 = vector.load %arg5[%c2_83, %c2_84, %c0_85, %c0_86] : memref<3x3x64x128xf32, #tpu.memory_space<vmem>>, vector<1x1x64x128xf32>
    %65 = vector.shape_cast %64 : vector<1x1x64x128xf32> to vector<64x128xf32>
    %cst_87 = arith.constant dense<0.000000e+00> : vector<256x128xf32>
    %66 = tpu.matmul %63, %65, %cst_87 {dimension_numbers = #tpu.dot_dimension_numbers<[1], [0], [0], [1], [0, 0, 1, 1], [], []>} : vector<256x64xf32>, vector<64x128xf32>, vector<256x128xf32> -> vector<256x128xf32>
    %67 = arith.addf %61, %66 : vector<256x128xf32>
    %c0_88 = arith.constant 0 : index
    %c0_89 = arith.constant 0 : index
    %68 = vector.load %arg6[%c0_88, %c0_89] : memref<1x128xf32, #tpu.memory_space<vmem>>, vector<1x128xf32>
    %69 = vector.broadcast %68 : vector<1x128xf32> to vector<256x128xf32>
    %70 = arith.addf %67, %69 : vector<256x128xf32>
    %cst_90 = arith.constant 0.000000e+00 : f32
    %71 = vector.broadcast %cst_90 : f32 to vector<256x128xf32>
    %72 = arith.cmpf oge, %70, %71 : vector<256x128xf32>
    %cst_91 = arith.constant 2.000000e-01 : f32
    %73 = vector.broadcast %cst_91 : f32 to vector<256x128xf32>
    %74 = arith.mulf %73, %70 : vector<256x128xf32>
    %75 = arith.select %72, %70, %74 : vector<256x128xi1>, vector<256x128xf32>
    %cst_92 = arith.constant 0.000000e+00 : f32
    %76 = vector.broadcast %cst_92 : f32 to vector<18x18x128xf32>
    %c0_93 = arith.constant 0 : index
    %c0_94 = arith.constant 0 : index
    %c0_95 = arith.constant 0 : index
    %77 = vector.load %arg11[%c0_93, %c0_94, %c0_95] : memref<18x18x128xf32, #tpu.memory_space<vmem>>, vector<18x18x128xf32>
    tpu.vector_store %arg11[%c0_93, %c0_94, %c0_95], %76 {strides = array<i32>} : memref<18x18x128xf32, #tpu.memory_space<vmem>>, vector<18x18x128xf32>,
    %78 = vector.shape_cast %75 : vector<256x128xf32> to vector<16x16x128xf32>
    %c1_96 = arith.constant 1 : index
    %c1_97 = arith.constant 1 : index
    %c0_98 = arith.constant 0 : index
    %79 = vector.load %arg11[%c1_96, %c1_97, %c0_98] : memref<18x18x128xf32, #tpu.memory_space<vmem>>, vector<16x16x128xf32>
    tpu.vector_store %arg11[%c1_96, %c1_97, %c0_98], %78 {strides = array<i32>} : memref<18x18x128xf32, #tpu.memory_space<vmem>>, vector<16x16x128xf32>,
    %cst_99 = arith.constant 0.000000e+00 : f32
    %80 = vector.broadcast %cst_99 : f32 to vector<256x128xf32>
    %c0_100 = arith.constant 0 : index
    %c0_101 = arith.constant 0 : index
    %c0_102 = arith.constant 0 : index
    %81 = vector.load %arg11[%c0_100, %c0_101, %c0_102] : memref<18x18x128xf32, #tpu.memory_space<vmem>>, vector<16x16x128xf32>
    %82 = vector.shape_cast %81 : vector<16x16x128xf32> to vector<256x128xf32>
    %c0_103 = arith.constant 0 : index
    %c0_104 = arith.constant 0 : index
    %c0_105 = arith.constant 0 : index
    %c0_106 = arith.constant 0 : index
    %83 = vector.load %arg7[%c0_103, %c0_104, %c0_105, %c0_106] : memref<3x3x128x128xf32, #tpu.memory_space<vmem>>, vector<1x1x128x128xf32>
    %84 = vector.shape_cast %83 : vector<1x1x128x128xf32> to vector<128x128xf32>
    %cst_107 = arith.constant dense<0.000000e+00> : vector<256x128xf32>
    %85 = tpu.matmul %82, %84, %cst_107 {dimension_numbers = #tpu.dot_dimension_numbers<[1], [0], [0], [1], [0, 0, 1, 1], [], []>} : vector<256x128xf32>, vector<128x128xf32>, vector<256x128xf32> -> vector<256x128xf32>
    %86 = arith.addf %80, %85 : vector<256x128xf32>
    %c0_108 = arith.constant 0 : index
    %c1_109 = arith.constant 1 : index
    %c0_110 = arith.constant 0 : index
    %87 = vector.load %arg11[%c0_108, %c1_109, %c0_110] : memref<18x18x128xf32, #tpu.memory_space<vmem>>, vector<16x16x128xf32>
    %88 = vector.shape_cast %87 : vector<16x16x128xf32> to vector<256x128xf32>
    %c0_111 = arith.constant 0 : index
    %c1_112 = arith.constant 1 : index
    %c0_113 = arith.constant 0 : index
    %c0_114 = arith.constant 0 : index
    %89 = vector.load %arg7[%c0_111, %c1_112, %c0_113, %c0_114] : memref<3x3x128x128xf32, #tpu.memory_space<vmem>>, vector<1x1x128x128xf32>
    %90 = vector.shape_cast %89 : vector<1x1x128x128xf32> to vector<128x128xf32>
    %cst_115 = arith.constant dense<0.000000e+00> : vector<256x128xf32>
    %91 = tpu.matmul %88, %90, %cst_115 {dimension_numbers = #tpu.dot_dimension_numbers<[1], [0], [0], [1], [0, 0, 1, 1], [], []>} : vector<256x128xf32>, vector<128x128xf32>, vector<256x128xf32> -> vector<256x128xf32>
    %92 = arith.addf %86, %91 : vector<256x128xf32>
    %c0_116 = arith.constant 0 : index
    %c2_117 = arith.constant 2 : index
    %c0_118 = arith.constant 0 : index
    %93 = vector.load %arg11[%c0_116, %c2_117, %c0_118] : memref<18x18x128xf32, #tpu.memory_space<vmem>>, vector<16x16x128xf32>
    %94 = vector.shape_cast %93 : vector<16x16x128xf32> to vector<256x128xf32>
    %c0_119 = arith.constant 0 : index
    %c2_120 = arith.constant 2 : index
    %c0_121 = arith.constant 0 : index
    %c0_122 = arith.constant 0 : index
    %95 = vector.load %arg7[%c0_119, %c2_120, %c0_121, %c0_122] : memref<3x3x128x128xf32, #tpu.memory_space<vmem>>, vector<1x1x128x128xf32>
    %96 = vector.shape_cast %95 : vector<1x1x128x128xf32> to vector<128x128xf32>
    %cst_123 = arith.constant dense<0.000000e+00> : vector<256x128xf32>
    %97 = tpu.matmul %94, %96, %cst_123 {dimension_numbers = #tpu.dot_dimension_numbers<[1], [0], [0], [1], [0, 0, 1, 1], [], []>} : vector<256x128xf32>, vector<128x128xf32>, vector<256x128xf32> -> vector<256x128xf32>
    %98 = arith.addf %92, %97 : vector<256x128xf32>
    %c1_124 = arith.constant 1 : index
    %c0_125 = arith.constant 0 : index
    %c0_126 = arith.constant 0 : index
    %99 = vector.load %arg11[%c1_124, %c0_125, %c0_126] : memref<18x18x128xf32, #tpu.memory_space<vmem>>, vector<16x16x128xf32>
    %100 = vector.shape_cast %99 : vector<16x16x128xf32> to vector<256x128xf32>
    %c1_127 = arith.constant 1 : index
    %c0_128 = arith.constant 0 : index
    %c0_129 = arith.constant 0 : index
    %c0_130 = arith.constant 0 : index
    %101 = vector.load %arg7[%c1_127, %c0_128, %c0_129, %c0_130] : memref<3x3x128x128xf32, #tpu.memory_space<vmem>>, vector<1x1x128x128xf32>
    %102 = vector.shape_cast %101 : vector<1x1x128x128xf32> to vector<128x128xf32>
    %cst_131 = arith.constant dense<0.000000e+00> : vector<256x128xf32>
    %103 = tpu.matmul %100, %102, %cst_131 {dimension_numbers = #tpu.dot_dimension_numbers<[1], [0], [0], [1], [0, 0, 1, 1], [], []>} : vector<256x128xf32>, vector<128x128xf32>, vector<256x128xf32> -> vector<256x128xf32>
    %104 = arith.addf %98, %103 : vector<256x128xf32>
    %c1_132 = arith.constant 1 : index
    %c1_133 = arith.constant 1 : index
    %c0_134 = arith.constant 0 : index
    %105 = vector.load %arg11[%c1_132, %c1_133, %c0_134] : memref<18x18x128xf32, #tpu.memory_space<vmem>>, vector<16x16x128xf32>
    %106 = vector.shape_cast %105 : vector<16x16x128xf32> to vector<256x128xf32>
    %c1_135 = arith.constant 1 : index
    %c1_136 = arith.constant 1 : index
    %c0_137 = arith.constant 0 : index
    %c0_138 = arith.constant 0 : index
    %107 = vector.load %arg7[%c1_135, %c1_136, %c0_137, %c0_138] : memref<3x3x128x128xf32, #tpu.memory_space<vmem>>, vector<1x1x128x128xf32>
    %108 = vector.shape_cast %107 : vector<1x1x128x128xf32> to vector<128x128xf32>
    %cst_139 = arith.constant dense<0.000000e+00> : vector<256x128xf32>
    %109 = tpu.matmul %106, %108, %cst_139 {dimension_numbers = #tpu.dot_dimension_numbers<[1], [0], [0], [1], [0, 0, 1, 1], [], []>} : vector<256x128xf32>, vector<128x128xf32>, vector<256x128xf32> -> vector<256x128xf32>
    %110 = arith.addf %104, %109 : vector<256x128xf32>
    %c1_140 = arith.constant 1 : index
    %c2_141 = arith.constant 2 : index
    %c0_142 = arith.constant 0 : index
    %111 = vector.load %arg11[%c1_140, %c2_141, %c0_142] : memref<18x18x128xf32, #tpu.memory_space<vmem>>, vector<16x16x128xf32>
    %112 = vector.shape_cast %111 : vector<16x16x128xf32> to vector<256x128xf32>
    %c1_143 = arith.constant 1 : index
    %c2_144 = arith.constant 2 : index
    %c0_145 = arith.constant 0 : index
    %c0_146 = arith.constant 0 : index
    %113 = vector.load %arg7[%c1_143, %c2_144, %c0_145, %c0_146] : memref<3x3x128x128xf32, #tpu.memory_space<vmem>>, vector<1x1x128x128xf32>
    %114 = vector.shape_cast %113 : vector<1x1x128x128xf32> to vector<128x128xf32>
    %cst_147 = arith.constant dense<0.000000e+00> : vector<256x128xf32>
    %115 = tpu.matmul %112, %114, %cst_147 {dimension_numbers = #tpu.dot_dimension_numbers<[1], [0], [0], [1], [0, 0, 1, 1], [], []>} : vector<256x128xf32>, vector<128x128xf32>, vector<256x128xf32> -> vector<256x128xf32>
    %116 = arith.addf %110, %115 : vector<256x128xf32>
    %c2_148 = arith.constant 2 : index
    %c0_149 = arith.constant 0 : index
    %c0_150 = arith.constant 0 : index
    %117 = vector.load %arg11[%c2_148, %c0_149, %c0_150] : memref<18x18x128xf32, #tpu.memory_space<vmem>>, vector<16x16x128xf32>
    %118 = vector.shape_cast %117 : vector<16x16x128xf32> to vector<256x128xf32>
    %c2_151 = arith.constant 2 : index
    %c0_152 = arith.constant 0 : index
    %c0_153 = arith.constant 0 : index
    %c0_154 = arith.constant 0 : index
    %119 = vector.load %arg7[%c2_151, %c0_152, %c0_153, %c0_154] : memref<3x3x128x128xf32, #tpu.memory_space<vmem>>, vector<1x1x128x128xf32>
    %120 = vector.shape_cast %119 : vector<1x1x128x128xf32> to vector<128x128xf32>
    %cst_155 = arith.constant dense<0.000000e+00> : vector<256x128xf32>
    %121 = tpu.matmul %118, %120, %cst_155 {dimension_numbers = #tpu.dot_dimension_numbers<[1], [0], [0], [1], [0, 0, 1, 1], [], []>} : vector<256x128xf32>, vector<128x128xf32>, vector<256x128xf32> -> vector<256x128xf32>
    %122 = arith.addf %116, %121 : vector<256x128xf32>
    %c2_156 = arith.constant 2 : index
    %c1_157 = arith.constant 1 : index
    %c0_158 = arith.constant 0 : index
    %123 = vector.load %arg11[%c2_156, %c1_157, %c0_158] : memref<18x18x128xf32, #tpu.memory_space<vmem>>, vector<16x16x128xf32>
    %124 = vector.shape_cast %123 : vector<16x16x128xf32> to vector<256x128xf32>
    %c2_159 = arith.constant 2 : index
    %c1_160 = arith.constant 1 : index
    %c0_161 = arith.constant 0 : index
    %c0_162 = arith.constant 0 : index
    %125 = vector.load %arg7[%c2_159, %c1_160, %c0_161, %c0_162] : memref<3x3x128x128xf32, #tpu.memory_space<vmem>>, vector<1x1x128x128xf32>
    %126 = vector.shape_cast %125 : vector<1x1x128x128xf32> to vector<128x128xf32>
    %cst_163 = arith.constant dense<0.000000e+00> : vector<256x128xf32>
    %127 = tpu.matmul %124, %126, %cst_163 {dimension_numbers = #tpu.dot_dimension_numbers<[1], [0], [0], [1], [0, 0, 1, 1], [], []>} : vector<256x128xf32>, vector<128x128xf32>, vector<256x128xf32> -> vector<256x128xf32>
    %128 = arith.addf %122, %127 : vector<256x128xf32>
    %c2_164 = arith.constant 2 : index
    %c2_165 = arith.constant 2 : index
    %c0_166 = arith.constant 0 : index
    %129 = vector.load %arg11[%c2_164, %c2_165, %c0_166] : memref<18x18x128xf32, #tpu.memory_space<vmem>>, vector<16x16x128xf32>
    %130 = vector.shape_cast %129 : vector<16x16x128xf32> to vector<256x128xf32>
    %c2_167 = arith.constant 2 : index
    %c2_168 = arith.constant 2 : index
    %c0_169 = arith.constant 0 : index
    %c0_170 = arith.constant 0 : index
    %131 = vector.load %arg7[%c2_167, %c2_168, %c0_169, %c0_170] : memref<3x3x128x128xf32, #tpu.memory_space<vmem>>, vector<1x1x128x128xf32>
    %132 = vector.shape_cast %131 : vector<1x1x128x128xf32> to vector<128x128xf32>
    %cst_171 = arith.constant dense<0.000000e+00> : vector<256x128xf32>
    %133 = tpu.matmul %130, %132, %cst_171 {dimension_numbers = #tpu.dot_dimension_numbers<[1], [0], [0], [1], [0, 0, 1, 1], [], []>} : vector<256x128xf32>, vector<128x128xf32>, vector<256x128xf32> -> vector<256x128xf32>
    %134 = arith.addf %128, %133 : vector<256x128xf32>
    %c0_172 = arith.constant 0 : index
    %c0_173 = arith.constant 0 : index
    %135 = vector.load %arg8[%c0_172, %c0_173] : memref<1x128xf32, #tpu.memory_space<vmem>>, vector<1x128xf32>
    %136 = vector.broadcast %135 : vector<1x128xf32> to vector<256x128xf32>
    %137 = arith.addf %134, %136 : vector<256x128xf32>
    %cst_174 = arith.constant 0.000000e+00 : f32
    %138 = vector.broadcast %cst_174 : f32 to vector<256x128xf32>
    %139 = arith.cmpf oge, %137, %138 : vector<256x128xf32>
    %cst_175 = arith.constant 2.000000e-01 : f32
    %140 = vector.broadcast %cst_175 : f32 to vector<256x128xf32>
    %141 = arith.mulf %140, %137 : vector<256x128xf32>
    %142 = arith.select %139, %137, %141 : vector<256x128xi1>, vector<256x128xf32>
    %cst_176 = arith.constant dense<0.000000e+00> : vector<64x128xf32>
    %143 = tpu.matmul %2, %142, %cst_176 {dimension_numbers = #tpu.dot_dimension_numbers<[1], [0], [0], [1], [0, 0, 1, 1], [], []>} : vector<64x256xf32>, vector<256x128xf32>, vector<64x128xf32> -> vector<64x128xf32>
    %144 = arith.addf %143, %9 : vector<64x128xf32>
    %c0_177 = arith.constant 0 : index
    %c0_178 = arith.constant 0 : index
    %c0_179 = arith.constant 0 : index
    %145 = vector.load %arg9[%c0_177, %c0_178, %c0_179] : memref<1x64x128xf32, #tpu.memory_space<vmem>>, vector<1x64x128xf32>
    %146 = vector.shape_cast %145 : vector<1x64x128xf32> to vector<64x128xf32>
    %147 = vector.shape_cast %144 : vector<64x128xf32> to vector<1x64x128xf32>
    tpu.vector_store %arg9[%c0_177, %c0_178, %c0_179], %147 {strides = array<i32>} : memref<1x64x128xf32, #tpu.memory_space<vmem>>, vector<1x64x128xf32>,
    return
  }
  func.func @transform_0(%arg0: i32) -> (i32, i32, i32, i32) {
    %c0_i32 = arith.constant 0 : i32
    %c0_i32_0 = arith.constant 0 : i32
    %c0_i32_1 = arith.constant 0 : i32
    %c0_i32_2 = arith.constant 0 : i32
    return %arg0, %c0_i32, %c0_i32_0, %c0_i32_1 : i32, i32, i32, i32
  }
  func.func @transform_1(%arg0: i32) -> (i32, i32) {
    %c0_i32 = arith.constant 0 : i32
    %c0_i32_0 = arith.constant 0 : i32
    %c0_i32_1 = arith.constant 0 : i32
    return %c0_i32, %c0_i32_0 : i32, i32
  }
  func.func @transform_2(%arg0: i32) -> (i32, i32) {
    %c0_i32 = arith.constant 0 : i32
    %c0_i32_0 = arith.constant 0 : i32
    %c0_i32_1 = arith.constant 0 : i32
    return %c0_i32, %c0_i32_0 : i32, i32
  }
  func.func @transform_3(%arg0: i32) -> (i32, i32) {
    %c0_i32 = arith.constant 0 : i32
    %c0_i32_0 = arith.constant 0 : i32
    %c0_i32_1 = arith.constant 0 : i32
    return %c0_i32, %c0_i32_0 : i32, i32
  }
  func.func @transform_4(%arg0: i32) -> (i32, i32, i32, i32) {
    %c0_i32 = arith.constant 0 : i32
    %c0_i32_0 = arith.constant 0 : i32
    %c0_i32_1 = arith.constant 0 : i32
    %c0_i32_2 = arith.constant 0 : i32
    %c0_i32_3 = arith.constant 0 : i32
    return %c0_i32, %c0_i32_0, %c0_i32_1, %c0_i32_2 : i32, i32, i32, i32
  }
  func.func @transform_5(%arg0: i32) -> (i32, i32) {
    %c0_i32 = arith.constant 0 : i32
    %c0_i32_0 = arith.constant 0 : i32
    %c0_i32_1 = arith.constant 0 : i32
    return %c0_i32, %c0_i32_0 : i32, i32
  }
  func.func @transform_6(%arg0: i32) -> (i32, i32, i32, i32) {
    %c0_i32 = arith.constant 0 : i32
    %c0_i32_0 = arith.constant 0 : i32
    %c0_i32_1 = arith.constant 0 : i32
    %c0_i32_2 = arith.constant 0 : i32
    %c0_i32_3 = arith.constant 0 : i32
    return %c0_i32, %c0_i32_0, %c0_i32_1, %c0_i32_2 : i32, i32, i32, i32
  }
  func.func @transform_7(%arg0: i32) -> (i32, i32) {
    %c0_i32 = arith.constant 0 : i32
    %c0_i32_0 = arith.constant 0 : i32
    %c0_i32_1 = arith.constant 0 : i32
    return %c0_i32, %c0_i32_0 : i32, i32
  }
  func.func @transform_8(%arg0: i32) -> (i32, i32, i32) {
    %c0_i32 = arith.constant 0 : i32
    %c0_i32_0 = arith.constant 0 : i32
    %c0_i32_1 = arith.constant 0 : i32
    return %arg0, %c0_i32, %c0_i32_0 : i32, i32, i32
  }
}

</mosaic_0001>

<bundles_post_ra>
// kernel: res_block_down.1
= control target key start
LH: loop header
LB: loop body
LE: loop exit
PB: predicated region body
PF: predicated region fallthrough
CT: control target
= control target key end

     0   :  { %s13480_s0 = inlined_call_operand.hbm [shape: f32[2,16,16,64], index: 0, kind: input, shape index: {}]   ;;  %s13481_s1 = inlined_call_operand.vmem [shape: f32[64,256], index: 1, kind: input, shape index: {}]   ;;  %s13482_s2 = inlined_call_operand.vmem [shape: f32[64,128], index: 2, kind: input, shape index: {}]   ;;  %s13483_s3 = inlined_call_operand.vmem [shape: f32[1,128], index: 3, kind: input, shape index: {}]   ;;  %s13484_s4 = inlined_call_operand.hbm [shape: f32[3,3,64,128], index: 4, kind: input, shape index: {}]   ;;  %s13485_s5 = inlined_call_operand.vmem [shape: f32[1,128], index: 5, kind: input, shape index: {}]   ;;  %s13486_s6 = inlined_call_operand.hbm [shape: f32[3,3,128,128], index: 6, kind: input, shape index: {}]   ;;  %s13487_s7 = inlined_call_operand.vmem [shape: f32[1,128], index: 7, kind: input, shape index: {}]   ;;  %s13488_s8 = inlined_call_operand.hbm [shape: f32[2,64,128], index: 8, kind: output, shape index: {}]  }
   0x1   :  { %13502 = sst [smem:[#allocation128_spill]] %s13484_s4 }
   0x2   :  { %13503 = sst [smem:[#allocation129_spill]] %s13486_s6 }
   0x3   :  { %13 = vsyncpa [#allocation5], 0 }
   0x4   :  { %15 = vsyncpa [#allocation5 + $0x1], 0 }
   0x5   :  { %16 = vsyncpa [#allocation8], 0 }
   0x6   :  { %17 = vsyncpa [#allocation6], 0 }
   0x7   :  { %19 = vsyncpa [#allocation6 + $0x1], 0  ;;  %s10349_s27 = smov 0   ;;  %s10351_s28 = smov 0  }
   0x8   :  { %s10353_s29 = smov 0   ;;  %s10355_s30 = smov 0  }
   0x9 LB: > { %s10370_s9 = sadd.s32 4294967295, %s10293_s30   ;;  %s7487_s10 = sadd.s32 4294967294, %s10293_s30   ;;  %s10293_s30 = sphi %s10355_s30, %s13834_s30   ;;  %s10289_s29 = sphi %s10353_s29, %s13833_s29   ;;  %s10285_s28 = sphi %s10351_s28, %s13832_s28   ;;  %s10281_s27 = sphi %s10349_s27, %s13831_s27  }
   0xa   : > { %p45_p0 = scmp.ne.s32.totalorder %s10285_s28, %s10281_s27  ;;  %p13491_p1 = scmp.eq.s32.totalorder %s10370_s9, 0 }
   0xb   : > { %p216_p2 = scmp.eq.s32.totalorder %s10370_s9, 1  ;;  %p222_p3 = scmp.eq.s32.totalorder %s7487_s10, 1 }
   0xc   : > { %p10379_p4 = por %p13491_p1, %p45_p0  ;;  %p7488_p5 = scmp.ge.s32.totalorder %s10293_s30, 1 }
   0xd   : > { %p10384_p6 = por %p222_p3, %p45_p0  ;;  %p229_p7 = scmp.lt.s32.totalorder %s10293_s30, 3 }
   0xe   : > { %s13504_s11 = scalar_select %p10379_p4, 1, 0 }
   0xf   : > { %s13505_s12 = scalar_select %p10384_p6, 1, 0 }
  0x10   : > { %p10389_p8 = pnand %p7488_p5, %p229_p7  ;;  %s10295_s14 = smov [#allocation7]  }
  0x11   : > { %s250_s15 = sshll.u32 %s10295_s14, 4  ;;  %s10296_s17 = smov [#allocation9]   ;;  %s251_s15 = int_to_ptr.vmem [resolvable:$true] %s250_s15 }
  0x12   : > { %s13506_s13 = scalar_select %p10389_p8, 1, 0 }
  0x13   : > { %p10062_p9 = pneg %p10389_p8  ;;  %s266_s18 = sshll.u32 %s10296_s17, 4  ;;  %s267_s18 = int_to_ptr.vmem [resolvable:$true] %s266_s18 }
  0x14   : > { %s10156_s19 = scalar_lea.vmem %s251_s15, 9216  ;;  %p10164_p5 = scmp.lt.s32.totalorder %s251_s15, %s251_s15 }
  0x15   : > { %p10398_p11 = pnand %p10062_p9, %p13491_p1  ;;  %p10157_p13 = scmp.ne.s32.totalorder %s251_s15, %s10156_s19 }
  0x16   : > { %p10165_p7 = scmp.lt.s32.totalorder %s10156_s19, %s10156_s19 }
  0x17   : > { %p10147_p12 = pneg %p10398_p11 }
  0x18   : > { %p10166_p10 = por %p10165_p7, %p10164_p5 }
  0x19   : > { %p10159_p0 = pnand %p10157_p13, %p10147_p12 }
  0x1b   : > { %p10160_p3 = pneg %p10159_p0 }
  0x1d   : > { %p10167_p9 = pnand %p10166_p10, %p10160_p3 }
  0x1f   : > { %10170 = shalt.err (!%p10167_p9)
}
  0x20   : > { %s13489_s20 = smov 128   ;;  %s13490_s21 = smov 8  }
  0x21   : > { %s13508_s4 = sld [smem:[#allocation128_spill]]  ;;  %s10182_s24 = scalar_lea.vmem %s267_s18, 18432 }
  0x22   : > { %p10183_p13 = scmp.ne.s32.totalorder %s267_s18, %s10182_s24  ;;  %p10190_p10 = scmp.lt.s32.totalorder %s267_s18, %s267_s18 }
  0x23   : > { %p10191_p3 = scmp.lt.s32.totalorder %s10182_s24, %s10182_s24 }
  0x24   : > { %p10185_p0 = pnand %p10183_p13, %p10147_p12 }
  0x25   : > { %p10192_p7 = por %p10191_p3, %p10190_p10 }
  0x26   : > { %p10186_p5 = pneg %p10185_p0 }
  0x27   : > { %10065 = dma.hbm_to_vmem [thread:$0]  (!%p10398_p11), %s13508_s4, 9216, %s251_s15, [#allocation8], %s13489_s20, %s13489_s20, %s13490_s21  }
  0x28   : > { %p10193_p9 = pnand %p10192_p7, %p10186_p5 }
  0x2a   : > { %10196 = shalt.err (!%p10193_p9)
}
  0x2b   : > { %s13509_s6 = sld [smem:[#allocation129_spill]]  ;;  %s10427_s10 = sadd.s32 1, %s10293_s30  }
  0x2c   : > { %s32_s14 = sadd.s32 1, %s10289_s29  ;;  %s29_s15 = ssub.s32 %s10293_s30, %s10427_s10 }
  0x2d   : > { %p39_p12 = scmp.ne.s32.totalorder %s10289_s29, %s10285_s28  ;;  %p30_p13 = scmp.eq.s32.totalorder %s29_s15, 0 }
  0x2e   : > { %p40_p0 = scmp.eq.s32.totalorder %s10293_s30, 0  ;;  %p10079_p10 = scmp.lt.s32.totalorder %s10293_s30, 2 }
  0x2f   : > { %p10437_p5 = por %p216_p2, %p39_p12  ;;  %s283_s19 = sand.u32 1, %s10289_s29  }
  0x30   : > { %s10443_s17 = scalar_select %p30_p13, %s10289_s29, %s32_s14  }
  0x31   : > { %10068 = dma.hbm_to_vmem [thread:$0]  (!%p10398_p11), %s13509_s6, 18432, %s267_s18, [#allocation8], %s13489_s20, %s13489_s20, %s13490_s21  }
  0x32   : > { %s13510_s16 = scalar_select %p10437_p5, 1, 0 }
  0x33   : > { %p41_p3 = por %p40_p0, %p39_p12  ;;  %s7492_s22 = sshll.u32 %s283_s19, 8 }
  0x34   : > { %s7804_s18 = sshll.u32 %s10293_s30, 12  ;;  %s287_s26 = scalar_lea.vmem [#allocation4], %s7492_s22 }
  0x35   : > { %s10450_s25 = scalar_lea.hbm %s13480_s0, %s7804_s18  ;;  %s294_s15 = sshll.u32 %s287_s26, 4  ;;  %s10452_s15 = int_to_ptr.vmem [resolvable:$true] %s294_s15 }
  0x36   : > { %p10454_p2 = pnand %p10079_p10, %p41_p3  ;;  %s10458_s14 = scalar_lea.sflag [#allocation5], %s283_s19 }
  0x37   : > { %s10197_s21 = scalar_lea.hbm %s10450_s25, 4096  ;;  %s10202_s22 = scalar_lea.hbm %s13480_s0, 8192 }
  0x38   : > { %p10198_p11 = scmp.ne.s32.totalorder %s10450_s25, %s10197_s21  ;;  %p10199_p7 = pneg %p10454_p2 }
  0x39   : > { %p10203_p13 = scmp.lt.s32.totalorder %s10450_s25, %s13480_s0  ;;  %p10204_p0 = scmp.lt.s32.totalorder %s10202_s22, %s10197_s21 }
  0x3a   : > { %p10200_p9 = pnand %p10199_p7, %p10198_p11 }
  0x3b   : > { %p10205_p10 = por %p10204_p0, %p10203_p13 }
  0x3c   : > { %p10201_p12 = pneg %p10200_p9 }
  0x3e   : > { %p10206_p3 = pnand %p10205_p10, %p10201_p12 }
  0x40   : > { %10209 = shalt.err (!%p10206_p3)
}
  0x41   : > { %s10210_s19 = scalar_lea.vmem %s10452_s15, 4096  ;;  %s10299_s4 = smov [#allocation4]  }
  0x42   : > { %p10211_p1 = scmp.ne.s32.totalorder %s10452_s15, %s10210_s19  ;;  %s10215_s6 = sshll.u32 %s10299_s4, 4  ;;  %s10216_s6 = int_to_ptr.vmem [resolvable:$false] %s10215_s6 }
  0x43   : > { %s10217_s18 = scalar_lea.vmem %s10216_s6, 8192  ;;  %p10218_p9 = scmp.lt.s32.totalorder %s10452_s15, %s10216_s6 }
  0x44   : > { %p10213_p6 = pnand %p10211_p1, %p10199_p7  ;;  %p10219_p5 = scmp.lt.s32.totalorder %s10217_s18, %s10210_s19 }
  0x46   : > { %p10214_p11 = pneg %p10213_p6  ;;  %p10220_p4 = por %p10219_p5, %p10218_p9 }
  0x48   : > { %p10221_p8 = pnand %p10220_p4, %p10214_p11 }
  0x4a   : > { %10224 = shalt.err (!%p10221_p8)
}
  0x4b   : > { %s13512_s21 = smov 8   ;;  %s13513_s23 = smov 128  }
  0x4c   : > { %10072 = dma.hbm_to_vmem [thread:$0]  (!%p10454_p2), %s10450_s25, 4096, %s10452_s15, %s10458_s14, %s13513_s23, %s13513_s23, %s13512_s21  }
  0x4d   : > { %p13514_p1 = scmp.ne.s32.totalorder %s13506_s13, 0 }
  0x4f   : > { %306 = sbr.rel (%p13514_p1) target bundleno = 1601 (0x641), region = 52 }
  0x54   : > { %s10485_s4 = sand.u32 1, %s10285_s28   ;;  %p13515_p4 = scmp.ne.s32.totalorder %s13504_s11, 0 }
  0x55   : > { %s7496_s6 = sshll.u32 %s10485_s4, 8  ;;  %s309_s22 = scalar_lea.sflag [#allocation5], %s10485_s4 }
  0x56   : > { %s10489_s24 = scalar_lea.vmem [#allocation4], %s7496_s6 }
  0x57   : > { %10268 = dma.done.wait (%p13515_p4), %s309_s22, 4096  }
  0x58   : > { %10270 = vsyncadd (%p13515_p4), %s309_s22, 4294963200  ;;  %p13516_p6 = scmp.eq.s32.totalorder %s10370_s9, 0 }
  0x5a   : > { %10272 = dma.done.wait (%p13516_p6), [#allocation8], 27648   ;;  %p13517_p8 = pmov %p13516_p6 }
  0x5b   : > { %vm521_vm0 = vcmask 523264   ;;  %vm653_vm1 = vcmask 517120   ;;  %v10300_v0 = vmov 0.0   ;;  %v384_v1 = vld [vmem:[%s10489_s24 + $0xf8] sm:$0xff]  ;;  %v383_v3 = vld [vmem:[%s10489_s24 + $0xf0] sm:$0xff]  ;;  %v382_v5 = vld [vmem:[%s10489_s24 + $0xe8] sm:$0xff] }
  0x5c   : > { %10274 = vsyncadd (%p13517_p8), [#allocation8], 4294939648  ;;  %701 = vst.msk [vmem:[#allocation2 + $0x188] sm:$0xff] %vm521_vm0, %v10300_v0  ;;  %v368_v2 = vld [vmem:[%s10489_s24 + $0x78] sm:$0xff]  ;;  %7806 = vmatprep.subr.mxu0 %v384_v1  ;;  %v367_v4 = vld [vmem:[%s10489_s24 + $0x70] sm:$0xff]  ;;  %s7499_s11 = sshll.u32 %s10485_s4, 6 }
  0x5d   : > { %702 = vst.msk [vmem:[#allocation2 + $0x190] sm:$0x3] %vm653_vm1, %v10300_v0  ;;  %654 = vst.msk [vmem:[#allocation2 + $0x10] sm:$0x3] %vm653_vm1, %v10300_v0  ;;  %v366_v6 = vld [vmem:[%s10489_s24 + $0x68] sm:$0xff]  ;;  %7807 = vmatpush3.msra.mxu0 %v368_v2  ;;  %v381_v7 = vld [vmem:[%s10489_s24 + $0xe0] sm:$0xff] }
  0x5e   : > { %651 = vst.msk [vmem:[#allocation2] sm:$0xff] %vm521_vm0, %v10300_v0  ;;  %652 = vst.msk [vmem:[#allocation2 + $0x8] sm:$0xff] %vm521_vm0, %v10300_v0  ;;  %v365_v8 = vld [vmem:[%s10489_s24 + $0x60] sm:$0xff]  ;;  %v380_v9 = vld [vmem:[%s10489_s24 + $0xd8] sm:$0xff]  ;;  %7808 = vmatprep.subr.mxu0 %v383_v3  ;;  %s13414_s25 = scalar_lea.vmem [#allocation10], %s7499_s11  ;;  %s7805_s14 = sshll.u32 %s10370_s9, 10 }
  0x5f   : > { %655 = vst.msk [vmem:[#allocation2 + $0x18] sm:$0xff] %vm521_vm0, %v10300_v0  ;;  %656 = vst.msk [vmem:[#allocation2 + $0x20] sm:$0xff] %vm521_vm0, %v10300_v0  ;;  %v364_v10 = vld [vmem:[%s10489_s24 + $0x58] sm:$0xff]  ;;  %v379_v11 = vld [vmem:[%s10489_s24 + $0xd0] sm:$0xff]  ;;  %7809 = vmatpush3.msra.mxu0 %v367_v4  ;;  %s7395_s15 = sshll.u32 %s13414_s25, 4  ;;  %s13436_s18 = scalar_lea.hbm %s13488_s8, %s7805_s14  ;;  %s13430_s15 = int_to_ptr.vmem [resolvable:$true] %s7395_s15 }
  0x60   : > { %657 = vst.msk [vmem:[#allocation2 + $0x28] sm:$0x3] %vm653_vm1, %v10300_v0  ;;  %660 = vst.msk [vmem:[#allocation2 + $0x40] sm:$0x3] %vm653_vm1, %v10300_v0  ;;  %v363_v12 = vld [vmem:[%s10489_s24 + $0x50] sm:$0xff]  ;;  %v378_v13 = vld [vmem:[%s10489_s24 + $0xc8] sm:$0xff]  ;;  %7810 = vmatprep.subr.mxu0 %v382_v5 }
  0x61   : > { %658 = vst.msk [vmem:[#allocation2 + $0x30] sm:$0xff] %vm521_vm0, %v10300_v0  ;;  %659 = vst.msk [vmem:[#allocation2 + $0x38] sm:$0xff] %vm521_vm0, %v10300_v0  ;;  %v362_v14 = vld [vmem:[%s10489_s24 + $0x48] sm:$0xff]  ;;  %v377_v15 = vld [vmem:[%s10489_s24 + $0xc0] sm:$0xff]  ;;  %7811 = vmatpush3.msra.mxu0 %v366_v6  ;;  %s7382_s21 = scalar_lea.sflag [#allocation6], %s10485_s4  ;;  %s10225_s23 = scalar_lea.vmem %s13430_s15, 1024 }
  0x62   : > { %661 = vst.msk [vmem:[#allocation2 + $0x48] sm:$0xff] %vm521_vm0, %v10300_v0  ;;  %662 = vst.msk [vmem:[#allocation2 + $0x50] sm:$0xff] %vm521_vm0, %v10300_v0  ;;  %v361_v16 = vld [vmem:[%s10489_s24 + $0x40] sm:$0xff]  ;;  %v376_v17 = vld [vmem:[%s10489_s24 + $0xb8] sm:$0xff]  ;;  %7812 = vmatprep.subr.mxu0 %v381_v7  ;;  %p10226_p5 = scmp.ne.s32.totalorder %s13430_s15, %s10225_s23  ;;  %p13828_p2 = scmp.ne.s32.totalorder %s13510_s16, 0 }
  0x63   : > { %663 = vst.msk [vmem:[#allocation2 + $0x58] sm:$0x3] %vm653_vm1, %v10300_v0  ;;  %666 = vst.msk [vmem:[#allocation2 + $0x70] sm:$0x3] %vm653_vm1, %v10300_v0  ;;  %v360_v18 = vld [vmem:[%s10489_s24 + $0x38] sm:$0xff]  ;;  %v375_v19 = vld [vmem:[%s10489_s24 + $0xb0] sm:$0xff]  ;;  %7813 = vmatpush3.msra.mxu0 %v365_v8 }
  0x64   : > { %664 = vst.msk [vmem:[#allocation2 + $0x60] sm:$0xff] %vm521_vm0, %v10300_v0  ;;  %665 = vst.msk [vmem:[#allocation2 + $0x68] sm:$0xff] %vm521_vm0, %v10300_v0  ;;  %v359_v20 = vld [vmem:[%s10489_s24 + $0x30] sm:$0xff]  ;;  %v374_v21 = vld [vmem:[%s10489_s24 + $0xa8] sm:$0xff]  ;;  %7814 = vmatprep.subr.mxu0 %v380_v9  ;;  %p10227_p7 = pnand %p10226_p5, %p13828_p2  ;;  %s10301_s9 = smov [#allocation10]  }
  0x65   : > { %667 = vst.msk [vmem:[#allocation2 + $0x78] sm:$0xff] %vm521_vm0, %v10300_v0  ;;  %668 = vst.msk [vmem:[#allocation2 + $0x80] sm:$0xff] %vm521_vm0, %v10300_v0  ;;  %v358_v22 = vld [vmem:[%s10489_s24 + $0x28] sm:$0xff]  ;;  %v373_v23 = vld [vmem:[%s10489_s24 + $0xa0] sm:$0xff]  ;;  %7815 = vmatpush3.msra.mxu0 %v364_v10  ;;  %s10229_s6 = sshll.u32 %s10301_s9, 4  ;;  %s10230_s6 = int_to_ptr.vmem [resolvable:$false] %s10229_s6 }
  0x66   : > { %669 = vst.msk [vmem:[#allocation2 + $0x88] sm:$0x3] %vm653_vm1, %v10300_v0  ;;  %672 = vst.msk [vmem:[#allocation2 + $0xa0] sm:$0x3] %vm653_vm1, %v10300_v0  ;;  %v357_v24 = vld [vmem:[%s10489_s24 + $0x20] sm:$0xff]  ;;  %v372_v25 = vld [vmem:[%s10489_s24 + $0x98] sm:$0xff]  ;;  %7816 = vmatprep.subr.mxu0 %v379_v11  ;;  %p10228_p12 = pneg %p10227_p7  ;;  %p10232_p13 = scmp.lt.s32.totalorder %s13430_s15, %s10230_s6 }
  0x67   : > { %670 = vst.msk [vmem:[#allocation2 + $0x90] sm:$0xff] %vm521_vm0, %v10300_v0  ;;  %671 = vst.msk [vmem:[#allocation2 + $0x98] sm:$0xff] %vm521_vm0, %v10300_v0  ;;  %v356_v26 = vld [vmem:[%s10489_s24 + $0x18] sm:$0xff]  ;;  %v371_v27 = vld [vmem:[%s10489_s24 + $0x90] sm:$0xff]  ;;  %7817 = vmatpush3.msra.mxu0 %v363_v12  ;;  %s10231_s22 = scalar_lea.vmem %s10230_s6, 2048 }
  0x68   : > { %673 = vst.msk [vmem:[#allocation2 + $0xa8] sm:$0xff] %vm521_vm0, %v10300_v0  ;;  %674 = vst.msk [vmem:[#allocation2 + $0xb0] sm:$0xff] %vm521_vm0, %v10300_v0  ;;  %v355_v28 = vld [vmem:[%s10489_s24 + $0x10] sm:$0xff]  ;;  %v370_v29 = vld [vmem:[%s10489_s24 + $0x88] sm:$0xff]  ;;  %7818 = vmatprep.subr.mxu0 %v378_v13  ;;  %p10233_p0 = scmp.lt.s32.totalorder %s10231_s22, %s10225_s23 }
  0x69   : > { %675 = vst.msk [vmem:[#allocation2 + $0xb8] sm:$0x3] %vm653_vm1, %v10300_v0  ;;  %678 = vst.msk [vmem:[#allocation2 + $0xd0] sm:$0x3] %vm653_vm1, %v10300_v0  ;;  %v354_v30 = vld [vmem:[%s10489_s24 + $0x8] sm:$0xff]  ;;  %v369_v31 = vld [vmem:[%s10489_s24 + $0x80] sm:$0xff]  ;;  %7819 = vmatpush3.msra.mxu0 %v362_v14 }
  0x6a   : > { %676 = vst.msk [vmem:[#allocation2 + $0xc0] sm:$0xff] %vm521_vm0, %v10300_v0  ;;  %677 = vst.msk [vmem:[#allocation2 + $0xc8] sm:$0xff] %vm521_vm0, %v10300_v0  ;;  %v353_v32 = vld [vmem:[%s10489_s24] sm:$0xff]  ;;  %v386_v33 = vld [vmem:[%s13481_s1 + $0x8] sm:$0xff]  ;;  %7820 = vmatprep.subr.mxu0 %v377_v15  ;;  %p10234_p10 = por %p10233_p0, %p10232_p13 }
  0x6b   : > { %679 = vst.msk [vmem:[#allocation2 + $0xd8] sm:$0xff] %vm521_vm0, %v10300_v0  ;;  %680 = vst.msk [vmem:[#allocation2 + $0xe0] sm:$0xff] %vm521_vm0, %v10300_v0  ;;  %465 = vmatprep.mubr.f32.mxu0 %v386_v33  ;;  %7821 = vmatpush3.msra.mxu0 %v361_v16  ;;  %v513_v34 = vld [vmem:[%s13482_s2 + $0x38] sm:$0xff]  ;;  %v512_v35 = vld [vmem:[%s13482_s2 + $0x30] sm:$0xff] }
  0x6c   : > { %681 = vst.msk [vmem:[#allocation2 + $0xe8] sm:$0x3] %vm653_vm1, %v10300_v0  ;;  %684 = vst.msk [vmem:[#allocation2 + $0x100] sm:$0x3] %vm653_vm1, %v10300_v0  ;;  %7822 = vmatprep.subr.mxu0 %v376_v17  ;;  %8726 = vmatprep.subr.mxu1 %v513_v34  ;;  %v511_v36 = vld [vmem:[%s13482_s2 + $0x28] sm:$0xff]  ;;  %v510_v37 = vld [vmem:[%s13482_s2 + $0x20] sm:$0xff]  ;;  %p10235_p3 = pnand %p10234_p10, %p10228_p12 }
  0x6d   : > { %682 = vst.msk [vmem:[#allocation2 + $0xf0] sm:$0xff] %vm521_vm0, %v10300_v0  ;;  %683 = vst.msk [vmem:[#allocation2 + $0xf8] sm:$0xff] %vm521_vm0, %v10300_v0  ;;  %7823 = vmatpush3.msra.mxu0 %v360_v18  ;;  %8727 = vmatpush3.msra.mxu1 %v513_v34  ;;  %v385_v38 = vld [vmem:[%s13481_s1] sm:$0xff]  ;;  %v388_v39 = vld [vmem:[%s13481_s1 + $0x18] sm:$0xff] }
  0x6e   : > { %685 = vst.msk [vmem:[#allocation2 + $0x108] sm:$0xff] %vm521_vm0, %v10300_v0  ;;  %686 = vst.msk [vmem:[#allocation2 + $0x110] sm:$0xff] %vm521_vm0, %v10300_v0  ;;  %7824 = vmatprep.subr.mxu0 %v375_v19  ;;  %8728 = vmatprep.subr.mxu1 %v512_v35  ;;  %v387_v40 = vld [vmem:[%s13481_s1 + $0x10] sm:$0xff]  ;;  %v390_v41 = vld [vmem:[%s13481_s1 + $0x28] sm:$0xff] }
  0x6f   : > { %687 = vst.msk [vmem:[#allocation2 + $0x118] sm:$0x3] %vm653_vm1, %v10300_v0  ;;  %690 = vst.msk [vmem:[#allocation2 + $0x130] sm:$0x3] %vm653_vm1, %v10300_v0  ;;  %7825 = vmatpush3.msra.mxu0 %v359_v20  ;;  %8729 = vmatpush3.msra.mxu1 %v512_v35  ;;  %v389_v42 = vld [vmem:[%s13481_s1 + $0x20] sm:$0xff]  ;;  %v392_v43 = vld [vmem:[%s13481_s1 + $0x38] sm:$0xff] }
  0x70   : > { %688 = vst.msk [vmem:[#allocation2 + $0x120] sm:$0xff] %vm521_vm0, %v10300_v0  ;;  %689 = vst.msk [vmem:[#allocation2 + $0x128] sm:$0xff] %vm521_vm0, %v10300_v0  ;;  %7826 = vmatprep.subr.mxu0 %v374_v21  ;;  %8730 = vmatprep.subr.mxu1 %v511_v36  ;;  %v391_v44 = vld [vmem:[%s13481_s1 + $0x30] sm:$0xff]  ;;  %v394_v45 = vld [vmem:[%s13481_s1 + $0x48] sm:$0xff] }
  0x71   : > { %691 = vst.msk [vmem:[#allocation2 + $0x138] sm:$0xff] %vm521_vm0, %v10300_v0  ;;  %692 = vst.msk [vmem:[#allocation2 + $0x140] sm:$0xff] %vm521_vm0, %v10300_v0  ;;  %7827 = vmatpush3.msra.mxu0 %v358_v22  ;;  %8731 = vmatpush3.msra.mxu1 %v511_v36  ;;  %v393_v46 = vld [vmem:[%s13481_s1 + $0x40] sm:$0xff]  ;;  %v396_v47 = vld [vmem:[%s13481_s1 + $0x58] sm:$0xff] }
  0x72   : > { %693 = vst.msk [vmem:[#allocation2 + $0x148] sm:$0x3] %vm653_vm1, %v10300_v0  ;;  %696 = vst.msk [vmem:[#allocation2 + $0x160] sm:$0x3] %vm653_vm1, %v10300_v0  ;;  %7828 = vmatprep.subr.mxu0 %v373_v23  ;;  %8732 = vmatprep.subr.mxu1 %v510_v37  ;;  %v395_v48 = vld [vmem:[%s13481_s1 + $0x50] sm:$0xff]  ;;  %v398_v49 = vld [vmem:[%s13481_s1 + $0x68] sm:$0xff] }
  0x73   : > { %694 = vst.msk [vmem:[#allocation2 + $0x150] sm:$0xff] %vm521_vm0, %v10300_v0  ;;  %695 = vst.msk [vmem:[#allocation2 + $0x158] sm:$0xff] %vm521_vm0, %v10300_v0  ;;  %7829 = vmatpush3.msra.mxu0 %v357_v24  ;;  %8733 = vmatpush3.msra.mxu1 %v510_v37  ;;  %v397_v50 = vld [vmem:[%s13481_s1 + $0x60] sm:$0xff]  ;;  %v400_v51 = vld [vmem:[%s13481_s1 + $0x78] sm:$0xff] }
  0x74   : > { %697 = vst.msk [vmem:[#allocation2 + $0x168] sm:$0xff] %vm521_vm0, %v10300_v0  ;;  %698 = vst.msk [vmem:[#allocation2 + $0x170] sm:$0xff] %vm521_vm0, %v10300_v0  ;;  %7830 = vmatprep.subr.mxu0 %v372_v25  ;;  %v399_v52 = vld [vmem:[%s13481_s1 + $0x70] sm:$0xff]  ;;  %v509_v53 = vld [vmem:[%s13482_s2 + $0x18] sm:$0xff] }
  0x75   : > { %699 = vst.msk [vmem:[#allocation2 + $0x178] sm:$0x3] %vm653_vm1, %v10300_v0  ;;  %705 = vst.msk [vmem:[#allocation2 + $0x1a8] sm:$0x3] %vm653_vm1, %v10300_v0  ;;  %7831 = vmatpush3.msra.mxu0 %v356_v26  ;;  %8734 = vmatprep.subr.mxu1 %v509_v53  ;;  %v508_v54 = vld [vmem:[%s13482_s2 + $0x10] sm:$0xff]  ;;  %v507_v55 = vld [vmem:[%s13482_s2 + $0x8] sm:$0xff] }
  0x76   : > { %700 = vst.msk [vmem:[#allocation2 + $0x180] sm:$0xff] %vm521_vm0, %v10300_v0  ;;  %703 = vst.msk [vmem:[#allocation2 + $0x198] sm:$0xff] %vm521_vm0, %v10300_v0  ;;  %7832 = vmatprep.subr.mxu0 %v371_v27  ;;  %8735 = vmatpush3.msra.mxu1 %v509_v53  ;;  %v506_v56 = vld [vmem:[%s13482_s2] sm:$0xff]  ;;  %v10797_v57 = vld [vmem:[#allocation7 + $0x78] sm:$0xff] }
  0x77   : > { %704 = vst.msk [vmem:[#allocation2 + $0x1a0] sm:$0xff] %vm521_vm0, %v10300_v0  ;;  %4356 = vst [vmem:[#allocation3] sm:$0xff] %v10300_v0  ;;  %7833 = vmatpush3.msra.mxu0 %v355_v28  ;;  %8736 = vmatprep.subr.mxu1 %v508_v54  ;;  %v778_v58 = vld [vmem:[#allocation7 + $0x38] sm:$0xff]  ;;  %v777_v59 = vld [vmem:[#allocation7 + $0x30] sm:$0xff] }
  0x78   : > { %4357 = vst [vmem:[#allocation3 + $0x8] sm:$0xff] %v10300_v0  ;;  %4358 = vst [vmem:[#allocation3 + $0x10] sm:$0x3] %v10300_v0  ;;  %7834 = vmatprep.subr.mxu0 %v370_v29  ;;  %8737 = vmatpush3.msra.mxu1 %v508_v54  ;;  %v776_v60 = vld [vmem:[#allocation7 + $0x28] sm:$0xff]  ;;  %v775_v61 = vld [vmem:[#allocation7 + $0x20] sm:$0xff] }
  0x79   : > { %4359 = vst [vmem:[#allocation3 + $0x18] sm:$0xff] %v10300_v0  ;;  %4360 = vst [vmem:[#allocation3 + $0x20] sm:$0xff] %v10300_v0  ;;  %7835 = vmatpush3.msra.mxu0 %v354_v30  ;;  %8738 = vmatprep.subr.mxu1 %v507_v55  ;;  %v774_v62 = vld [vmem:[#allocation7 + $0x18] sm:$0xff]  ;;  %v773_v63 = vld [vmem:[#allocation7 + $0x10] sm:$0xff] }
  0x7a   : > { %4361 = vst [vmem:[#allocation3 + $0x28] sm:$0x3] %v10300_v0  ;;  %4362 = vst [vmem:[#allocation3 + $0x30] sm:$0xff] %v10300_v0  ;;  %7836 = vmatprep.subr.mxu0 %v369_v31  ;;  %8739 = vmatpush3.msra.mxu1 %v507_v55  ;;  %v1893_v35 = vld [vmem:[#allocation7 + $0xe0] sm:$0xff]  ;;  %v1892_v36 = vld [vmem:[#allocation7 + $0xd8] sm:$0xff] }
  0x7b   : > { %4363 = vst [vmem:[#allocation3 + $0x38] sm:$0xff] %v10300_v0  ;;  %4364 = vst [vmem:[#allocation3 + $0x40] sm:$0x3] %v10300_v0  ;;  %7837 = vmatpush3.msra.mxu0 %v353_v32  ;;  %8740 = vmatprep.subr.mxu1 %v506_v56  ;;  %v816_v54 = vld [vmem:[#allocation7 + $0x60] sm:$0xff] }
  0x7c   : > { %4365 = vst [vmem:[#allocation3 + $0x48] sm:$0xff] %v10300_v0  ;;  %4366 = vst [vmem:[#allocation3 + $0x50] sm:$0xff] %v10300_v0  ;;  %466 = vmatmul.mubr.f32.vlgmr.msra.gmra.mxu0 %v385_v38  ;;  %8741 = vmatpush3.msra.mxu1 %v506_v56  ;;  %v815_v56 = vld [vmem:[#allocation7 + $0x58] sm:$0xff] }
  0x7d   : > { %4367 = vst [vmem:[#allocation3 + $0x58] sm:$0x3] %v10300_v0  ;;  %4368 = vst [vmem:[#allocation3 + $0x60] sm:$0xff] %v10300_v0  ;;  %470 = vmatprep.mubr.f32.mxu0 %v388_v39  ;;  %8754 = vmatprep.subr.mxu1 %v10797_v57  ;;  %v1891_v39 = vld [vmem:[#allocation7 + $0xd0] sm:$0xff] }
  0x7e   : > { %4369 = vst [vmem:[#allocation3 + $0x68] sm:$0xff] %v10300_v0  ;;  %4370 = vst [vmem:[#allocation3 + $0x70] sm:$0x3] %v10300_v0  ;;  %8818 = vmatprep.subr.mxu0 %v778_v58 }
  0x7f   : > { %4371 = vst [vmem:[#allocation3 + $0x78] sm:$0xff] %v10300_v0  ;;  %4372 = vst [vmem:[#allocation3 + $0x80] sm:$0xff] %v10300_v0  ;;  %8819 = vmatpush3.msra.mxu0 %v778_v58 }
  0x80   : > { %4373 = vst [vmem:[#allocation3 + $0x88] sm:$0x3] %v10300_v0  ;;  %4374 = vst [vmem:[#allocation3 + $0x90] sm:$0xff] %v10300_v0  ;;  %471 = vmatmul.mubr.f32.gmra.mxu0 %v387_v40  ;;  %8820 = vmatprep.subr.mxu0 %v777_v59  ;;  %v1890_v40 = vld [vmem:[#allocation7 + $0xc8] sm:$0xff] }
  0x81   : > { %4375 = vst [vmem:[#allocation3 + $0x98] sm:$0xff] %v10300_v0  ;;  %4376 = vst [vmem:[#allocation3 + $0xa0] sm:$0x3] %v10300_v0  ;;  %475 = vmatprep.mubr.f32.mxu0 %v390_v41  ;;  %8821 = vmatpush3.msra.mxu0 %v777_v59  ;;  %v1889_v41 = vld [vmem:[#allocation7 + $0xc0] sm:$0xff]  ;;  %v814_v59 = vld [vmem:[#allocation7 + $0x50] sm:$0xff] }
  0x82   : > { %4377 = vst [vmem:[#allocation3 + $0xa8] sm:$0xff] %v10300_v0  ;;  %4378 = vst [vmem:[#allocation3 + $0xb0] sm:$0xff] %v10300_v0  ;;  %8822 = vmatprep.subr.mxu0 %v776_v60 }
  0x83   : > { %4379 = vst [vmem:[#allocation3 + $0xb8] sm:$0x3] %v10300_v0  ;;  %4380 = vst [vmem:[#allocation3 + $0xc0] sm:$0xff] %v10300_v0  ;;  %8823 = vmatpush3.msra.mxu0 %v776_v60 }
  0x84   : > { %4381 = vst [vmem:[#allocation3 + $0xc8] sm:$0xff] %v10300_v0  ;;  %4382 = vst [vmem:[#allocation3 + $0xd0] sm:$0x3] %v10300_v0  ;;  %476 = vmatmul.mubr.f32.gmra.mxu0 %v389_v42  ;;  %8824 = vmatprep.subr.mxu0 %v775_v61 }
  0x85   : > { %4383 = vst [vmem:[#allocation3 + $0xd8] sm:$0xff] %v10300_v0  ;;  %4384 = vst [vmem:[#allocation3 + $0xe0] sm:$0xff] %v10300_v0  ;;  %480 = vmatprep.mubr.f32.mxu0 %v392_v43  ;;  %8825 = vmatpush3.msra.mxu0 %v775_v61  ;;  %v813_v61 = vld [vmem:[#allocation7 + $0x48] sm:$0xff] }
  0x86   : > { %4385 = vst [vmem:[#allocation3 + $0xe8] sm:$0x3] %v10300_v0  ;;  %4386 = vst [vmem:[#allocation3 + $0xf0] sm:$0xff] %v10300_v0  ;;  %8826 = vmatprep.subr.mxu0 %v774_v62 }
  0x87   : > { %4387 = vst [vmem:[#allocation3 + $0xf8] sm:$0xff] %v10300_v0  ;;  %4388 = vst [vmem:[#allocation3 + $0x100] sm:$0x3] %v10300_v0  ;;  %8827 = vmatpush3.msra.mxu0 %v774_v62 }
  0x88   : > { %4389 = vst [vmem:[#allocation3 + $0x108] sm:$0xff] %v10300_v0  ;;  %4390 = vst [vmem:[#allocation3 + $0x110] sm:$0xff] %v10300_v0  ;;  %481 = vmatmul.mubr.f32.gmra.mxu0 %v391_v44  ;;  %8828 = vmatprep.subr.mxu0 %v773_v63 }
  0x89   : > { %4391 = vst [vmem:[#allocation3 + $0x118] sm:$0x3] %v10300_v0  ;;  %4392 = vst [vmem:[#allocation3 + $0x120] sm:$0xff] %v10300_v0  ;;  %485 = vmatprep.mubr.f32.mxu0 %v394_v45  ;;  %8829 = vmatpush3.msra.mxu0 %v773_v63 }
  0x8a   : > { %4393 = vst [vmem:[#allocation3 + $0x128] sm:$0xff] %v10300_v0  ;;  %4394 = vst [vmem:[#allocation3 + $0x130] sm:$0x3] %v10300_v0 }
  0x8b   : > { %4395 = vst [vmem:[#allocation3 + $0x138] sm:$0xff] %v10300_v0  ;;  %4396 = vst [vmem:[#allocation3 + $0x140] sm:$0xff] %v10300_v0 }
  0x8c   : > { %4397 = vst [vmem:[#allocation3 + $0x148] sm:$0x3] %v10300_v0  ;;  %4398 = vst [vmem:[#allocation3 + $0x150] sm:$0xff] %v10300_v0  ;;  %486 = vmatmul.mubr.f32.gmra.mxu0 %v393_v46 }
  0x8d   : > { %4399 = vst [vmem:[#allocation3 + $0x158] sm:$0xff] %v10300_v0  ;;  %4400 = vst [vmem:[#allocation3 + $0x160] sm:$0x3] %v10300_v0  ;;  %490 = vmatprep.mubr.f32.mxu0 %v396_v47 }
  0x8e   : > { %4401 = vst [vmem:[#allocation3 + $0x168] sm:$0xff] %v10300_v0  ;;  %4402 = vst [vmem:[#allocation3 + $0x170] sm:$0xff] %v10300_v0 }
  0x8f   : > { %4403 = vst [vmem:[#allocation3 + $0x178] sm:$0x3] %v10300_v0  ;;  %4404 = vst [vmem:[#allocation3 + $0x180] sm:$0xff] %v10300_v0 }
  0x90   : > { %4405 = vst [vmem:[#allocation3 + $0x188] sm:$0xff] %v10300_v0  ;;  %4406 = vst [vmem:[#allocation3 + $0x190] sm:$0x3] %v10300_v0  ;;  %491 = vmatmul.mubr.f32.gmra.mxu0 %v395_v48 }
  0x91   : > { %4407 = vst [vmem:[#allocation3 + $0x198] sm:$0xff] %v10300_v0  ;;  %4408 = vst [vmem:[#allocation3 + $0x1a0] sm:$0xff] %v10300_v0  ;;  %495 = vmatprep.mubr.f32.mxu0 %v398_v49  ;;  %v818_v49 = vld [vmem:[#allocation7 + $0x70] sm:$0xff] }
  0x92   : > { %4409 = vst [vmem:[#allocation3 + $0x1a8] sm:$0x3] %v10300_v0  ;;  %738 = vst.msk [vmem:[#allocation2 + $0x189] sm:$0xff] %vm521_vm0, %v384_v1  ;;  %v772_v0 = vld [vmem:[#allocation7 + $0x8] sm:$0xff]  ;;  %v771_v1 = vld [vmem:[#allocation7] sm:$0xff] }
  0x93   : > { %722 = vst.msk [vmem:[#allocation2 + $0xc9] sm:$0xff] %vm521_vm0, %v368_v2  ;;  %737 = vst.msk [vmem:[#allocation2 + $0x181] sm:$0xff] %vm521_vm0, %v383_v3  ;;  %8830 = vmatprep.subr.mxu0 %v772_v0  ;;  %v739_v2 = vld [vmem:[#allocation2] sm:$0xff]  ;;  %v740_v3 = vld [vmem:[#allocation2 + $0x8] sm:$0xff] }
  0x94   : > { %721 = vst.msk [vmem:[#allocation2 + $0xc1] sm:$0xff] %vm521_vm0, %v367_v4  ;;  %736 = vst.msk [vmem:[#allocation2 + $0x171] sm:$0xff] %vm521_vm0, %v382_v5  ;;  %496 = vmatmul.mubr.f32.gmra.mxu0 %v397_v50 }
  0x95   : > { %720 = vst.msk [vmem:[#allocation2 + $0xb1] sm:$0xff] %vm521_vm0, %v366_v6  ;;  %735 = vst.msk [vmem:[#allocation2 + $0x169] sm:$0xff] %vm521_vm0, %v381_v7  ;;  %500 = vmatprep.mubr.f32.mxu0 %v400_v51  ;;  %8831 = vmatpush3.msra.mxu0 %v772_v0  ;;  %v817_v51 = vld [vmem:[#allocation7 + $0x68] sm:$0xff]  ;;  %v812_v0 = vld [vmem:[#allocation7 + $0x40] sm:$0xff] }
  0x96   : > { %719 = vst.msk [vmem:[#allocation2 + $0xa9] sm:$0xff] %vm521_vm0, %v365_v8  ;;  %734 = vst.msk [vmem:[#allocation2 + $0x159] sm:$0xff] %vm521_vm0, %v380_v9  ;;  %8832 = vmatprep.subr.mxu0 %v771_v1 }
  0x97   : > { %718 = vst.msk [vmem:[#allocation2 + $0x99] sm:$0xff] %vm521_vm0, %v364_v10  ;;  %733 = vst.msk [vmem:[#allocation2 + $0x151] sm:$0xff] %vm521_vm0, %v379_v11  ;;  %8833 = vmatpush3.msra.mxu0 %v771_v1  ;;  %v2684_v1 = vld [vmem:[#allocation7 + $0x178] sm:$0xff] }
  0x98   : > { %717 = vst.msk [vmem:[#allocation2 + $0x91] sm:$0xff] %vm521_vm0, %v363_v12  ;;  %732 = vst.msk [vmem:[#allocation2 + $0x141] sm:$0xff] %vm521_vm0, %v378_v13  ;;  %501 = vmatmul.mubr.f32.gmra.mxu0 %v399_v52 }
  0x99   : > { %716 = vst.msk [vmem:[#allocation2 + $0x81] sm:$0xff] %vm521_vm0, %v362_v14  ;;  %731 = vst.msk [vmem:[#allocation2 + $0x139] sm:$0xff] %vm521_vm0, %v377_v15  ;;  %8834 = vmatprep.mubr.msk.f32.mxu0 %vm521_vm0, %v739_v2 }
  0x9a   : > { %715 = vst.msk [vmem:[#allocation2 + $0x79] sm:$0xff] %vm521_vm0, %v361_v16  ;;  %730 = vst.msk [vmem:[#allocation2 + $0x129] sm:$0xff] %vm521_vm0, %v376_v17 }
  0x9b   : > { %714 = vst.msk [vmem:[#allocation2 + $0x69] sm:$0xff] %vm521_vm0, %v360_v18  ;;  %729 = vst.msk [vmem:[#allocation2 + $0x121] sm:$0xff] %vm521_vm0, %v375_v19  ;;  %v10858_v18 = vld [vmem:[#allocation2 + $0xc0] sm:$0xff]  ;;  %v10862_v19 = vld [vmem:[#allocation2 + $0xc8] sm:$0xff] }
  0x9c   : > { %713 = vst.msk [vmem:[#allocation2 + $0x61] sm:$0xff] %vm521_vm0, %v359_v20  ;;  %728 = vst.msk [vmem:[#allocation2 + $0x111] sm:$0xff] %vm521_vm0, %v374_v21  ;;  %8835 = vmatmul.mubr.msk.f32.vlgmr.msra.gmra.mxu0 %vm521_vm0, %v740_v3  ;;  %v10914_v37 = vld [vmem:[#allocation2 + $0x168] sm:$0xff]  ;;  %v10918_v38 = vld [vmem:[#allocation2 + $0x170] sm:$0xff] }
  0x9d   : > { %712 = vst.msk [vmem:[#allocation2 + $0x51] sm:$0xff] %vm521_vm0, %v358_v22  ;;  %727 = vst.msk [vmem:[#allocation2 + $0x109] sm:$0xff] %vm521_vm0, %v373_v23  ;;  %v10850_v16 = vld [vmem:[#allocation2 + $0xa8] sm:$0xff]  ;;  %v10854_v17 = vld [vmem:[#allocation2 + $0xb0] sm:$0xff] }
  0x9e   : > { %711 = vst.msk [vmem:[#allocation2 + $0x49] sm:$0xff] %vm521_vm0, %v357_v24  ;;  %726 = vst.msk [vmem:[#allocation2 + $0xf9] sm:$0xff] %vm521_vm0, %v372_v25  ;;  %v10906_v33 = vld [vmem:[#allocation2 + $0x150] sm:$0xff]  ;;  %v10910_v34 = vld [vmem:[#allocation2 + $0x158] sm:$0xff] }
  0x9f   : > { %710 = vst.msk [vmem:[#allocation2 + $0x39] sm:$0xff] %vm521_vm0, %v356_v26  ;;  %725 = vst.msk [vmem:[#allocation2 + $0xf1] sm:$0xff] %vm521_vm0, %v371_v27  ;;  %v10842_v14 = vld [vmem:[#allocation2 + $0x90] sm:$0xff]  ;;  %v10846_v15 = vld [vmem:[#allocation2 + $0x98] sm:$0xff] }
  0xa0   : > { %709 = vst.msk [vmem:[#allocation2 + $0x31] sm:$0xff] %vm521_vm0, %v355_v28  ;;  %724 = vst.msk [vmem:[#allocation2 + $0xe1] sm:$0xff] %vm521_vm0, %v370_v29  ;;  %v1896_v28 = vld [vmem:[#allocation7 + $0xf8] sm:$0xff] }
  0xa1   : > { %708 = vst.msk [vmem:[#allocation2 + $0x21] sm:$0xff] %vm521_vm0, %v354_v30  ;;  %723 = vst.msk [vmem:[#allocation2 + $0xd9] sm:$0xff] %vm521_vm0, %v369_v31  ;;  %v10834_v12 = vld [vmem:[#allocation2 + $0x78] sm:$0xff]  ;;  %v10838_v13 = vld [vmem:[#allocation2 + $0x80] sm:$0xff]  ;;  %8946 = vmatprep.subr.mxu0 %v1896_v28 }
  0xa2   : > { %707 = vst.msk [vmem:[#allocation2 + $0x19] sm:$0xff] %vm521_vm0, %v353_v32  ;;  %v10890_v26 = vld [vmem:[#allocation2 + $0x120] sm:$0xff]  ;;  %v10894_v27 = vld [vmem:[#allocation2 + $0x128] sm:$0xff]  ;;  %v10898_v29 = vld [vmem:[#allocation2 + $0x138] sm:$0xff]  ;;  %8947 = vmatpush3.msra.mxu0 %v1896_v28 }
  0xa3   : > { %v10826_v10 = vld [vmem:[#allocation2 + $0x60] sm:$0xff]  ;;  %v10830_v11 = vld [vmem:[#allocation2 + $0x68] sm:$0xff]  ;;  %v1895_v31 = vld [vmem:[#allocation7 + $0xf0] sm:$0xff] }
  0xa4   : > { %v10882_v24 = vld [vmem:[#allocation2 + $0x108] sm:$0xff]  ;;  %v10886_v25 = vld [vmem:[#allocation2 + $0x110] sm:$0xff]  ;;  %v10902_v30 = vld [vmem:[#allocation2 + $0x140] sm:$0xff]  ;;  %8948 = vmatprep.subr.mxu0 %v1895_v31 }
  0xa5   : > { %v10818_v8 = vld [vmem:[#allocation2 + $0x48] sm:$0xff]  ;;  %v10822_v9 = vld [vmem:[#allocation2 + $0x50] sm:$0xff]  ;;  %8949 = vmatpush3.msra.mxu0 %v1895_v31  ;;  %v1502_v3 = vld [vmem:[#allocation7 + $0xb8] sm:$0xff] }
  0xa6   : > { %v10874_v22 = vld [vmem:[#allocation2 + $0xf0] sm:$0xff]  ;;  %v10878_v23 = vld [vmem:[#allocation2 + $0xf8] sm:$0xff]  ;;  %v1894_v32 = vld [vmem:[#allocation7 + $0xe8] sm:$0xff] }
  0xa7   : > { %v10810_v6 = vld [vmem:[#allocation2 + $0x30] sm:$0xff]  ;;  %v10814_v7 = vld [vmem:[#allocation2 + $0x38] sm:$0xff]  ;;  %8950 = vmatprep.subr.mxu0 %v1894_v32 }
  0xa8   : > { %v10866_v20 = vld [vmem:[#allocation2 + $0xd8] sm:$0xff]  ;;  %v10870_v21 = vld [vmem:[#allocation2 + $0xe0] sm:$0xff]  ;;  %8951 = vmatpush3.msra.mxu0 %v1894_v32  ;;  %v11011_v31 = vld [vmem:[#allocation2 + $0x49] sm:$0xff] }
  0xa9   : > { %v10802_v4 = vld [vmem:[#allocation2 + $0x18] sm:$0xff]  ;;  %v10806_v5 = vld [vmem:[#allocation2 + $0x20] sm:$0xff]  ;;  %8952 = vmatprep.subr.mxu0 %v1893_v35 }
  0xaa   : > { %8837 = vmatprep.mubr.msk.f32.mxu0 %vm521_vm0, %v10802_v4  ;;  %8953 = vmatpush3.msra.mxu0 %v1893_v35  ;;  %v11007_v28 = vld [vmem:[#allocation2 + $0x39] sm:$0xff]  ;;  %v11013_v32 = vld [vmem:[#allocation2 + $0x22] sm:$0xff] }
  0xab   : > { %8838 = vmatmul.mubr.msk.f32.gmra.mxu0 %vm521_vm0, %v10806_v5  ;;  %8954 = vmatprep.subr.mxu0 %v1892_v36  ;;  %v1496_v35 = vld [vmem:[#allocation7 + $0x88] sm:$0xff] }
  0xac   : > { %8840 = vmatprep.mubr.msk.f32.mxu0 %vm521_vm0, %v10810_v6  ;;  %8955 = vmatpush3.msra.mxu0 %v1892_v36  ;;  %v11025_v36 = vld [vmem:[#allocation2 + $0x32] sm:$0xff] }
  0xad   : > { %8956 = vmatprep.subr.mxu0 %v1891_v39 }
  0xae   : > { %8957 = vmatpush3.msra.mxu0 %v1891_v39  ;;  %v1495_v39 = vld [vmem:[#allocation7 + $0x80] sm:$0xff] }
  0xaf   : > { %8841 = vmatmul.mubr.msk.f32.gmra.mxu0 %vm521_vm0, %v10814_v7  ;;  %8958 = vmatprep.subr.mxu0 %v1890_v40 }
  0xb0   : > { %8843 = vmatprep.mubr.msk.f32.mxu0 %vm521_vm0, %v10818_v8  ;;  %8959 = vmatpush3.msra.mxu0 %v1890_v40  ;;  %v11039_v40 = vld [vmem:[#allocation2 + $0x69] sm:$0xff] }
  0xb1   : > { %8960 = vmatprep.subr.mxu0 %v1889_v41 }
  0xb2   : > { %8961 = vmatpush3.msra.mxu0 %v1889_v41  ;;  %v11041_v41 = vld [vmem:[#allocation2 + $0x4a] sm:$0xff] }
  0xb3   : > { %8844 = vmatmul.mubr.msk.f32.gmra.mxu0 %vm521_vm0, %v10822_v9  ;;  %9074 = vmatprep.subr.mxu0 %v2684_v1 }
  0xb4   : > { %8846 = vmatprep.mubr.msk.f32.mxu0 %vm521_vm0, %v10826_v10 }
  0xb7   : > { %8847 = vmatmul.mubr.msk.f32.gmra.mxu0 %vm521_vm0, %v10830_v11 }
  0xb8   : > { %8849 = vmatprep.mubr.msk.f32.mxu0 %vm521_vm0, %v10834_v12 }
  0xbb   : > { %8850 = vmatmul.mubr.msk.f32.gmra.mxu0 %vm521_vm0, %v10838_v13 }
  0xbc   : > { %8852 = vmatprep.mubr.msk.f32.mxu0 %vm521_vm0, %v10842_v14 }
  0xbf   : > { %8853 = vmatmul.mubr.msk.f32.gmra.mxu0 %vm521_vm0, %v10846_v15 }
  0xc0   : > { %8855 = vmatprep.mubr.msk.f32.mxu0 %vm521_vm0, %v10850_v16 }
  0xc3   : > { %8856 = vmatmul.mubr.msk.f32.gmra.mxu0 %vm521_vm0, %v10854_v17 }
  0xc4   : > { %8858 = vmatprep.mubr.msk.f32.mxu0 %vm521_vm0, %v10858_v18 }
  0xc7   : > { %8859 = vmatmul.mubr.msk.f32.gmra.mxu0 %vm521_vm0, %v10862_v19 }
  0xc8   : > { %8861 = vmatprep.mubr.msk.f32.mxu0 %vm521_vm0, %v10866_v20 }
  0xcb   : > { %8862 = vmatmul.mubr.msk.f32.gmra.mxu0 %vm521_vm0, %v10870_v21 }
  0xcc   : > { %8864 = vmatprep.mubr.msk.f32.mxu0 %vm521_vm0, %v10874_v22 }
  0xcf   : > { %8865 = vmatmul.mubr.msk.f32.gmra.mxu0 %vm521_vm0, %v10878_v23 }
  0xd0   : > { %8867 = vmatprep.mubr.msk.f32.mxu0 %vm521_vm0, %v10882_v24 }
  0xd3   : > { %8868 = vmatmul.mubr.msk.f32.gmra.mxu0 %vm521_vm0, %v10886_v25 }
  0xd4   : > { %8870 = vmatprep.mubr.msk.f32.mxu0 %vm521_vm0, %v10890_v26 }
  0xd7   : > { %8871 = vmatmul.mubr.msk.f32.gmra.mxu0 %vm521_vm0, %v10894_v27 }
  0xd8   : > { %8873 = vmatprep.mubr.msk.f32.mxu0 %vm521_vm0, %v10898_v29 }
  0xdb   : > { %8874 = vmatmul.mubr.msk.f32.gmra.mxu0 %vm521_vm0, %v10902_v30 }
  0xdc   : > { %8876 = vmatprep.mubr.msk.f32.mxu0 %vm521_vm0, %v10906_v33 }
  0xdf   : > { %8877 = vmatmul.mubr.msk.f32.gmra.mxu0 %vm521_vm0, %v10910_v34 }
  0xe0   : > { %8879 = vmatprep.mubr.msk.f32.mxu0 %vm521_vm0, %v10914_v37 }
  0xe3   : > { %8880 = vmatmul.mubr.msk.f32.gmra.mxu0 %vm521_vm0, %v10918_v38 }
  0xe4   : > { %8962 = vmatprep.mubr.msk.f32.mxu0 %vm521_vm0, %v10802_v4 }
  0xe7   : > { %8963 = vmatmul.mubr.msk.f32.vlgmr.msra.gmra.mxu0 %vm521_vm0, %v10806_v5 }
  0xe8   : > { %8965 = vmatprep.mubr.msk.f32.mxu0 %vm521_vm0, %v10810_v6  ;;  %9075 = vmatpush3.msra.mxu0 %v2684_v1  ;;  %v2683_v6 = vld [vmem:[#allocation7 + $0x170] sm:$0xff]  ;;  %v11132_v1 = vld [vmem:[#allocation2 + $0xda] sm:$0xff] }
  0xe9   : > { %9076 = vmatprep.subr.mxu0 %v2683_v6 }
  0xea   : > { %9077 = vmatpush3.msra.mxu0 %v2683_v6  ;;  %v11158_v6 = vld [vmem:[#allocation2 + $0x111] sm:$0xff] }
  0xeb   : > { %8966 = vmatmul.mubr.msk.f32.gmra.mxu0 %vm521_vm0, %v10814_v7  ;;  %v2682_v7 = vld [vmem:[#allocation7 + $0x168] sm:$0xff] }
  0xec   : > { %8968 = vmatprep.mubr.msk.f32.mxu0 %vm521_vm0, %v10818_v8  ;;  %9078 = vmatprep.subr.mxu0 %v2682_v7 }
  0xed   : > { %9079 = vmatpush3.msra.mxu0 %v2682_v7  ;;  %v11160_v7 = vld [vmem:[#allocation2 + $0x121] sm:$0xff] }
  0xef   : > { %8969 = vmatmul.mubr.msk.f32.gmra.mxu0 %vm521_vm0, %v10822_v9 }
  0xf0   : > { %8971 = vmatprep.mubr.msk.f32.mxu0 %vm521_vm0, %v10826_v10 }
  0xf3   : > { %8972 = vmatmul.mubr.msk.f32.gmra.mxu0 %vm521_vm0, %v10830_v11  ;;  %v2681_v11 = vld [vmem:[#allocation7 + $0x160] sm:$0xff] }
  0xf4   : > { %8974 = vmatprep.mubr.msk.f32.mxu0 %vm521_vm0, %v10834_v12  ;;  %v2680_v12 = vld [vmem:[#allocation7 + $0x158] sm:$0xff]  ;;  %9080 = vmatprep.subr.mxu0 %v2681_v11 }
  0xf5   : > { %9081 = vmatpush3.msra.mxu0 %v2681_v11  ;;  %v11176_v11 = vld [vmem:[#allocation2 + $0x139] sm:$0xff] }
  0xf6   : > { %9082 = vmatprep.subr.mxu0 %v2680_v12  ;;  %13518 = vst [vmem:[#allocation14_spill] sm:$0xff] %v11176_v11 }
  0xf7   : > { %8975 = vmatmul.mubr.msk.f32.gmra.mxu0 %vm521_vm0, %v10838_v13 }
  0xf8   : > { %8977 = vmatprep.mubr.msk.f32.mxu0 %vm521_vm0, %v10842_v14  ;;  %9083 = vmatpush3.msra.mxu0 %v2680_v12  ;;  %v11178_v12 = vld [vmem:[#allocation2 + $0x112] sm:$0xff] }
  0xfb   : > { %8978 = vmatmul.mubr.msk.f32.gmra.mxu0 %vm521_vm0, %v10846_v15  ;;  %v779_v15 = vld [vmem:[#allocation2 + $0x1] sm:$0xff] }
  0xfc   : > { %8980 = vmatprep.mubr.msk.f32.mxu0 %vm521_vm0, %v10850_v16  ;;  %v2679_v16 = vld [vmem:[#allocation7 + $0x150] sm:$0xff] }
  0xfd   : > { %9084 = vmatprep.subr.mxu0 %v2679_v16 }
  0xfe   : > { %9085 = vmatpush3.msra.mxu0 %v2679_v16  ;;  %v11192_v16 = vld [vmem:[#allocation2 + $0x151] sm:$0xff] }
  0xff   : > { %8981 = vmatmul.mubr.msk.f32.gmra.mxu0 %vm521_vm0, %v10854_v17  ;;  %v1886_v17 = vld [vmem:[#allocation2 + $0x180] sm:$0xff]  ;;  %13520 = vst [vmem:[#allocation16_spill] sm:$0xff] %v11192_v16 }
 0x100   : > { %8983 = vmatprep.mubr.msk.f32.mxu0 %vm521_vm0, %v10858_v18  ;;  %v1887_v18 = vld [vmem:[#allocation2 + $0x188] sm:$0xff] }
 0x103   : > { %8984 = vmatmul.mubr.msk.f32.gmra.mxu0 %vm521_vm0, %v10862_v19  ;;  %v780_v19 = vld [vmem:[#allocation2 + $0x9] sm:$0xff] }
 0x104   : > { %8986 = vmatprep.mubr.msk.f32.mxu0 %vm521_vm0, %v10866_v20  ;;  %v2678_v20 = vld [vmem:[#allocation7 + $0x148] sm:$0xff] }
 0x105   : > { %9086 = vmatprep.subr.mxu0 %v2678_v20 }
 0x106   : > { %9087 = vmatpush3.msra.mxu0 %v2678_v20  ;;  %v11206_v20 = vld [vmem:[#allocation2 + $0x159] sm:$0xff] }
 0x107   : > { %8987 = vmatmul.mubr.msk.f32.gmra.mxu0 %vm521_vm0, %v10870_v21  ;;  %v10992_v21 = vld [vmem:[#allocation2 + $0x19] sm:$0xff]  ;;  %13521 = vst [vmem:[#allocation17_spill] sm:$0xff] %v11206_v20 }
 0x108   : > { %8989 = vmatprep.mubr.msk.f32.mxu0 %vm521_vm0, %v10874_v22  ;;  %v1501_v22 = vld [vmem:[#allocation7 + $0xb0] sm:$0xff] }
 0x10b   : > { %8990 = vmatmul.mubr.msk.f32.gmra.mxu0 %vm521_vm0, %v10878_v23  ;;  %v2677_v23 = vld [vmem:[#allocation7 + $0x140] sm:$0xff] }
 0x10c   : > { %8992 = vmatprep.mubr.msk.f32.mxu0 %vm521_vm0, %v10882_v24  ;;  %v10999_v24 = vld [vmem:[#allocation2 + $0x21] sm:$0xff]  ;;  %9088 = vmatprep.subr.mxu0 %v2677_v23 }
 0x10d   : > { %9089 = vmatpush3.msra.mxu0 %v2677_v23  ;;  %v11208_v23 = vld [vmem:[#allocation2 + $0x169] sm:$0xff] }
 0x10e   : > { %13522 = vst [vmem:[#allocation18_spill] sm:$0xff] %v11208_v23 }
 0x10f   : > { %8993 = vmatmul.mubr.msk.f32.gmra.mxu0 %vm521_vm0, %v10886_v25  ;;  %v1500_v25 = vld [vmem:[#allocation7 + $0xa8] sm:$0xff] }
 0x110   : > { %8995 = vmatprep.mubr.msk.f32.mxu0 %vm521_vm0, %v10890_v26  ;;  %v11001_v26 = vld [vmem:[#allocation2 + $0x31] sm:$0xff] }
 0x113   : > { %8996 = vmatmul.mubr.msk.f32.gmra.mxu0 %vm521_vm0, %v10894_v27  ;;  %v1499_v27 = vld [vmem:[#allocation7 + $0xa0] sm:$0xff] }
 0x114   : > { %8998 = vmatprep.mubr.msk.f32.mxu0 %vm521_vm0, %v10898_v29  ;;  %v1498_v29 = vld [vmem:[#allocation7 + $0x98] sm:$0xff] }
 0x117   : > { %8999 = vmatmul.mubr.msk.f32.gmra.mxu0 %vm521_vm0, %v10902_v30  ;;  %v11009_v30 = vld [vmem:[#allocation2 + $0x1a] sm:$0xff] }
 0x118   : > { %9001 = vmatprep.mubr.msk.f32.mxu0 %vm521_vm0, %v10906_v33  ;;  %v1497_v33 = vld [vmem:[#allocation7 + $0x90] sm:$0xff] }
 0x11b   : > { %9002 = vmatmul.mubr.msk.f32.gmra.mxu0 %vm521_vm0, %v10910_v34  ;;  %v11023_v34 = vld [vmem:[#allocation2 + $0x51] sm:$0xff] }
 0x11c   : > { %9004 = vmatprep.mubr.msk.f32.mxu0 %vm521_vm0, %v10914_v37  ;;  %v11027_v37 = vld [vmem:[#allocation2 + $0x61] sm:$0xff] }
 0x11f   : > { %9005 = vmatmul.mubr.msk.f32.gmra.mxu0 %vm521_vm0, %v10918_v38  ;;  %v11029_v38 = vld [vmem:[#allocation2 + $0x3a] sm:$0xff] }
 0x120   : > { %9007 = vmatprep.mubr.msk.f32.mxu0 %vm521_vm0, %v1886_v17  ;;  %v11194_v17 = vld [vmem:[#allocation2 + $0x12a] sm:$0xff] }
 0x123   : > { %9008 = vmatmul.mubr.msk.f32.gmra.mxu0 %vm521_vm0, %v1887_v18  ;;  %v11196_v18 = vld [vmem:[#allocation2 + $0x13a] sm:$0xff] }
 0x124   : > { %9090 = vmatprep.mubr.msk.f32.mxu0 %vm521_vm0, %v11009_v30 }
 0x127   : > { %9091 = vmatmul.mubr.msk.f32.vlgmr.msra.gmra.mxu0 %vm521_vm0, %v11013_v32 }
 0x128   : > { %9093 = vmatprep.mubr.msk.f32.mxu0 %vm521_vm0, %v11025_v36 }
 0x12b   : > { %9094 = vmatmul.mubr.msk.f32.gmra.mxu0 %vm521_vm0, %v11029_v38 }
 0x12c   : > { %9096 = vmatprep.mubr.msk.f32.mxu0 %vm521_vm0, %v11041_v41 }
 0x13c   : > { %v7838_v42 = vpop.f32.mrf.mxu0 }
 0x13e   : > { %v7839_v43 = vpop.f32.mrf.mxu0 }
 0x13f   : > { %v7840_v44 = vadd.f32 %v7839_v43, %v7838_v42  ;;  %v11043_v42 = vld [vmem:[#allocation7 + $0x138] sm:$0xff] }
 0x140   : > { %v7841_v45 = vpop.f32.mrf.mxu0  ;;  %v11045_v43 = vld [vmem:[#allocation2 + $0x79] sm:$0xff] }
 0x141   : > { %8742 = vmatprep.mubr.msk.f32.mxu1 %vm521_vm0, %v7840_v44  ;;  %v11047_v44 = vld [vmem:[#allocation2 + $0x52] sm:$0xff] }
 0x142   : > { %v7842_v46 = vpop.f32.mrf.mxu0  ;;  %9097 = vmatmul.mubr.msk.f32.gmra.mxu0 %vm521_vm0, %v11047_v44 }
 0x143   : > { %v7843_v47 = vadd.f32 %v7842_v46, %v7841_v45  ;;  %v11055_v45 = vld [vmem:[#allocation2 + $0x62] sm:$0xff] }
 0x144   : > { %v7844_v48 = vpop.f32.mrf.mxu0  ;;  %v11060_v46 = vld [vmem:[#allocation2 + $0x81] sm:$0xff]  ;;  %9099 = vmatprep.mubr.msk.f32.mxu0 %vm521_vm0, %v11055_v45 }
 0x145   : > { %8743 = vmatmul.mubr.msk.f32.vlgmr.msra.gmra.mxu1 %vm521_vm0, %v7843_v47  ;;  %v11064_v47 = vld [vmem:[#allocation2 + $0x91] sm:$0xff] }
 0x146   : > { %v7845_v50 = vpop.f32.mrf.mxu0  ;;  %8755 = vmatpush3.msra.mxu1 %v10797_v57 }
 0x147   : > { %v7846_v52 = vadd.f32 %v7845_v50, %v7844_v48  ;;  %8756 = vmatprep.subr.mxu1 %v818_v49  ;;  %v11066_v48 = vld [vmem:[#allocation2 + $0x6a] sm:$0xff]  ;;  %v11078_v50 = vld [vmem:[#allocation2 + $0x99] sm:$0xff] }
 0x148   : > { %v7847_v53 = vpop.f32.mrf.mxu0  ;;  %8757 = vmatpush3.msra.mxu1 %v818_v49  ;;  %v11068_v49 = vld [vmem:[#allocation2 + $0x7a] sm:$0xff]  ;;  %9100 = vmatmul.mubr.msk.f32.gmra.mxu0 %vm521_vm0, %v11066_v48 }
 0x149   : > { %8745 = vmatprep.mubr.msk.f32.mxu1 %vm521_vm0, %v7846_v52  ;;  %8758 = vmatprep.subr.mxu1 %v817_v51  ;;  %v11082_v52 = vld [vmem:[#allocation2 + $0x82] sm:$0xff] }
 0x14a   : > { %v7848_v55 = vpop.f32.mrf.mxu0  ;;  %8759 = vmatpush3.msra.mxu1 %v817_v51  ;;  %9102 = vmatprep.mubr.msk.f32.mxu0 %vm521_vm0, %v11068_v49  ;;  %v11080_v51 = vld [vmem:[#allocation2 + $0xa9] sm:$0xff] }
 0x14b   : > { %v7849_v58 = vadd.f32 %v7848_v55, %v7847_v53  ;;  %8760 = vmatprep.subr.mxu1 %v816_v54  ;;  %v11084_v53 = vld [vmem:[#allocation2 + $0x92] sm:$0xff]  ;;  %v11096_v55 = vld [vmem:[#allocation2 + $0xc1] sm:$0xff] }
 0x14c   : > { %v7850_v57 = vpop.f32.mrf.mxu0  ;;  %8761 = vmatpush3.msra.mxu1 %v816_v54  ;;  %9103 = vmatmul.mubr.msk.f32.gmra.mxu0 %vm521_vm0, %v11082_v52  ;;  %v11094_v54 = vld [vmem:[#allocation2 + $0xb1] sm:$0xff] }
 0x14d   : > { %8746 = vmatmul.mubr.msk.f32.gmra.mxu1 %vm521_vm0, %v7849_v58  ;;  %8762 = vmatprep.subr.mxu1 %v815_v56  ;;  %v11100_v58 = vld [vmem:[#allocation2 + $0xaa] sm:$0xff] }
 0x14e   : > { %v7851_v60 = vpop.f32.mrf.mxu0  ;;  %8763 = vmatpush3.msra.mxu1 %v815_v56  ;;  %9105 = vmatprep.mubr.msk.f32.mxu0 %vm521_vm0, %v11084_v53  ;;  %v11098_v56 = vld [vmem:[#allocation2 + $0x9a] sm:$0xff] }
 0x14f   : > { %v7852_v62 = vadd.f32 %v7851_v60, %v7850_v57  ;;  %8764 = vmatprep.subr.mxu1 %v814_v59  ;;  %v11110_v57 = vld [vmem:[#allocation2 + $0xc9] sm:$0xff]  ;;  %v11114_v60 = vld [vmem:[#allocation2 + $0xb2] sm:$0xff] }
 0x150   : > { %v7853_v63 = vpop.f32.mrf.mxu0  ;;  %8765 = vmatpush3.msra.mxu1 %v814_v59  ;;  %9106 = vmatmul.mubr.msk.f32.gmra.mxu0 %vm521_vm0, %v11098_v56  ;;  %v11112_v59 = vld [vmem:[#allocation2 + $0xd9] sm:$0xff] }
 0x151   : > { %8748 = vmatprep.mubr.msk.f32.mxu1 %vm521_vm0, %v7852_v62  ;;  %8766 = vmatprep.subr.mxu1 %v813_v61  ;;  %v11126_v62 = vld [vmem:[#allocation2 + $0xe1] sm:$0xff] }
 0x152   : > { %v7854_v2 = vpop.f32.mrf.mxu0  ;;  %8767 = vmatpush3.msra.mxu1 %v813_v61  ;;  %9108 = vmatprep.mubr.msk.f32.mxu0 %vm521_vm0, %v11100_v58  ;;  %v11116_v61 = vld [vmem:[#allocation2 + $0xc2] sm:$0xff] }
 0x153   : > { %v7855_v4 = vadd.f32 %v7854_v2, %v7853_v63  ;;  %8768 = vmatprep.subr.mxu1 %v812_v0  ;;  %v11128_v63 = vld [vmem:[#allocation2 + $0xf1] sm:$0xff]  ;;  %v11142_v2 = vld [vmem:[#allocation2 + $0xf9] sm:$0xff] }
 0x154   : > { %v7856_v5 = vpop.f32.mrf.mxu0  ;;  %8769 = vmatpush3.msra.mxu1 %v812_v0  ;;  %9109 = vmatmul.mubr.msk.f32.gmra.mxu0 %vm521_vm0, %v11114_v60  ;;  %v11130_v0 = vld [vmem:[#allocation2 + $0xca] sm:$0xff] }
 0x155   : > { %8749 = vmatmul.mubr.msk.f32.gmra.mxu1 %vm521_vm0, %v7855_v4  ;;  %8882 = vmatprep.subr.mxu1 %v1502_v3  ;;  %v11146_v4 = vld [vmem:[#allocation2 + $0xe2] sm:$0xff] }
 0x156   : > { %v7857_v8 = vpop.f32.mrf.mxu0  ;;  %9111 = vmatprep.mubr.msk.f32.mxu0 %vm521_vm0, %v11116_v61 }
 0x157   : > { %v7858_v9 = vadd.f32 %v7857_v8, %v7856_v5  ;;  %v11148_v5 = vld [vmem:[#allocation2 + $0xf2] sm:$0xff]  ;;  %v11162_v8 = vld [vmem:[#allocation2 + $0xfa] sm:$0xff] }
 0x158   : > { %v7859_v10 = vpop.f32.mrf.mxu0  ;;  %9112 = vmatmul.mubr.msk.f32.gmra.mxu0 %vm521_vm0, %v11130_v0 }
 0x159   : > { %8751 = vmatprep.mubr.msk.f32.mxu1 %vm521_vm0, %v7858_v9  ;;  %9114 = vmatprep.mubr.msk.f32.mxu0 %vm521_vm0, %v11132_v1  ;;  %v11164_v9 = vld [vmem:[#allocation2 + $0x10a] sm:$0xff] }
 0x15a   : > { %v7860_v13 = vpop.f32.mrf.mxu0 }
 0x15b   : > { %v7861_v14 = vadd.f32 %v7860_v13, %v7859_v10  ;;  %v11174_v10 = vld [vmem:[#allocation2 + $0x129] sm:$0xff] }
 0x15c   : > { %9115 = vmatmul.mubr.msk.f32.gmra.mxu0 %vm521_vm0, %v11146_v4  ;;  %v11180_v13 = vld [vmem:[#allocation2 + $0x122] sm:$0xff] }
 0x15d   : > { %8752 = vmatmul.mubr.msk.f32.gmra.mxu1 %vm521_vm0, %v7861_v14  ;;  %9117 = vmatprep.mubr.msk.f32.mxu0 %vm521_vm0, %v11148_v5  ;;  %v3473_v14 = vld [vmem:[#allocation7 + $0x1f8] sm:$0xff] }
 0x15e   : > { %8770 = vmatprep.mubr.msk.f32.mxu1 %vm521_vm0, %v779_v15  ;;  %v11190_v15 = vld [vmem:[#allocation2 + $0x141] sm:$0xff]  ;;  %9202 = vmatprep.subr.mxu0 %v3473_v14 }
 0x15f   : > { %13519 = vst [vmem:[#allocation15_spill] sm:$0xff] %v11190_v15  ;;  %9203 = vmatpush3.msra.mxu0 %v3473_v14  ;;  %v11226_v14 = vld [vmem:[#allocation2 + $0x16a] sm:$0xff] }
 0x160   : > { %9118 = vmatmul.mubr.msk.f32.gmra.mxu0 %vm521_vm0, %v11162_v8 }
 0x161   : > { %8771 = vmatmul.mubr.msk.f32.vlgmr.msra.gmra.mxu1 %vm521_vm0, %v780_v19  ;;  %9120 = vmatprep.mubr.msk.f32.mxu0 %vm521_vm0, %v11164_v9  ;;  %v3472_v19 = vld [vmem:[#allocation7 + $0x1f0] sm:$0xff] }
 0x162   : > { %8773 = vmatprep.mubr.msk.f32.mxu1 %vm521_vm0, %v10992_v21  ;;  %8883 = vmatpush3.msra.mxu1 %v1502_v3  ;;  %v11144_v3 = vld [vmem:[#allocation2 + $0x109] sm:$0xff] }
 0x163   : > { %8884 = vmatprep.subr.mxu1 %v1501_v22  ;;  %9204 = vmatprep.subr.mxu0 %v3472_v19 }
 0x164   : > { %8885 = vmatpush3.msra.mxu1 %v1501_v22  ;;  %9121 = vmatmul.mubr.msk.f32.gmra.mxu0 %vm521_vm0, %v11178_v12  ;;  %v3471_v22 = vld [vmem:[#allocation7 + $0x1e8] sm:$0xff] }
 0x165   : > { %8774 = vmatmul.mubr.msk.f32.gmra.mxu1 %vm521_vm0, %v10999_v24  ;;  %8886 = vmatprep.subr.mxu1 %v1500_v25 }
 0x166   : > { %8776 = vmatprep.mubr.msk.f32.mxu1 %vm521_vm0, %v11001_v26  ;;  %8887 = vmatpush3.msra.mxu1 %v1500_v25  ;;  %v11210_v25 = vld [vmem:[#allocation2 + $0x142] sm:$0xff] }
 0x167   : > { %8888 = vmatprep.subr.mxu1 %v1499_v27  ;;  %9123 = vmatprep.mubr.msk.f32.mxu0 %vm521_vm0, %v11180_v13 }
 0x168   : > { %8889 = vmatpush3.msra.mxu1 %v1499_v27  ;;  %9124 = vmatmul.mubr.msk.f32.gmra.mxu0 %vm521_vm0, %v11194_v17  ;;  %v11212_v27 = vld [vmem:[#allocation2 + $0x152] sm:$0xff] }
 0x169   : > { %8777 = vmatmul.mubr.msk.f32.gmra.mxu1 %vm521_vm0, %v11007_v28  ;;  %8890 = vmatprep.subr.mxu1 %v1498_v29 }
 0x16a   : > { %8779 = vmatprep.mubr.msk.f32.mxu1 %vm521_vm0, %v11011_v31  ;;  %8891 = vmatpush3.msra.mxu1 %v1498_v29  ;;  %v3470_v29 = vld [vmem:[#allocation7 + $0x1e0] sm:$0xff] }
 0x16b   : > { %8892 = vmatprep.subr.mxu1 %v1497_v33  ;;  %9126 = vmatprep.mubr.msk.f32.mxu0 %vm521_vm0, %v11196_v18 }
 0x16c   : > { %8893 = vmatpush3.msra.mxu1 %v1497_v33  ;;  %9205 = vmatpush3.msra.mxu0 %v3472_v19  ;;  %v11222_v33 = vld [vmem:[#allocation2 + $0x171] sm:$0xff] }
 0x16d   : > { %8780 = vmatmul.mubr.msk.f32.gmra.mxu1 %vm521_vm0, %v11023_v34  ;;  %8894 = vmatprep.subr.mxu1 %v1496_v35  ;;  %13523 = vst [vmem:[#allocation19_spill] sm:$0xff] %v11222_v33  ;;  %v3469_v19 = vld [vmem:[#allocation7 + $0x1d8] sm:$0xff] }
 0x16e   : > { %8782 = vmatprep.mubr.msk.f32.mxu1 %vm521_vm0, %v11027_v37  ;;  %8895 = vmatpush3.msra.mxu1 %v1496_v35  ;;  %v1462_v35 = vld [vmem:[#allocation2 + $0x2] sm:$0xff] }
 0x16f   : > { %8896 = vmatprep.subr.mxu1 %v1495_v39  ;;  %9127 = vmatmul.mubr.msk.f32.gmra.mxu0 %vm521_vm0, %v11210_v25 }
 0x170   : > { %8897 = vmatpush3.msra.mxu1 %v1495_v39  ;;  %9206 = vmatprep.subr.mxu0 %v3471_v22  ;;  %v11224_v39 = vld [vmem:[#allocation2 + $0x15a] sm:$0xff] }
 0x171   : > { %8783 = vmatmul.mubr.msk.f32.gmra.mxu1 %vm521_vm0, %v11039_v40  ;;  %9010 = vmatprep.subr.mxu1 %v11043_v42 }
 0x172   : > { %8785 = vmatprep.mubr.msk.f32.mxu1 %vm521_vm0, %v11045_v43  ;;  %9129 = vmatprep.mubr.msk.f32.mxu0 %vm521_vm0, %v11212_v27 }
 0x173   : > { %9207 = vmatpush3.msra.mxu0 %v3471_v22  ;;  %v11235_v22 = vld [vmem:[#allocation2 + $0x172] sm:$0xff] }
 0x174   : > { %9208 = vmatprep.subr.mxu0 %v3470_v29  ;;  %9130 = vmatmul.mubr.msk.f32.gmra.mxu0 %vm521_vm0, %v11224_v39 }
 0x175   : > { %8786 = vmatmul.mubr.msk.f32.gmra.mxu1 %vm521_vm0, %v11060_v46  ;;  %9132 = vmatprep.mubr.msk.f32.mxu0 %vm521_vm0, %v11226_v14 }
 0x176   : > { %8788 = vmatprep.mubr.msk.f32.mxu1 %vm521_vm0, %v11064_v47  ;;  %9209 = vmatpush3.msra.mxu0 %v3470_v29  ;;  %v2288_v29 = vld [vmem:[#allocation7 + $0x128] sm:$0xff] }
 0x177   : > { %9210 = vmatprep.subr.mxu0 %v3469_v19 }
 0x178   : > { %9133 = vmatmul.mubr.msk.f32.gmra.mxu0 %vm521_vm0, %v11235_v22 }
 0x179   : > { %8789 = vmatmul.mubr.msk.f32.gmra.mxu1 %vm521_vm0, %v11078_v50  ;;  %9211 = vmatpush3.msra.mxu0 %v3469_v19 }
 0x17a   : > { %8791 = vmatprep.mubr.msk.f32.mxu1 %vm521_vm0, %v11080_v51 }
 0x17d   : > { %8792 = vmatmul.mubr.msk.f32.gmra.mxu1 %vm521_vm0, %v11094_v54 }
 0x17e   : > { %8794 = vmatprep.mubr.msk.f32.mxu1 %vm521_vm0, %v11096_v55 }
 0x181   : > { %8795 = vmatmul.mubr.msk.f32.gmra.mxu1 %vm521_vm0, %v11110_v57 }
 0x182   : > { %8797 = vmatprep.mubr.msk.f32.mxu1 %vm521_vm0, %v11112_v59 }
 0x185   : > { %8798 = vmatmul.mubr.msk.f32.gmra.mxu1 %vm521_vm0, %v11126_v62 }
 0x186   : > { %8800 = vmatprep.mubr.msk.f32.mxu1 %vm521_vm0, %v11128_v63 }
 0x189   : > { %8801 = vmatmul.mubr.msk.f32.gmra.mxu1 %vm521_vm0, %v11142_v2 }
 0x18a   : > { %8803 = vmatprep.mubr.msk.f32.mxu1 %vm521_vm0, %v11144_v3 }
 0x18d   : > { %8804 = vmatmul.mubr.msk.f32.gmra.mxu1 %vm521_vm0, %v11158_v6 }
 0x18e   : > { %8806 = vmatprep.mubr.msk.f32.mxu1 %vm521_vm0, %v11160_v7 }
 0x191   : > { %8807 = vmatmul.mubr.msk.f32.gmra.mxu1 %vm521_vm0, %v11174_v10 }
 0x192   : > { %8809 = vmatprep.mubr.msk.f32.mxu1 %vm521_vm0, %v11176_v11  ;;  %v2287_v11 = vld [vmem:[#allocation7 + $0x120] sm:$0xff] }
 0x195   : > { %8810 = vmatmul.mubr.msk.f32.gmra.mxu1 %vm521_vm0, %v11190_v15  ;;  %v2674_v15 = vld [vmem:[#allocation2 + $0x182] sm:$0xff] }
 0x196   : > { %8812 = vmatprep.mubr.msk.f32.mxu1 %vm521_vm0, %v11192_v16  ;;  %v3468_v16 = vld [vmem:[#allocation7 + $0x1d0] sm:$0xff]  ;;  %9135 = vmatprep.mubr.msk.f32.mxu0 %vm521_vm0, %v2674_v15  ;;  %v3467_v15 = vld [vmem:[#allocation7 + $0x1c8] sm:$0xff] }
 0x197   : > { %9212 = vmatprep.subr.mxu0 %v3468_v16 }
 0x198   : > { %9213 = vmatpush3.msra.mxu0 %v3468_v16 }
 0x199   : > { %8813 = vmatmul.mubr.msk.f32.gmra.mxu1 %vm521_vm0, %v11206_v20  ;;  %v2289_v20 = vld [vmem:[#allocation7 + $0x130] sm:$0xff]  ;;  %9214 = vmatprep.subr.mxu0 %v3467_v15 }
 0x19a   : > { %8815 = vmatprep.mubr.msk.f32.mxu1 %vm521_vm0, %v11208_v23  ;;  %v1463_v23 = vld [vmem:[#allocation2 + $0xa] sm:$0xff]  ;;  %9215 = vmatpush3.msra.mxu0 %v3467_v15 }
 0x19d   : > { %8816 = vmatmul.mubr.msk.f32.gmra.mxu1 %vm521_vm0, %v11222_v33  ;;  %v11240_v33 = vpop.f32.mrf.mxu0 }
 0x19e   : > { %8898 = vmatprep.mubr.msk.f32.mxu1 %vm521_vm0, %v1462_v35 }
 0x19f   : > { %v11245_v35 = vpop.f32.mrf.mxu0 }
 0x1a1   : > { %8899 = vmatmul.mubr.msk.f32.vlgmr.msra.gmra.mxu1 %vm521_vm0, %v1463_v23  ;;  %v2675_v23 = vld [vmem:[#allocation2 + $0x18a] sm:$0xff]  ;;  %v11250_v19 = vpop.f32.mrf.mxu0 }
 0x1a2   : > { %8901 = vmatprep.mubr.msk.f32.mxu1 %vm521_vm0, %v11009_v30  ;;  %9011 = vmatpush3.msra.mxu1 %v11043_v42  ;;  %v2286_v30 = vld [vmem:[#allocation7 + $0x118] sm:$0xff] }
 0x1a3   : > { %9012 = vmatprep.subr.mxu1 %v2289_v20  ;;  %v11254_v42 = vpop.f32.mrf.mxu0  ;;  %9136 = vmatmul.mubr.msk.f32.gmra.mxu0 %vm521_vm0, %v2675_v23  ;;  %v3433_v23 = vld [vmem:[#allocation2 + $0x31] sm:$0xff] }
 0x1a4   : > { %9013 = vmatpush3.msra.mxu1 %v2289_v20  ;;  %v2285_v20 = vld [vmem:[#allocation7 + $0x110] sm:$0xff]  ;;  %9218 = vmatprep.mubr.msk.f32.mxu0 %vm521_vm0, %v3433_v23  ;;  %v3439_v23 = vld [vmem:[#allocation2 + $0x79] sm:$0xff] }
 0x1a5   : > { %8902 = vmatmul.mubr.msk.f32.gmra.mxu1 %vm521_vm0, %v11013_v32  ;;  %9014 = vmatprep.subr.mxu1 %v2288_v29  ;;  %v11259_v32 = vpop.f32.mrf.mxu0 }
 0x1a6   : > { %8904 = vmatprep.mubr.msk.f32.mxu1 %vm521_vm0, %v11025_v36  ;;  %9015 = vmatpush3.msra.mxu1 %v2288_v29  ;;  %v2284_v36 = vld [vmem:[#allocation7 + $0x108] sm:$0xff]  ;;  %v3466_v29 = vld [vmem:[#allocation7 + $0x1c0] sm:$0xff] }
 0x1a7   : > { %9016 = vmatprep.subr.mxu1 %v2287_v11  ;;  %v11263_v16 = vpop.f32.mrf.mxu0  ;;  %9216 = vmatprep.subr.mxu0 %v3466_v29 }
 0x1a8   : > { %9017 = vmatpush3.msra.mxu1 %v2287_v11  ;;  %v2283_v11 = vld [vmem:[#allocation7 + $0x100] sm:$0xff]  ;;  %9217 = vmatpush3.msra.mxu0 %v3466_v29  ;;  %v3438_v29 = vld [vmem:[#allocation2 + $0x69] sm:$0xff] }
 0x1a9   : > { %8905 = vmatmul.mubr.msk.f32.gmra.mxu1 %vm521_vm0, %v11029_v38  ;;  %9018 = vmatprep.subr.mxu1 %v2286_v30  ;;  %v11267_v38 = vpop.f32.mrf.mxu0 }
 0x1aa   : > { %8907 = vmatprep.mubr.msk.f32.mxu1 %vm521_vm0, %v11041_v41  ;;  %9019 = vmatpush3.msra.mxu1 %v2286_v30  ;;  %v11271_v41 = vld [vmem:[#allocation7 + $0x1b8] sm:$0xff] }
 0x1ab   : > { %9020 = vmatprep.subr.mxu1 %v2285_v20  ;;  %v11273_v30 = vpop.f32.mrf.mxu0 }
 0x1ac   : > { %9021 = vmatpush3.msra.mxu1 %v2285_v20  ;;  %v3434_v20 = vld [vmem:[#allocation2 + $0x39] sm:$0xff] }
 0x1ad   : > { %8908 = vmatmul.mubr.msk.f32.gmra.mxu1 %vm521_vm0, %v11047_v44  ;;  %9022 = vmatprep.subr.mxu1 %v2284_v36  ;;  %v3435_v44 = vld [vmem:[#allocation2 + $0x49] sm:$0xff]  ;;  %v11278_v15 = vpop.f32.mrf.mxu0 }
 0x1ae   : > { %8910 = vmatprep.mubr.msk.f32.mxu1 %vm521_vm0, %v11055_v45  ;;  %9023 = vmatpush3.msra.mxu1 %v2284_v36  ;;  %v3436_v36 = vld [vmem:[#allocation2 + $0x51] sm:$0xff] }
 0x1af   : > { %9024 = vmatprep.subr.mxu1 %v2283_v11  ;;  %9219 = vmatmul.mubr.msk.f32.vlgmr.msra.gmra.mxu0 %vm521_vm0, %v3434_v20  ;;  %v11284_v45 = vpop.f32.mrf.mxu0 }
 0x1b0   : > { %9025 = vmatpush3.msra.mxu1 %v2283_v11  ;;  %9221 = vmatprep.mubr.msk.f32.mxu0 %vm521_vm0, %v3435_v44  ;;  %v3441_v44 = vld [vmem:[#allocation2 + $0x91] sm:$0xff] }
 0x1b1   : > { %8911 = vmatmul.mubr.msk.f32.gmra.mxu1 %vm521_vm0, %v11066_v48  ;;  %9138 = vmatprep.subr.mxu1 %v11271_v41  ;;  %v3437_v48 = vld [vmem:[#allocation2 + $0x61] sm:$0xff]  ;;  %v11289_v11 = vpop.f32.mrf.mxu0 }
 0x1b2   : > { %8913 = vmatprep.mubr.msk.f32.mxu1 %vm521_vm0, %v11068_v49 }
 0x1b3   : > { %9222 = vmatmul.mubr.msk.f32.gmra.mxu0 %vm521_vm0, %v3436_v36  ;;  %v11294_v49 = vpop.f32.mrf.mxu0 }
 0x1b4   : > { %9224 = vmatprep.mubr.msk.f32.mxu0 %vm521_vm0, %v3437_v48  ;;  %v3443_v48 = vld [vmem:[#allocation2 + $0xa9] sm:$0xff] }
 0x1b5   : > { %8914 = vmatmul.mubr.msk.f32.gmra.mxu1 %vm521_vm0, %v11082_v52  ;;  %v11299_v20 = vpop.f32.mrf.mxu0 }
 0x1b6   : > { %8916 = vmatprep.mubr.msk.f32.mxu1 %vm521_vm0, %v11084_v53  ;;  %v3440_v53 = vld [vmem:[#allocation2 + $0x81] sm:$0xff] }
 0x1b7   : > { %9225 = vmatmul.mubr.msk.f32.gmra.mxu0 %vm521_vm0, %v3438_v29  ;;  %v11304_v52 = vpop.f32.mrf.mxu0 }
 0x1b8   : > { %9227 = vmatprep.mubr.msk.f32.mxu0 %vm521_vm0, %v3439_v23  ;;  %v3445_v23 = vld [vmem:[#allocation2 + $0xc1] sm:$0xff] }
 0x1b9   : > { %8917 = vmatmul.mubr.msk.f32.gmra.mxu1 %vm521_vm0, %v11098_v56  ;;  %v11309_v36 = vpop.f32.mrf.mxu0 }
 0x1ba   : > { %8919 = vmatprep.mubr.msk.f32.mxu1 %vm521_vm0, %v11100_v58  ;;  %v3442_v58 = vld [vmem:[#allocation2 + $0x99] sm:$0xff] }
 0x1bb   : > { %9228 = vmatmul.mubr.msk.f32.gmra.mxu0 %vm521_vm0, %v3440_v53  ;;  %v11314_v56 = vpop.f32.mrf.mxu0 }
 0x1bc   : > { %9230 = vmatprep.mubr.msk.f32.mxu0 %vm521_vm0, %v3441_v44  ;;  %v3447_v44 = vld [vmem:[#allocation2 + $0xd9] sm:$0xff] }
 0x1bd   : > { %8920 = vmatmul.mubr.msk.f32.gmra.mxu1 %vm521_vm0, %v11114_v60  ;;  %v11319_v29 = vpop.f32.mrf.mxu0 }
 0x1be   : > { %8922 = vmatprep.mubr.msk.f32.mxu1 %vm521_vm0, %v11116_v61  ;;  %v3444_v61 = vld [vmem:[#allocation2 + $0xb1] sm:$0xff] }
 0x1bf   : > { %9231 = vmatmul.mubr.msk.f32.gmra.mxu0 %vm521_vm0, %v3442_v58  ;;  %v11324_v60 = vpop.f32.mrf.mxu0 }
 0x1c0   : > { %9233 = vmatprep.mubr.msk.f32.mxu0 %vm521_vm0, %v3443_v48  ;;  %v3449_v48 = vld [vmem:[#allocation2 + $0xf1] sm:$0xff] }
 0x1c1   : > { %8923 = vmatmul.mubr.msk.f32.gmra.mxu1 %vm521_vm0, %v11130_v0  ;;  %v11329_v53 = vpop.f32.mrf.mxu0 }
 0x1c2   : > { %8925 = vmatprep.mubr.msk.f32.mxu1 %vm521_vm0, %v11132_v1  ;;  %v3446_v1 = vld [vmem:[#allocation2 + $0xc9] sm:$0xff] }
 0x1c3   : > { %9234 = vmatmul.mubr.msk.f32.gmra.mxu0 %vm521_vm0, %v3444_v61  ;;  %v11334_v0 = vpop.f32.mrf.mxu0 }
 0x1c4   : > { %13524 = vst [vmem:[#allocation20_spill] sm:$0xff] %v11334_v0  ;;  %9236 = vmatprep.mubr.msk.f32.mxu0 %vm521_vm0, %v3445_v23  ;;  %v3451_v23 = vld [vmem:[#allocation2 + $0x109] sm:$0xff] }
 0x1c5   : > { %8926 = vmatmul.mubr.msk.f32.gmra.mxu1 %vm521_vm0, %v11146_v4  ;;  %v11339_v58 = vpop.f32.mrf.mxu0 }
 0x1c6   : > { %8928 = vmatprep.mubr.msk.f32.mxu1 %vm521_vm0, %v11148_v5  ;;  %v3448_v5 = vld [vmem:[#allocation2 + $0xe1] sm:$0xff] }
 0x1c7   : > { %9237 = vmatmul.mubr.msk.f32.gmra.mxu0 %vm521_vm0, %v3446_v1  ;;  %v11344_v4 = vpop.f32.mrf.mxu0 }
 0x1c8   : > { %13525 = vst [vmem:[#allocation21_spill] sm:$0xff] %v11344_v4  ;;  %9239 = vmatprep.mubr.msk.f32.mxu0 %vm521_vm0, %v3447_v44  ;;  %v3453_v44 = vld [vmem:[#allocation2 + $0x121] sm:$0xff] }
 0x1c9   : > { %8929 = vmatmul.mubr.msk.f32.gmra.mxu1 %vm521_vm0, %v11162_v8  ;;  %v11349_v61 = vpop.f32.mrf.mxu0 }
 0x1ca   : > { %8931 = vmatprep.mubr.msk.f32.mxu1 %vm521_vm0, %v11164_v9  ;;  %v3450_v9 = vld [vmem:[#allocation2 + $0xf9] sm:$0xff] }
 0x1cb   : > { %9240 = vmatmul.mubr.msk.f32.gmra.mxu0 %vm521_vm0, %v3448_v5  ;;  %v11354_v8 = vpop.f32.mrf.mxu0 }
 0x1cc   : > { %13526 = vst [vmem:[#allocation22_spill] sm:$0xff] %v11354_v8  ;;  %9242 = vmatprep.mubr.msk.f32.mxu0 %vm521_vm0, %v3449_v48  ;;  %v3455_v48 = vld [vmem:[#allocation2 + $0x139] sm:$0xff] }
 0x1cd   : > { %8932 = vmatmul.mubr.msk.f32.gmra.mxu1 %vm521_vm0, %v11178_v12  ;;  %v11359_v1 = vpop.f32.mrf.mxu0  ;;  %v3059_v8 = vld [vmem:[#allocation2 + $0x120] sm:$0xff] }
 0x1ce   : > { %8934 = vmatprep.mubr.msk.f32.mxu1 %vm521_vm0, %v11180_v13  ;;  %v3452_v13 = vld [vmem:[#allocation2 + $0x111] sm:$0xff] }
 0x1cf   : > { %9243 = vmatmul.mubr.msk.f32.gmra.mxu0 %vm521_vm0, %v3450_v9  ;;  %v11364_v12 = vpop.f32.mrf.mxu0 }
 0x1d0   : > { %13527 = vst [vmem:[#allocation23_spill] sm:$0xff] %v11364_v12  ;;  %9245 = vmatprep.mubr.msk.f32.mxu0 %vm521_vm0, %v3451_v23  ;;  %v3457_v23 = vld [vmem:[#allocation2 + $0x151] sm:$0xff] }
 0x1d1   : > { %8935 = vmatmul.mubr.msk.f32.gmra.mxu1 %vm521_vm0, %v11194_v17  ;;  %v11369_v5 = vpop.f32.mrf.mxu0 }
 0x1d2   : > { %8937 = vmatprep.mubr.msk.f32.mxu1 %vm521_vm0, %v11196_v18  ;;  %v3454_v18 = vld [vmem:[#allocation2 + $0x129] sm:$0xff] }
 0x1d3   : > { %9246 = vmatmul.mubr.msk.f32.gmra.mxu0 %vm521_vm0, %v3452_v13  ;;  %v11374_v17 = vpop.f32.mrf.mxu0 }
 0x1d4   : > { %13528 = vst [vmem:[#allocation24_spill] sm:$0xff] %v11374_v17  ;;  %9248 = vmatprep.mubr.msk.f32.mxu0 %vm521_vm0, %v3453_v44  ;;  %v3459_v44 = vld [vmem:[#allocation2 + $0x169] sm:$0xff] }
 0x1d5   : > { %8938 = vmatmul.mubr.msk.f32.gmra.mxu1 %vm521_vm0, %v11210_v25  ;;  %v11379_v9 = vpop.f32.mrf.mxu0  ;;  %v3057_v17 = vld [vmem:[#allocation2 + $0x108] sm:$0xff] }
 0x1d6   : > { %8940 = vmatprep.mubr.msk.f32.mxu1 %vm521_vm0, %v11212_v27  ;;  %v3456_v27 = vld [vmem:[#allocation2 + $0x141] sm:$0xff] }
 0x1d7   : > { %9249 = vmatmul.mubr.msk.f32.gmra.mxu0 %vm521_vm0, %v3454_v18  ;;  %v11384_v25 = vpop.f32.mrf.mxu0 }
 0x1d8   : > { %13529 = vst [vmem:[#allocation25_spill] sm:$0xff] %v11384_v25  ;;  %9251 = vmatprep.mubr.msk.f32.mxu0 %vm521_vm0, %v3455_v48  ;;  %v3076_v48 = vld [vmem:[#allocation7 + $0x1a0] sm:$0xff] }
 0x1d9   : > { %8941 = vmatmul.mubr.msk.f32.gmra.mxu1 %vm521_vm0, %v11224_v39  ;;  %v11389_v13 = vpop.f32.mrf.mxu0  ;;  %v3078_v39 = vld [vmem:[#allocation7 + $0x1b0] sm:$0xff] }
 0x1da   : > { %8943 = vmatprep.mubr.msk.f32.mxu1 %vm521_vm0, %v11226_v14  ;;  %v3458_v14 = vld [vmem:[#allocation2 + $0x159] sm:$0xff] }
 0x1db   : > { %9252 = vmatmul.mubr.msk.f32.gmra.mxu0 %vm521_vm0, %v3456_v27  ;;  %v11397_v18 = vpop.f32.mrf.mxu0  ;;  %v3460_v27 = vld [vmem:[#allocation2 + $0x171] sm:$0xff] }
 0x1dc   : > { %9254 = vmatprep.mubr.msk.f32.mxu0 %vm521_vm0, %v3457_v23  ;;  %13530 = vst [vmem:[#allocation26_spill] sm:$0xff] %v11397_v18  ;;  %v3074_v23 = vld [vmem:[#allocation7 + $0x190] sm:$0xff] }
 0x1dd   : > { %8944 = vmatmul.mubr.msk.f32.gmra.mxu1 %vm521_vm0, %v11235_v22  ;;  %v3077_v22 = vld [vmem:[#allocation7 + $0x1a8] sm:$0xff] }
 0x1de   : > { %9026 = vmatprep.mubr.msk.f32.mxu1 %vm521_vm0, %v10992_v21  ;;  %v11403_v21 = vpop.f32.mrf.mxu0 }
 0x1df   : > { %9255 = vmatmul.mubr.msk.f32.gmra.mxu0 %vm521_vm0, %v3458_v14  ;;  %v3073_v14 = vld [vmem:[#allocation7 + $0x188] sm:$0xff] }
 0x1e0   : > { %9257 = vmatprep.mubr.msk.f32.mxu0 %vm521_vm0, %v3459_v44  ;;  %v3072_v44 = vld [vmem:[#allocation7 + $0x180] sm:$0xff] }
 0x1e1   : > { %9027 = vmatmul.mubr.msk.f32.vlgmr.msra.gmra.mxu1 %vm521_vm0, %v10999_v24  ;;  %v11408_v24 = vpop.f32.mrf.mxu0 }
 0x1e2   : > { %9029 = vmatprep.mubr.msk.f32.mxu1 %vm521_vm0, %v11001_v26  ;;  %9139 = vmatpush3.msra.mxu1 %v11271_v41  ;;  %13531 = vst [vmem:[#allocation27_spill] sm:$0xff] %v11408_v24  ;;  %v3075_v26 = vld [vmem:[#allocation7 + $0x198] sm:$0xff]  ;;  %v11412_v41 = vld [vmem:[#allocation2 + $0x181] sm:$0xff]  ;;  %v3055_v24 = vld [vmem:[#allocation2 + $0xf0] sm:$0xff] }
 0x1e3   : > { %9140 = vmatprep.subr.mxu1 %v3078_v39  ;;  %9258 = vmatmul.mubr.msk.f32.gmra.mxu0 %vm521_vm0, %v3460_v27  ;;  %v13551_v27 = vld [vmem:[#allocation18_spill] sm:$0xff] }
 0x1e4   : > { %9141 = vmatpush3.msra.mxu1 %v3078_v39  ;;  %9260 = vmatprep.mubr.msk.f32.mxu0 %vm521_vm0, %v11412_v41  ;;  %v11417_v39 = vpop.f32.mrf.mxu0 }
 0x1e5   : > { %9030 = vmatmul.mubr.msk.f32.gmra.mxu1 %vm521_vm0, %v11007_v28  ;;  %9142 = vmatprep.subr.mxu1 %v3077_v22  ;;  %v3463_v28 = vld [vmem:[#allocation2 + $0x199] sm:$0xff] }
 0x1e6   : > { %9032 = vmatprep.mubr.msk.f32.mxu1 %vm521_vm0, %v11011_v31  ;;  %9143 = vmatpush3.msra.mxu1 %v3077_v22  ;;  %v2281_v31 = vld [vmem:[#allocation2 + $0x189] sm:$0xff]  ;;  %v3464_v22 = vld [vmem:[#allocation2 + $0x1a1] sm:$0xff] }
 0x1e7   : > { %9144 = vmatprep.subr.mxu1 %v3076_v48  ;;  %9261 = vmatmul.mubr.msk.f32.gmra.mxu0 %vm521_vm0, %v2281_v31 }
 0x1e8   : > { %9145 = vmatpush3.msra.mxu1 %v3076_v48  ;;  %9263 = vmatprep.mubr.msk.f32.mxu0 %vm521_vm0, %v3463_v28  ;;  %v11425_v48 = vpop.f32.mrf.mxu0  ;;  %v13554_v28 = vld [vmem:[#allocation19_spill] sm:$0xff] }
 0x1e9   : > { %9033 = vmatmul.mubr.msk.f32.gmra.mxu1 %vm521_vm0, %v11023_v34  ;;  %9146 = vmatprep.subr.mxu1 %v3075_v26  ;;  %13532 = vst [vmem:[#allocation28_spill] sm:$0xff] %v11425_v48  ;;  %v3867_v34 = vld [vmem:[#allocation7 + $0x238] sm:$0xff] }
 0x1ea   : > { %9035 = vmatprep.mubr.msk.f32.mxu1 %vm521_vm0, %v11027_v37  ;;  %9147 = vmatpush3.msra.mxu1 %v3075_v26  ;;  %v11432_v37 = vpop.f32.mrf.mxu0 }
 0x1eb   : > { %9148 = vmatprep.subr.mxu1 %v3074_v23  ;;  %9264 = vmatmul.mubr.msk.f32.gmra.mxu0 %vm521_vm0, %v3464_v22  ;;  %13533 = vst [vmem:[#allocation29_spill] sm:$0xff] %v11432_v37 }
 0x1ec   : > { %9149 = vmatpush3.msra.mxu1 %v3074_v23 }
 0x1ed   : > { %9036 = vmatmul.mubr.msk.f32.gmra.mxu1 %vm521_vm0, %v11039_v40  ;;  %9150 = vmatprep.subr.mxu1 %v3073_v14  ;;  %v11438_v40 = vpop.f32.mrf.mxu0 }
 0x1ee   : > { %9038 = vmatprep.mubr.msk.f32.mxu1 %vm521_vm0, %v11045_v43  ;;  %9151 = vmatpush3.msra.mxu1 %v3073_v14  ;;  %13534 = vst [vmem:[#allocation30_spill] sm:$0xff] %v11438_v40  ;;  %v3053_v40 = vld [vmem:[#allocation2 + $0xd8] sm:$0xff] }
 0x1ef   : > { %9152 = vmatprep.subr.mxu1 %v3072_v44  ;;  %v11444_v43 = vpop.f32.mrf.mxu0 }
 0x1f0   : > { %9153 = vmatpush3.msra.mxu1 %v3072_v44  ;;  %13535 = vst [vmem:[#allocation31_spill] sm:$0xff] %v11444_v43  ;;  %v3039_v44 = vld [vmem:[#allocation2 + $0x30] sm:$0xff]  ;;  %v3831_v43 = vld [vmem:[#allocation2 + $0x62] sm:$0xff] }
 0x1f1   : > { %9039 = vmatmul.mubr.msk.f32.gmra.mxu1 %vm521_vm0, %v11060_v46  ;;  %9266 = vmatprep.subr.mxu1 %v3867_v34  ;;  %v11450_v46 = vpop.f32.mrf.mxu0 }
 0x1f2   : > { %9041 = vmatprep.mubr.msk.f32.mxu1 %vm521_vm0, %v11064_v47  ;;  %13536 = vst [vmem:[#allocation32_spill] sm:$0xff] %v11450_v46 }
 0x1f3   : > { %v11456_v47 = vpop.f32.mrf.mxu0 }
 0x1f4   : > { %13537 = vst [vmem:[#allocation33_spill] sm:$0xff] %v11456_v47 }
 0x1f5   : > { %9042 = vmatmul.mubr.msk.f32.gmra.mxu1 %vm521_vm0, %v11078_v50  ;;  %v11462_v50 = vpop.f32.mrf.mxu0 }
 0x1f6   : > { %9044 = vmatprep.mubr.msk.f32.mxu1 %vm521_vm0, %v11080_v51  ;;  %13538 = vst [vmem:[#allocation34_spill] sm:$0xff] %v11462_v50  ;;  %v3051_v50 = vld [vmem:[#allocation2 + $0xc0] sm:$0xff] }
 0x1f7   : > { %v11468_v51 = vpop.f32.mrf.mxu0 }
 0x1f8   : > { %13539 = vst [vmem:[#allocation35_spill] sm:$0xff] %v11468_v51 }
 0x1f9   : > { %9045 = vmatmul.mubr.msk.f32.gmra.mxu1 %vm521_vm0, %v11094_v54 }
 0x1fa   : > { %9047 = vmatprep.mubr.msk.f32.mxu1 %vm521_vm0, %v11096_v55  ;;  %v11476_v55 = vpop.f32.mrf.mxu0 }
 0x1fb   : > { %13541 = vst [vmem:[#allocation37_spill] sm:$0xff] %v11476_v55 }
 0x1fd   : > { %9048 = vmatmul.mubr.msk.f32.gmra.mxu1 %vm521_vm0, %v11110_v57  ;;  %v13542_v57 = vld [vmem:[#allocation14_spill] sm:$0xff] }
 0x1fe   : > { %9050 = vmatprep.mubr.msk.f32.mxu1 %vm521_vm0, %v11112_v59 }
 0x201   : > { %9051 = vmatmul.mubr.msk.f32.gmra.mxu1 %vm521_vm0, %v11126_v62  ;;  %v11484_v62 = vpop.f32.mrf.mxu0 }
 0x202   : > { %9053 = vmatprep.mubr.msk.f32.mxu1 %vm521_vm0, %v11128_v63  ;;  %13544 = vst [vmem:[#allocation38_spill] sm:$0xff] %v11484_v62  ;;  %v3827_v62 = vld [vmem:[#allocation2 + $0x32] sm:$0xff] }
 0x205   : > { %9054 = vmatmul.mubr.msk.f32.gmra.mxu1 %vm521_vm0, %v11142_v2  ;;  %v11474_v54 = vpop.f32.mrf.mxu1  ;;  %v13546_v2 = vld [vmem:[#allocation15_spill] sm:$0xff] }
 0x206   : > { %9056 = vmatprep.mubr.msk.f32.mxu1 %vm521_vm0, %v11144_v3  ;;  %13540 = vst [vmem:[#allocation36_spill] sm:$0xff] %v11474_v54  ;;  %v13547_v3 = vld [vmem:[#allocation16_spill] sm:$0xff] }
 0x207   : > { %v11482_v59 = vpop.f32.mrf.mxu1  ;;  %v3862_v54 = vld [vmem:[#allocation7 + $0x210] sm:$0xff] }
 0x208   : > { %13543 = vst [vmem:[#allocation14_spill] sm:$0xff] %v11482_v59 }
 0x209   : > { %9057 = vmatmul.mubr.msk.f32.gmra.mxu1 %vm521_vm0, %v11158_v6  ;;  %v11492_v6 = vpop.f32.mrf.mxu0 }
 0x20a   : > { %9059 = vmatprep.mubr.msk.f32.mxu1 %vm521_vm0, %v11160_v7  ;;  %13548 = vst [vmem:[#allocation15_spill] sm:$0xff] %v11492_v6 }
 0x20b   : > { %v11502_v23 = vpop.f32.mrf.mxu0 }
 0x20c   : > { %13553 = vst [vmem:[#allocation18_spill] sm:$0xff] %v11502_v23 }
 0x20d   : > { %9060 = vmatmul.mubr.msk.f32.gmra.mxu1 %vm521_vm0, %v11174_v10  ;;  %v11486_v63 = vpop.f32.mrf.mxu1  ;;  %v13550_v10 = vld [vmem:[#allocation17_spill] sm:$0xff]  ;;  %v11510_v22 = vpop.f32.mrf.mxu0 }
 0x20e   : > { %9062 = vmatprep.mubr.msk.f32.mxu1 %vm521_vm0, %v13542_v57  ;;  %13545 = vst [vmem:[#allocation39_spill] sm:$0xff] %v11486_v63  ;;  %13556 = vst [vmem:[#allocation40_spill] sm:$0xff] %v11510_v22  ;;  %v3860_v22 = vld [vmem:[#allocation7 + $0x200] sm:$0xff] }
 0x20f   : > { %v11494_v7 = vpop.f32.mrf.mxu1 }
 0x210   : > { %13549 = vst [vmem:[#allocation16_spill] sm:$0xff] %v11494_v7  ;;  %v3045_v7 = vld [vmem:[#allocation2 + $0x78] sm:$0xff] }
 0x211   : > { %9063 = vmatmul.mubr.msk.f32.gmra.mxu1 %vm521_vm0, %v13546_v2  ;;  %v3040_v2 = vld [vmem:[#allocation2 + $0x38] sm:$0xff] }
 0x212   : > { %9065 = vmatprep.mubr.msk.f32.mxu1 %vm521_vm0, %v13547_v3 }
 0x215   : > { %9066 = vmatmul.mubr.msk.f32.gmra.mxu1 %vm521_vm0, %v13550_v10  ;;  %v11500_v26 = vpop.f32.mrf.mxu1  ;;  %v3041_v10 = vld [vmem:[#allocation2 + $0x48] sm:$0xff] }
 0x216   : > { %9068 = vmatprep.mubr.msk.f32.mxu1 %vm521_vm0, %v13551_v27  ;;  %13552 = vst [vmem:[#allocation17_spill] sm:$0xff] %v11500_v26  ;;  %v3866_v27 = vld [vmem:[#allocation7 + $0x230] sm:$0xff] }
 0x217   : > { %v11508_v14 = vpop.f32.mrf.mxu1 }
 0x218   : > { %13555 = vst [vmem:[#allocation19_spill] sm:$0xff] %v11508_v14 }
 0x219   : > { %9069 = vmatmul.mubr.msk.f32.gmra.mxu1 %vm521_vm0, %v13554_v28  ;;  %v11518_v28 = vpop.f32.mrf.mxu0 }
 0x21a   : > { %9071 = vmatprep.mubr.msk.f32.mxu1 %vm521_vm0, %v11412_v41  ;;  %13559 = vst [vmem:[#allocation43_spill] sm:$0xff] %v11518_v28  ;;  %v3042_v41 = vld [vmem:[#allocation2 + $0x50] sm:$0xff] }
 0x21d   : > { %v11512_v57 = vpop.f32.mrf.mxu1  ;;  %9072 = vmatmul.mubr.msk.f32.gmra.mxu1 %vm521_vm0, %v2281_v31  ;;  %v3043_v31 = vld [vmem:[#allocation2 + $0x60] sm:$0xff] }
 0x21e   : > { %13557 = vst [vmem:[#allocation41_spill] sm:$0xff] %v11512_v57  ;;  %9154 = vmatprep.mubr.msk.f32.mxu1 %vm521_vm0, %v3039_v44  ;;  %v3865_v57 = vld [vmem:[#allocation7 + $0x228] sm:$0xff]  ;;  %v3864_v44 = vld [vmem:[#allocation7 + $0x220] sm:$0xff] }
 0x21f   : > { %v11516_v3 = vpop.f32.mrf.mxu1 }
 0x220   : > { %13558 = vst [vmem:[#allocation42_spill] sm:$0xff] %v11516_v3  ;;  %v11526_v3 = vpop.f32.mrf.mxu0 }
 0x221   : > { %v11520_v26 = vpop.f32.mrf.mxu1  ;;  %9155 = vmatmul.mubr.msk.f32.vlgmr.msra.gmra.mxu1 %vm521_vm0, %v3040_v2  ;;  %13560 = vst [vmem:[#allocation44_spill] sm:$0xff] %v11526_v3  ;;  %v3044_v2 = vld [vmem:[#allocation2 + $0x68] sm:$0xff]  ;;  %v3047_v3 = vld [vmem:[#allocation2 + $0x90] sm:$0xff] }
 0x222   : > { %9157 = vmatprep.mubr.msk.f32.mxu1 %vm521_vm0, %v3041_v10  ;;  %9267 = vmatpush3.msra.mxu1 %v3867_v34  ;;  %v3863_v10 = vld [vmem:[#allocation7 + $0x218] sm:$0xff] }
 0x223   : > { %v11524_v14 = vpop.f32.mrf.mxu1  ;;  %9268 = vmatprep.subr.mxu1 %v3866_v27 }
 0x224   : > { %9269 = vmatpush3.msra.mxu1 %v3866_v27  ;;  %v11534_v27 = vpop.f32.mrf.mxu0 }
 0x225   : > { %v11528_v63 = vpop.f32.mrf.mxu1  ;;  %9158 = vmatmul.mubr.msk.f32.gmra.mxu1 %vm521_vm0, %v3042_v41  ;;  %9270 = vmatprep.subr.mxu1 %v3865_v57  ;;  %13561 = vst [vmem:[#allocation45_spill] sm:$0xff] %v11534_v27  ;;  %v3046_v41 = vld [vmem:[#allocation2 + $0x80] sm:$0xff] }
 0x226   : > { %9160 = vmatprep.mubr.msk.f32.mxu1 %vm521_vm0, %v3043_v31  ;;  %9271 = vmatpush3.msra.mxu1 %v3865_v57  ;;  %v3861_v31 = vld [vmem:[#allocation7 + $0x208] sm:$0xff] }
 0x227   : > { %v11532_v34 = vpop.f32.mrf.mxu1  ;;  %9272 = vmatprep.subr.mxu1 %v3864_v44 }
 0x228   : > { %9273 = vmatpush3.msra.mxu1 %v3864_v44  ;;  %v11542_v44 = vpop.f32.mrf.mxu0 }
 0x229   : > { %v11536_v59 = vpop.f32.mrf.mxu1  ;;  %9161 = vmatmul.mubr.msk.f32.gmra.mxu1 %vm521_vm0, %v3044_v2  ;;  %9274 = vmatprep.subr.mxu1 %v3863_v10  ;;  %13562 = vst [vmem:[#allocation46_spill] sm:$0xff] %v11542_v44  ;;  %v3048_v2 = vld [vmem:[#allocation2 + $0x98] sm:$0xff]  ;;  %v3050_v44 = vld [vmem:[#allocation2 + $0xb0] sm:$0xff] }
 0x22a   : > { %9163 = vmatprep.mubr.msk.f32.mxu1 %vm521_vm0, %v3045_v7  ;;  %9275 = vmatpush3.msra.mxu1 %v3863_v10  ;;  %v3049_v10 = vld [vmem:[#allocation2 + $0xa8] sm:$0xff]  ;;  %v11550_v55 = vpop.f32.mrf.mxu0 }
 0x22b   : > { %v11540_v57 = vpop.f32.mrf.mxu1  ;;  %9276 = vmatprep.subr.mxu1 %v3862_v54  ;;  %13563 = vst [vmem:[#allocation47_spill] sm:$0xff] %v11550_v55  ;;  %v3063_v55 = vld [vmem:[#allocation2 + $0x150] sm:$0xff] }
 0x22c   : > { %9277 = vmatpush3.msra.mxu1 %v3862_v54 }
 0x22d   : > { %v11544_v6 = vpop.f32.mrf.mxu1  ;;  %9164 = vmatmul.mubr.msk.f32.gmra.mxu1 %vm521_vm0, %v3046_v41  ;;  %9278 = vmatprep.subr.mxu1 %v3861_v31 }
 0x22e   : > { %9166 = vmatprep.mubr.msk.f32.mxu1 %vm521_vm0, %v3047_v3  ;;  %9279 = vmatpush3.msra.mxu1 %v3861_v31  ;;  %v11558_v3 = vpop.f32.mrf.mxu0 }
 0x22f   : > { %v11548_v7 = vpop.f32.mrf.mxu1  ;;  %9280 = vmatprep.subr.mxu1 %v3860_v22  ;;  %13564 = vst [vmem:[#allocation48_spill] sm:$0xff] %v11558_v3 }
 0x230   : > { %9281 = vmatpush3.msra.mxu1 %v3860_v22  ;;  %v3052_v22 = vld [vmem:[#allocation2 + $0xc8] sm:$0xff]  ;;  %v11566_v48 = vpop.f32.mrf.mxu0 }
 0x231   : > { %v11552_v54 = vpop.f32.mrf.mxu1  ;;  %9167 = vmatmul.mubr.msk.f32.gmra.mxu1 %vm521_vm0, %v3048_v2  ;;  %13565 = vst [vmem:[#allocation49_spill] sm:$0xff] %v11566_v48 }
 0x232   : > { %9169 = vmatprep.mubr.msk.f32.mxu1 %vm521_vm0, %v3049_v10  ;;  %v3054_v10 = vld [vmem:[#allocation2 + $0xe0] sm:$0xff]  ;;  %v11574_v18 = vpop.f32.mrf.mxu0 }
 0x233   : > { %v11556_v41 = vpop.f32.mrf.mxu1  ;;  %13566 = vst [vmem:[#allocation50_spill] sm:$0xff] %v11574_v18 }
 0x234   : > { %v11582_v12 = vpop.f32.mrf.mxu0 }
 0x235   : > { %v11560_v31 = vpop.f32.mrf.mxu1  ;;  %9170 = vmatmul.mubr.msk.f32.gmra.mxu1 %vm521_vm0, %v3050_v44  ;;  %13567 = vst [vmem:[#allocation51_spill] sm:$0xff] %v11582_v12  ;;  %v3061_v12 = vld [vmem:[#allocation2 + $0x138] sm:$0xff] }
 0x236   : > { %9172 = vmatprep.mubr.msk.f32.mxu1 %vm521_vm0, %v3051_v50  ;;  %v3056_v50 = vld [vmem:[#allocation2 + $0xf8] sm:$0xff]  ;;  %v11590_v4 = vpop.f32.mrf.mxu0 }
 0x237   : > { %v11564_v46 = vpop.f32.mrf.mxu1  ;;  %13568 = vst [vmem:[#allocation52_spill] sm:$0xff] %v11590_v4 }
 0x238   : > { %v11598_v48 = vpop.f32.mrf.mxu0 }
 0x239   : > { %v11568_v2 = vpop.f32.mrf.mxu1  ;;  %9173 = vmatmul.mubr.msk.f32.gmra.mxu1 %vm521_vm0, %v3052_v22  ;;  %13570 = vst [vmem:[#allocation54_spill] sm:$0xff] %v11598_v48  ;;  %v3065_v48 = vld [vmem:[#allocation2 + $0x168] sm:$0xff] }
 0x23a   : > { %9175 = vmatprep.mubr.msk.f32.mxu1 %vm521_vm0, %v3053_v40  ;;  %v3058_v40 = vld [vmem:[#allocation2 + $0x110] sm:$0xff]  ;;  %v11606_v27 = vpop.f32.mrf.mxu0 }
 0x23b   : > { %v11572_v3 = vpop.f32.mrf.mxu1  ;;  %13572 = vst [vmem:[#allocation56_spill] sm:$0xff] %v11606_v27 }
 0x23c   : > { %v11614_v28 = vpop.f32.mrf.mxu0 }
 0x23d   : > { %v11576_v44 = vpop.f32.mrf.mxu1  ;;  %9176 = vmatmul.mubr.msk.f32.gmra.mxu1 %vm521_vm0, %v3054_v10  ;;  %13574 = vst [vmem:[#allocation58_spill] sm:$0xff] %v11614_v28  ;;  %v3069_v28 = vld [vmem:[#allocation2 + $0x198] sm:$0xff] }
 0x23e   : > { %9178 = vmatprep.mubr.msk.f32.mxu1 %vm521_vm0, %v3055_v24  ;;  %v3060_v24 = vld [vmem:[#allocation2 + $0x128] sm:$0xff] }
 0x23f   : > { %v11580_v25 = vpop.f32.mrf.mxu1 }
 0x241   : > { %v11584_v22 = vpop.f32.mrf.mxu1  ;;  %9179 = vmatmul.mubr.msk.f32.gmra.mxu1 %vm521_vm0, %v3056_v50 }
 0x242   : > { %9181 = vmatprep.mubr.msk.f32.mxu1 %vm521_vm0, %v3057_v17  ;;  %v3062_v17 = vld [vmem:[#allocation2 + $0x140] sm:$0xff] }
 0x243   : > { %v11588_v18 = vpop.f32.mrf.mxu1 }
 0x245   : > { %v11592_v10 = vpop.f32.mrf.mxu1  ;;  %9182 = vmatmul.mubr.msk.f32.gmra.mxu1 %vm521_vm0, %v3058_v40 }
 0x246   : > { %9184 = vmatprep.mubr.msk.f32.mxu1 %vm521_vm0, %v3059_v8  ;;  %v3064_v8 = vld [vmem:[#allocation2 + $0x158] sm:$0xff] }
 0x247   : > { %v11596_v0 = vpop.f32.mrf.mxu1 }
 0x248   : > { %13569 = vst [vmem:[#allocation53_spill] sm:$0xff] %v11596_v0 }
 0x249   : > { %v11600_v50 = vpop.f32.mrf.mxu1  ;;  %9185 = vmatmul.mubr.msk.f32.gmra.mxu1 %vm521_vm0, %v3060_v24 }
 0x24a   : > { %9187 = vmatprep.mubr.msk.f32.mxu1 %vm521_vm0, %v3061_v12  ;;  %v3066_v12 = vld [vmem:[#allocation2 + $0x170] sm:$0xff] }
 0x24b   : > { %v11604_v4 = vpop.f32.mrf.mxu1 }
 0x24c   : > { %13571 = vst [vmem:[#allocation55_spill] sm:$0xff] %v11604_v4  ;;  %v11622_v4 = vpop.f32.mrf.mxu0 }
 0x24d   : > { %v11608_v40 = vpop.f32.mrf.mxu1  ;;  %9188 = vmatmul.mubr.msk.f32.gmra.mxu1 %vm521_vm0, %v3062_v17  ;;  %13576 = vst [vmem:[#allocation60_spill] sm:$0xff] %v11622_v4  ;;  %v3070_v4 = vld [vmem:[#allocation2 + $0x1a0] sm:$0xff] }
 0x24e   : > { %9190 = vmatprep.mubr.msk.f32.mxu1 %vm521_vm0, %v3063_v55  ;;  %v10122_v55 = vld [vmem:[#allocation2 + $0x180] sm:$0xff]  ;;  %v11630_v23 = vpop.f32.mrf.mxu0 }
 0x24f   : > { %v11612_v0 = vpop.f32.mrf.mxu1  ;;  %13578 = vst [vmem:[#allocation62_spill] sm:$0xff] %v11630_v23  ;;  %v3829_v23 = vld [vmem:[#allocation2 + $0x4a] sm:$0xff] }
 0x250   : > { %13573 = vst [vmem:[#allocation57_spill] sm:$0xff] %v11612_v0 }
 0x251   : > { %v11616_v24 = vpop.f32.mrf.mxu1  ;;  %9191 = vmatmul.mubr.msk.f32.gmra.mxu1 %vm521_vm0, %v3064_v8 }
 0x252   : > { %9193 = vmatprep.mubr.msk.f32.mxu1 %vm521_vm0, %v3065_v48  ;;  %v10123_v48 = vld [vmem:[#allocation2 + $0x188] sm:$0xff] }
 0x253   : > { %v11620_v27 = vpop.f32.mrf.mxu1 }
 0x254   : > { %13575 = vst [vmem:[#allocation59_spill] sm:$0xff] %v11620_v27 }
 0x255   : > { %v11624_v17 = vpop.f32.mrf.mxu1  ;;  %9194 = vmatmul.mubr.msk.f32.gmra.mxu1 %vm521_vm0, %v3066_v12  ;;  %v11638_v12 = vpop.f32.mrf.mxu0 }
 0x256   : > { %9196 = vmatprep.mubr.msk.f32.mxu1 %vm521_vm0, %v10122_v55  ;;  %13580 = vst [vmem:[#allocation64_spill] sm:$0xff] %v11638_v12  ;;  %v3828_v55 = vld [vmem:[#allocation2 + $0x3a] sm:$0xff]  ;;  %v1304_v12 = vadd.f32 %v11245_v35, %v11524_v14  ;;  %v1314_v35 = vadd.f32 %v11254_v42, %v11532_v34  ;;  %v1324_v42 = vadd.f32 %v11263_v16, %v11540_v57 }
 0x257   : > { %v11628_v0 = vpop.f32.mrf.mxu1  ;;  %v1334_v16 = vadd.f32 %v11273_v30, %v11548_v7  ;;  %v1344_v30 = vadd.f32 %v11284_v45, %v11556_v41  ;;  %v1354_v45 = vadd.f32 %v11294_v49, %v11564_v46  ;;  %v1364_v49 = vadd.f32 %v11304_v52, %v11572_v3 }
 0x258   : > { %13577 = vst [vmem:[#allocation61_spill] sm:$0xff] %v11628_v0  ;;  %v1374_v52 = vadd.f32 %v11314_v56, %v11580_v25  ;;  %v1384_v56 = vadd.f32 %v11324_v60, %v11588_v18  ;;  %v3848_v18 = vld [vmem:[#allocation2 + $0x12a] sm:$0xff] }
 0x259   : > { %v11632_v8 = vpop.f32.mrf.mxu1  ;;  %9197 = vmatmul.mubr.msk.f32.gmra.mxu1 %vm521_vm0, %v10123_v48  ;;  %v1309_v48 = vadd.f32 %v11240_v33, %v11520_v26 }
 0x25a   : > { %9199 = vmatprep.mubr.msk.f32.mxu1 %vm521_vm0, %v3069_v28  ;;  %v11648_v28 = vpop.f32.mrf.mxu0 }
 0x25b   : > { %v11636_v27 = vpop.f32.mrf.mxu1 }
 0x25c   : > { %13579 = vst [vmem:[#allocation63_spill] sm:$0xff] %v11636_v27  ;;  %v11660_v33 = vpop.f32.mrf.mxu0 }
 0x25d   : > { %v11640_v51 = vpop.f32.mrf.mxu1  ;;  %9200 = vmatmul.mubr.msk.f32.gmra.mxu1 %vm521_vm0, %v3070_v4  ;;  %v3830_v4 = vld [vmem:[#allocation2 + $0x52] sm:$0xff] }
 0x25e   : > { %9282 = vmatprep.mubr.msk.f32.mxu1 %vm521_vm0, %v3827_v62 }
 0x25f   : > { %v11644_v0 = vpop.f32.mrf.mxu1 }
 0x260   : > { %13581 = vst [vmem:[#allocation65_spill] sm:$0xff] %v11644_v0  ;;  %v1319_v0 = vadd.f32 %v11250_v19, %v11528_v63  ;;  %v1329_v19 = vadd.f32 %v11259_v32, %v11536_v59  ;;  %v1339_v32 = vadd.f32 %v11267_v38, %v11544_v6  ;;  %v1349_v38 = vadd.f32 %v11278_v15, %v11552_v54 }
 0x261   : > { %v8900_v47 = vpop.f32.mrf.mxu1  ;;  %9283 = vmatmul.mubr.msk.f32.vlgmr.msra.gmra.mxu1 %vm521_vm0, %v3828_v55  ;;  %v3833_v55 = vld [vmem:[#allocation2 + $0x7a] sm:$0xff]  ;;  %v1359_v15 = vadd.f32 %v11289_v11, %v11560_v31  ;;  %v1369_v11 = vadd.f32 %v11299_v20, %v11568_v2  ;;  %v1379_v20 = vadd.f32 %v11309_v36, %v11576_v44  ;;  %v1389_v36 = vadd.f32 %v11319_v29, %v11584_v22 }
 0x262   : > { %v11653_v27 = vadd.f32 %v8900_v47, %v1309_v48  ;;  %9285 = vmatprep.mubr.msk.f32.mxu1 %vm521_vm0, %v3829_v23  ;;  %v3832_v23 = vld [vmem:[#allocation2 + $0x6a] sm:$0xff]  ;;  %v1399_v29 = vadd.f32 %v11329_v53, %v11592_v10 }
 0x263   : > { %v1665_v62 = vpop.f32.mrf.mxu1  ;;  %v4538_v53 = vld [vmem:[#allocation9 + $0xf0] sm:$0xff] }
 0x264   : > { %v11658_v37 = vadd.f32 %v1665_v62, %v1304_v12  ;;  %v11672_v12 = vpop.f32.mrf.mxu0  ;;  %v4489_v10 = vld [vmem:[#allocation9 + $0x70] sm:$0xff] }
 0x265   : > { %v8903_v26 = vpop.f32.mrf.mxu1  ;;  %9286 = vmatmul.mubr.msk.f32.gmra.mxu1 %vm521_vm0, %v3830_v4  ;;  %v3835_v4 = vld [vmem:[#allocation2 + $0x92] sm:$0xff] }
 0x266   : > { %v11665_v47 = vadd.f32 %v8903_v26, %v1319_v0  ;;  %9288 = vmatprep.mubr.msk.f32.mxu1 %vm521_vm0, %v3831_v43  ;;  %v3834_v43 = vld [vmem:[#allocation2 + $0x82] sm:$0xff]  ;;  %v11684_v62 = vpop.f32.mrf.mxu0 }
 0x267   : > { %v1675_v14 = vpop.f32.mrf.mxu1 }
 0x268   : > { %v11670_v63 = vadd.f32 %v1675_v14, %v1314_v35  ;;  %v3836_v35 = vld [vmem:[#allocation2 + $0x9a] sm:$0xff]  ;;  %v3837_v14 = vld [vmem:[#allocation2 + $0xaa] sm:$0xff] }
 0x269   : > { %v8906_v48 = vpop.f32.mrf.mxu1  ;;  %9289 = vmatmul.mubr.msk.f32.gmra.mxu1 %vm521_vm0, %v3832_v23 }
 0x26a   : > { %v11677_v0 = vadd.f32 %v8906_v48, %v1329_v19  ;;  %9291 = vmatprep.mubr.msk.f32.mxu1 %vm521_vm0, %v3833_v55  ;;  %v11696_v55 = vpop.f32.mrf.mxu0  ;;  %v3838_v48 = vld [vmem:[#allocation2 + $0xb2] sm:$0xff] }
 0x26b   : > { %v1685_v34 = vpop.f32.mrf.mxu1 }
 0x26c   : > { %v11682_v59 = vadd.f32 %v1685_v34, %v1324_v42  ;;  %v11708_v34 = vpop.f32.mrf.mxu0 }
 0x26d   : > { %v8909_v26 = vpop.f32.mrf.mxu1  ;;  %9292 = vmatmul.mubr.msk.f32.gmra.mxu1 %vm521_vm0, %v3834_v43  ;;  %v3839_v43 = vld [vmem:[#allocation2 + $0xc2] sm:$0xff] }
 0x26e   : > { %v11689_v57 = vadd.f32 %v8909_v26, %v1339_v32  ;;  %9294 = vmatprep.mubr.msk.f32.mxu1 %vm521_vm0, %v3835_v4  ;;  %v3840_v32 = vld [vmem:[#allocation2 + $0xca] sm:$0xff] }
 0x26f   : > { %v1695_v23 = vpop.f32.mrf.mxu1 }
 0x270   : > { %v11694_v6 = vadd.f32 %v1695_v23, %v1334_v16  ;;  %v3841_v16 = vld [vmem:[#allocation2 + $0xda] sm:$0xff] }
 0x271   : > { %v8912_v19 = vpop.f32.mrf.mxu1  ;;  %9295 = vmatmul.mubr.msk.f32.gmra.mxu1 %vm521_vm0, %v3836_v35  ;;  %v11720_v35 = vpop.f32.mrf.mxu0 }
 0x272   : > { %v11701_v7 = vadd.f32 %v8912_v19, %v1349_v38  ;;  %9297 = vmatprep.mubr.msk.f32.mxu1 %vm521_vm0, %v3837_v14  ;;  %v3842_v14 = vld [vmem:[#allocation2 + $0xe2] sm:$0xff]  ;;  %v3843_v19 = vld [vmem:[#allocation2 + $0xf2] sm:$0xff] }
 0x273   : > { %v1705_v42 = vpop.f32.mrf.mxu1 }
 0x274   : > { %v11706_v54 = vadd.f32 %v1705_v42, %v1344_v30  ;;  %v11732_v30 = vpop.f32.mrf.mxu0  ;;  %v3844_v42 = vld [vmem:[#allocation2 + $0xfa] sm:$0xff] }
 0x275   : > { %v8915_v4 = vpop.f32.mrf.mxu1  ;;  %9298 = vmatmul.mubr.msk.f32.gmra.mxu1 %vm521_vm0, %v3838_v48 }
 0x276   : > { %v11713_v41 = vadd.f32 %v8915_v4, %v1359_v15  ;;  %9300 = vmatprep.mubr.msk.f32.mxu1 %vm521_vm0, %v3839_v43  ;;  %v3845_v15 = vld [vmem:[#allocation2 + $0x10a] sm:$0xff]  ;;  %v11744_v4 = vpop.f32.mrf.mxu0 }
 0x277   : > { %v1715_v26 = vpop.f32.mrf.mxu1 }
 0x278   : > { %v11718_v31 = vadd.f32 %v1715_v26, %v1354_v45 }
 0x279   : > { %v8918_v23 = vpop.f32.mrf.mxu1  ;;  %9301 = vmatmul.mubr.msk.f32.gmra.mxu1 %vm521_vm0, %v3840_v32  ;;  %v3846_v32 = vld [vmem:[#allocation2 + $0x112] sm:$0xff] }
 0x27a   : > { %v11725_v46 = vadd.f32 %v8918_v23, %v1369_v11  ;;  %9303 = vmatprep.mubr.msk.f32.mxu1 %vm521_vm0, %v3841_v16  ;;  %v3847_v16 = vld [vmem:[#allocation2 + $0x122] sm:$0xff]  ;;  %v11756_v11 = vpop.f32.mrf.mxu0 }
 0x27b   : > { %v1725_v38 = vpop.f32.mrf.mxu1 }
 0x27c   : > { %v11730_v2 = vadd.f32 %v1725_v38, %v1364_v49  ;;  %v4539_v49 = vld [vmem:[#allocation9 + $0xf8] sm:$0xff] }
 0x27d   : > { %v8921_v48 = vpop.f32.mrf.mxu1  ;;  %9304 = vmatmul.mubr.msk.f32.gmra.mxu1 %vm521_vm0, %v3842_v14  ;;  %v4490_v14 = vld [vmem:[#allocation9 + $0x78] sm:$0xff]  ;;  %9330 = vmatprep.subr.mxu0 %v4539_v49 }
 0x27e   : > { %v11737_v3 = vadd.f32 %v8921_v48, %v1379_v20  ;;  %9306 = vmatprep.mubr.msk.f32.mxu1 %vm521_vm0, %v3843_v19  ;;  %v3849_v19 = vld [vmem:[#allocation2 + $0x13a] sm:$0xff]  ;;  %9410 = vmatprep.subr.mxu1 %v4490_v14  ;;  %v1409_v20 = vadd.f32 %v11339_v58, %v11600_v50  ;;  %v11766_v48 = vpop.f32.mrf.mxu0  ;;  %v1419_v50 = vadd.f32 %v11349_v61, %v11608_v40  ;;  %v3853_v61 = vld [vmem:[#allocation2 + $0x16a] sm:$0xff] }
 0x27f   : > { %v1735_v43 = vpop.f32.mrf.mxu1  ;;  %9331 = vmatpush3.msra.mxu0 %v4539_v49  ;;  %13582 = vst [vmem:[#allocation66_spill] sm:$0xff] %v11766_v48  ;;  %9411 = vmatpush3.msra.mxu1 %v4490_v14  ;;  %v4536_v58 = vld [vmem:[#allocation9 + $0xe0] sm:$0xff]  ;;  %v4486_v14 = vld [vmem:[#allocation9 + $0x58] sm:$0xff]  ;;  %v1429_v40 = vadd.f32 %v11359_v1, %v11616_v24  ;;  %v1439_v1 = vadd.f32 %v11369_v5, %v11624_v17 }
 0x280   : > { %v11742_v44 = vadd.f32 %v1735_v43, %v1374_v52  ;;  %9332 = vmatprep.subr.mxu0 %v4538_v53  ;;  %9412 = vmatprep.subr.mxu1 %v4489_v10  ;;  %v4488_v43 = vld [vmem:[#allocation9 + $0x68] sm:$0xff]  ;;  %v3852_v49 = vld [vmem:[#allocation2 + $0x15a] sm:$0xff]  ;;  %v1449_v17 = vadd.f32 %v11379_v9, %v11632_v8  ;;  %v1459_v9 = vadd.f32 %v11389_v13, %v11640_v51 }
 0x281   : > { %v8924_v45 = vpop.f32.mrf.mxu1  ;;  %9307 = vmatmul.mubr.msk.f32.gmra.mxu1 %vm521_vm0, %v3844_v42  ;;  %v4537_v42 = vld [vmem:[#allocation9 + $0xe8] sm:$0xff]  ;;  %9333 = vmatpush3.msra.mxu0 %v4538_v53  ;;  %v4534_v53 = vld [vmem:[#allocation9 + $0xd0] sm:$0xff]  ;;  %v3857_v5 = vld [vmem:[#allocation2 + $0x19a] sm:$0xff]  ;;  %v2219_v13 = vadd.f32 %v11403_v21, %v11653_v27  ;;  %v2221_v21 = vadd.f32 %v11417_v39, %v11665_v47 }
 0x282   : > { %v11749_v25 = vadd.f32 %v8924_v45, %v1389_v36  ;;  %9309 = vmatprep.mubr.msk.f32.mxu1 %vm521_vm0, %v3845_v15  ;;  %v3850_v36 = vld [vmem:[#allocation2 + $0x142] sm:$0xff]  ;;  %9413 = vmatpush3.msra.mxu1 %v4489_v10  ;;  %v13590_v39 = vld [vmem:[#allocation29_spill] sm:$0xff] }
 0x283   : > { %v1745_v26 = vpop.f32.mrf.mxu1  ;;  %9334 = vmatprep.subr.mxu0 %v4537_v42  ;;  %9414 = vmatprep.subr.mxu1 %v4488_v43  ;;  %v2223_v47 = vadd.f32 %v13590_v39, %v11677_v0  ;;  %v13592_v0 = vld [vmem:[#allocation31_spill] sm:$0xff] }
 0x284   : > { %v11754_v22 = vadd.f32 %v1745_v26, %v1384_v56  ;;  %v3851_v56 = vld [vmem:[#allocation2 + $0x152] sm:$0xff]  ;;  %9335 = vmatpush3.msra.mxu0 %v4537_v42  ;;  %v4487_v26 = vld [vmem:[#allocation9 + $0x60] sm:$0xff]  ;;  %9415 = vmatpush3.msra.mxu1 %v4488_v43  ;;  %v4533_v43 = vld [vmem:[#allocation9 + $0xc8] sm:$0xff] }
 0x285   : > { %v8927_v23 = vpop.f32.mrf.mxu1  ;;  %9310 = vmatmul.mubr.msk.f32.gmra.mxu1 %vm521_vm0, %v3846_v32  ;;  %v11776_v32 = vpop.f32.mrf.mxu0  ;;  %9336 = vmatprep.subr.mxu0 %v4536_v58  ;;  %v3854_v42 = vld [vmem:[#allocation2 + $0x172] sm:$0xff] }
 0x286   : > { %v11759_v60 = vadd.f32 %v8927_v23, %v1399_v29  ;;  %9312 = vmatprep.mubr.msk.f32.mxu1 %vm521_vm0, %v3847_v16  ;;  %13583 = vst [vmem:[#allocation67_spill] sm:$0xff] %v11776_v32  ;;  %v4535_v29 = vld [vmem:[#allocation9 + $0xd8] sm:$0xff]  ;;  %9416 = vmatprep.subr.mxu1 %v4487_v26 }
 0x287   : > { %v11762_v38 = vpop.f32.mrf.mxu1  ;;  %9337 = vmatpush3.msra.mxu0 %v4536_v58  ;;  %9417 = vmatpush3.msra.mxu1 %v4487_v26 }
 0x288   : > { %9338 = vmatprep.subr.mxu0 %v4535_v29  ;;  %9418 = vmatprep.subr.mxu1 %v4486_v14 }
 0x289   : > { %v8930_v52 = vpop.f32.mrf.mxu1  ;;  %9313 = vmatmul.mubr.msk.f32.gmra.mxu1 %vm521_vm0, %v3848_v18  ;;  %9339 = vmatpush3.msra.mxu0 %v4535_v29  ;;  %v4483_v29 = vld [vmem:[#allocation9 + $0x40] sm:$0xff] }
 0x28a   : > { %v11769_v15 = vadd.f32 %v8930_v52, %v1409_v20  ;;  %9315 = vmatprep.mubr.msk.f32.mxu1 %vm521_vm0, %v3849_v19  ;;  %v11786_v19 = vpop.f32.mrf.mxu0  ;;  %v4485_v20 = vld [vmem:[#allocation9 + $0x50] sm:$0xff]  ;;  %9419 = vmatpush3.msra.mxu1 %v4486_v14 }
 0x28b   : > { %v11772_v45 = vpop.f32.mrf.mxu1  ;;  %13584 = vst [vmem:[#allocation68_spill] sm:$0xff] %v11786_v19  ;;  %9340 = vmatprep.subr.mxu0 %v4534_v53  ;;  %9420 = vmatprep.subr.mxu1 %v4485_v20  ;;  %v13608_v19 = vld [vmem:[#allocation45_spill] sm:$0xff] }
 0x28c   : > { %v11796_v24 = vpop.f32.mrf.mxu0  ;;  %9341 = vmatpush3.msra.mxu0 %v4534_v53  ;;  %9421 = vmatpush3.msra.mxu1 %v4485_v20  ;;  %v10125_v53 = vld [vmem:[#allocation2 + $0x18a] sm:$0xff] }
 0x28d   : > { %v8933_v16 = vpop.f32.mrf.mxu1  ;;  %9316 = vmatmul.mubr.msk.f32.gmra.mxu1 %vm521_vm0, %v3850_v36  ;;  %13585 = vst [vmem:[#allocation69_spill] sm:$0xff] %v11796_v24  ;;  %9342 = vmatprep.subr.mxu0 %v4533_v43  ;;  %v13605_v24 = vld [vmem:[#allocation43_spill] sm:$0xff] }
 0x28e   : > { %v11779_v23 = vadd.f32 %v8933_v16, %v1419_v50  ;;  %9318 = vmatprep.mubr.msk.f32.mxu1 %vm521_vm0, %v3851_v56  ;;  %v4484_v56 = vld [vmem:[#allocation9 + $0x48] sm:$0xff]  ;;  %v4532_v50 = vld [vmem:[#allocation9 + $0xc0] sm:$0xff]  ;;  %9343 = vmatpush3.msra.mxu0 %v4533_v43  ;;  %v11806_v14 = vpop.f32.mrf.mxu0  ;;  %v4530_v43 = vld [vmem:[#allocation9 + $0xb0] sm:$0xff] }
 0x28f   : > { %v11782_v18 = vpop.f32.mrf.mxu1  ;;  %v10124_v16 = vld [vmem:[#allocation2 + $0x182] sm:$0xff]  ;;  %9422 = vmatprep.subr.mxu1 %v4484_v56  ;;  %13586 = vst [vmem:[#allocation70_spill] sm:$0xff] %v11806_v14  ;;  %9344 = vmatprep.subr.mxu0 %v4532_v50 }
 0x290   : > { %9423 = vmatpush3.msra.mxu1 %v4484_v56  ;;  %9345 = vmatpush3.msra.mxu0 %v4532_v50  ;;  %v11816_v8 = vpop.f32.mrf.mxu0  ;;  %v4481_v56 = vld [vmem:[#allocation9 + $0x30] sm:$0xff]  ;;  %v4480_v50 = vld [vmem:[#allocation9 + $0x28] sm:$0xff]  ;;  %v13602_v14 = vld [vmem:[#allocation18_spill] sm:$0xff] }
 0x291   : > { %v8936_v10 = vpop.f32.mrf.mxu1  ;;  %9319 = vmatmul.mubr.msk.f32.gmra.mxu1 %vm521_vm0, %v3852_v49  ;;  %9424 = vmatprep.subr.mxu1 %v4483_v29  ;;  %13587 = vst [vmem:[#allocation71_spill] sm:$0xff] %v11816_v8 }
 0x292   : > { %v11789_v52 = vadd.f32 %v8936_v10, %v1429_v40  ;;  %9321 = vmatprep.mubr.msk.f32.mxu1 %vm521_vm0, %v3853_v61  ;;  %v4531_v61 = vld [vmem:[#allocation9 + $0xb8] sm:$0xff]  ;;  %9425 = vmatpush3.msra.mxu1 %v4483_v29  ;;  %v4528_v29 = vld [vmem:[#allocation9 + $0xa0] sm:$0xff]  ;;  %v11825_v51 = vpop.f32.mrf.mxu0 }
 0x293   : > { %v11792_v36 = vpop.f32.mrf.mxu1  ;;  %v4482_v10 = vld [vmem:[#allocation9 + $0x38] sm:$0xff]  ;;  %9346 = vmatprep.subr.mxu0 %v4531_v61  ;;  %13588 = vst [vmem:[#allocation72_spill] sm:$0xff] %v11825_v51 }
 0x294   : > { %9426 = vmatprep.subr.mxu1 %v4482_v10  ;;  %9347 = vmatpush3.msra.mxu0 %v4531_v61  ;;  %v4479_v61 = vld [vmem:[#allocation9 + $0x20] sm:$0xff]  ;;  %v11833_v27 = vpop.f32.mrf.mxu0 }
 0x295   : > { %v8939_v58 = vpop.f32.mrf.mxu1  ;;  %9322 = vmatmul.mubr.msk.f32.gmra.mxu1 %vm521_vm0, %v3854_v42  ;;  %v3858_v42 = vld [vmem:[#allocation2 + $0x1a2] sm:$0xff]  ;;  %9348 = vmatprep.subr.mxu0 %v4530_v43  ;;  %13589 = vst [vmem:[#allocation73_spill] sm:$0xff] %v11833_v27  ;;  %v4491_v27 = vld [vmem:[#allocation3 + $0x1] sm:$0xff] }
 0x296   : > { %v11799_v26 = vadd.f32 %v8939_v58, %v1439_v1  ;;  %9324 = vmatprep.mubr.msk.f32.mxu1 %vm521_vm0, %v10124_v16  ;;  %v4529_v58 = vld [vmem:[#allocation9 + $0xa8] sm:$0xff]  ;;  %9427 = vmatpush3.msra.mxu1 %v4482_v10 }
 0x297   : > { %v11802_v49 = vpop.f32.mrf.mxu1  ;;  %9349 = vmatpush3.msra.mxu0 %v4530_v43  ;;  %9428 = vmatprep.subr.mxu1 %v4481_v56  ;;  %v4526_v43 = vld [vmem:[#allocation9 + $0x90] sm:$0xff] }
 0x298   : > { %9350 = vmatprep.subr.mxu0 %v4529_v58  ;;  %9429 = vmatpush3.msra.mxu1 %v4481_v56  ;;  %v4477_v56 = vld [vmem:[#allocation9 + $0x10] sm:$0xff] }
 0x299   : > { %v8942_v40 = vpop.f32.mrf.mxu1  ;;  %9325 = vmatmul.mubr.msk.f32.gmra.mxu1 %vm521_vm0, %v10125_v53  ;;  %9351 = vmatpush3.msra.mxu0 %v4529_v58  ;;  %v4525_v58 = vld [vmem:[#allocation9 + $0x88] sm:$0xff] }
 0x29a   : > { %v11809_v20 = vadd.f32 %v8942_v40, %v1449_v17  ;;  %9327 = vmatprep.mubr.msk.f32.mxu1 %vm521_vm0, %v3857_v5  ;;  %v4527_v40 = vld [vmem:[#allocation9 + $0x98] sm:$0xff]  ;;  %9430 = vmatprep.subr.mxu1 %v4480_v50 }
 0x29b   : > { %v11812_v1 = vpop.f32.mrf.mxu1  ;;  %9352 = vmatprep.subr.mxu0 %v4528_v29  ;;  %9431 = vmatpush3.msra.mxu1 %v4480_v50 }
 0x29c   : > { %9353 = vmatpush3.msra.mxu0 %v4528_v29  ;;  %9432 = vmatprep.subr.mxu1 %v4479_v61  ;;  %v4476_v29 = vld [vmem:[#allocation9 + $0x8] sm:$0xff] }
 0x29d   : > { %v8945_v16 = vpop.f32.mrf.mxu1  ;;  %9328 = vmatmul.mubr.msk.f32.gmra.mxu1 %vm521_vm0, %v3858_v42  ;;  %v4478_v42 = vld [vmem:[#allocation9 + $0x18] sm:$0xff]  ;;  %9354 = vmatprep.subr.mxu0 %v4527_v40 }
 0x29e   : > { %v11819_v5 = vadd.f32 %v8945_v16, %v1459_v9  ;;  %9433 = vmatpush3.msra.mxu1 %v4479_v61  ;;  %9355 = vmatpush3.msra.mxu0 %v4527_v40  ;;  %v11841_v61 = vpop.f32.mrf.mxu0  ;;  %v4475_v40 = vld [vmem:[#allocation9] sm:$0xff] }
 0x29f   : > { %v11821_v17 = vpop.f32.mrf.mxu1  ;;  %9434 = vmatprep.subr.mxu1 %v4478_v42  ;;  %9356 = vmatprep.subr.mxu0 %v4526_v43  ;;  %13591 = vst [vmem:[#allocation29_spill] sm:$0xff] %v11841_v61 }
 0x2a0   : > { %9435 = vmatpush3.msra.mxu1 %v4478_v42  ;;  %9357 = vmatpush3.msra.mxu0 %v4526_v43  ;;  %v4492_v43 = vld [vmem:[#allocation3 + $0x9] sm:$0xff]  ;;  %v11849_v39 = vpop.f32.mrf.mxu0 }
 0x2a1   : > { %v9028_v53 = vpop.f32.mrf.mxu1  ;;  %9436 = vmatprep.subr.mxu1 %v4477_v56  ;;  %9358 = vmatprep.subr.mxu0 %v4525_v58  ;;  %13593 = vst [vmem:[#allocation31_spill] sm:$0xff] %v11849_v39 }
 0x2a2   : > { %v11827_v10 = vadd.f32 %v9028_v53, %v2219_v13  ;;  %v4524_v13 = vld [vmem:[#allocation9 + $0x80] sm:$0xff]  ;;  %9437 = vmatpush3.msra.mxu1 %v4477_v56  ;;  %9359 = vmatpush3.msra.mxu0 %v4525_v58  ;;  %v10126_v56 = vld [vmem:[#allocation3] sm:$0xff]  ;;  %v11857_v61 = vpop.f32.mrf.mxu0 }
 0x2a3   : > { %v11829_v9 = vpop.f32.mrf.mxu1  ;;  %9438 = vmatprep.subr.mxu1 %v4476_v29  ;;  %9360 = vmatprep.subr.mxu0 %v4524_v13 }
 0x2a4   : > { %9439 = vmatpush3.msra.mxu1 %v4476_v29  ;;  %9361 = vmatpush3.msra.mxu0 %v4524_v13  ;;  %v13594_v13 = vld [vmem:[#allocation33_spill] sm:$0xff]  ;;  %v11865_v39 = vpop.f32.mrf.mxu0 }
 0x2a5   : > { %v9031_v16 = vpop.f32.mrf.mxu1  ;;  %9440 = vmatprep.subr.mxu1 %v4475_v40  ;;  %9362 = vmatprep.mubr.f32.mxu0 %v4491_v27  ;;  %13595 = vst [vmem:[#allocation33_spill] sm:$0xff] %v11857_v61 }
 0x2a6   : > { %v11835_v50 = vadd.f32 %v9031_v16, %v2221_v21  ;;  %v2225_v16 = vadd.f32 %v13592_v0, %v11689_v57  ;;  %9441 = vmatpush3.msra.mxu1 %v4475_v40  ;;  %9442 = vmatprep.mubr.f32.mxu1 %v10126_v56  ;;  %v13596_v40 = vld [vmem:[#allocation35_spill] sm:$0xff] }
 0x2a7   : > { %v11837_v53 = vpop.f32.mrf.mxu1  ;;  %9363 = vmatmul.mubr.f32.vlgmr.msra.gmra.mxu0 %v4492_v43  ;;  %9443 = vmatmul.mubr.f32.vlgmr.msra.gmra.mxu1 %v10126_v56  ;;  %v2229_v0 = vadd.f32 %v13596_v40, %v11713_v41  ;;  %13597 = vst [vmem:[#allocation35_spill] sm:$0xff] %v11865_v39  ;;  %v2233_v41 = vadd.f32 %v13602_v14, %v11737_v3 }
 0x2a8   : > { %v2237_v3 = vadd.f32 %v13608_v19, %v11759_v60  ;;  %v13616_v19 = vld [vmem:[#allocation49_spill] sm:$0xff] }
 0x2a9   : > { %v9034_v51 = vpop.f32.mrf.mxu1 }
 0x2aa   : > { %v11843_v42 = vadd.f32 %v9034_v51, %v2223_v47  ;;  %v2227_v47 = vadd.f32 %v13594_v13, %v11701_v7  ;;  %v11873_v13 = vpop.f32.mrf.mxu0 }
 0x2ab   : > { %v11845_v21 = vpop.f32.mrf.mxu1 }
 0x2ac   : > { %v11881_v40 = vpop.f32.mrf.mxu0 }
 0x2ad   : > { %v9037_v58 = vpop.f32.mrf.mxu1  ;;  %13603 = vst [vmem:[#allocation18_spill] sm:$0xff] %v11881_v40 }
 0x2ae   : > { %v11851_v51 = vadd.f32 %v9037_v58, %v2225_v16  ;;  %v13599_v58 = vld [vmem:[#allocation38_spill] sm:$0xff] }
 0x2af   : > { %v11853_v29 = vpop.f32.mrf.mxu1  ;;  %v2231_v7 = vadd.f32 %v13599_v58, %v11725_v46  ;;  %13600 = vst [vmem:[#allocation38_spill] sm:$0xff] %v11873_v13  ;;  %v2235_v46 = vadd.f32 %v13605_v24, %v11749_v25  ;;  %v11889_v58 = vpop.f32.mrf.mxu0 }
 0x2b0   : > { %13606 = vst [vmem:[#allocation43_spill] sm:$0xff] %v11889_v58  ;;  %v5038_v58 = vld [vmem:[#allocation9 + $0x178] sm:$0xff] }
 0x2b1   : > { %v9040_v27 = vpop.f32.mrf.mxu1  ;;  %v11897_v14 = vpop.f32.mrf.mxu0  ;;  %9490 = vmatprep.subr.mxu0 %v5038_v58 }
 0x2b2   : > { %v11859_v8 = vadd.f32 %v9040_v27, %v2227_v47  ;;  %13609 = vst [vmem:[#allocation45_spill] sm:$0xff] %v11897_v14  ;;  %9491 = vmatpush3.msra.mxu0 %v5038_v58  ;;  %v5036_v14 = vld [vmem:[#allocation9 + $0x168] sm:$0xff] }
 0x2b3   : > { %v11861_v57 = vpop.f32.mrf.mxu1  ;;  %v11905_v24 = vpop.f32.mrf.mxu0  ;;  %v13620_v58 = vld [vmem:[#allocation51_spill] sm:$0xff] }
 0x2b5   : > { %v9043_v43 = vpop.f32.mrf.mxu1 }
 0x2b6   : > { %v11867_v16 = vadd.f32 %v9043_v43, %v2229_v0 }
 0x2b7   : > { %v11869_v56 = vpop.f32.mrf.mxu1 }
 0x2b8   : > { %13598 = vst [vmem:[#allocation74_spill] sm:$0xff] %v11867_v16 }
 0x2b9   : > { %v9046_v61 = vpop.f32.mrf.mxu1 }
 0x2ba   : > { %v11875_v47 = vadd.f32 %v9046_v61, %v2231_v7 }
 0x2bb   : > { %v11877_v27 = vpop.f32.mrf.mxu1 }
 0x2bc   : > { %13601 = vst [vmem:[#allocation75_spill] sm:$0xff] %v11875_v47  ;;  %v13681_v47 = vld [vmem:[#allocation61_spill] sm:$0xff] }
 0x2bd   : > { %v9049_v39 = vpop.f32.mrf.mxu1 }
 0x2be   : > { %v11883_v0 = vadd.f32 %v9049_v39, %v2233_v41 }
 0x2bf   : > { %v11885_v43 = vpop.f32.mrf.mxu1 }
 0x2c0   : > { %13604 = vst [vmem:[#allocation76_spill] sm:$0xff] %v11883_v0  ;;  %v13612_v0 = vld [vmem:[#allocation47_spill] sm:$0xff] }
 0x2c1   : > { %v9052_v13 = vpop.f32.mrf.mxu1  ;;  %v2239_v25 = vadd.f32 %v13612_v0, %v11769_v15  ;;  %13613 = vst [vmem:[#allocation47_spill] sm:$0xff] %v11905_v24  ;;  %v5035_v24 = vld [vmem:[#allocation9 + $0x160] sm:$0xff] }
 0x2c2   : > { %v11891_v61 = vadd.f32 %v9052_v13, %v2235_v46 }
 0x2c3   : > { %v11893_v7 = vpop.f32.mrf.mxu1 }
 0x2c4   : > { %13607 = vst [vmem:[#allocation77_spill] sm:$0xff] %v11891_v61  ;;  %v5037_v61 = vld [vmem:[#allocation9 + $0x170] sm:$0xff] }
 0x2c5   : > { %v9055_v40 = vpop.f32.mrf.mxu1  ;;  %9492 = vmatprep.subr.mxu0 %v5037_v61 }
 0x2c6   : > { %v11899_v39 = vadd.f32 %v9055_v40, %v2237_v3  ;;  %v2241_v40 = vadd.f32 %v13616_v19, %v11779_v23  ;;  %v11913_v3 = vpop.f32.mrf.mxu0  ;;  %9493 = vmatpush3.msra.mxu0 %v5037_v61  ;;  %v5034_v23 = vld [vmem:[#allocation9 + $0x158] sm:$0xff] }
 0x2c7   : > { %v11901_v41 = vpop.f32.mrf.mxu1  ;;  %13617 = vst [vmem:[#allocation49_spill] sm:$0xff] %v11913_v3  ;;  %9494 = vmatprep.subr.mxu0 %v5036_v14  ;;  %v5032_v3 = vld [vmem:[#allocation9 + $0x148] sm:$0xff] }
 0x2c8   : > { %13610 = vst [vmem:[#allocation78_spill] sm:$0xff] %v11899_v39  ;;  %13611 = vst [vmem:[#allocation79_spill] sm:$0xff] %v11901_v41  ;;  %9495 = vmatpush3.msra.mxu0 %v5036_v14  ;;  %v5033_v14 = vld [vmem:[#allocation9 + $0x150] sm:$0xff]  ;;  %v13680_v41 = vld [vmem:[#allocation23_spill] sm:$0xff] }
 0x2c9   : > { %v9058_v13 = vpop.f32.mrf.mxu1  ;;  %9496 = vmatprep.subr.mxu0 %v5035_v24 }
 0x2ca   : > { %v11907_v46 = vadd.f32 %v9058_v13, %v2239_v25  ;;  %v2243_v13 = vadd.f32 %v13620_v58, %v11789_v52  ;;  %9497 = vmatpush3.msra.mxu0 %v5035_v24  ;;  %v13624_v52 = vld [vmem:[#allocation54_spill] sm:$0xff]  ;;  %v5342_v24 = vld [vmem:[#allocation9 + $0x1e8] sm:$0xff] }
 0x2cb   : > { %v11909_v60 = vpop.f32.mrf.mxu1  ;;  %9498 = vmatprep.subr.mxu0 %v5034_v23  ;;  %v2245_v58 = vadd.f32 %v13624_v52, %v11799_v26  ;;  %v13628_v26 = vld [vmem:[#allocation58_spill] sm:$0xff] }
 0x2cc   : > { %13614 = vst [vmem:[#allocation80_spill] sm:$0xff] %v11907_v46  ;;  %13615 = vst [vmem:[#allocation81_spill] sm:$0xff] %v11909_v60  ;;  %v11921_v46 = vpop.f32.mrf.mxu0  ;;  %v5344_v60 = vld [vmem:[#allocation9 + $0x1f8] sm:$0xff]  ;;  %9499 = vmatpush3.msra.mxu0 %v5034_v23  ;;  %v5031_v23 = vld [vmem:[#allocation9 + $0x140] sm:$0xff]  ;;  %v2247_v52 = vadd.f32 %v13628_v26, %v11809_v20 }
 0x2cd   : > { %v9061_v15 = vpop.f32.mrf.mxu1  ;;  %13621 = vst [vmem:[#allocation51_spill] sm:$0xff] %v11921_v46  ;;  %9570 = vmatprep.subr.mxu1 %v5344_v60  ;;  %9500 = vmatprep.subr.mxu0 %v5033_v14  ;;  %v13632_v20 = vld [vmem:[#allocation62_spill] sm:$0xff] }
 0x2ce   : > { %v11915_v0 = vadd.f32 %v9061_v15, %v2241_v40  ;;  %9571 = vmatpush3.msra.mxu1 %v5344_v60  ;;  %v5343_v40 = vld [vmem:[#allocation9 + $0x1f0] sm:$0xff]  ;;  %v11929_v46 = vpop.f32.mrf.mxu0  ;;  %9501 = vmatpush3.msra.mxu0 %v5033_v14  ;;  %v5340_v14 = vld [vmem:[#allocation9 + $0x1d8] sm:$0xff]  ;;  %v2249_v26 = vadd.f32 %v13632_v20, %v11819_v5 }
 0x2cf   : > { %v11917_v25 = vpop.f32.mrf.mxu1  ;;  %9572 = vmatprep.subr.mxu1 %v5343_v40  ;;  %13625 = vst [vmem:[#allocation54_spill] sm:$0xff] %v11929_v46  ;;  %9502 = vmatprep.subr.mxu0 %v5032_v3  ;;  %v5030_v46 = vld [vmem:[#allocation9 + $0x138] sm:$0xff] }
 0x2d0   : > { %13618 = vst [vmem:[#allocation82_spill] sm:$0xff] %v11915_v0  ;;  %13619 = vst [vmem:[#allocation83_spill] sm:$0xff] %v11917_v25  ;;  %9573 = vmatpush3.msra.mxu1 %v5343_v40  ;;  %9503 = vmatpush3.msra.mxu0 %v5032_v3  ;;  %v11937_v40 = vpop.f32.mrf.mxu0  ;;  %v5339_v3 = vld [vmem:[#allocation9 + $0x1d0] sm:$0xff] }
 0x2d1   : > { %v9064_v19 = vpop.f32.mrf.mxu1  ;;  %9574 = vmatprep.subr.mxu1 %v5342_v24  ;;  %9504 = vmatprep.subr.mxu0 %v5031_v23  ;;  %13629 = vst [vmem:[#allocation58_spill] sm:$0xff] %v11937_v40  ;;  %v5028_v40 = vld [vmem:[#allocation9 + $0x128] sm:$0xff] }
 0x2d2   : > { %v11923_v61 = vadd.f32 %v9064_v19, %v2243_v13  ;;  %9575 = vmatpush3.msra.mxu1 %v5342_v24  ;;  %v5341_v13 = vld [vmem:[#allocation9 + $0x1e0] sm:$0xff]  ;;  %9505 = vmatpush3.msra.mxu0 %v5031_v23  ;;  %v5338_v23 = vld [vmem:[#allocation9 + $0x1c8] sm:$0xff] }
 0x2d3   : > { %v11925_v15 = vpop.f32.mrf.mxu1  ;;  %9576 = vmatprep.subr.mxu1 %v5341_v13  ;;  %9506 = vmatprep.subr.mxu0 %v5030_v46 }
 0x2d4   : > { %13622 = vst [vmem:[#allocation84_spill] sm:$0xff] %v11923_v61  ;;  %13623 = vst [vmem:[#allocation85_spill] sm:$0xff] %v11925_v15  ;;  %9577 = vmatpush3.msra.mxu1 %v5341_v13  ;;  %9507 = vmatpush3.msra.mxu0 %v5030_v46  ;;  %v11945_v13 = vpop.f32.mrf.mxu0  ;;  %v5337_v46 = vld [vmem:[#allocation9 + $0x1c0] sm:$0xff] }
 0x2d5   : > { %v9067_v0 = vpop.f32.mrf.mxu1  ;;  %9578 = vmatprep.subr.mxu1 %v5340_v14  ;;  %13633 = vst [vmem:[#allocation62_spill] sm:$0xff] %v11945_v13  ;;  %v5334_v13 = vld [vmem:[#allocation9 + $0x1a8] sm:$0xff]  ;;  %v5329_v15 = vld [vmem:[#allocation9 + $0x180] sm:$0xff] }
 0x2d6   : > { %v11931_v60 = vadd.f32 %v9067_v0, %v2245_v58  ;;  %9579 = vmatpush3.msra.mxu1 %v5340_v14  ;;  %v5029_v58 = vld [vmem:[#allocation9 + $0x130] sm:$0xff]  ;;  %v11951_v5 = vpop.f32.mrf.mxu0 }
 0x2d7   : > { %v11933_v19 = vpop.f32.mrf.mxu1  ;;  %9580 = vmatprep.subr.mxu1 %v5339_v3  ;;  %9508 = vmatprep.subr.mxu0 %v5029_v58 }
 0x2d8   : > { %13626 = vst [vmem:[#allocation86_spill] sm:$0xff] %v11931_v60  ;;  %13627 = vst [vmem:[#allocation87_spill] sm:$0xff] %v11933_v19  ;;  %9581 = vmatpush3.msra.mxu1 %v5339_v3  ;;  %9509 = vmatpush3.msra.mxu0 %v5029_v58  ;;  %v5336_v3 = vld [vmem:[#allocation9 + $0x1b8] sm:$0xff] }
 0x2d9   : > { %v9070_v61 = vpop.f32.mrf.mxu1  ;;  %9582 = vmatprep.subr.mxu1 %v5338_v23  ;;  %9510 = vmatprep.subr.mxu0 %v5028_v40  ;;  %v5026_v58 = vld [vmem:[#allocation9 + $0x118] sm:$0xff] }
 0x2da   : > { %v11939_v0 = vadd.f32 %v9070_v61, %v2247_v52  ;;  %9583 = vmatpush3.msra.mxu1 %v5338_v23  ;;  %9511 = vmatpush3.msra.mxu0 %v5028_v40  ;;  %v5027_v52 = vld [vmem:[#allocation9 + $0x120] sm:$0xff]  ;;  %v11957_v23 = vpop.f32.mrf.mxu0 }
 0x2db   : > { %v11941_v24 = vpop.f32.mrf.mxu1  ;;  %9584 = vmatprep.subr.mxu1 %v5337_v46  ;;  %9512 = vmatprep.subr.mxu0 %v5027_v52  ;;  %13636 = vst [vmem:[#allocation92_spill] sm:$0xff] %v11957_v23 }
 0x2dc   : > { %13630 = vst [vmem:[#allocation88_spill] sm:$0xff] %v11939_v0  ;;  %13631 = vst [vmem:[#allocation89_spill] sm:$0xff] %v11941_v24  ;;  %9585 = vmatpush3.msra.mxu1 %v5337_v46  ;;  %9513 = vmatpush3.msra.mxu0 %v5027_v52  ;;  %v5024_v46 = vld [vmem:[#allocation9 + $0x108] sm:$0xff]  ;;  %v5332_v0 = vld [vmem:[#allocation9 + $0x198] sm:$0xff] }
 0x2dd   : > { %v9073_v60 = vpop.f32.mrf.mxu1  ;;  %9586 = vmatprep.subr.mxu1 %v5336_v3  ;;  %9514 = vmatprep.subr.mxu0 %v5026_v58 }
 0x2de   : > { %v11947_v61 = vadd.f32 %v9073_v60, %v2249_v26  ;;  %9587 = vmatpush3.msra.mxu1 %v5336_v3  ;;  %v5335_v60 = vld [vmem:[#allocation9 + $0x1b0] sm:$0xff]  ;;  %9515 = vmatpush3.msra.mxu0 %v5026_v58  ;;  %v5023_v3 = vld [vmem:[#allocation9 + $0x100] sm:$0xff] }
 0x2df   : > { %v11949_v14 = vpop.f32.mrf.mxu1  ;;  %v5025_v26 = vld [vmem:[#allocation9 + $0x110] sm:$0xff]  ;;  %9588 = vmatprep.subr.mxu1 %v5335_v60 }
 0x2e0   : > { %13634 = vst [vmem:[#allocation90_spill] sm:$0xff] %v11947_v61  ;;  %13635 = vst [vmem:[#allocation91_spill] sm:$0xff] %v11949_v14  ;;  %9516 = vmatprep.subr.mxu0 %v5025_v26  ;;  %9589 = vmatpush3.msra.mxu1 %v5335_v60  ;;  %v5333_v61 = vld [vmem:[#allocation9 + $0x1a0] sm:$0xff]  ;;  %v11963_v14 = vpop.f32.mrf.mxu0 }
 0x2e1   : > { %v11953_v20 = vpop.f32.mrf.mxu1  ;;  %9517 = vmatpush3.msra.mxu0 %v5025_v26  ;;  %9590 = vmatprep.subr.mxu1 %v5334_v13  ;;  %13639 = vst [vmem:[#allocation95_spill] sm:$0xff] %v11963_v14  ;;  %v5331_v26 = vld [vmem:[#allocation9 + $0x190] sm:$0xff] }
 0x2e2   : > { %9518 = vmatprep.subr.mxu0 %v5024_v46  ;;  %9591 = vmatpush3.msra.mxu1 %v5334_v13  ;;  %v11969_v13 = vpop.f32.mrf.mxu0 }
 0x2e3   : > { %v11955_v40 = vpop.f32.mrf.mxu1  ;;  %9519 = vmatpush3.msra.mxu0 %v5024_v46  ;;  %9592 = vmatprep.subr.mxu1 %v5333_v61  ;;  %13642 = vst [vmem:[#allocation98_spill] sm:$0xff] %v11969_v13  ;;  %v5330_v46 = vld [vmem:[#allocation9 + $0x188] sm:$0xff] }
 0x2e4   : > { %9520 = vmatprep.subr.mxu0 %v5023_v3  ;;  %9593 = vmatpush3.msra.mxu1 %v5333_v61 }
 0x2e5   : > { %v11959_v52 = vpop.f32.mrf.mxu1  ;;  %9521 = vmatpush3.msra.mxu0 %v5023_v3  ;;  %9594 = vmatprep.subr.mxu1 %v5332_v0  ;;  %v11975_v3 = vpop.f32.mrf.mxu0 }
 0x2e6   : > { %13637 = vst [vmem:[#allocation93_spill] sm:$0xff] %v11959_v52  ;;  %9595 = vmatpush3.msra.mxu1 %v5332_v0  ;;  %13645 = vst [vmem:[#allocation101_spill] sm:$0xff] %v11975_v3  ;;  %v13688_v52 = vld [vmem:[#allocation27_spill] sm:$0xff] }
 0x2e7   : > { %v11961_v58 = vpop.f32.mrf.mxu1  ;;  %9596 = vmatprep.subr.mxu1 %v5331_v26 }
 0x2e8   : > { %13638 = vst [vmem:[#allocation94_spill] sm:$0xff] %v11961_v58  ;;  %9597 = vmatpush3.msra.mxu1 %v5331_v26  ;;  %v13677_v58 = vld [vmem:[#allocation57_spill] sm:$0xff] }
 0x2e9   : > { %v11965_v60 = vpop.f32.mrf.mxu1  ;;  %9598 = vmatprep.subr.mxu1 %v5330_v46 }
 0x2ea   : > { %13640 = vst [vmem:[#allocation96_spill] sm:$0xff] %v11965_v60  ;;  %9599 = vmatpush3.msra.mxu1 %v5330_v46  ;;  %v13676_v60 = vld [vmem:[#allocation21_spill] sm:$0xff] }
 0x2eb   : > { %v11967_v24 = vpop.f32.mrf.mxu1  ;;  %9600 = vmatprep.subr.mxu1 %v5329_v15 }
 0x2ec   : > { %13641 = vst [vmem:[#allocation97_spill] sm:$0xff] %v11967_v24  ;;  %9601 = vmatpush3.msra.mxu1 %v5329_v15  ;;  %v11981_v24 = vpop.f32.mrf.mxu0 }
 0x2ed   : > { %v11971_v19 = vpop.f32.mrf.mxu1  ;;  %13648 = vst [vmem:[#allocation104_spill] sm:$0xff] %v11981_v24 }
 0x2ee   : > { %13643 = vst [vmem:[#allocation99_spill] sm:$0xff] %v11971_v19  ;;  %v11987_v19 = vpop.f32.mrf.mxu0 }
 0x2ef   : > { %v11973_v61 = vpop.f32.mrf.mxu1  ;;  %13651 = vst [vmem:[#allocation107_spill] sm:$0xff] %v11987_v19 }
 0x2f0   : > { %13644 = vst [vmem:[#allocation100_spill] sm:$0xff] %v11973_v61  ;;  %v11993_v61 = vpop.f32.mrf.mxu0 }
 0x2f1   : > { %v11977_v25 = vpop.f32.mrf.mxu1  ;;  %13654 = vst [vmem:[#allocation110_spill] sm:$0xff] %v11993_v61 }
 0x2f2   : > { %13646 = vst [vmem:[#allocation102_spill] sm:$0xff] %v11977_v25  ;;  %v11999_v25 = vpop.f32.mrf.mxu0 }
 0x2f3   : > { %v11979_v0 = vpop.f32.mrf.mxu1  ;;  %13657 = vst [vmem:[#allocation113_spill] sm:$0xff] %v11999_v25  ;;  %v13673_v25 = vld [vmem:[#allocation20_spill] sm:$0xff] }
 0x2f4   : > { %13647 = vst [vmem:[#allocation103_spill] sm:$0xff] %v11979_v0 }
 0x2f5   : > { %v11983_v13 = vpop.f32.mrf.mxu1 }
 0x2f6   : > { %13649 = vst [vmem:[#allocation105_spill] sm:$0xff] %v11983_v13  ;;  %v12005_v13 = vpop.f32.mrf.mxu0 }
 0x2f7   : > { %v11985_v26 = vpop.f32.mrf.mxu1  ;;  %13660 = vst [vmem:[#allocation116_spill] sm:$0xff] %v12005_v13 }
 0x2f8   : > { %13650 = vst [vmem:[#allocation106_spill] sm:$0xff] %v11985_v26 }
 0x2f9   : > { %v11989_v46 = vpop.f32.mrf.mxu1 }
 0x2fa   : > { %13652 = vst [vmem:[#allocation108_spill] sm:$0xff] %v11989_v46  ;;  %v12011_v46 = vpop.f32.mrf.mxu0 }
 0x2fb   : > { %v11991_v39 = vpop.f32.mrf.mxu1  ;;  %13663 = vst [vmem:[#allocation119_spill] sm:$0xff] %v12011_v46  ;;  %v13672_v46 = vld [vmem:[#allocation53_spill] sm:$0xff] }
 0x2fc   : > { %13653 = vst [vmem:[#allocation109_spill] sm:$0xff] %v11991_v39  ;;  %v12013_v39 = vld [vmem:[#allocation9 + $0x278] sm:$0xff]  ;;  %v1394_v14 = vadd.f32 %v13673_v25, %v13672_v46  ;;  %v13687_v46 = vld [vmem:[#allocation26_spill] sm:$0xff] }
 0x2fd   : > { %v11995_v3 = vpop.f32.mrf.mxu1  ;;  %13664 = vst [vmem:[#allocation120_spill] sm:$0xff] %v12013_v39  ;;  %9650 = vmatprep.subr.mxu0 %v12013_v39  ;;  %v13675_v39 = vld [vmem:[#allocation55_spill] sm:$0xff]  ;;  %v13686_v25 = vld [vmem:[#allocation65_spill] sm:$0xff] }
 0x2fe   : > { %13655 = vst [vmem:[#allocation111_spill] sm:$0xff] %v11995_v3  ;;  %v12020_v3 = vpop.f32.mrf.mxu0 }
 0x2ff   : > { %v11997_v15 = vpop.f32.mrf.mxu1  ;;  %13667 = vst [vmem:[#allocation123_spill] sm:$0xff] %v12020_v3  ;;  %v13678_v3 = vld [vmem:[#allocation22_spill] sm:$0xff] }
 0x300   : > { %13656 = vst [vmem:[#allocation112_spill] sm:$0xff] %v11997_v15  ;;  %v12026_v13 = vpop.f32.mrf.mxu0  ;;  %v1414_v23 = vadd.f32 %v13678_v3, %v13677_v58 }
 0x301   : > { %v12001_v0 = vpop.f32.mrf.mxu1  ;;  %13670 = vst [vmem:[#allocation126_spill] sm:$0xff] %v12026_v13  ;;  %v13682_v13 = vld [vmem:[#allocation24_spill] sm:$0xff] }
 0x302   : > { %13658 = vst [vmem:[#allocation114_spill] sm:$0xff] %v12001_v0  ;;  %v1434_v32 = vadd.f32 %v13682_v13, %v13681_v47  ;;  %v12042_v48 = vpop.f32.mrf.mxu0  ;;  %v13691_v47 = vld [vmem:[#allocation32_spill] sm:$0xff] }
 0x303   : > { %v12003_v24 = vpop.f32.mrf.mxu1  ;;  %13683 = vst [vmem:[#allocation20_spill] sm:$0xff] %v12042_v48  ;;  %v2224_v13 = vadd.f32 %v13691_v47, %v11694_v6  ;;  %v1842_v48 = vadd.f32 %v11762_v38, %v1394_v14  ;;  %v13694_v6 = vld [vmem:[#allocation15_spill] sm:$0xff]  ;;  %v13700_v47 = vld [vmem:[#allocation52_spill] sm:$0xff] }
 0x304   : > { %13659 = vst [vmem:[#allocation115_spill] sm:$0xff] %v12003_v24  ;;  %v12073_v14 = vpop.f32.mrf.mxu0 }
 0x305   : > { %v12007_v26 = vpop.f32.mrf.mxu1 }
 0x306   : > { %13661 = vst [vmem:[#allocation117_spill] sm:$0xff] %v12007_v26  ;;  %v5956_v26 = vld [vmem:[#allocation9 + $0x2f8] sm:$0xff] }
 0x307   : > { %v12009_v19 = vpop.f32.mrf.mxu1  ;;  %9730 = vmatprep.subr.mxu1 %v5956_v26  ;;  %v13684_v26 = vld [vmem:[#allocation63_spill] sm:$0xff] }
 0x308   : > { %13662 = vst [vmem:[#allocation118_spill] sm:$0xff] %v12009_v19 }
 0x309   : > { %v12015_v61 = vpop.f32.mrf.mxu1 }
 0x30a   : > { %13665 = vst [vmem:[#allocation121_spill] sm:$0xff] %v12015_v61 }
 0x30b   : > { %v12018_v15 = vpop.f32.mrf.mxu1 }
 0x30c   : > { %13666 = vst [vmem:[#allocation122_spill] sm:$0xff] %v12018_v15  ;;  %v1404_v15 = vadd.f32 %v13676_v60, %v13675_v39  ;;  %v2218_v39 = vadd.f32 %v13688_v52, %v11658_v37  ;;  %v13689_v60 = vld [vmem:[#allocation28_spill] sm:$0xff]  ;;  %v1846_v37 = vadd.f32 %v11782_v18, %v1414_v23  ;;  %v13697_v23 = vld [vmem:[#allocation46_spill] sm:$0xff] }
 0x30d   : > { %v12022_v0 = vpop.f32.mrf.mxu1  ;;  %v2220_v58 = vadd.f32 %v13689_v60, %v11670_v63  ;;  %v1850_v63 = vadd.f32 %v11802_v49, %v1434_v32 }
 0x30e   : > { %13668 = vst [vmem:[#allocation124_spill] sm:$0xff] %v12022_v0  ;;  %v13679_v0 = vld [vmem:[#allocation59_spill] sm:$0xff] }
 0x30f   : > { %v12024_v24 = vpop.f32.mrf.mxu1 }
 0x310   : > { %13669 = vst [vmem:[#allocation125_spill] sm:$0xff] %v12024_v24  ;;  %v1424_v24 = vadd.f32 %v13680_v41, %v13679_v0  ;;  %v13690_v41 = vld [vmem:[#allocation30_spill] sm:$0xff] }
 0x311   : > { %v12028_v19 = vpop.f32.mrf.mxu1  ;;  %v2222_v0 = vadd.f32 %v13690_v41, %v11682_v59  ;;  %v13693_v59 = vld [vmem:[#allocation37_spill] sm:$0xff]  ;;  %v2230_v41 = vadd.f32 %v13694_v6, %v11730_v2  ;;  %v2236_v2 = vadd.f32 %v13697_v23, %v1842_v48  ;;  %v13702_v48 = vld [vmem:[#allocation60_spill] sm:$0xff] }
 0x312   : > { %13671 = vst [vmem:[#allocation127_spill] sm:$0xff] %v12028_v19  ;;  %v13685_v19 = vld [vmem:[#allocation25_spill] sm:$0xff]  ;;  %v1848_v52 = vadd.f32 %v11792_v36, %v1424_v24  ;;  %v2228_v60 = vadd.f32 %v13693_v59, %v11718_v31  ;;  %v13696_v36 = vld [vmem:[#allocation44_spill] sm:$0xff]  ;;  %v2614_v24 = vadd.f32 %v11837_v53, %v2220_v58  ;;  %v2618_v53 = vadd.f32 %v11853_v29, %v2224_v13 }
 0x313   : > { %v12032_v61 = vpop.f32.mrf.mxu1  ;;  %v1444_v16 = vadd.f32 %v13685_v19, %v13684_v26  ;;  %v1844_v19 = vadd.f32 %v11772_v45, %v1404_v15  ;;  %v13692_v26 = vld [vmem:[#allocation34_spill] sm:$0xff]  ;;  %v2612_v45 = vadd.f32 %v11829_v9, %v2218_v39  ;;  %v2234_v32 = vadd.f32 %v13696_v36, %v11754_v22  ;;  %v13698_v15 = vld [vmem:[#allocation48_spill] sm:$0xff] }
 0x314   : > { %13674 = vst [vmem:[#allocation53_spill] sm:$0xff] %v12032_v61  ;;  %v1454_v61 = vadd.f32 %v13687_v46, %v13686_v25  ;;  %v2226_v25 = vadd.f32 %v13692_v26, %v11706_v54  ;;  %v13695_v54 = vld [vmem:[#allocation40_spill] sm:$0xff]  ;;  %v3007_v9 = vadd.f32 %v11648_v28, %v11827_v10  ;;  %v13699_v39 = vld [vmem:[#allocation50_spill] sm:$0xff]  ;;  %v12092_v22 = vadd.f32 %v13700_v47, %v1848_v52 }
 0x315   : > { %v12052_v3 = vpop.f32.mrf.mxu1  ;;  %v1852_v38 = vadd.f32 %v11812_v1, %v1444_v16  ;;  %v2232_v18 = vadd.f32 %v13695_v54, %v11742_v44  ;;  %v2238_v1 = vadd.f32 %v13698_v15, %v1844_v19  ;;  %v2616_v16 = vadd.f32 %v11845_v21, %v2222_v0  ;;  %v12106_v0 = vpop.f32.mrf.mxu0  ;;  %v13703_v26 = vld [vmem:[#allocation64_spill] sm:$0xff]  ;;  %v13713_v36 = vld [vmem:[#allocation70_spill] sm:$0xff]  ;;  %v13715_v15 = vld [vmem:[#allocation71_spill] sm:$0xff] }
 0x316   : > { %v1854_v49 = vadd.f32 %v11821_v17, %v1454_v61  ;;  %v12089_v44 = vadd.f32 %v13699_v39, %v1846_v37  ;;  %v13701_v17 = vld [vmem:[#allocation56_spill] sm:$0xff]  ;;  %v3006_v28 = vadd.f32 %v11660_v33, %v2612_v45  ;;  %v2620_v10 = vadd.f32 %v11861_v57, %v2226_v25  ;;  %v13711_v45 = vld [vmem:[#allocation69_spill] sm:$0xff]  ;;  %v13718_v47 = vld [vmem:[#allocation94_spill] sm:$0xff] }
 0x317   : > { %v12065_v46 = vpop.f32.mrf.mxu1  ;;  %v12095_v61 = vadd.f32 %v13701_v17, %v1850_v63  ;;  %v12101_v19 = vadd.f32 %v13702_v48, %v1852_v38  ;;  %v3402_v21 = vadd.f32 %v11953_v20, %v3007_v9  ;;  %v3009_v52 = vadd.f32 %v11672_v12, %v11835_v50  ;;  %v13709_v6 = vld [vmem:[#allocation68_spill] sm:$0xff] }
 0x318   : > { %v12109_v37 = vadd.f32 %v13703_v26, %v1854_v49  ;;  %v3008_v29 = vadd.f32 %v11684_v62, %v2614_v24  ;;  %v2622_v13 = vadd.f32 %v11869_v56, %v2228_v60  ;;  %v3011_v33 = vadd.f32 %v11696_v55, %v11843_v42  ;;  %v12136_v60 = vpop.f32.mrf.mxu0  ;;  %v13714_v49 = vld [vmem:[#allocation92_spill] sm:$0xff]  ;;  %v13721_v26 = vld [vmem:[#allocation95_spill] sm:$0xff] }
 0x319   : > { %v12081_v31 = vpop.f32.mrf.mxu1  ;;  %v3010_v57 = vadd.f32 %v11708_v34, %v2616_v16  ;;  %v2624_v20 = vadd.f32 %v11877_v27, %v2230_v41  ;;  %v3401_v25 = vadd.f32 %v11955_v40, %v3006_v28  ;;  %v3013_v59 = vadd.f32 %v11720_v35, %v11851_v51  ;;  %v13704_v27 = vld [vmem:[#allocation93_spill] sm:$0xff]  ;;  %v13705_v35 = vld [vmem:[#allocation74_spill] sm:$0xff]  ;;  %v13717_v16 = vld [vmem:[#allocation72_spill] sm:$0xff] }
 0x31a   : > { %v3012_v12 = vadd.f32 %v11732_v30, %v2618_v53  ;;  %v3015_v62 = vadd.f32 %v11744_v4, %v11859_v8  ;;  %v2626_v50 = vadd.f32 %v11885_v43, %v2232_v18  ;;  %v12131_v55 = vadd.f32 %v11756_v11, %v2620_v10  ;;  %v13706_v30 = vld [vmem:[#allocation66_spill] sm:$0xff]  ;;  %v13707_v4 = vld [vmem:[#allocation67_spill] sm:$0xff]  ;;  %v13712_v18 = vld [vmem:[#allocation76_spill] sm:$0xff] }
 0x31b   : > { %v12098_v58 = vpop.f32.mrf.mxu1  ;;  %v2628_v34 = vadd.f32 %v11893_v7, %v2234_v32  ;;  %v3796_v42 = vadd.f32 %v11951_v5, %v3402_v21  ;;  %v3404_v40 = vadd.f32 %v13704_v27, %v3009_v52  ;;  %v12140_v51 = vadd.f32 %v13706_v30, %v13705_v35  ;;  %v13708_v43 = vld [vmem:[#allocation75_spill] sm:$0xff]  ;;  %v12153_v5 = vld [vmem:[%s13485_s5] ss:$0 sm:$0xff]  ;;  %v13719_v53 = vld [vmem:[#allocation96_spill] sm:$0xff] }
 0x31c   : > { %v12143_v8 = vadd.f32 %v13707_v4, %v2622_v13  ;;  %v12147_v41 = vadd.f32 %v13709_v6, %v13708_v43  ;;  %v13710_v11 = vld [vmem:[#allocation79_spill] sm:$0xff]  ;;  %v12156_v54 = vadd.f32 %v13711_v45, %v2624_v20  ;;  %v12160_v32 = vadd.f32 %v13713_v36, %v13712_v18  ;;  %v13720_v10 = vld [vmem:[#allocation73_spill] sm:$0xff]  ;;  %v12176_v13 = vpop.f32.mrf.mxu0  ;;  %v13729_v36 = vld [vmem:[#allocation98_spill] sm:$0xff] }
 0x31d   : > { %v12115_v63 = vpop.f32.mrf.mxu1  ;;  %v2630_v38 = vadd.f32 %v13710_v11, %v2236_v2  ;;  %v3795_v24 = vadd.f32 %v13714_v49, %v3401_v25  ;;  %v12164_v9 = vadd.f32 %v13715_v15, %v2626_v50  ;;  %v13716_v2 = vld [vmem:[#allocation77_spill] sm:$0xff]  ;;  %v3403_v17 = vadd.f32 %v13718_v47, %v3008_v29  ;;  %v13722_v50 = vld [vmem:[#allocation78_spill] sm:$0xff]  ;;  %v13724_v35 = vld [vmem:[#allocation31_spill] sm:$0xff] }
 0x31e   : > { %v12168_v39 = vadd.f32 %v13717_v16, %v13716_v2  ;;  %v3406_v48 = vadd.f32 %v13719_v53, %v3011_v33  ;;  %v12173_v21 = vadd.f32 %v13720_v10, %v2628_v34  ;;  %v3798_v52 = vadd.f32 %v13721_v26, %v3404_v40  ;;  %v13725_v29 = vld [vmem:[#allocation81_spill] sm:$0xff]  ;;  %v13732_v53 = vld [vmem:[#allocation35_spill] sm:$0xff] }
 0x31f   : > { %v12128_v56 = vpop.f32.mrf.mxu1  ;;  %v12184_v30 = vadd.f32 %v13724_v35, %v2630_v38  ;;  %v2632_v33 = vadd.f32 %v13725_v29, %v2238_v1  ;;  %v13726_v4 = vld [vmem:[#allocation97_spill] sm:$0xff]  ;;  %v3797_v49 = vadd.f32 %v13729_v36, %v3403_v17  ;;  %v13731_v38 = vld [vmem:[#allocation99_spill] sm:$0xff]  ;;  %v12196_v1 = vpop.f32.mrf.mxu0  ;;  %v13736_v35 = vld [vmem:[#allocation38_spill] sm:$0xff] }
 0x320   : > { %v3405_v43 = vadd.f32 %v13726_v4, %v3010_v57  ;;  %v13728_v45 = vld [vmem:[#allocation33_spill] sm:$0xff]  ;;  %v3408_v15 = vadd.f32 %v13731_v38, %v3013_v59  ;;  %v13733_v10 = vld [vmem:[#allocation83_spill] sm:$0xff]  ;;  %v13737_v4 = vld [vmem:[#allocation100_spill] sm:$0xff] }
 0x321   : > { %v9284_v7 = vpop.f32.mrf.mxu1  ;;  %v2634_v26 = vadd.f32 %v13733_v10, %v12089_v44 }
 0x322   : > { %v4190_v23 = vadd.f32 %v9284_v7, %v3796_v42  ;;  %v13723_v42 = vld [vmem:[#allocation29_spill] sm:$0xff]  ;;  %v13727_v7 = vld [vmem:[#allocation80_spill] sm:$0xff] }
 0x323   : > { %v4030_v28 = vpop.f32.mrf.mxu1  ;;  %v12181_v27 = vadd.f32 %v13723_v42, %v13722_v50  ;;  %v12191_v18 = vadd.f32 %v13728_v45, %v13727_v7  ;;  %v12213_v45 = vpop.f32.mrf.mxu0 }
 0x324   : > { %v4229_v20 = vadd.f32 %v12153_v5, %v4190_v23  ;;  %v4189_v25 = vadd.f32 %v4030_v28, %v3795_v24  ;;  %v13730_v24 = vld [vmem:[#allocation101_spill] sm:$0xff]  ;;  %v12200_v28 = vadd.f32 %v13732_v53, %v2632_v33  ;;  %v13738_v33 = vld [vmem:[#allocation102_spill] sm:$0xff] }
 0x325   : > { %v9287_v34 = vpop.f32.mrf.mxu1  ;;  %v3800_v23 = vadd.f32 %v13730_v24, %v3406_v48  ;;  %v13740_v24 = vld [vmem:[#allocation18_spill] sm:$0xff] }
 0x326   : > { %vm4261_vm2 = vcmp.ge.f32.partialorder %v4229_v20, 0.0  ;;  %v4293_v6 = vmul.f32 0.2, %v4229_v20  ;;  %v4228_v40 = vadd.f32 %v12153_v5, %v4189_v25  ;;  %v4192_v11 = vadd.f32 %v9287_v34, %v3798_v52  ;;  %v13734_v52 = vld [vmem:[#allocation104_spill] sm:$0xff] }
 0x327   : > { %v4040_v2 = vpop.f32.mrf.mxu1  ;;  %v3799_v17 = vadd.f32 %v13734_v52, %v3405_v43  ;;  %v3407_v34 = vadd.f32 %v13737_v4, %v3012_v12  ;;  %v13739_v43 = vld [vmem:[#allocation107_spill] sm:$0xff]  ;;  %v13743_v52 = vld [vmem:[#allocation113_spill] sm:$0xff]  ;;  %v13746_v4 = vld [vmem:[#allocation84_spill] sm:$0xff] }
 0x328   : > { %v4325_v57 = vsel %vm4261_vm2, %v4229_v20, %v4293_v6  ;;  %vm4260_vm3 = vcmp.ge.f32.partialorder %v4228_v40, 0.0  ;;  %v4292_v16 = vmul.f32 0.2, %v4228_v40  ;;  %v4231_v47 = vadd.f32 %v12153_v5, %v4192_v11  ;;  %v13735_v20 = vld [vmem:[#allocation82_spill] sm:$0xff]  ;;  %v13741_v12 = vld [vmem:[#allocation103_spill] sm:$0xff] }
 0x329   : > { %4412 = vst [vmem:[#allocation3 + $0x21] sm:$0xff] %v4325_v57  ;;  %v4191_v48 = vadd.f32 %v4040_v2, %v3797_v49  ;;  %v9290_v25 = vpop.f32.mrf.mxu1  ;;  %v12207_v29 = vadd.f32 %v13736_v35, %v13735_v20  ;;  %v3410_v6 = vadd.f32 %v13738_v33, %v3015_v62  ;;  %v3802_v7 = vadd.f32 %v13739_v43, %v3408_v15  ;;  %v13745_v20 = vld [vmem:[#allocation85_spill] sm:$0xff] }
 0x32a   : > { %v4324_v59 = vsel %vm4260_vm3, %v4228_v40, %v4292_v16  ;;  %vm4263_vm4 = vcmp.ge.f32.partialorder %v4231_v47, 0.0  ;;  %v4295_v50 = vmul.f32 0.2, %v4231_v47  ;;  %v4194_v42 = vadd.f32 %v9290_v25, %v3800_v23 }
 0x32b   : > { %4411 = vst [vmem:[#allocation3 + $0x19] sm:$0xff] %v4324_v59  ;;  %v4230_v44 = vadd.f32 %v12153_v5, %v4191_v48  ;;  %v4050_v11 = vpop.f32.mrf.mxu1  ;;  %9365 = vmatprep.mubr.f32.mxu0 %v4324_v59  ;;  %v12217_v23 = vadd.f32 %v13740_v24, %v2634_v26  ;;  %v3409_v62 = vadd.f32 %v13741_v12, %v12131_v55  ;;  %v12226_v59 = vpop.f32.mrf.mxu0 }
 0x32c   : > { %v4327_v40 = vsel %vm4263_vm4, %v4231_v47, %v4295_v50  ;;  %v4233_v36 = vadd.f32 %v12153_v5, %v4194_v42  ;;  %v4193_v49 = vadd.f32 %v4050_v11, %v3799_v17  ;;  %9366 = vmatmul.mubr.f32.gmra.mxu0 %v4325_v57  ;;  %v13742_v47 = vld [vmem:[#allocation110_spill] sm:$0xff]  ;;  %v3804_v17 = vadd.f32 %v13743_v52, %v3410_v6  ;;  %v13744_v57 = vld [vmem:[#allocation105_spill] sm:$0xff]  ;;  %v13748_v6 = vld [vmem:[#allocation116_spill] sm:$0xff] }
 0x32d   : > { %4414 = vst [vmem:[#allocation3 + $0x39] sm:$0xff] %v4327_v40  ;;  %vm4262_vm5 = vcmp.ge.f32.partialorder %v4230_v44, 0.0  ;;  %v4294_v38 = vmul.f32 0.2, %v4230_v44  ;;  %v9293_v2 = vpop.f32.mrf.mxu1  ;;  %v3801_v10 = vadd.f32 %v13742_v47, %v3407_v34  ;;  %v3412_v26 = vadd.f32 %v13744_v57, %v12140_v51  ;;  %v13747_v34 = vld [vmem:[#allocation43_spill] sm:$0xff] }
 0x32e   : > { %vm4265_vm6 = vcmp.ge.f32.partialorder %v4233_v36, 0.0  ;;  %v4297_v16 = vmul.f32 0.2, %v4233_v36  ;;  %v4232_v15 = vadd.f32 %v12153_v5, %v4193_v49  ;;  %v4196_v53 = vadd.f32 %v9293_v2, %v3802_v7 }
 0x32f   : > { %v4326_v48 = vsel %vm4262_vm5, %v4230_v44, %v4294_v38  ;;  %v4060_v25 = vpop.f32.mrf.mxu1  ;;  %v2636_v35 = vadd.f32 %v13745_v20, %v12092_v22  ;;  %v12233_v33 = vadd.f32 %v13747_v34, %v13746_v4  ;;  %v3803_v51 = vadd.f32 %v13748_v6, %v3409_v62  ;;  %v13749_v22 = vld [vmem:[#allocation106_spill] sm:$0xff]  ;;  %v13750_v38 = vld [vmem:[#allocation108_spill] sm:$0xff]  ;;  %v13754_v20 = vld [vmem:[#allocation123_spill] sm:$0xff] }
 0x330   : > { %4413 = vst [vmem:[#allocation3 + $0x31] sm:$0xff] %v4326_v48  ;;  %v4329_v55 = vsel %vm4265_vm6, %v4233_v36, %v4297_v16  ;;  %vm4264_vm7 = vcmp.ge.f32.partialorder %v4232_v15, 0.0  ;;  %v4296_v50 = vmul.f32 0.2, %v4232_v15  ;;  %v4235_v42 = vadd.f32 %v12153_v5, %v4196_v53  ;;  %9368 = vmatprep.mubr.f32.mxu0 %v4326_v48  ;;  %v12247_v53 = vpop.f32.mrf.mxu0  ;;  %v13755_v34 = vld [vmem:[#allocation126_spill] sm:$0xff] }
 0x331   : > { %4416 = vst [vmem:[#allocation3 + $0x51] sm:$0xff] %v4329_v55  ;;  %v4195_v44 = vadd.f32 %v4060_v25, %v3801_v10  ;;  %v9296_v11 = vpop.f32.mrf.mxu1  ;;  %9369 = vmatmul.mubr.f32.gmra.mxu0 %v4327_v40  ;;  %v3411_v12 = vadd.f32 %v13749_v22, %v12143_v8  ;;  %v3414_v2 = vadd.f32 %v13750_v38, %v12147_v41  ;;  %v13751_v40 = vld [vmem:[#allocation119_spill] sm:$0xff]  ;;  %v13752_v8 = vld [vmem:[#allocation45_spill] sm:$0xff]  ;;  %v13758_v38 = vld [vmem:[#allocation20_spill] sm:$0xff] }
 0x332   : > { %v4328_v43 = vsel %vm4264_vm7, %v4232_v15, %v4296_v50  ;;  %vm4267_vm8 = vcmp.ge.f32.partialorder %v4235_v42, 0.0  ;;  %v4299_v7 = vmul.f32 0.2, %v4235_v42  ;;  %v4198_v36 = vadd.f32 %v9296_v11, %v3804_v17  ;;  %v12236_v49 = vld [vmem:[#allocation3 + $0x18] sm:$0xff]  ;;  %v12238_v24 = vld [vmem:[#allocation3 + $0x20] sm:$0xff]  ;;  %v13753_v41 = vld [vmem:[#allocation109_spill] sm:$0xff] }
 0x333   : > { %4415 = vst [vmem:[#allocation3 + $0x49] sm:$0xff] %v4328_v43  ;;  %v4234_v62 = vadd.f32 %v12153_v5, %v4195_v44  ;;  %v4070_v16 = vpop.f32.mrf.mxu1  ;;  %9445 = vmatprep.mubr.f32.mxu1 %v12236_v49  ;;  %9371 = vmatprep.mubr.f32.mxu0 %v4328_v43  ;;  %v3806_v15 = vadd.f32 %v13751_v40, %v3412_v26 }
 0x334   : > { %v4331_v47 = vsel %vm4267_vm8, %v4235_v42, %v4299_v7  ;;  %v4237_v10 = vadd.f32 %v12153_v5, %v4198_v36  ;;  %v4197_v52 = vadd.f32 %v4070_v16, %v3803_v51  ;;  %9446 = vmatmul.mubr.f32.gmra.mxu1 %v12238_v24  ;;  %v12252_v17 = vadd.f32 %v13752_v8, %v2636_v35  ;;  %v13756_v35 = vld [vmem:[#allocation111_spill] sm:$0xff]  ;;  %v12265_v7 = vpop.f32.mrf.mxu0 }
 0x335   : > { %v3413_v57 = vadd.f32 %v13753_v41, %v12156_v54  ;;  %4418 = vst [vmem:[#allocation3 + $0x69] sm:$0xff] %v4331_v47  ;;  %vm4266_vm9 = vcmp.ge.f32.partialorder %v4234_v62, 0.0  ;;  %v4298_v48 = vmul.f32 0.2, %v4234_v62  ;;  %v9299_v25 = vpop.f32.mrf.mxu1  ;;  %9372 = vmatmul.mubr.f32.gmra.mxu0 %v4329_v55  ;;  %v3805_v4 = vadd.f32 %v13754_v20, %v3411_v12  ;;  %v13757_v12 = vld [vmem:[#allocation87_spill] sm:$0xff]  ;;  %v13759_v41 = vld [vmem:[#allocation112_spill] sm:$0xff] }
 0x336   : > { %vm4269_vm10 = vcmp.ge.f32.partialorder %v4237_v10, 0.0  ;;  %v4301_v26 = vmul.f32 0.2, %v4237_v10  ;;  %v4236_v50 = vadd.f32 %v12153_v5, %v4197_v52  ;;  %v4200_v42 = vadd.f32 %v9299_v25, %v3806_v15 }
 0x337   : > { %v3808_v6 = vadd.f32 %v13755_v34, %v3414_v2  ;;  %v3416_v51 = vadd.f32 %v13756_v35, %v12160_v32  ;;  %v4330_v44 = vsel %vm4266_vm9, %v4234_v62, %v4298_v48  ;;  %v4080_v11 = vpop.f32.mrf.mxu1  ;;  %v12261_v54 = vld [vmem:[#allocation3 + $0x30] sm:$0xff]  ;;  %v12263_v43 = vld [vmem:[#allocation3 + $0x38] sm:$0xff]  ;;  %v2638_v32 = vadd.f32 %v13757_v12, %v12095_v61 }
 0x338   : > { %4417 = vst [vmem:[#allocation3 + $0x61] sm:$0xff] %v4330_v44  ;;  %v4333_v55 = vsel %vm4269_vm10, %v4237_v10, %v4301_v26  ;;  %vm4268_vm11 = vcmp.ge.f32.partialorder %v4236_v50, 0.0  ;;  %v4300_v36 = vmul.f32 0.2, %v4236_v50  ;;  %v4239_v22 = vadd.f32 %v12153_v5, %v4200_v42  ;;  %9448 = vmatprep.mubr.f32.mxu1 %v12261_v54  ;;  %9374 = vmatprep.mubr.f32.mxu0 %v4330_v44  ;;  %v13760_v61 = vld [vmem:[#allocation114_spill] sm:$0xff] }
 0x339   : > { %v3807_v2 = vadd.f32 %v13758_v38, %v3413_v57  ;;  %4420 = vst [vmem:[#allocation3 + $0x81] sm:$0xff] %v4333_v55  ;;  %v4199_v62 = vadd.f32 %v4080_v11, %v3805_v4  ;;  %9449 = vmatmul.mubr.f32.gmra.mxu1 %v12263_v43  ;;  %v9302_v16 = vpop.f32.mrf.mxu1  ;;  %9375 = vmatmul.mubr.f32.gmra.mxu0 %v4331_v47  ;;  %v13761_v34 = vld [vmem:[#allocation86_spill] sm:$0xff]  ;;  %v13764_v38 = vld [vmem:[#allocation117_spill] sm:$0xff] }
 0x33a   : > { %v4332_v40 = vsel %vm4268_vm11, %v4236_v50, %v4300_v36  ;;  %vm4271_vm12 = vcmp.ge.f32.partialorder %v4239_v22, 0.0  ;;  %v4303_v15 = vmul.f32 0.2, %v4239_v22  ;;  %v4202_v10 = vadd.f32 %v9302_v16, %v3808_v6  ;;  %v12273_v52 = vld [vmem:[#allocation3 + $0x48] sm:$0xff]  ;;  %v12275_v8 = vld [vmem:[#allocation3 + $0x50] sm:$0xff]  ;;  %v12284_v50 = vpop.f32.mrf.mxu0 }
 0x33b   : > { %v3415_v48 = vadd.f32 %v13759_v41, %v12164_v9  ;;  %v3418_v57 = vadd.f32 %v13760_v61, %v12168_v39  ;;  %4419 = vst [vmem:[#allocation3 + $0x79] sm:$0xff] %v4332_v40  ;;  %v4238_v25 = vadd.f32 %v12153_v5, %v4199_v62  ;;  %v4090_v26 = vpop.f32.mrf.mxu1  ;;  %9451 = vmatprep.mubr.f32.mxu1 %v12273_v52  ;;  %v13762_v9 = vld [vmem:[#allocation47_spill] sm:$0xff] }
 0x33c   : > { %9377 = vmatprep.mubr.f32.mxu0 %v4332_v40  ;;  %v3810_v47 = vadd.f32 %v12073_v14, %v3416_v51  ;;  %v4335_v42 = vsel %vm4271_vm12, %v4239_v22, %v4303_v15  ;;  %v4241_v20 = vadd.f32 %v12153_v5, %v4202_v10  ;;  %v4201_v4 = vadd.f32 %v4090_v26, %v3807_v2  ;;  %v13763_v39 = vld [vmem:[#allocation115_spill] sm:$0xff]  ;;  %v12303_v15 = vpop.f32.mrf.mxu0 }
 0x33d   : > { %v12289_v6 = vadd.f32 %v13762_v9, %v13761_v34  ;;  %v3417_v35 = vadd.f32 %v13763_v39, %v12173_v21  ;;  %4422 = vst [vmem:[#allocation3 + $0x99] sm:$0xff] %v4335_v42  ;;  %vm4270_vm13 = vcmp.ge.f32.partialorder %v4238_v25, 0.0  ;;  %v4302_v44 = vmul.f32 0.2, %v4238_v25  ;;  %9452 = vmatmul.mubr.f32.gmra.mxu1 %v12275_v8  ;;  %v9305_v11 = vpop.f32.mrf.mxu1  ;;  %9378 = vmatmul.mubr.f32.gmra.mxu0 %v4333_v55  ;;  %v13767_v34 = vld [vmem:[#allocation121_spill] sm:$0xff] }
 0x33e   : > { %vm4273_vm14 = vcmp.ge.f32.partialorder %v4241_v20, 0.0  ;;  %v4305_v14 = vmul.f32 0.2, %v4241_v20  ;;  %v4240_v51 = vadd.f32 %v12153_v5, %v4201_v4  ;;  %v4204_v36 = vadd.f32 %v9305_v11, %v3810_v47  ;;  %v13766_v4 = vld [vmem:[#allocation118_spill] sm:$0xff] }
 0x33f   : > { %v3809_v22 = vadd.f32 %v12106_v0, %v3415_v48  ;;  %v3812_v12 = vadd.f32 %v12136_v60, %v3418_v57  ;;  %v3420_v2 = vadd.f32 %v13764_v38, %v12181_v27  ;;  %v4334_v21 = vsel %vm4270_vm13, %v4238_v25, %v4302_v44  ;;  %v4100_v62 = vpop.f32.mrf.mxu1  ;;  %v12299_v16 = vld [vmem:[#allocation3 + $0x60] sm:$0xff]  ;;  %v12301_v40 = vld [vmem:[#allocation3 + $0x68] sm:$0xff] }
 0x340   : > { %4421 = vst [vmem:[#allocation3 + $0x91] sm:$0xff] %v4334_v21  ;;  %v4337_v55 = vsel %vm4273_vm14, %v4241_v20, %v4305_v14  ;;  %vm4272_vm15 = vcmp.ge.f32.partialorder %v4240_v51, 0.0  ;;  %v4304_v10 = vmul.f32 0.2, %v4240_v51  ;;  %v4243_v41 = vadd.f32 %v12153_v5, %v4204_v36  ;;  %9454 = vmatprep.mubr.f32.mxu1 %v12299_v16  ;;  %9380 = vmatprep.mubr.f32.mxu0 %v4334_v21  ;;  %v13765_v0 = vld [vmem:[#allocation49_spill] sm:$0xff] }
 0x341   : > { %v12308_v60 = vadd.f32 %v13765_v0, %v2638_v32  ;;  %v3811_v27 = vadd.f32 %v12176_v13, %v3417_v35  ;;  %4424 = vst [vmem:[#allocation3 + $0xb1] sm:$0xff] %v4337_v55  ;;  %v4203_v48 = vadd.f32 %v4100_v62, %v3809_v22  ;;  %9455 = vmatmul.mubr.f32.gmra.mxu1 %v12301_v40  ;;  %v9308_v61 = vpop.f32.mrf.mxu1  ;;  %v12323_v35 = vpop.f32.mrf.mxu0 }
 0x342   : > { %9381 = vmatmul.mubr.f32.gmra.mxu0 %v4335_v42  ;;  %v4336_v57 = vsel %vm4272_vm15, %v4240_v51, %v4304_v10  ;;  %vm4275_vm0 = vcmp.ge.f32.partialorder %v4243_v41, 0.0  ;;  %v4307_v25 = vmul.f32 0.2, %v4243_v41  ;;  %v4206_v26 = vadd.f32 %v9308_v61, %v3812_v12  ;;  %v12312_v47 = vld [vmem:[#allocation3 + $0x78] sm:$0xff]  ;;  %v12314_v20 = vld [vmem:[#allocation3 + $0x80] sm:$0xff] }
 0x343   : > { %v3419_v32 = vadd.f32 %v13766_v4, %v12184_v30  ;;  %v3422_v13 = vadd.f32 %v13767_v34, %v12191_v18  ;;  %4423 = vst [vmem:[#allocation3 + $0xa9] sm:$0xff] %v4336_v57  ;;  %v4242_v9 = vadd.f32 %v12153_v5, %v4203_v48  ;;  %v4110_v39 = vpop.f32.mrf.mxu1  ;;  %9457 = vmatprep.mubr.f32.mxu1 %v12312_v47  ;;  %v13768_v30 = vld [vmem:[#allocation89_spill] sm:$0xff]  ;;  %v13769_v18 = vld [vmem:[#allocation122_spill] sm:$0xff]  ;;  %v12340_v48 = vpop.f32.mrf.mxu0 }
 0x344   : > { %9383 = vmatprep.mubr.f32.mxu0 %v4336_v57  ;;  %v3814_v42 = vadd.f32 %v12196_v1, %v3420_v2  ;;  %v4339_v44 = vsel %vm4275_vm0, %v4243_v41, %v4307_v25  ;;  %v4245_v11 = vadd.f32 %v12153_v5, %v4206_v26  ;;  %v4205_v14 = vadd.f32 %v4110_v39, %v3811_v27 }
 0x345   : > { %v2640_v51 = vadd.f32 %v13768_v30, %v12101_v19  ;;  %v3421_v36 = vadd.f32 %v13769_v18, %v12200_v28  ;;  %4426 = vst [vmem:[#allocation3 + $0xc9] sm:$0xff] %v4339_v44  ;;  %vm4274_vm1 = vcmp.ge.f32.partialorder %v4242_v9, 0.0  ;;  %v4306_v22 = vmul.f32 0.2, %v4242_v9  ;;  %9458 = vmatmul.mubr.f32.gmra.mxu1 %v12314_v20  ;;  %v9311_v12 = vpop.f32.mrf.mxu1  ;;  %v13770_v19 = vld [vmem:[#allocation124_spill] sm:$0xff] }
 0x346   : > { %9384 = vmatmul.mubr.f32.gmra.mxu0 %v4337_v55  ;;  %vm4277_vm2 = vcmp.ge.f32.partialorder %v4245_v11, 0.0  ;;  %v4309_v1 = vmul.f32 0.2, %v4245_v11  ;;  %v4244_v38 = vadd.f32 %v12153_v5, %v4205_v14  ;;  %v4208_v2 = vadd.f32 %v9311_v12, %v3814_v42  ;;  %v13773_v42 = vld [vmem:[#allocation125_spill] sm:$0xff]  ;;  %v13774_v14 = vld [vmem:[#allocation127_spill] sm:$0xff] }
 0x347   : > { %v3813_v21 = vadd.f32 %v12213_v45, %v3419_v32  ;;  %v3816_v62 = vadd.f32 %v12226_v59, %v3422_v13  ;;  %v3424_v10 = vadd.f32 %v13770_v19, %v12207_v29  ;;  %v4338_v28 = vsel %vm4274_vm1, %v4242_v9, %v4306_v22  ;;  %v4120_v41 = vpop.f32.mrf.mxu1  ;;  %v12336_v0 = vld [vmem:[#allocation3 + $0x90] sm:$0xff]  ;;  %v12338_v27 = vld [vmem:[#allocation3 + $0x98] sm:$0xff]  ;;  %v13771_v45 = vld [vmem:[#allocation88_spill] sm:$0xff] }
 0x348   : > { %4425 = vst [vmem:[#allocation3 + $0xc1] sm:$0xff] %v4338_v28  ;;  %v4341_v55 = vsel %vm4277_vm2, %v4245_v11, %v4309_v1  ;;  %vm4276_vm3 = vcmp.ge.f32.partialorder %v4244_v38, 0.0  ;;  %v4308_v61 = vmul.f32 0.2, %v4244_v38  ;;  %v4247_v57 = vadd.f32 %v12153_v5, %v4208_v2  ;;  %9460 = vmatprep.mubr.f32.mxu1 %v12336_v0  ;;  %9386 = vmatprep.mubr.f32.mxu0 %v4338_v28  ;;  %v13772_v59 = vld [vmem:[#allocation51_spill] sm:$0xff]  ;;  %v13776_v2 = vld [vmem:[#allocation53_spill] sm:$0xff] }
 0x349   : > { %v12346_v29 = vadd.f32 %v13772_v59, %v13771_v45  ;;  %v3815_v25 = vadd.f32 %v12247_v53, %v3421_v36  ;;  %4428 = vst [vmem:[#allocation3 + $0xe1] sm:$0xff] %v4341_v55  ;;  %v4207_v26 = vadd.f32 %v4120_v41, %v3813_v21  ;;  %9461 = vmatmul.mubr.f32.gmra.mxu1 %v12338_v27  ;;  %v9314_v4 = vpop.f32.mrf.mxu1  ;;  %v12361_v36 = vpop.f32.mrf.mxu0 }
 0x34a   : > { %9387 = vmatmul.mubr.f32.gmra.mxu0 %v4339_v44  ;;  %v4340_v32 = vsel %vm4276_vm3, %v4244_v38, %v4308_v61  ;;  %vm4279_vm4 = vcmp.ge.f32.partialorder %v4247_v57, 0.0  ;;  %v4311_v34 = vmul.f32 0.2, %v4247_v57  ;;  %v4210_v13 = vadd.f32 %v9314_v4, %v3816_v62  ;;  %v12350_v9 = vld [vmem:[#allocation3 + $0xa8] sm:$0xff]  ;;  %v12352_v39 = vld [vmem:[#allocation3 + $0xb0] sm:$0xff] }
 0x34b   : > { %v3423_v11 = vadd.f32 %v13773_v42, %v12217_v23  ;;  %v3426_v53 = vadd.f32 %v13774_v14, %v12233_v33  ;;  %4427 = vst [vmem:[#allocation3 + $0xd9] sm:$0xff] %v4340_v32  ;;  %v4246_v30 = vadd.f32 %v12153_v5, %v4207_v26  ;;  %v4130_v18 = vpop.f32.mrf.mxu1  ;;  %9463 = vmatprep.mubr.f32.mxu1 %v12350_v9  ;;  %v13775_v38 = vld [vmem:[#allocation54_spill] sm:$0xff]  ;;  %v9262_v59 = vpop.f32.mrf.mxu0 }
 0x34c   : > { %9389 = vmatprep.mubr.f32.mxu0 %v4340_v32  ;;  %v3818_v44 = vadd.f32 %v12265_v7, %v3424_v10  ;;  %v4343_v22 = vsel %vm4279_vm4, %v4247_v57, %v4311_v34  ;;  %v4249_v12 = vadd.f32 %v12153_v5, %v4210_v13  ;;  %v4209_v1 = vadd.f32 %v4130_v18, %v3815_v25 }
 0x34d   : > { %v3034_v23 = vadd.f32 %v13775_v38, %v2640_v51  ;;  %v3425_v33 = vadd.f32 %v13776_v2, %v12252_v17  ;;  %4430 = vst [vmem:[#allocation3 + $0xf9] sm:$0xff] %v4343_v22  ;;  %vm4278_vm5 = vcmp.ge.f32.partialorder %v4246_v30, 0.0  ;;  %v4310_v21 = vmul.f32 0.2, %v4246_v30  ;;  %9464 = vmatmul.mubr.f32.gmra.mxu1 %v12352_v39  ;;  %v9317_v62 = vpop.f32.mrf.mxu1  ;;  %v3776_v18 = vpop.f32.mrf.mxu0  ;;  %v13779_v38 = vld [vmem:[#allocation58_spill] sm:$0xff] }
 0x34e   : > { %9390 = vmatmul.mubr.f32.gmra.mxu0 %v4341_v55  ;;  %vm4281_vm6 = vcmp.ge.f32.partialorder %v4249_v12, 0.0  ;;  %v4313_v7 = vmul.f32 0.2, %v4249_v12  ;;  %v4248_v19 = vadd.f32 %v12153_v5, %v4209_v1  ;;  %v4212_v10 = vadd.f32 %v9317_v62, %v3818_v44  ;;  %v13778_v1 = vld [vmem:[#allocation90_spill] sm:$0xff] }
 0x34f   : > { %v3817_v28 = vadd.f32 %v12284_v50, %v3423_v11  ;;  %v3820_v41 = vadd.f32 %v12303_v15, %v3426_v53  ;;  %v3428_v51 = vadd.f32 %v12052_v3, %v12289_v6  ;;  %v4342_v17 = vsel %vm4278_vm5, %v4246_v30, %v4310_v21  ;;  %v4140_v61 = vpop.f32.mrf.mxu1  ;;  %v12373_v57 = vld [vmem:[#allocation3 + $0xc0] sm:$0xff]  ;;  %v12375_v45 = vld [vmem:[#allocation3 + $0xc8] sm:$0xff]  ;;  %v13777_v50 = vld [vmem:[#allocation91_spill] sm:$0xff] }
 0x350   : > { %4429 = vst [vmem:[#allocation3 + $0xf1] sm:$0xff] %v4342_v17  ;;  %v4345_v55 = vsel %vm4281_vm6, %v4249_v12, %v4313_v7  ;;  %vm4280_vm7 = vcmp.ge.f32.partialorder %v4248_v19, 0.0  ;;  %v4312_v25 = vmul.f32 0.2, %v4248_v19  ;;  %v4251_v26 = vadd.f32 %v12153_v5, %v4212_v10  ;;  %9466 = vmatprep.mubr.f32.mxu1 %v12373_v57  ;;  %9392 = vmatprep.mubr.f32.mxu0 %v4342_v17 }
 0x351   : > { %v2642_v15 = vadd.f32 %v13777_v50, %v12109_v37  ;;  %v3819_v3 = vadd.f32 %v12323_v35, %v3425_v33  ;;  %4432 = vst [vmem:[#allocation3 + $0x111] sm:$0xff] %v4345_v55  ;;  %v4211_v6 = vadd.f32 %v4140_v61, %v3817_v28  ;;  %9467 = vmatmul.mubr.f32.gmra.mxu1 %v12375_v45  ;;  %v9320_v4 = vpop.f32.mrf.mxu1  ;;  %v9265_v28 = vpop.f32.mrf.mxu0 }
 0x352   : > { %9393 = vmatmul.mubr.f32.gmra.mxu0 %v4343_v22  ;;  %v4344_v32 = vsel %vm4280_vm7, %v4248_v19, %v4312_v25  ;;  %vm4283_vm8 = vcmp.ge.f32.partialorder %v4251_v26, 0.0  ;;  %v4315_v34 = vmul.f32 0.2, %v4251_v26  ;;  %v4214_v13 = vadd.f32 %v9320_v4, %v3820_v41  ;;  %v12383_v42 = vld [vmem:[#allocation3 + $0xd8] sm:$0xff]  ;;  %v12385_v11 = vld [vmem:[#allocation3 + $0xe0] sm:$0xff] }
 0x353   : > { %v3427_v14 = vadd.f32 %v12065_v46, %v12308_v60  ;;  %v3430_v37 = vadd.f32 %v12081_v31, %v12346_v29  ;;  %4431 = vst [vmem:[#allocation3 + $0x109] sm:$0xff] %v4344_v32  ;;  %v4250_v35 = vadd.f32 %v12153_v5, %v4211_v6  ;;  %v4150_v53 = vpop.f32.mrf.mxu1  ;;  %9469 = vmatprep.mubr.f32.mxu1 %v12383_v42 }
 0x354   : > { %9395 = vmatprep.mubr.f32.mxu0 %v4344_v32  ;;  %v3822_v30 = vadd.f32 %v12340_v48, %v3428_v51  ;;  %v4347_v44 = vsel %vm4283_vm8, %v4251_v26, %v4315_v34  ;;  %v4253_v22 = vadd.f32 %v12153_v5, %v4214_v13  ;;  %v4213_v12 = vadd.f32 %v4150_v53, %v3819_v3  ;;  %v3786_v13 = vpop.f32.mrf.mxu0 }
 0x355   : > { %v3037_v46 = vadd.f32 %v13779_v38, %v13778_v1  ;;  %v3429_v60 = vadd.f32 %v12098_v58, %v3034_v23  ;;  %4434 = vst [vmem:[#allocation3 + $0x129] sm:$0xff] %v4347_v44  ;;  %vm4282_vm9 = vcmp.ge.f32.partialorder %v4250_v35, 0.0  ;;  %v4314_v31 = vmul.f32 0.2, %v4250_v35  ;;  %9470 = vmatmul.mubr.f32.gmra.mxu1 %v12385_v11  ;;  %v9323_v29 = vpop.f32.mrf.mxu1 }
 0x356   : > { %9396 = vmatmul.mubr.f32.gmra.mxu0 %v4345_v55  ;;  %vm4285_vm10 = vcmp.ge.f32.partialorder %v4253_v22, 0.0  ;;  %v4317_v2 = vmul.f32 0.2, %v4253_v22  ;;  %v4252_v48 = vadd.f32 %v12153_v5, %v4213_v12  ;;  %v4216_v33 = vadd.f32 %v9323_v29, %v3822_v30 }
 0x357   : > { %v3821_v21 = vadd.f32 %v12361_v36, %v3427_v14  ;;  %v3824_v62 = vadd.f32 %v9262_v59, %v3430_v37  ;;  %v3432_v7 = vadd.f32 %v12115_v63, %v3037_v46  ;;  %v4346_v19 = vsel %vm4282_vm9, %v4250_v35, %v4314_v31  ;;  %v4160_v10 = vpop.f32.mrf.mxu1  ;;  %v12402_v58 = vld [vmem:[#allocation3 + $0xf0] sm:$0xff]  ;;  %v12404_v23 = vld [vmem:[#allocation3 + $0xf8] sm:$0xff] }
 0x358   : > { %4433 = vst [vmem:[#allocation3 + $0x121] sm:$0xff] %v4346_v19  ;;  %v4349_v41 = vsel %vm4285_vm10, %v4253_v22, %v4317_v2  ;;  %vm4284_vm11 = vcmp.ge.f32.partialorder %v4252_v48, 0.0  ;;  %v4316_v51 = vmul.f32 0.2, %v4252_v48  ;;  %v4255_v17 = vadd.f32 %v12153_v5, %v4216_v33  ;;  %9472 = vmatprep.mubr.f32.mxu1 %v12402_v58  ;;  %9398 = vmatprep.mubr.f32.mxu0 %v4346_v19  ;;  %v13780_v36 = vld [vmem:[#allocation62_spill] sm:$0xff]  ;;  %v4990_v19 = vld [vmem:[#allocation3 + $0x2] sm:$0xff] }
 0x359   : > { %v3036_v61 = vadd.f32 %v13780_v36, %v2642_v15  ;;  %v3823_v59 = vadd.f32 %v3776_v18, %v3429_v60  ;;  %4436 = vst [vmem:[#allocation3 + $0x141] sm:$0xff] %v4349_v41  ;;  %v4215_v63 = vadd.f32 %v4160_v10, %v3821_v21  ;;  %9473 = vmatmul.mubr.f32.gmra.mxu1 %v12404_v23  ;;  %v9326_v55 = vpop.f32.mrf.mxu1 }
 0x35a   : > { %9399 = vmatmul.mubr.f32.gmra.mxu0 %v4347_v44  ;;  %v4348_v25 = vsel %vm4284_vm11, %v4252_v48, %v4316_v51  ;;  %vm4287_vm12 = vcmp.ge.f32.partialorder %v4255_v17, 0.0  ;;  %v4319_v26 = vmul.f32 0.2, %v4255_v17  ;;  %v4218_v50 = vadd.f32 %v9326_v55, %v3824_v62  ;;  %v12410_v3 = vld [vmem:[#allocation3 + $0x108] sm:$0xff]  ;;  %v12412_v6 = vld [vmem:[#allocation3 + $0x110] sm:$0xff]  ;;  %v13781_v55 = vld [vmem:[#allocation120_spill] sm:$0xff] }
 0x35b   : > { %v3431_v4 = vadd.f32 %v12128_v56, %v3036_v61  ;;  %4435 = vst [vmem:[#allocation3 + $0x139] sm:$0xff] %v4348_v25  ;;  %v4254_v15 = vadd.f32 %v12153_v5, %v4215_v63  ;;  %v4170_v32 = vpop.f32.mrf.mxu1  ;;  %9475 = vmatprep.mubr.f32.mxu1 %v12410_v3  ;;  %9401 = vmatprep.mubr.f32.mxu0 %v4348_v25  ;;  %v12443_v61 = vld [vmem:[#allocation3 + $0x1a] sm:$0xff]  ;;  %v12452_v25 = vld [vmem:[#allocation3 + $0x22] sm:$0xff] }
 0x35c   : > { %v3826_v34 = vadd.f32 %v9265_v28, %v3432_v7  ;;  %v4351_v14 = vsel %vm4287_vm12, %v4255_v17, %v4319_v26  ;;  %v4257_v37 = vadd.f32 %v12153_v5, %v4218_v50  ;;  %v4217_v35 = vadd.f32 %v4170_v32, %v3823_v59  ;;  %v5648_v26 = vld [vmem:[#allocation9 + $0x268] sm:$0xff] }
 0x35d   : > { %4438 = vst [vmem:[#allocation3 + $0x159] sm:$0xff] %v4351_v14  ;;  %vm4286_vm13 = vcmp.ge.f32.partialorder %v4254_v15, 0.0  ;;  %v4318_v53 = vmul.f32 0.2, %v4254_v15  ;;  %9476 = vmatmul.mubr.f32.gmra.mxu1 %v12412_v6  ;;  %v9329_v30 = vpop.f32.mrf.mxu1  ;;  %v3825_v22 = vadd.f32 %v3786_v13, %v3431_v4  ;;  %v12456_v50 = vld [vmem:[#allocation3 + $0x32] sm:$0xff] }
 0x35e   : > { %9402 = vmatmul.mubr.f32.gmra.mxu0 %v4349_v41  ;;  %vm4289_vm14 = vcmp.ge.f32.partialorder %v4257_v37, 0.0  ;;  %v4321_v56 = vmul.f32 0.2, %v4257_v37  ;;  %v4256_v18 = vadd.f32 %v12153_v5, %v4217_v35  ;;  %v4220_v44 = vadd.f32 %v9329_v30, %v3826_v34  ;;  %v4991_v41 = vld [vmem:[#allocation3 + $0xa] sm:$0xff]  ;;  %v12462_v34 = vld [vmem:[#allocation3 + $0x3a] sm:$0xff]  ;;  %v12470_v35 = vld [vmem:[#allocation3 + $0x52] sm:$0xff] }
 0x35f   : > { %v4350_v12 = vsel %vm4286_vm13, %v4254_v15, %v4318_v53  ;;  %v4180_v1 = vpop.f32.mrf.mxu1  ;;  %v12420_v38 = vld [vmem:[#allocation3 + $0x120] sm:$0xff]  ;;  %v12422_v46 = vld [vmem:[#allocation3 + $0x128] sm:$0xff]  ;;  %v5647_v13 = vld [vmem:[#allocation9 + $0x260] sm:$0xff] }
 0x360   : > { %4437 = vst [vmem:[#allocation3 + $0x151] sm:$0xff] %v4350_v12  ;;  %v4353_v60 = vsel %vm4289_vm14, %v4257_v37, %v4321_v56  ;;  %vm4288_vm15 = vcmp.ge.f32.partialorder %v4256_v18, 0.0  ;;  %v4320_v31 = vmul.f32 0.2, %v4256_v18  ;;  %v4259_v29 = vadd.f32 %v12153_v5, %v4220_v44  ;;  %9478 = vmatprep.mubr.f32.mxu1 %v12420_v38  ;;  %9404 = vmatprep.mubr.f32.mxu0 %v4350_v12  ;;  %v5955_v37 = vld [vmem:[#allocation9 + $0x2f0] sm:$0xff]  ;;  %v5646_v53 = vld [vmem:[#allocation9 + $0x258] sm:$0xff] }
 0x361   : > { %4440 = vst [vmem:[#allocation3 + $0x171] sm:$0xff] %v4353_v60  ;;  %v4219_v2 = vadd.f32 %v4180_v1, %v3825_v22  ;;  %9479 = vmatmul.mubr.f32.gmra.mxu1 %v12422_v46  ;;  %v5954_v30 = vld [vmem:[#allocation9 + $0x2e8] sm:$0xff]  ;;  %v5645_v56 = vld [vmem:[#allocation9 + $0x250] sm:$0xff]  ;;  %v5952_v22 = vld [vmem:[#allocation9 + $0x2d8] sm:$0xff] }
 0x362   : > { %9405 = vmatmul.mubr.f32.gmra.mxu0 %v4351_v14  ;;  %v4352_v48 = vsel %vm4288_vm15, %v4256_v18, %v4320_v31  ;;  %vm4291_vm0 = vcmp.ge.f32.partialorder %v4259_v29, 0.0  ;;  %v4323_v33 = vmul.f32 0.2, %v4259_v29  ;;  %v12427_v21 = vld [vmem:[#allocation3 + $0x138] sm:$0xff]  ;;  %v12429_v62 = vld [vmem:[#allocation3 + $0x140] sm:$0xff]  ;;  %v12466_v14 = vld [vmem:[#allocation3 + $0x4a] sm:$0xff] }
 0x363   : > { %4439 = vst [vmem:[#allocation3 + $0x169] sm:$0xff] %v4352_v48  ;;  %v4258_v7 = vadd.f32 %v12153_v5, %v4219_v2  ;;  %9481 = vmatprep.mubr.f32.mxu1 %v12427_v21  ;;  %9407 = vmatprep.mubr.f32.mxu0 %v4352_v48  ;;  %v5649_v5 = vld [vmem:[#allocation9 + $0x270] sm:$0xff]  ;;  %v5953_v18 = vld [vmem:[#allocation9 + $0x2e0] sm:$0xff]  ;;  %v5644_v44 = vld [vmem:[#allocation9 + $0x248] sm:$0xff] }
 0x364   : > { %v4355_v10 = vsel %vm4291_vm0, %v4259_v29, %v4323_v33  ;;  %v5643_v12 = vld [vmem:[#allocation9 + $0x240] sm:$0xff]  ;;  %v5951_v1 = vld [vmem:[#allocation9 + $0x2d0] sm:$0xff]  ;;  %v5950_v31 = vld [vmem:[#allocation9 + $0x2c8] sm:$0xff] }
 0x365   : > { %4442 = vst [vmem:[#allocation3 + $0x189] sm:$0xff] %v4355_v10  ;;  %vm4290_vm1 = vcmp.ge.f32.partialorder %v4258_v7, 0.0  ;;  %v4322_v28 = vmul.f32 0.2, %v4258_v7  ;;  %9482 = vmatmul.mubr.f32.gmra.mxu1 %v12429_v62  ;;  %v5641_v29 = vld [vmem:[#allocation9 + $0x230] sm:$0xff]  ;;  %v5949_v2 = vld [vmem:[#allocation9 + $0x2c0] sm:$0xff] }
 0x366   : > { %9408 = vmatmul.mubr.f32.gmra.mxu0 %v4353_v60  ;;  %v5642_v60 = vld [vmem:[#allocation9 + $0x238] sm:$0xff]  ;;  %v5640_v48 = vld [vmem:[#allocation9 + $0x228] sm:$0xff] }
 0x367   : > { %9522 = vmatprep.mubr.f32.mxu0 %v4990_v19  ;;  %v12434_v51 = vsel %vm4290_vm1, %v4258_v7, %v4322_v28  ;;  %v12436_v17 = vld [vmem:[#allocation3 + $0x150] sm:$0xff]  ;;  %v12438_v36 = vld [vmem:[#allocation3 + $0x158] sm:$0xff]  ;;  %v9364_v4 = vpop.f32.mrf.mxu0  ;;  %v9444_v15 = vpop.f32.mrf.mxu1  ;;  %v5948_v33 = vld [vmem:[#allocation9 + $0x2b8] sm:$0xff] }
 0x368   : > { %4441 = vst [vmem:[#allocation3 + $0x181] sm:$0xff] %v12434_v51  ;;  %9484 = vmatprep.mubr.f32.mxu1 %v12436_v17  ;;  %v12460_v32 = vadd.f32 %v9444_v15, %v9364_v4  ;;  %v5639_v7 = vld [vmem:[#allocation9 + $0x220] sm:$0xff]  ;;  %v5947_v19 = vld [vmem:[#allocation9 + $0x2b0] sm:$0xff]  ;;  %v5638_v10 = vld [vmem:[#allocation9 + $0x218] sm:$0xff] }
 0x369   : > { %9485 = vmatmul.mubr.f32.gmra.mxu1 %v12438_v36  ;;  %v5946_v28 = vld [vmem:[#allocation9 + $0x2a8] sm:$0xff]  ;;  %v5635_v4 = vld [vmem:[#allocation9 + $0x200] sm:$0xff]  ;;  %v5943_v15 = vld [vmem:[#allocation9 + $0x290] sm:$0xff] }
 0x36a   : > { %9523 = vmatmul.mubr.f32.vlgmr.msra.gmra.mxu0 %v4991_v41  ;;  %v12445_v59 = vld [vmem:[#allocation3 + $0x168] sm:$0xff]  ;;  %v12447_v63 = vld [vmem:[#allocation3 + $0x170] sm:$0xff]  ;;  %v5637_v41 = vld [vmem:[#allocation9 + $0x210] sm:$0xff] }
 0x36b   : > { %9525 = vmatprep.mubr.f32.mxu0 %v12443_v61  ;;  %9651 = vmatpush3.msra.mxu0 %v13781_v55  ;;  %v5636_v55 = vld [vmem:[#allocation9 + $0x208] sm:$0xff] }
 0x36c   : > { %9487 = vmatprep.mubr.f32.mxu1 %v12445_v59  ;;  %9652 = vmatprep.subr.mxu0 %v5649_v5 }
 0x36d   : > { %9653 = vmatpush3.msra.mxu0 %v5649_v5  ;;  %9488 = vmatmul.mubr.f32.gmra.mxu1 %v12447_v63  ;;  %v5945_v5 = vld [vmem:[#allocation9 + $0x2a0] sm:$0xff] }
 0x36e   : > { %9526 = vmatmul.mubr.f32.gmra.mxu0 %v12452_v25  ;;  %9602 = vmatprep.mubr.f32.mxu1 %v12236_v49  ;;  %v10127_v49 = vld [vmem:[#allocation9 + $0x2f8] sm:$0xff] }
 0x36f   : > { %9528 = vmatprep.mubr.f32.mxu0 %v12456_v50  ;;  %9654 = vmatprep.subr.mxu0 %v5648_v26 }
 0x370   : > { %9655 = vmatpush3.msra.mxu0 %v5648_v26  ;;  %v5944_v26 = vld [vmem:[#allocation9 + $0x298] sm:$0xff] }
 0x371   : > { %9603 = vmatmul.mubr.f32.vlgmr.msra.gmra.mxu1 %v12238_v24  ;;  %9656 = vmatprep.subr.mxu0 %v5647_v13  ;;  %v12474_v24 = vld [vmem:[#allocation3 + $0x62] sm:$0xff] }
 0x372   : > { %9529 = vmatmul.mubr.f32.gmra.mxu0 %v12462_v34  ;;  %9605 = vmatprep.mubr.f32.mxu1 %v12261_v54  ;;  %v12478_v54 = vld [vmem:[#allocation3 + $0x6a] sm:$0xff] }
 0x373   : > { %9531 = vmatprep.mubr.f32.mxu0 %v12466_v14  ;;  %9731 = vmatpush3.msra.mxu1 %v10127_v49  ;;  %v5941_v49 = vld [vmem:[#allocation9 + $0x280] sm:$0xff] }
 0x374   : > { %9732 = vmatprep.subr.mxu1 %v5955_v37  ;;  %9657 = vmatpush3.msra.mxu0 %v5647_v13  ;;  %v5942_v13 = vld [vmem:[#allocation9 + $0x288] sm:$0xff] }
 0x375   : > { %9606 = vmatmul.mubr.f32.gmra.mxu1 %v12263_v43  ;;  %9658 = vmatprep.subr.mxu0 %v5646_v53  ;;  %v12482_v43 = vld [vmem:[#allocation3 + $0x7a] sm:$0xff] }
 0x376   : > { %9532 = vmatmul.mubr.f32.gmra.mxu0 %v12470_v35  ;;  %9608 = vmatprep.mubr.f32.mxu1 %v12273_v52  ;;  %v12486_v52 = vld [vmem:[#allocation3 + $0x82] sm:$0xff] }
 0x377   : > { %9534 = vmatprep.mubr.f32.mxu0 %v12474_v24  ;;  %9733 = vmatpush3.msra.mxu1 %v5955_v37  ;;  %v5602_v37 = vld [vmem:[#allocation3 + $0x19] sm:$0xff] }
 0x378   : > { %9734 = vmatprep.subr.mxu1 %v5954_v30  ;;  %9659 = vmatpush3.msra.mxu0 %v5646_v53  ;;  %v12572_v53 = vld [vmem:[#allocation3 + $0x180] sm:$0xff] }
 0x379   : > { %9609 = vmatmul.mubr.f32.gmra.mxu1 %v12275_v8  ;;  %9660 = vmatprep.subr.mxu0 %v5645_v56  ;;  %v12490_v8 = vld [vmem:[#allocation3 + $0x92] sm:$0xff] }
 0x37a   : > { %9535 = vmatmul.mubr.f32.gmra.mxu0 %v12478_v54  ;;  %9611 = vmatprep.mubr.f32.mxu1 %v12299_v16  ;;  %v12494_v16 = vld [vmem:[#allocation3 + $0x9a] sm:$0xff] }
 0x37b   : > { %9537 = vmatprep.mubr.f32.mxu0 %v12482_v43  ;;  %9735 = vmatpush3.msra.mxu1 %v5954_v30  ;;  %v6262_v30 = vld [vmem:[#allocation9 + $0x370] sm:$0xff] }
 0x37c   : > { %9736 = vmatprep.subr.mxu1 %v5953_v18  ;;  %9661 = vmatpush3.msra.mxu0 %v5645_v56  ;;  %v12577_v56 = vld [vmem:[#allocation3 + $0x188] sm:$0xff] }
 0x37d   : > { %9612 = vmatmul.mubr.f32.gmra.mxu1 %v12301_v40  ;;  %9662 = vmatprep.subr.mxu0 %v5644_v44  ;;  %v12498_v40 = vld [vmem:[#allocation3 + $0xaa] sm:$0xff] }
 0x37e   : > { %9538 = vmatmul.mubr.f32.gmra.mxu0 %v12486_v52  ;;  %9614 = vmatprep.mubr.f32.mxu1 %v12312_v47  ;;  %v12502_v47 = vld [vmem:[#allocation3 + $0xb2] sm:$0xff] }
 0x37f   : > { %9540 = vmatprep.mubr.f32.mxu0 %v12490_v8  ;;  %9737 = vmatpush3.msra.mxu1 %v5953_v18  ;;  %v6261_v18 = vld [vmem:[#allocation9 + $0x368] sm:$0xff] }
 0x380   : > { %9738 = vmatprep.subr.mxu1 %v5952_v22  ;;  %9663 = vmatpush3.msra.mxu0 %v5644_v44  ;;  %v6260_v44 = vld [vmem:[#allocation9 + $0x360] sm:$0xff] }
 0x381   : > { %9615 = vmatmul.mubr.f32.gmra.mxu1 %v12314_v20  ;;  %9664 = vmatprep.subr.mxu0 %v5643_v12  ;;  %v12506_v20 = vld [vmem:[#allocation3 + $0xc2] sm:$0xff] }
 0x382   : > { %9541 = vmatmul.mubr.f32.gmra.mxu0 %v12494_v16  ;;  %9617 = vmatprep.mubr.f32.mxu1 %v12336_v0  ;;  %v12510_v0 = vld [vmem:[#allocation3 + $0xca] sm:$0xff] }
 0x383   : > { %9543 = vmatprep.mubr.f32.mxu0 %v12498_v40  ;;  %9739 = vmatpush3.msra.mxu1 %v5952_v22  ;;  %v12585_v22 = vld [vmem:[#allocation3 + $0x49] sm:$0xff] }
 0x384   : > { %9740 = vmatprep.subr.mxu1 %v5951_v1  ;;  %9665 = vmatpush3.msra.mxu0 %v5643_v12  ;;  %v6568_v12 = vld [vmem:[#allocation9 + $0x3f0] sm:$0xff] }
 0x385   : > { %9618 = vmatmul.mubr.f32.gmra.mxu1 %v12338_v27  ;;  %9666 = vmatprep.subr.mxu0 %v5642_v60  ;;  %v12514_v27 = vld [vmem:[#allocation3 + $0xda] sm:$0xff] }
 0x386   : > { %9544 = vmatmul.mubr.f32.gmra.mxu0 %v12502_v47  ;;  %9620 = vmatprep.mubr.f32.mxu1 %v12350_v9  ;;  %v12518_v9 = vld [vmem:[#allocation3 + $0xe2] sm:$0xff] }
 0x387   : > { %9546 = vmatprep.mubr.f32.mxu0 %v12506_v20  ;;  %9741 = vmatpush3.msra.mxu1 %v5951_v1  ;;  %v12590_v1 = vld [vmem:[#allocation3 + $0x51] sm:$0xff] }
 0x388   : > { %9742 = vmatprep.subr.mxu1 %v5950_v31  ;;  %9667 = vmatpush3.msra.mxu0 %v5642_v60  ;;  %v12593_v60 = vld [vmem:[#allocation3 + $0x61] sm:$0xff] }
 0x389   : > { %9621 = vmatmul.mubr.f32.gmra.mxu1 %v12352_v39  ;;  %9668 = vmatprep.subr.mxu0 %v5641_v29  ;;  %v12522_v39 = vld [vmem:[#allocation3 + $0xf2] sm:$0xff] }
 0x38a   : > { %9547 = vmatmul.mubr.f32.gmra.mxu0 %v12510_v0  ;;  %9623 = vmatprep.mubr.f32.mxu1 %v12373_v57  ;;  %v12526_v57 = vld [vmem:[#allocation3 + $0xfa] sm:$0xff] }
 0x38b   : > { %9549 = vmatprep.mubr.f32.mxu0 %v12514_v27  ;;  %9743 = vmatpush3.msra.mxu1 %v5950_v31  ;;  %v6566_v31 = vld [vmem:[#allocation9 + $0x3e0] sm:$0xff] }
 0x38c   : > { %9744 = vmatprep.subr.mxu1 %v5949_v2  ;;  %9669 = vmatpush3.msra.mxu0 %v5641_v29  ;;  %v12601_v29 = vld [vmem:[#allocation3 + $0x79] sm:$0xff] }
 0x38d   : > { %9624 = vmatmul.mubr.f32.gmra.mxu1 %v12375_v45  ;;  %9670 = vmatprep.subr.mxu0 %v5640_v48  ;;  %v12530_v45 = vld [vmem:[#allocation3 + $0x10a] sm:$0xff] }
 0x38e   : > { %9550 = vmatmul.mubr.f32.gmra.mxu0 %v12518_v9  ;;  %9626 = vmatprep.mubr.f32.mxu1 %v12383_v42  ;;  %v12534_v42 = vld [vmem:[#allocation3 + $0x112] sm:$0xff] }
 0x38f   : > { %9552 = vmatprep.mubr.f32.mxu0 %v12522_v39  ;;  %9745 = vmatpush3.msra.mxu1 %v5949_v2  ;;  %v6565_v2 = vld [vmem:[#allocation9 + $0x3d8] sm:$0xff] }
 0x390   : > { %9746 = vmatprep.subr.mxu1 %v5948_v33  ;;  %9671 = vmatpush3.msra.mxu0 %v5640_v48  ;;  %v12609_v48 = vld [vmem:[#allocation3 + $0x91] sm:$0xff] }
 0x391   : > { %9627 = vmatmul.mubr.f32.gmra.mxu1 %v12385_v11  ;;  %9672 = vmatprep.subr.mxu0 %v5639_v7  ;;  %v12538_v11 = vld [vmem:[#allocation3 + $0x122] sm:$0xff] }
 0x392   : > { %9553 = vmatmul.mubr.f32.gmra.mxu0 %v12526_v57  ;;  %9629 = vmatprep.mubr.f32.mxu1 %v12402_v58  ;;  %v12542_v58 = vld [vmem:[#allocation3 + $0x12a] sm:$0xff] }
 0x393   : > { %9555 = vmatprep.mubr.f32.mxu0 %v12530_v45  ;;  %9747 = vmatpush3.msra.mxu1 %v5948_v33  ;;  %v6564_v33 = vld [vmem:[#allocation9 + $0x3d0] sm:$0xff] }
 0x394   : > { %9748 = vmatprep.subr.mxu1 %v5947_v19  ;;  %9673 = vmatpush3.msra.mxu0 %v5639_v7  ;;  %v12617_v7 = vld [vmem:[#allocation3 + $0xa9] sm:$0xff] }
 0x395   : > { %9630 = vmatmul.mubr.f32.gmra.mxu1 %v12404_v23  ;;  %9674 = vmatprep.subr.mxu0 %v5638_v10  ;;  %v12546_v23 = vld [vmem:[#allocation3 + $0x13a] sm:$0xff] }
 0x396   : > { %9556 = vmatmul.mubr.f32.gmra.mxu0 %v12534_v42  ;;  %9632 = vmatprep.mubr.f32.mxu1 %v12410_v3  ;;  %v12550_v3 = vld [vmem:[#allocation3 + $0x142] sm:$0xff] }
 0x397   : > { %9558 = vmatprep.mubr.f32.mxu0 %v12538_v11  ;;  %9749 = vmatpush3.msra.mxu1 %v5947_v19  ;;  %v6563_v19 = vld [vmem:[#allocation9 + $0x3c8] sm:$0xff] }
 0x398   : > { %9750 = vmatprep.subr.mxu1 %v5946_v28  ;;  %9675 = vmatpush3.msra.mxu0 %v5638_v10  ;;  %v12625_v10 = vld [vmem:[#allocation3 + $0xc1] sm:$0xff] }
 0x399   : > { %9633 = vmatmul.mubr.f32.gmra.mxu1 %v12412_v6  ;;  %9676 = vmatprep.subr.mxu0 %v5637_v41  ;;  %v12554_v6 = vld [vmem:[#allocation3 + $0x152] sm:$0xff] }
 0x39a   : > { %9559 = vmatmul.mubr.f32.gmra.mxu0 %v12542_v58  ;;  %9635 = vmatprep.mubr.f32.mxu1 %v12420_v38  ;;  %v12558_v38 = vld [vmem:[#allocation3 + $0x15a] sm:$0xff] }
 0x39b   : > { %9561 = vmatprep.mubr.f32.mxu0 %v12546_v23  ;;  %9751 = vmatpush3.msra.mxu1 %v5946_v28  ;;  %v6562_v28 = vld [vmem:[#allocation9 + $0x3c0] sm:$0xff] }
 0x39c   : > { %9752 = vmatprep.subr.mxu1 %v5945_v5  ;;  %9677 = vmatpush3.msra.mxu0 %v5637_v41  ;;  %v12633_v41 = vld [vmem:[#allocation3 + $0xd9] sm:$0xff] }
 0x39d   : > { %9636 = vmatmul.mubr.f32.gmra.mxu1 %v12422_v46  ;;  %9678 = vmatprep.subr.mxu0 %v5636_v55  ;;  %v12562_v46 = vld [vmem:[#allocation3 + $0x16a] sm:$0xff] }
 0x39e   : > { %9562 = vmatmul.mubr.f32.gmra.mxu0 %v12550_v3  ;;  %9638 = vmatprep.mubr.f32.mxu1 %v12427_v21  ;;  %v12566_v21 = vld [vmem:[#allocation3 + $0x172] sm:$0xff] }
 0x39f   : > { %9564 = vmatprep.mubr.f32.mxu0 %v12554_v6  ;;  %9753 = vmatpush3.msra.mxu1 %v5945_v5  ;;  %v6561_v5 = vld [vmem:[#allocation9 + $0x3b8] sm:$0xff] }
 0x3a0   : > { %9754 = vmatprep.subr.mxu1 %v5944_v26  ;;  %9679 = vmatpush3.msra.mxu0 %v5636_v55  ;;  %v12641_v55 = vld [vmem:[#allocation3 + $0xf1] sm:$0xff] }
 0x3a1   : > { %9639 = vmatmul.mubr.f32.gmra.mxu1 %v12429_v62  ;;  %9680 = vmatprep.subr.mxu0 %v5635_v4  ;;  %v6263_v62 = vld [vmem:[#allocation9 + $0x378] sm:$0xff] }
 0x3a2   : > { %9565 = vmatmul.mubr.f32.gmra.mxu0 %v12558_v38  ;;  %9641 = vmatprep.mubr.f32.mxu1 %v12436_v17  ;;  %v6569_v17 = vld [vmem:[#allocation9 + $0x3f8] sm:$0xff] }
 0x3a3   : > { %9567 = vmatprep.mubr.f32.mxu0 %v12562_v46  ;;  %9755 = vmatpush3.msra.mxu1 %v5944_v26  ;;  %v6560_v26 = vld [vmem:[#allocation9 + $0x3b0] sm:$0xff] }
 0x3a4   : > { %9756 = vmatprep.subr.mxu1 %v5943_v15  ;;  %9681 = vmatpush3.msra.mxu0 %v5635_v4  ;;  %v12649_v4 = vld [vmem:[#allocation3 + $0x109] sm:$0xff] }
 0x3a5   : > { %9642 = vmatmul.mubr.f32.gmra.mxu1 %v12438_v36  ;;  %9810 = vmatprep.subr.mxu0 %v6263_v62  ;;  %v5603_v36 = vld [vmem:[#allocation3 + $0x21] sm:$0xff] }
 0x3a6   : > { %9568 = vmatmul.mubr.f32.gmra.mxu0 %v12566_v21  ;;  %9644 = vmatprep.mubr.f32.mxu1 %v12445_v59  ;;  %v12575_v59 = vld [vmem:[#allocation3 + $0x31] sm:$0xff] }
 0x3a7   : > { %9757 = vmatpush3.msra.mxu1 %v5943_v15  ;;  %9682 = vmatprep.mubr.f32.mxu0 %v5602_v37  ;;  %v6559_v15 = vld [vmem:[#allocation9 + $0x3a8] sm:$0xff] }
 0x3a8   : > { %9758 = vmatprep.subr.mxu1 %v5942_v13  ;;  %v12665_v37 = vld [vmem:[#allocation3 + $0x139] sm:$0xff] }
 0x3a9   : > { %9759 = vmatpush3.msra.mxu1 %v5942_v13  ;;  %v12657_v13 = vld [vmem:[#allocation3 + $0x121] sm:$0xff] }
 0x3aa   : > { %9645 = vmatmul.mubr.f32.gmra.mxu1 %v12447_v63  ;;  %9760 = vmatprep.subr.mxu1 %v5941_v49  ;;  %v12582_v63 = vld [vmem:[#allocation3 + $0x39] sm:$0xff] }
 0x3ab   : > { %9647 = vmatprep.mubr.f32.mxu1 %v12572_v53  ;;  %9761 = vmatpush3.msra.mxu1 %v5941_v49  ;;  %v6557_v49 = vld [vmem:[#allocation9 + $0x398] sm:$0xff] }
 0x3ac   : > { %9683 = vmatmul.mubr.f32.vlgmr.msra.gmra.mxu0 %v5603_v36  ;;  %9890 = vmatprep.subr.mxu1 %v6569_v17  ;;  %v6556_v36 = vld [vmem:[#allocation9 + $0x390] sm:$0xff] }
 0x3ad   : > { %9685 = vmatprep.mubr.f32.mxu0 %v12575_v59  ;;  %9811 = vmatpush3.msra.mxu0 %v6263_v62  ;;  %v6558_v62 = vld [vmem:[#allocation9 + $0x3a0] sm:$0xff] }
 0x3ae   : > { %9648 = vmatmul.mubr.f32.gmra.mxu1 %v12577_v56  ;;  %9812 = vmatprep.subr.mxu0 %v6262_v30 }
 0x3af   : > { %9762 = vmatprep.mubr.f32.mxu1 %v12443_v61  ;;  %9813 = vmatpush3.msra.mxu0 %v6262_v30  ;;  %v6567_v61 = vld [vmem:[#allocation9 + $0x3e8] sm:$0xff]  ;;  %v12681_v30 = vld [vmem:[#allocation3 + $0x169] sm:$0xff] }
 0x3b0   : > { %9686 = vmatmul.mubr.f32.gmra.mxu0 %v12582_v63  ;;  %9814 = vmatprep.subr.mxu0 %v6261_v18 }
 0x3b1   : > { %9688 = vmatprep.mubr.f32.mxu0 %v12585_v22  ;;  %9815 = vmatpush3.msra.mxu0 %v6261_v18  ;;  %v6555_v18 = vld [vmem:[#allocation9 + $0x388] sm:$0xff] }
 0x3b2   : > { %9763 = vmatmul.mubr.f32.vlgmr.msra.gmra.mxu1 %v12452_v25  ;;  %9816 = vmatprep.subr.mxu0 %v6260_v44  ;;  %v12598_v25 = vld [vmem:[#allocation3 + $0x69] sm:$0xff] }
 0x3b3   : > { %9765 = vmatprep.mubr.f32.mxu1 %v12456_v50  ;;  %9891 = vmatpush3.msra.mxu1 %v6569_v17  ;;  %v6259_v50 = vld [vmem:[#allocation9 + $0x358] sm:$0xff]  ;;  %v12673_v17 = vld [vmem:[#allocation3 + $0x151] sm:$0xff] }
 0x3b4   : > { %9689 = vmatmul.mubr.f32.gmra.mxu0 %v12590_v1  ;;  %9892 = vmatprep.subr.mxu1 %v6568_v12 }
 0x3b5   : > { %9691 = vmatprep.mubr.f32.mxu0 %v12593_v60  ;;  %9893 = vmatpush3.msra.mxu1 %v6568_v12  ;;  %v6215_v12 = vld [vmem:[#allocation3 + $0x30] sm:$0xff] }
 0x3b6   : > { %9766 = vmatmul.mubr.f32.gmra.mxu1 %v12462_v34  ;;  %9894 = vmatprep.subr.mxu1 %v6567_v61  ;;  %v12606_v34 = vld [vmem:[#allocation3 + $0x81] sm:$0xff] }
 0x3b7   : > { %9768 = vmatprep.mubr.f32.mxu1 %v12466_v14  ;;  %9895 = vmatpush3.msra.mxu1 %v6567_v61  ;;  %v6258_v14 = vld [vmem:[#allocation9 + $0x350] sm:$0xff] }
 0x3b8   : > { %9692 = vmatmul.mubr.f32.gmra.mxu0 %v12598_v25  ;;  %9896 = vmatprep.subr.mxu1 %v6566_v31  ;;  %v6874_v61 = vld [vmem:[#allocation9 + $0x470] sm:$0xff] }
 0x3b9   : > { %9694 = vmatprep.mubr.f32.mxu0 %v12601_v29  ;;  %9817 = vmatpush3.msra.mxu0 %v6260_v44  ;;  %v6554_v44 = vld [vmem:[#allocation9 + $0x380] sm:$0xff] }
 0x3ba   : > { %9769 = vmatmul.mubr.f32.gmra.mxu1 %v12470_v35  ;;  %9818 = vmatprep.subr.mxu0 %v6259_v50  ;;  %v12614_v35 = vld [vmem:[#allocation3 + $0x99] sm:$0xff] }
 0x3bb   : > { %9771 = vmatprep.mubr.f32.mxu1 %v12474_v24  ;;  %9897 = vmatpush3.msra.mxu1 %v6566_v31  ;;  %v6257_v24 = vld [vmem:[#allocation9 + $0x348] sm:$0xff]  ;;  %v6217_v31 = vld [vmem:[#allocation3 + $0x48] sm:$0xff] }
 0x3bc   : > { %9695 = vmatmul.mubr.f32.gmra.mxu0 %v12606_v34  ;;  %9898 = vmatprep.subr.mxu1 %v6565_v2 }
 0x3bd   : > { %9697 = vmatprep.mubr.f32.mxu0 %v12609_v48  ;;  %9819 = vmatpush3.msra.mxu0 %v6259_v50  ;;  %v12701_v50 = vld [vmem:[#allocation3 + $0x18a] sm:$0xff] }
 0x3be   : > { %9772 = vmatmul.mubr.f32.gmra.mxu1 %v12478_v54  ;;  %9820 = vmatprep.subr.mxu0 %v6258_v14  ;;  %v12622_v54 = vld [vmem:[#allocation3 + $0xb1] sm:$0xff] }
 0x3bf   : > { %9774 = vmatprep.mubr.f32.mxu1 %v12482_v43  ;;  %9899 = vmatpush3.msra.mxu1 %v6565_v2  ;;  %v6256_v43 = vld [vmem:[#allocation9 + $0x340] sm:$0xff] }
 0x3c0   : > { %9698 = vmatmul.mubr.f32.gmra.mxu0 %v12614_v35  ;;  %9900 = vmatprep.subr.mxu1 %v6564_v33 }
 0x3c1   : > { %9700 = vmatprep.mubr.f32.mxu0 %v12617_v7  ;;  %9821 = vmatpush3.msra.mxu0 %v6258_v14  ;;  %v6873_v14 = vld [vmem:[#allocation9 + $0x468] sm:$0xff] }
 0x3c2   : > { %9775 = vmatmul.mubr.f32.gmra.mxu1 %v12486_v52  ;;  %9822 = vmatprep.subr.mxu0 %v6257_v24  ;;  %v12630_v52 = vld [vmem:[#allocation3 + $0xc9] sm:$0xff] }
 0x3c3   : > { %9777 = vmatprep.mubr.f32.mxu1 %v12490_v8  ;;  %9901 = vmatpush3.msra.mxu1 %v6564_v33  ;;  %v6255_v8 = vld [vmem:[#allocation9 + $0x338] sm:$0xff] }
 0x3c4   : > { %9701 = vmatmul.mubr.f32.gmra.mxu0 %v12622_v54  ;;  %9902 = vmatprep.subr.mxu1 %v6563_v19 }
 0x3c5   : > { %9703 = vmatprep.mubr.f32.mxu0 %v12625_v10  ;;  %9823 = vmatpush3.msra.mxu0 %v6257_v24  ;;  %v6872_v24 = vld [vmem:[#allocation9 + $0x460] sm:$0xff] }
 0x3c6   : > { %9778 = vmatmul.mubr.f32.gmra.mxu1 %v12494_v16  ;;  %9824 = vmatprep.subr.mxu0 %v6256_v43  ;;  %v12638_v16 = vld [vmem:[#allocation3 + $0xe1] sm:$0xff] }
 0x3c7   : > { %9780 = vmatprep.mubr.f32.mxu1 %v12498_v40  ;;  %9903 = vmatpush3.msra.mxu1 %v6563_v19  ;;  %v6254_v40 = vld [vmem:[#allocation9 + $0x330] sm:$0xff] }
 0x3c8   : > { %9704 = vmatmul.mubr.f32.gmra.mxu0 %v12630_v52  ;;  %9904 = vmatprep.subr.mxu1 %v6562_v28  ;;  %v6219_v19 = vld [vmem:[#allocation3 + $0x60] sm:$0xff] }
 0x3c9   : > { %9706 = vmatprep.mubr.f32.mxu0 %v12633_v41  ;;  %9825 = vmatpush3.msra.mxu0 %v6256_v43  ;;  %v6871_v43 = vld [vmem:[#allocation9 + $0x458] sm:$0xff] }
 0x3ca   : > { %9781 = vmatmul.mubr.f32.gmra.mxu1 %v12502_v47  ;;  %9826 = vmatprep.subr.mxu0 %v6255_v8  ;;  %v12646_v47 = vld [vmem:[#allocation3 + $0xf9] sm:$0xff] }
 0x3cb   : > { %9783 = vmatprep.mubr.f32.mxu1 %v12506_v20  ;;  %9905 = vmatpush3.msra.mxu1 %v6562_v28  ;;  %v6253_v20 = vld [vmem:[#allocation9 + $0x328] sm:$0xff] }
 0x3cc   : > { %9707 = vmatmul.mubr.f32.gmra.mxu0 %v12638_v16  ;;  %9906 = vmatprep.subr.mxu1 %v6561_v5 }
 0x3cd   : > { %9709 = vmatprep.mubr.f32.mxu0 %v12641_v55  ;;  %9827 = vmatpush3.msra.mxu0 %v6255_v8  ;;  %v12706_v8 = vpop.f32.mrf.mxu1 }
 0x3ce   : > { %9784 = vmatmul.mubr.f32.gmra.mxu1 %v12510_v0  ;;  %9828 = vmatprep.subr.mxu0 %v6254_v40  ;;  %v12654_v0 = vld [vmem:[#allocation3 + $0x111] sm:$0xff] }
 0x3cf   : > { %9786 = vmatprep.mubr.f32.mxu1 %v12514_v27  ;;  %9907 = vmatpush3.msra.mxu1 %v6561_v5  ;;  %v6252_v27 = vld [vmem:[#allocation9 + $0x320] sm:$0xff]  ;;  %v6220_v5 = vld [vmem:[#allocation3 + $0x68] sm:$0xff] }
 0x3d0   : > { %9710 = vmatmul.mubr.f32.gmra.mxu0 %v12646_v47  ;;  %9908 = vmatprep.subr.mxu1 %v6560_v26 }
 0x3d1   : > { %9712 = vmatprep.mubr.f32.mxu0 %v12649_v4  ;;  %9829 = vmatpush3.msra.mxu0 %v6254_v40  ;;  %v6221_v40 = vld [vmem:[#allocation3 + $0x78] sm:$0xff] }
 0x3d2   : > { %9787 = vmatmul.mubr.f32.gmra.mxu1 %v12518_v9  ;;  %9830 = vmatprep.subr.mxu0 %v6253_v20  ;;  %v12662_v9 = vld [vmem:[#allocation3 + $0x129] sm:$0xff] }
 0x3d3   : > { %9789 = vmatprep.mubr.f32.mxu1 %v12522_v39  ;;  %9909 = vmatpush3.msra.mxu1 %v6560_v26  ;;  %v6251_v39 = vld [vmem:[#allocation9 + $0x318] sm:$0xff] }
 0x3d4   : > { %9713 = vmatmul.mubr.f32.gmra.mxu0 %v12654_v0  ;;  %9910 = vmatprep.subr.mxu1 %v6559_v15 }
 0x3d5   : > { %9715 = vmatprep.mubr.f32.mxu0 %v12657_v13  ;;  %9831 = vmatpush3.msra.mxu0 %v6253_v20 }
 0x3d6   : > { %9790 = vmatmul.mubr.f32.gmra.mxu1 %v12526_v57  ;;  %9832 = vmatprep.subr.mxu0 %v6252_v27  ;;  %v12670_v57 = vld [vmem:[#allocation3 + $0x141] sm:$0xff] }
 0x3d7   : > { %9792 = vmatprep.mubr.f32.mxu1 %v12530_v45  ;;  %9911 = vmatpush3.msra.mxu1 %v6559_v15  ;;  %v6250_v45 = vld [vmem:[#allocation9 + $0x310] sm:$0xff]  ;;  %v6869_v15 = vld [vmem:[#allocation9 + $0x448] sm:$0xff] }
 0x3d8   : > { %9716 = vmatmul.mubr.f32.gmra.mxu0 %v12662_v9  ;;  %9912 = vmatprep.subr.mxu1 %v6558_v62 }
 0x3d9   : > { %9718 = vmatprep.mubr.f32.mxu0 %v12665_v37  ;;  %9833 = vmatpush3.msra.mxu0 %v6252_v27 }
 0x3da   : > { %9793 = vmatmul.mubr.f32.gmra.mxu1 %v12534_v42  ;;  %9834 = vmatprep.subr.mxu0 %v6251_v39  ;;  %v12678_v42 = vld [vmem:[#allocation3 + $0x159] sm:$0xff] }
 0x3db   : > { %9795 = vmatprep.mubr.f32.mxu1 %v12538_v11  ;;  %9913 = vmatpush3.msra.mxu1 %v6558_v62  ;;  %v6249_v11 = vld [vmem:[#allocation9 + $0x308] sm:$0xff]  ;;  %v6222_v62 = vld [vmem:[#allocation3 + $0x80] sm:$0xff] }
 0x3dc   : > { %9719 = vmatmul.mubr.f32.gmra.mxu0 %v12670_v57  ;;  %9914 = vmatprep.subr.mxu1 %v6557_v49 }
 0x3dd   : > { %9721 = vmatprep.mubr.f32.mxu0 %v12673_v17  ;;  %9835 = vmatpush3.msra.mxu0 %v6251_v39  ;;  %v6868_v39 = vld [vmem:[#allocation9 + $0x440] sm:$0xff] }
 0x3de   : > { %9796 = vmatmul.mubr.f32.gmra.mxu1 %v12542_v58  ;;  %9836 = vmatprep.subr.mxu0 %v6250_v45  ;;  %v12686_v58 = vld [vmem:[#allocation3 + $0x171] sm:$0xff] }
 0x3df   : > { %9798 = vmatprep.mubr.f32.mxu1 %v12546_v23  ;;  %9915 = vmatpush3.msra.mxu1 %v6557_v49  ;;  %v6248_v23 = vld [vmem:[#allocation9 + $0x300] sm:$0xff] }
 0x3e0   : > { %9722 = vmatmul.mubr.f32.gmra.mxu0 %v12678_v42  ;;  %9916 = vmatprep.subr.mxu1 %v6556_v36 }
 0x3e1   : > { %9724 = vmatprep.mubr.f32.mxu0 %v12681_v30  ;;  %9837 = vmatpush3.msra.mxu0 %v6250_v45  ;;  %v6223_v45 = vld [vmem:[#allocation3 + $0x90] sm:$0xff] }
 0x3e2   : > { %9799 = vmatmul.mubr.f32.gmra.mxu1 %v12550_v3  ;;  %9838 = vmatprep.subr.mxu0 %v6249_v11  ;;  %v12692_v3 = vld [vmem:[#allocation3 + $0x189] sm:$0xff] }
 0x3e3   : > { %9801 = vmatprep.mubr.f32.mxu1 %v12554_v6  ;;  %9917 = vmatpush3.msra.mxu1 %v6556_v36  ;;  %v6875_v6 = vld [vmem:[#allocation9 + $0x478] sm:$0xff] }
 0x3e4   : > { %9725 = vmatmul.mubr.f32.gmra.mxu0 %v12686_v58  ;;  %9918 = vmatprep.subr.mxu1 %v6555_v18 }
 0x3e5   : > { %9727 = vmatprep.mubr.f32.mxu0 %v12434_v51  ;;  %9839 = vmatpush3.msra.mxu0 %v6249_v11  ;;  %v12696_v51 = vld [vmem:[#allocation3 + $0x182] sm:$0xff] }
 0x3e6   : > { %9802 = vmatmul.mubr.f32.gmra.mxu1 %v12558_v38  ;;  %9840 = vmatprep.subr.mxu0 %v6248_v23  ;;  %v12699_v38 = vpop.f32.mrf.mxu0  ;;  %v6867_v11 = vld [vmem:[#allocation9 + $0x438] sm:$0xff] }
 0x3e7   : > { %9804 = vmatprep.mubr.f32.mxu1 %v12562_v46  ;;  %9919 = vmatpush3.msra.mxu1 %v6555_v18  ;;  %v6216_v46 = vld [vmem:[#allocation3 + $0x38] sm:$0xff] }
 0x3e8   : > { %9728 = vmatmul.mubr.f32.gmra.mxu0 %v12692_v3  ;;  %9920 = vmatprep.subr.mxu1 %v6554_v44 }
 0x3e9   : > { %9842 = vmatprep.mubr.f32.mxu0 %v6215_v12  ;;  %9841 = vmatpush3.msra.mxu0 %v6248_v23  ;;  %v6225_v12 = vld [vmem:[#allocation3 + $0xa8] sm:$0xff] }
 0x3ea   : > { %9805 = vmatmul.mubr.f32.gmra.mxu1 %v12566_v21  ;;  %9970 = vmatprep.subr.mxu0 %v6875_v6  ;;  %v6218_v21 = vld [vmem:[#allocation3 + $0x50] sm:$0xff] }
 0x3eb   : > { %9807 = vmatprep.mubr.f32.mxu1 %v12696_v51  ;;  %9921 = vmatpush3.msra.mxu1 %v6554_v44  ;;  %v6866_v44 = vld [vmem:[#allocation9 + $0x430] sm:$0xff] }
 0x3ec   : > { %9843 = vmatmul.mubr.f32.vlgmr.msra.gmra.mxu0 %v6216_v46  ;;  %v9367_v2 = vpop.f32.mrf.mxu0 }
 0x3ed   : > { %9845 = vmatprep.mubr.f32.mxu0 %v6217_v31  ;;  %9971 = vmatpush3.msra.mxu0 %v6875_v6  ;;  %v6865_v31 = vld [vmem:[#allocation9 + $0x428] sm:$0xff] }
 0x3ee   : > { %9808 = vmatmul.mubr.f32.gmra.mxu1 %v12701_v50  ;;  %9972 = vmatprep.subr.mxu0 %v6874_v61  ;;  %v4616_v33 = vpop.f32.mrf.mxu0 }
 0x3ef   : > { %9922 = vmatprep.mubr.f32.mxu1 %v12575_v59  ;;  %9973 = vmatpush3.msra.mxu0 %v6874_v61  ;;  %v6870_v59 = vld [vmem:[#allocation9 + $0x450] sm:$0xff] }
 0x3f0   : > { %9846 = vmatmul.mubr.f32.gmra.mxu0 %v6218_v21  ;;  %9974 = vmatprep.subr.mxu0 %v6873_v14  ;;  %v6864_v21 = vld [vmem:[#allocation9 + $0x420] sm:$0xff] }
 0x3f1   : > { %9848 = vmatprep.mubr.f32.mxu0 %v6219_v19  ;;  %9975 = vmatpush3.msra.mxu0 %v6873_v14  ;;  %v9370_v28 = vpop.f32.mrf.mxu0 }
 0x3f2   : > { %9923 = vmatmul.mubr.f32.vlgmr.msra.gmra.mxu1 %v12582_v63  ;;  %9976 = vmatprep.subr.mxu0 %v6872_v24 }
 0x3f3   : > { %9925 = vmatprep.mubr.f32.mxu1 %v12585_v22  ;;  %9977 = vmatpush3.msra.mxu0 %v6872_v24  ;;  %v4626_v26 = vpop.f32.mrf.mxu0  ;;  %v6227_v24 = vld [vmem:[#allocation3 + $0xc0] sm:$0xff] }
 0x3f4   : > { %9849 = vmatmul.mubr.f32.gmra.mxu0 %v6220_v5  ;;  %9978 = vmatprep.subr.mxu0 %v6871_v43  ;;  %v9447_v20 = vpop.f32.mrf.mxu1 }
 0x3f5   : > { %9851 = vmatprep.mubr.f32.mxu0 %v6221_v40  ;;  %9979 = vmatpush3.msra.mxu0 %v6871_v43  ;;  %v12709_v27 = vadd.f32 %v9447_v20, %v9367_v2  ;;  %v9373_v63 = vpop.f32.mrf.mxu0  ;;  %v6862_v40 = vld [vmem:[#allocation9 + $0x410] sm:$0xff]  ;;  %v6229_v20 = vld [vmem:[#allocation3 + $0xd8] sm:$0xff] }
 0x3f6   : > { %9926 = vmatmul.mubr.f32.gmra.mxu1 %v12590_v1  ;;  %9980 = vmatprep.subr.mxu0 %v6870_v59  ;;  %v4841_v22 = vpop.f32.mrf.mxu1 }
 0x3f7   : > { %9928 = vmatprep.mubr.f32.mxu1 %v12593_v60  ;;  %9981 = vmatpush3.msra.mxu0 %v6870_v59  ;;  %v12713_v49 = vadd.f32 %v4841_v22, %v4616_v33  ;;  %v4636_v36 = vpop.f32.mrf.mxu0  ;;  %v6224_v60 = vld [vmem:[#allocation3 + $0x98] sm:$0xff] }
 0x3f8   : > { %9852 = vmatmul.mubr.f32.gmra.mxu0 %v6222_v62  ;;  %9982 = vmatprep.subr.mxu0 %v6869_v15  ;;  %v6861_v22 = vld [vmem:[#allocation9 + $0x408] sm:$0xff] }
 0x3f9   : > { %9854 = vmatprep.mubr.f32.mxu0 %v6223_v45  ;;  %9983 = vmatpush3.msra.mxu0 %v6869_v15  ;;  %v9450_v18 = vpop.f32.mrf.mxu1  ;;  %v9376_v1 = vpop.f32.mrf.mxu0  ;;  %v6860_v45 = vld [vmem:[#allocation9 + $0x400] sm:$0xff] }
 0x3fa   : > { %9929 = vmatmul.mubr.f32.gmra.mxu1 %v12598_v25  ;;  %9984 = vmatprep.subr.mxu0 %v6868_v39  ;;  %v12716_v23 = vadd.f32 %v9450_v18, %v9370_v28  ;;  %v6863_v28 = vld [vmem:[#allocation9 + $0x418] sm:$0xff] }
 0x3fb   : > { %9931 = vmatprep.mubr.f32.mxu1 %v12601_v29  ;;  %9985 = vmatpush3.msra.mxu0 %v6868_v39  ;;  %v4851_v6 = vpop.f32.mrf.mxu1  ;;  %v4646_v46 = vpop.f32.mrf.mxu0  ;;  %v6226_v29 = vld [vmem:[#allocation3 + $0xb0] sm:$0xff] }
 0x3fc   : > { %9855 = vmatmul.mubr.f32.gmra.mxu0 %v6224_v60  ;;  %9986 = vmatprep.subr.mxu0 %v6867_v11  ;;  %v12719_v61 = vadd.f32 %v4851_v6, %v4626_v26 }
 0x3fd   : > { %9857 = vmatprep.mubr.f32.mxu0 %v6225_v12  ;;  %9987 = vmatpush3.msra.mxu0 %v6867_v11  ;;  %v9453_v25 = vpop.f32.mrf.mxu1  ;;  %v9379_v2 = vpop.f32.mrf.mxu0  ;;  %v6231_v11 = vld [vmem:[#allocation3 + $0xf0] sm:$0xff]  ;;  %v6233_v12 = vld [vmem:[#allocation3 + $0x108] sm:$0xff] }
 0x3fe   : > { %9932 = vmatmul.mubr.f32.gmra.mxu1 %v12606_v34  ;;  %9988 = vmatprep.subr.mxu0 %v6866_v44  ;;  %v12722_v14 = vadd.f32 %v9453_v25, %v9373_v63 }
 0x3ff   : > { %9934 = vmatprep.mubr.f32.mxu1 %v12609_v48  ;;  %9989 = vmatpush3.msra.mxu0 %v6866_v44  ;;  %v4861_v33 = vpop.f32.mrf.mxu1  ;;  %v4656_v19 = vpop.f32.mrf.mxu0  ;;  %v6228_v48 = vld [vmem:[#allocation3 + $0xc8] sm:$0xff] }
 0x400   : > { %9858 = vmatmul.mubr.f32.gmra.mxu0 %v6226_v29  ;;  %9990 = vmatprep.subr.mxu0 %v6865_v31  ;;  %v12725_v43 = vadd.f32 %v4861_v33, %v4636_v36  ;;  %v6234_v29 = vld [vmem:[#allocation3 + $0x110] sm:$0xff] }
 0x401   : > { %9860 = vmatprep.mubr.f32.mxu0 %v6227_v24  ;;  %9991 = vmatpush3.msra.mxu0 %v6865_v31  ;;  %v9456_v34 = vpop.f32.mrf.mxu1 }
 0x402   : > { %9935 = vmatmul.mubr.f32.gmra.mxu1 %v12614_v35  ;;  %v9382_v5 = vpop.f32.mrf.mxu0  ;;  %9992 = vmatprep.subr.mxu0 %v6864_v21  ;;  %v12728_v59 = vadd.f32 %v9456_v34, %v9376_v1 }
 0x403   : > { %9937 = vmatprep.mubr.f32.mxu1 %v12617_v7  ;;  %9993 = vmatpush3.msra.mxu0 %v6864_v21  ;;  %v4871_v26 = vpop.f32.mrf.mxu1  ;;  %v6230_v7 = vld [vmem:[#allocation3 + $0xe0] sm:$0xff] }
 0x404   : > { %9861 = vmatmul.mubr.f32.gmra.mxu0 %v6228_v48  ;;  %v4666_v15 = vpop.f32.mrf.mxu0  ;;  %9994 = vmatprep.subr.mxu0 %v6863_v28  ;;  %v12731_v63 = vadd.f32 %v4871_v26, %v4646_v46  ;;  %v6235_v21 = vld [vmem:[#allocation3 + $0x120] sm:$0xff] }
 0x405   : > { %9863 = vmatprep.mubr.f32.mxu0 %v6229_v20  ;;  %9995 = vmatpush3.msra.mxu0 %v6863_v28  ;;  %v9459_v35 = vpop.f32.mrf.mxu1 }
 0x406   : > { %9938 = vmatmul.mubr.f32.gmra.mxu1 %v12622_v54  ;;  %v9385_v62 = vpop.f32.mrf.mxu0  ;;  %9996 = vmatprep.subr.mxu0 %v6862_v40  ;;  %v12734_v39 = vadd.f32 %v9459_v35, %v9379_v2 }
 0x407   : > { %9940 = vmatprep.mubr.f32.mxu1 %v12625_v10  ;;  %9997 = vmatpush3.msra.mxu0 %v6862_v40  ;;  %v4881_v36 = vpop.f32.mrf.mxu1  ;;  %v6232_v10 = vld [vmem:[#allocation3 + $0xf8] sm:$0xff] }
 0x408   : > { %9864 = vmatmul.mubr.f32.gmra.mxu0 %v6230_v7  ;;  %v4676_v18 = vpop.f32.mrf.mxu0  ;;  %9998 = vmatprep.subr.mxu0 %v6861_v22  ;;  %v12737_v1 = vadd.f32 %v4881_v36, %v4656_v19 }
 0x409   : > { %9866 = vmatprep.mubr.f32.mxu0 %v6231_v11  ;;  %9999 = vmatpush3.msra.mxu0 %v6861_v22  ;;  %v9462_v60 = vpop.f32.mrf.mxu1 }
 0x40a   : > { %9941 = vmatmul.mubr.f32.gmra.mxu1 %v12630_v52  ;;  %v9388_v54 = vpop.f32.mrf.mxu0  ;;  %10000 = vmatprep.subr.mxu0 %v6860_v45  ;;  %v12740_v44 = vadd.f32 %v9462_v60, %v9382_v5 }
 0x40b   : > { %9943 = vmatprep.mubr.f32.mxu1 %v12633_v41  ;;  %10001 = vmatpush3.msra.mxu0 %v6860_v45  ;;  %v4891_v6 = vpop.f32.mrf.mxu1 }
 0x40c   : > { %9867 = vmatmul.mubr.f32.gmra.mxu0 %v6232_v10  ;;  %v12743_v46 = vpop.f32.mrf.mxu0  ;;  %v12745_v31 = vadd.f32 %v4891_v6, %v4666_v15 }
 0x40d   : > { %9869 = vmatprep.mubr.f32.mxu0 %v6233_v12  ;;  %v9465_v25 = vpop.f32.mrf.mxu1 }
 0x40e   : > { %9944 = vmatmul.mubr.f32.gmra.mxu1 %v12638_v16  ;;  %v9391_v52 = vpop.f32.mrf.mxu0  ;;  %v12748_v2 = vadd.f32 %v9465_v25, %v9385_v62  ;;  %v6236_v16 = vld [vmem:[#allocation3 + $0x128] sm:$0xff]  ;;  %v10128_v25 = vld [vmem:[#allocation3] sm:$0xff] }
 0x40f   : > { %9946 = vmatprep.mubr.f32.mxu1 %v12641_v55  ;;  %v4901_v41 = vpop.f32.mrf.mxu1  ;;  %v6237_v55 = vld [vmem:[#allocation3 + $0x138] sm:$0xff] }
 0x410   : > { %9870 = vmatmul.mubr.f32.gmra.mxu0 %v6234_v29  ;;  %v12751_v33 = vpop.f32.mrf.mxu0  ;;  %v12753_v24 = vadd.f32 %v4901_v41, %v4676_v18 }
 0x411   : > { %9872 = vmatprep.mubr.f32.mxu0 %v6235_v21  ;;  %v9468_v19 = vpop.f32.mrf.mxu1  ;;  %v6827_v21 = vld [vmem:[#allocation3 + $0x32] sm:$0xff] }
 0x412   : > { %9947 = vmatmul.mubr.f32.gmra.mxu1 %v12646_v47  ;;  %v9394_v28 = vpop.f32.mrf.mxu0  ;;  %v12756_v34 = vadd.f32 %v9468_v19, %v9388_v54  ;;  %v6238_v47 = vld [vmem:[#allocation3 + $0x140] sm:$0xff] }
 0x413   : > { %9949 = vmatprep.mubr.f32.mxu1 %v12649_v4  ;;  %v12759_v5 = vpop.f32.mrf.mxu1  ;;  %v6239_v4 = vld [vmem:[#allocation3 + $0x150] sm:$0xff] }
 0x414   : > { %9873 = vmatmul.mubr.f32.gmra.mxu0 %v6236_v16  ;;  %v12761_v48 = vpop.f32.mrf.mxu0 }
 0x415   : > { %9875 = vmatprep.mubr.f32.mxu0 %v6237_v55  ;;  %v9471_v40 = vpop.f32.mrf.mxu1 }
 0x416   : > { %9950 = vmatmul.mubr.f32.gmra.mxu1 %v12654_v0  ;;  %v9397_v26 = vpop.f32.mrf.mxu0  ;;  %v12764_v20 = vadd.f32 %v9471_v40, %v9391_v52  ;;  %v6240_v0 = vld [vmem:[#allocation3 + $0x158] sm:$0xff] }
 0x417   : > { %9952 = vmatprep.mubr.f32.mxu1 %v12657_v13  ;;  %v12767_v15 = vpop.f32.mrf.mxu1  ;;  %v6241_v13 = vld [vmem:[#allocation3 + $0x168] sm:$0xff]  ;;  %v6828_v40 = vld [vmem:[#allocation3 + $0x3a] sm:$0xff] }
 0x418   : > { %9876 = vmatmul.mubr.f32.gmra.mxu0 %v6238_v47  ;;  %v12769_v22 = vpop.f32.mrf.mxu0  ;;  %v6829_v47 = vld [vmem:[#allocation3 + $0x4a] sm:$0xff] }
 0x419   : > { %9878 = vmatprep.mubr.f32.mxu0 %v6239_v4  ;;  %v9474_v35 = vpop.f32.mrf.mxu1 }
 0x41a   : > { %9953 = vmatmul.mubr.f32.gmra.mxu1 %v12662_v9  ;;  %v9400_v62 = vpop.f32.mrf.mxu0  ;;  %v12772_v7 = vadd.f32 %v9474_v35, %v9394_v28  ;;  %v6242_v9 = vld [vmem:[#allocation3 + $0x170] sm:$0xff] }
 0x41b   : > { %9955 = vmatprep.mubr.f32.mxu1 %v12665_v37  ;;  %v12775_v45 = vpop.f32.mrf.mxu1 }
 0x41c   : > { %9879 = vmatmul.mubr.f32.gmra.mxu0 %v6240_v0  ;;  %v12777_v36 = vpop.f32.mrf.mxu0 }
 0x41d   : > { %9881 = vmatprep.mubr.f32.mxu0 %v6241_v13  ;;  %v9477_v11 = vpop.f32.mrf.mxu1  ;;  %v6830_v13 = vld [vmem:[#allocation3 + $0x52] sm:$0xff] }
 0x41e   : > { %9956 = vmatmul.mubr.f32.gmra.mxu1 %v12670_v57  ;;  %v9403_v18 = vpop.f32.mrf.mxu0  ;;  %v12780_v60 = vadd.f32 %v9477_v11, %v9397_v26  ;;  %v10129_v11 = vld [vmem:[%s13481_s1 + $0x8] sm:$0xff] }
 0x41f   : > { %9958 = vmatprep.mubr.f32.mxu1 %v12673_v17  ;;  %v12783_v54 = vpop.f32.mrf.mxu1 }
 0x420   : > { %9882 = vmatmul.mubr.f32.gmra.mxu0 %v6242_v9  ;;  %v12785_v37 = vpop.f32.mrf.mxu0 }
 0x421   : > { %9884 = vmatprep.mubr.f32.mxu0 %v12572_v53  ;;  %v9480_v10 = vpop.f32.mrf.mxu1  ;;  %v6549_v53 = vld [vmem:[#allocation3 + $0x181] sm:$0xff] }
 0x422   : > { %9959 = vmatmul.mubr.f32.gmra.mxu1 %v12678_v42  ;;  %v9406_v6 = vpop.f32.mrf.mxu0  ;;  %v12789_v12 = vadd.f32 %v9480_v10, %v9400_v62  ;;  %v4832_v10 = vadd.f32 %v12706_v8, %v12699_v38 }
 0x423   : > { %9961 = vmatprep.mubr.f32.mxu1 %v12681_v30  ;;  %v12792_v57 = vpop.f32.mrf.mxu1  ;;  %v6551_v30 = vld [vmem:[#allocation3 + $0x199] sm:$0xff] }
 0x424   : > { %9885 = vmatmul.mubr.f32.gmra.mxu0 %v12577_v56  ;;  %v12795_v17 = vpop.f32.mrf.mxu0 }
 0x425   : > { %9887 = vmatprep.mubr.f32.mxu0 %v10128_v25  ;;  %v9483_v52 = vpop.f32.mrf.mxu1 }
 0x426   : > { %9962 = vmatmul.mubr.f32.gmra.mxu1 %v12686_v58  ;;  %v9409_v29 = vpop.f32.mrf.mxu0  ;;  %v12798_v41 = vadd.f32 %v9483_v52, %v9403_v18  ;;  %v6552_v58 = vld [vmem:[#allocation3 + $0x1a1] sm:$0xff] }
 0x427   : > { %9964 = vmatprep.mubr.f32.mxu1 %v6549_v53  ;;  %v12800_v42 = vpop.f32.mrf.mxu1  ;;  %v6831_v18 = vld [vmem:[#allocation3 + $0x62] sm:$0xff] }
 0x428   : > { %9888 = vmatmul.mubr.f32.gmra.mxu0 %v10128_v25  ;;  %v12802_v19 = vpop.f32.mrf.mxu0 }
 0x429   : > { %10002 = vmatprep.mubr.f32.mxu0 %v6827_v21  ;;  %v9486_v56 = vpop.f32.mrf.mxu1 }
 0x42a   : > { %9965 = vmatmul.mubr.f32.gmra.mxu1 %v12692_v3  ;;  %v9524_v28 = vpop.f32.mrf.mxu0  ;;  %v12805_v16 = vadd.f32 %v9486_v56, %v9406_v6  ;;  %v6833_v56 = vld [vmem:[#allocation3 + $0x7a] sm:$0xff] }
 0x42b   : > { %9967 = vmatprep.mubr.f32.mxu1 %v6551_v30  ;;  %v5265_v55 = vadd.f32 %v9524_v28, %v12460_v32  ;;  %v12808_v26 = vpop.f32.mrf.mxu1  ;;  %v6832_v30 = vld [vmem:[#allocation3 + $0x6a] sm:$0xff] }
 0x42c   : > { %10003 = vmatmul.mubr.f32.vlgmr.msra.gmra.mxu0 %v6828_v40  ;;  %v5105_v4 = vpop.f32.mrf.mxu0 }
 0x42d   : > { %10005 = vmatprep.mubr.f32.mxu0 %v6829_v47  ;;  %v9489_v35 = vpop.f32.mrf.mxu1  ;;  %v5264_v53 = vadd.f32 %v5105_v4, %v4832_v10  ;;  %v6834_v47 = vld [vmem:[#allocation3 + $0x82] sm:$0xff] }
 0x42e   : > { %9968 = vmatmul.mubr.f32.gmra.mxu1 %v6552_v58  ;;  %v9527_v62 = vpop.f32.mrf.mxu0  ;;  %v12810_v0 = vadd.f32 %v9489_v35, %v9409_v29 }
 0x42f   : > { %v5267_v3 = vadd.f32 %v9527_v62, %v12709_v27  ;;  %7332 = vmatprep.mubr.f32.mxu1 %v10129_v11  ;;  %v12816_v32 = vpop.f32.mrf.mxu1 }
 0x430   : > { %10006 = vmatmul.mubr.f32.gmra.mxu0 %v6830_v13  ;;  %v5115_v9 = vpop.f32.mrf.mxu0 }
 0x431   : > { %10008 = vmatprep.mubr.f32.mxu0 %v6831_v18  ;;  %v5266_v6 = vadd.f32 %v5115_v9, %v12713_v49  ;;  %v9604_v25 = vpop.f32.mrf.mxu1 }
 0x432   : > { %v9530_v52 = vpop.f32.mrf.mxu0  ;;  %v12821_v27 = vadd.f32 %v9604_v25, %v5265_v55 }
 0x433   : > { %v5269_v29 = vadd.f32 %v9530_v52, %v12716_v23  ;;  %v5411_v21 = vpop.f32.mrf.mxu1  ;;  %v6835_v23 = vld [vmem:[#allocation3 + $0x92] sm:$0xff] }
 0x434   : > { %10009 = vmatmul.mubr.f32.gmra.mxu0 %v6832_v30  ;;  %v5125_v28 = vpop.f32.mrf.mxu0  ;;  %v12824_v58 = vadd.f32 %v5411_v21, %v5264_v53 }
 0x435   : > { %10011 = vmatprep.mubr.f32.mxu0 %v6833_v56  ;;  %v5268_v38 = vadd.f32 %v5125_v28, %v12719_v61  ;;  %v9607_v8 = vpop.f32.mrf.mxu1 }
 0x436   : > { %v9533_v40 = vpop.f32.mrf.mxu0  ;;  %v12827_v49 = vadd.f32 %v9607_v8, %v5267_v3  ;;  %v6836_v3 = vld [vmem:[#allocation3 + $0x9a] sm:$0xff] }
 0x437   : > { %v5271_v55 = vadd.f32 %v9533_v40, %v12722_v14  ;;  %v5421_v4 = vpop.f32.mrf.mxu1  ;;  %v6837_v14 = vld [vmem:[#allocation3 + $0xaa] sm:$0xff] }
 0x438   : > { %10012 = vmatmul.mubr.f32.gmra.mxu0 %v6834_v47  ;;  %v5135_v35 = vpop.f32.mrf.mxu0  ;;  %v12830_v62 = vadd.f32 %v5421_v4, %v5266_v6 }
 0x439   : > { %10014 = vmatprep.mubr.f32.mxu0 %v6835_v23  ;;  %v5270_v13 = vadd.f32 %v5135_v35, %v12725_v43  ;;  %v9610_v11 = vpop.f32.mrf.mxu1 }
 0x43a   : > { %v9536_v18 = vpop.f32.mrf.mxu0  ;;  %v12833_v9 = vadd.f32 %v9610_v11, %v5269_v29  ;;  %v6838_v29 = vld [vmem:[#allocation3 + $0xb2] sm:$0xff] }
 0x43b   : > { %v5273_v61 = vadd.f32 %v9536_v18, %v12728_v59  ;;  %v5431_v10 = vpop.f32.mrf.mxu1  ;;  %v6839_v59 = vld [vmem:[#allocation3 + $0xc2] sm:$0xff] }
 0x43c   : > { %10015 = vmatmul.mubr.f32.gmra.mxu0 %v6836_v3  ;;  %v5145_v25 = vpop.f32.mrf.mxu0  ;;  %v12836_v52 = vadd.f32 %v5431_v10, %v5268_v38 }
 0x43d   : > { %10017 = vmatprep.mubr.f32.mxu0 %v6837_v14  ;;  %v5272_v6 = vadd.f32 %v5145_v25, %v12731_v63  ;;  %v9613_v53 = vpop.f32.mrf.mxu1 }
 0x43e   : > { %v9539_v30 = vpop.f32.mrf.mxu0  ;;  %v12839_v21 = vadd.f32 %v9613_v53, %v5271_v55  ;;  %v6840_v55 = vld [vmem:[#allocation3 + $0xca] sm:$0xff] }
 0x43f   : > { %v5275_v43 = vadd.f32 %v9539_v30, %v12734_v39  ;;  %v5441_v56 = vpop.f32.mrf.mxu1  ;;  %v6841_v39 = vld [vmem:[#allocation3 + $0xda] sm:$0xff] }
 0x440   : > { %10018 = vmatmul.mubr.f32.gmra.mxu0 %v6838_v29  ;;  %v5155_v28 = vpop.f32.mrf.mxu0  ;;  %v12842_v8 = vadd.f32 %v5441_v56, %v5270_v13 }
 0x441   : > { %10020 = vmatprep.mubr.f32.mxu0 %v6839_v59  ;;  %v5274_v38 = vadd.f32 %v5155_v28, %v12737_v1  ;;  %v9616_v40 = vpop.f32.mrf.mxu1  ;;  %v6845_v28 = vld [vmem:[#allocation3 + $0x10a] sm:$0xff] }
 0x442   : > { %v9542_v47 = vpop.f32.mrf.mxu0  ;;  %v12845_v4 = vadd.f32 %v9616_v40, %v5273_v61  ;;  %v6842_v61 = vld [vmem:[#allocation3 + $0xe2] sm:$0xff] }
 0x443   : > { %v5277_v63 = vadd.f32 %v9542_v47, %v12740_v44  ;;  %v5451_v23 = vpop.f32.mrf.mxu1  ;;  %v6843_v44 = vld [vmem:[#allocation3 + $0xf2] sm:$0xff] }
 0x444   : > { %10021 = vmatmul.mubr.f32.gmra.mxu0 %v6840_v55  ;;  %v5165_v35 = vpop.f32.mrf.mxu0  ;;  %v12848_v11 = vadd.f32 %v5451_v23, %v5272_v6  ;;  %v4922_v23 = vadd.f32 %v12767_v15, %v12751_v33  ;;  %v6848_v15 = vld [vmem:[#allocation3 + $0x12a] sm:$0xff] }
 0x445   : > { %10023 = vmatprep.mubr.f32.mxu0 %v6841_v39  ;;  %v5276_v13 = vadd.f32 %v5165_v35, %v12745_v31  ;;  %v9619_v18 = vpop.f32.mrf.mxu1  ;;  %v4912_v31 = vadd.f32 %v12759_v5, %v12743_v46  ;;  %v6846_v5 = vld [vmem:[#allocation3 + $0x112] sm:$0xff] }
 0x446   : > { %v9545_v3 = vpop.f32.mrf.mxu0  ;;  %v12851_v10 = vadd.f32 %v9619_v18, %v5275_v43 }
 0x447   : > { %v5279_v1 = vadd.f32 %v9545_v3, %v12748_v2  ;;  %v5461_v14 = vpop.f32.mrf.mxu1  ;;  %v6844_v2 = vld [vmem:[#allocation3 + $0xfa] sm:$0xff] }
 0x448   : > { %10024 = vmatmul.mubr.f32.gmra.mxu0 %v6842_v61  ;;  %v5175_v25 = vpop.f32.mrf.mxu0  ;;  %v12854_v53 = vadd.f32 %v5461_v14, %v5274_v38  ;;  %v4932_v14 = vadd.f32 %v12775_v45, %v12761_v48  ;;  %v6850_v45 = vld [vmem:[#allocation3 + $0x142] sm:$0xff] }
 0x449   : > { %10026 = vmatprep.mubr.f32.mxu0 %v6843_v44  ;;  %v5278_v6 = vadd.f32 %v5175_v25, %v12753_v24  ;;  %v9622_v30 = vpop.f32.mrf.mxu1 }
 0x44a   : > { %v9548_v29 = vpop.f32.mrf.mxu0  ;;  %v12859_v56 = vadd.f32 %v9622_v30, %v5277_v63  ;;  %v6847_v63 = vld [vmem:[#allocation3 + $0x122] sm:$0xff] }
 0x44b   : > { %v5281_v43 = vadd.f32 %v9548_v29, %v12756_v34  ;;  %v5471_v59 = vpop.f32.mrf.mxu1 }
 0x44c   : > { %10027 = vmatmul.mubr.f32.gmra.mxu0 %v6844_v2  ;;  %v5185_v40 = vpop.f32.mrf.mxu0  ;;  %v12862_v47 = vadd.f32 %v5471_v59, %v5276_v13  ;;  %v4942_v2 = vadd.f32 %v12783_v54, %v12769_v22  ;;  %v6852_v54 = vld [vmem:[#allocation3 + $0x15a] sm:$0xff] }
 0x44d   : > { %10029 = vmatprep.mubr.f32.mxu0 %v6845_v28  ;;  %v5280_v38 = vadd.f32 %v5185_v40, %v4912_v31  ;;  %v9625_v55 = vpop.f32.mrf.mxu1 }
 0x44e   : > { %v9551_v24 = vpop.f32.mrf.mxu0  ;;  %v12866_v39 = vadd.f32 %v9625_v55, %v5279_v1  ;;  %v6849_v1 = vld [vmem:[#allocation3 + $0x13a] sm:$0xff] }
 0x44f   : > { %v5283_v46 = vadd.f32 %v9551_v24, %v12764_v20  ;;  %v5481_v34 = vpop.f32.mrf.mxu1 }
 0x450   : > { %10030 = vmatmul.mubr.f32.gmra.mxu0 %v6846_v5  ;;  %v5195_v35 = vpop.f32.mrf.mxu0  ;;  %v12869_v18 = vadd.f32 %v5481_v34, %v5278_v6 }
 0x451   : > { %10032 = vmatprep.mubr.f32.mxu0 %v6847_v63  ;;  %v5282_v13 = vadd.f32 %v5195_v35, %v4922_v23  ;;  %v9628_v3 = vpop.f32.mrf.mxu1  ;;  %v4952_v23 = vadd.f32 %v12792_v57, %v12777_v36  ;;  %v6854_v57 = vld [vmem:[#allocation3 + $0x172] sm:$0xff] }
 0x452   : > { %v9554_v61 = vpop.f32.mrf.mxu0  ;;  %v12873_v44 = vadd.f32 %v9628_v3, %v5281_v43  ;;  %v6851_v43 = vld [vmem:[#allocation3 + $0x152] sm:$0xff] }
 0x453   : > { %v5285_v33 = vadd.f32 %v9554_v61, %v12772_v7  ;;  %v5491_v20 = vpop.f32.mrf.mxu1  ;;  %v4962_v61 = vadd.f32 %v12800_v42, %v12785_v37 }
 0x454   : > { %10033 = vmatmul.mubr.f32.gmra.mxu0 %v6848_v15  ;;  %v5205_v25 = vpop.f32.mrf.mxu0  ;;  %v12876_v30 = vadd.f32 %v5491_v20, %v5280_v38 }
 0x455   : > { %10035 = vmatprep.mubr.f32.mxu0 %v6849_v1  ;;  %v5284_v6 = vadd.f32 %v5205_v25, %v4932_v14  ;;  %v9631_v29 = vpop.f32.mrf.mxu1 }
 0x456   : > { %v9557_v31 = vpop.f32.mrf.mxu0  ;;  %v12880_v59 = vadd.f32 %v9631_v29, %v5283_v46  ;;  %v6853_v46 = vld [vmem:[#allocation3 + $0x16a] sm:$0xff]  ;;  %v4972_v29 = vadd.f32 %v12808_v26, %v12795_v17 }
 0x457   : > { %v5287_v48 = vadd.f32 %v9557_v31, %v12780_v60  ;;  %v5501_v7 = vpop.f32.mrf.mxu1 }
 0x458   : > { %10036 = vmatmul.mubr.f32.gmra.mxu0 %v6850_v45  ;;  %v5215_v28 = vpop.f32.mrf.mxu0  ;;  %v12883_v40 = vadd.f32 %v5501_v7, %v5282_v13 }
 0x459   : > { %10038 = vmatprep.mubr.f32.mxu0 %v6851_v43  ;;  %v5286_v38 = vadd.f32 %v5215_v28, %v4942_v2  ;;  %v9634_v55 = vpop.f32.mrf.mxu1  ;;  %v4982_v43 = vadd.f32 %v12816_v32, %v12802_v19 }
 0x45a   : > { %v9560_v24 = vpop.f32.mrf.mxu0  ;;  %v12887_v5 = vadd.f32 %v9634_v55, %v5285_v33 }
 0x45b   : > { %v5289_v22 = vadd.f32 %v9560_v24, %v12789_v12  ;;  %v5511_v60 = vpop.f32.mrf.mxu1 }
 0x45c   : > { %10039 = vmatmul.mubr.f32.gmra.mxu0 %v6852_v54  ;;  %v5225_v34 = vpop.f32.mrf.mxu0  ;;  %v12890_v63 = vadd.f32 %v5511_v60, %v5284_v6  ;;  %v6857_v6 = vld [vmem:[#allocation3 + $0x19a] sm:$0xff] }
 0x45d   : > { %10041 = vmatprep.mubr.f32.mxu0 %v6853_v46  ;;  %v5288_v35 = vadd.f32 %v5225_v34, %v4952_v23  ;;  %v9637_v13 = vpop.f32.mrf.mxu1 }
 0x45e   : > { %v9563_v3 = vpop.f32.mrf.mxu0  ;;  %v12894_v14 = vadd.f32 %v9637_v13, %v5287_v48 }
 0x45f   : > { %v5291_v36 = vadd.f32 %v9563_v3, %v12798_v41  ;;  %v5521_v12 = vpop.f32.mrf.mxu1 }
 0x460   : > { %10042 = vmatmul.mubr.f32.gmra.mxu0 %v6854_v57  ;;  %v5235_v33 = vpop.f32.mrf.mxu0  ;;  %v12897_v15 = vadd.f32 %v5521_v12, %v5286_v38 }
 0x461   : > { %10044 = vmatprep.mubr.f32.mxu0 %v12696_v51  ;;  %v5290_v20 = vadd.f32 %v5235_v33, %v4962_v61  ;;  %v9640_v1 = vpop.f32.mrf.mxu1  ;;  %v6858_v51 = vld [vmem:[#allocation3 + $0x1a2] sm:$0xff] }
 0x462   : > { %v9566_v25 = vpop.f32.mrf.mxu0  ;;  %v12902_v37 = vadd.f32 %v9640_v1, %v5289_v22 }
 0x463   : > { %v5293_v42 = vadd.f32 %v9566_v25, %v12805_v16  ;;  %v5531_v41 = vpop.f32.mrf.mxu1 }
 0x464   : > { %10045 = vmatmul.mubr.f32.gmra.mxu0 %v12701_v50  ;;  %v5245_v31 = vpop.f32.mrf.mxu0  ;;  %v12906_v2 = vadd.f32 %v5531_v41, %v5288_v35 }
 0x465   : > { %v5292_v48 = vadd.f32 %v5245_v31, %v4972_v29  ;;  %10047 = vmatprep.mubr.f32.mxu0 %v6857_v6  ;;  %v9643_v45 = vpop.f32.mrf.mxu1 }
 0x466   : > { %v9569_v7 = vpop.f32.mrf.mxu0  ;;  %v12910_v28 = vadd.f32 %v9643_v45, %v5291_v36 }
 0x467   : > { %v5295_v17 = vadd.f32 %v9569_v7, %v12810_v0  ;;  %v5541_v26 = vpop.f32.mrf.mxu1 }
 0x468   : > { %10048 = vmatmul.mubr.f32.gmra.mxu0 %v6858_v51  ;;  %v5255_v16 = vpop.f32.mrf.mxu0  ;;  %v12913_v38 = vadd.f32 %v5541_v26, %v5290_v20 }
 0x469   : > { %v5294_v50 = vadd.f32 %v5255_v16, %v4982_v43 }
 0x46a   : > { %v9646_v55 = vpop.f32.mrf.mxu1 }
 0x46b   : > { %v12915_v24 = vadd.f32 %v9646_v55, %v5293_v42 }
 0x46c   : > { %v5551_v23 = vpop.f32.mrf.mxu1  ;;  %v9684_v22 = vpop.f32.mrf.mxu0 }
 0x46d   : > { %v12917_v54 = vadd.f32 %v5551_v23, %v5292_v48  ;;  %v5877_v60 = vadd.f32 %v9684_v22, %v12821_v27 }
 0x46e   : > { %v9649_v19 = vpop.f32.mrf.mxu1  ;;  %v5717_v32 = vpop.f32.mrf.mxu0 }
 0x46f   : > { %v12920_v46 = vadd.f32 %v9649_v19, %v5295_v17  ;;  %v5876_v0 = vadd.f32 %v5717_v32, %v12824_v58 }
 0x470   : > { %v5561_v34 = vpop.f32.mrf.mxu1  ;;  %v9687_v35 = vpop.f32.mrf.mxu0 }
 0x471   : > { %v12923_v13 = vadd.f32 %v5561_v34, %v5294_v50  ;;  %v5879_v3 = vadd.f32 %v9687_v35, %v12827_v49 }
 0x472   : > { %v9764_v61 = vpop.f32.mrf.mxu1  ;;  %v5727_v36 = vpop.f32.mrf.mxu0 }
 0x473   : > { %v12926_v57 = vadd.f32 %v9764_v61, %v5877_v60  ;;  %v5878_v12 = vadd.f32 %v5727_v36, %v12830_v62 }
 0x474   : > { %v6023_v33 = vpop.f32.mrf.mxu1  ;;  %v9690_v27 = vpop.f32.mrf.mxu0 }
 0x475   : > { %v12929_v20 = vadd.f32 %v6023_v33, %v5876_v0  ;;  %v5881_v1 = vadd.f32 %v9690_v27, %v12833_v9 }
 0x476   : > { %v9767_v25 = vpop.f32.mrf.mxu1  ;;  %v5737_v58 = vpop.f32.mrf.mxu0 }
 0x477   : > { %v12932_v6 = vadd.f32 %v9767_v25, %v5879_v3  ;;  %v5880_v29 = vadd.f32 %v5737_v58, %v12836_v52 }
 0x478   : > { %v6033_v42 = vpop.f32.mrf.mxu1  ;;  %v9693_v49 = vpop.f32.mrf.mxu0 }
 0x479   : > { %v12935_v41 = vadd.f32 %v6033_v42, %v5878_v12  ;;  %v5883_v31 = vadd.f32 %v9693_v49, %v12839_v21 }
 0x47a   : > { %v9770_v48 = vpop.f32.mrf.mxu1  ;;  %v5747_v62 = vpop.f32.mrf.mxu0 }
 0x47b   : > { %v12938_v51 = vadd.f32 %v9770_v48, %v5881_v1  ;;  %v5882_v45 = vadd.f32 %v5747_v62, %v12842_v8 }
 0x47c   : > { %v6043_v7 = vpop.f32.mrf.mxu1  ;;  %v9696_v9 = vpop.f32.mrf.mxu0 }
 0x47d   : > { %v12941_v43 = vadd.f32 %v6043_v7, %v5880_v29  ;;  %v5885_v17 = vadd.f32 %v9696_v9, %v12845_v4 }
 0x47e   : > { %v9773_v26 = vpop.f32.mrf.mxu1  ;;  %v5757_v52 = vpop.f32.mrf.mxu0 }
 0x47f   : > { %v12944_v16 = vadd.f32 %v9773_v26, %v5883_v31  ;;  %v5884_v50 = vadd.f32 %v5757_v52, %v12848_v11 }
 0x480   : > { %v6053_v55 = vpop.f32.mrf.mxu1  ;;  %v9699_v21 = vpop.f32.mrf.mxu0 }
 0x481   : > { %v12947_v23 = vadd.f32 %v6053_v55, %v5882_v45  ;;  %v5887_v22 = vadd.f32 %v9699_v21, %v12851_v10 }
 0x482   : > { %v9776_v60 = vpop.f32.mrf.mxu1  ;;  %v5767_v8 = vpop.f32.mrf.mxu0 }
 0x483   : > { %v12950_v19 = vadd.f32 %v9776_v60, %v5885_v17  ;;  %v5886_v32 = vadd.f32 %v5767_v8, %v12854_v53 }
 0x484   : > { %v6063_v0 = vpop.f32.mrf.mxu1  ;;  %v9702_v4 = vpop.f32.mrf.mxu0 }
 0x485   : > { %v12953_v34 = vadd.f32 %v6063_v0, %v5884_v50  ;;  %v5889_v35 = vadd.f32 %v9702_v4, %v12859_v56 }
 0x486   : > { %v9779_v3 = vpop.f32.mrf.mxu1  ;;  %v5777_v11 = vpop.f32.mrf.mxu0 }
 0x487   : > { %v12956_v61 = vadd.f32 %v9779_v3, %v5887_v22  ;;  %v5888_v36 = vadd.f32 %v5777_v11, %v12862_v47 }
 0x488   : > { %v6073_v12 = vpop.f32.mrf.mxu1  ;;  %v9705_v10 = vpop.f32.mrf.mxu0 }
 0x489   : > { %v12959_v33 = vadd.f32 %v6073_v12, %v5886_v32  ;;  %v5891_v27 = vadd.f32 %v9705_v10, %v12866_v39 }
 0x48a   : > { %v9782_v1 = vpop.f32.mrf.mxu1  ;;  %v5787_v53 = vpop.f32.mrf.mxu0 }
 0x48b   : > { %v12962_v25 = vadd.f32 %v9782_v1, %v5889_v35  ;;  %v5890_v58 = vadd.f32 %v5787_v53, %v12869_v18 }
 0x48c   : > { %v6083_v29 = vpop.f32.mrf.mxu1  ;;  %v9708_v56 = vpop.f32.mrf.mxu0 }
 0x48d   : > { %v12965_v42 = vadd.f32 %v6083_v29, %v5888_v36  ;;  %v5893_v49 = vadd.f32 %v9708_v56, %v12873_v44 }
 0x48e   : > { %v9785_v31 = vpop.f32.mrf.mxu1  ;;  %v5797_v47 = vpop.f32.mrf.mxu0 }
 0x48f   : > { %v12968_v48 = vadd.f32 %v9785_v31, %v5891_v27  ;;  %v5892_v62 = vadd.f32 %v5797_v47, %v12876_v30 }
 0x490   : > { %v6093_v45 = vpop.f32.mrf.mxu1  ;;  %v9711_v39 = vpop.f32.mrf.mxu0 }
 0x491   : > { %v12971_v7 = vadd.f32 %v6093_v45, %v5890_v58  ;;  %v5895_v9 = vadd.f32 %v9711_v39, %v12880_v59 }
 0x492   : > { %v9788_v17 = vpop.f32.mrf.mxu1  ;;  %v5807_v18 = vpop.f32.mrf.mxu0 }
 0x493   : > { %v12974_v26 = vadd.f32 %v9788_v17, %v5893_v49  ;;  %v5894_v52 = vadd.f32 %v5807_v18, %v12883_v40 }
 0x494   : > { %v6103_v50 = vpop.f32.mrf.mxu1  ;;  %v9714_v44 = vpop.f32.mrf.mxu0 }
 0x495   : > { %v12977_v55 = vadd.f32 %v6103_v50, %v5892_v62  ;;  %v5897_v21 = vadd.f32 %v9714_v44, %v12887_v5 }
 0x496   : > { %v9791_v22 = vpop.f32.mrf.mxu1  ;;  %v5817_v30 = vpop.f32.mrf.mxu0 }
 0x497   : > { %v12980_v60 = vadd.f32 %v9791_v22, %v5895_v9  ;;  %v5896_v8 = vadd.f32 %v5817_v30, %v12890_v63 }
 0x498   : > { %v6113_v32 = vpop.f32.mrf.mxu1  ;;  %v9717_v59 = vpop.f32.mrf.mxu0 }
 0x499   : > { %v12983_v0 = vadd.f32 %v6113_v32, %v5894_v52  ;;  %v5899_v4 = vadd.f32 %v9717_v59, %v12894_v14 }
 0x49a   : > { %v9794_v35 = vpop.f32.mrf.mxu1  ;;  %v5827_v40 = vpop.f32.mrf.mxu0 }
 0x49b   : > { %v12986_v3 = vadd.f32 %v9794_v35, %v5897_v21  ;;  %v5898_v11 = vadd.f32 %v5827_v40, %v12897_v15 }
 0x49c   : > { %v6123_v36 = vpop.f32.mrf.mxu1  ;;  %v9720_v5 = vpop.f32.mrf.mxu0 }
 0x49d   : > { %v12989_v12 = vadd.f32 %v6123_v36, %v5896_v8  ;;  %v5901_v10 = vadd.f32 %v9720_v5, %v12902_v37 }
 0x49e   : > { %v9797_v27 = vpop.f32.mrf.mxu1  ;;  %v5837_v63 = vpop.f32.mrf.mxu0 }
 0x49f   : > { %v12992_v1 = vadd.f32 %v9797_v27, %v5899_v4  ;;  %v5900_v53 = vadd.f32 %v5837_v63, %v12906_v2 }
 0x4a0   : > { %v6133_v58 = vpop.f32.mrf.mxu1  ;;  %v9723_v14 = vpop.f32.mrf.mxu0 }
 0x4a1   : > { %v12995_v29 = vadd.f32 %v6133_v58, %v5898_v11  ;;  %v5903_v56 = vadd.f32 %v9723_v14, %v12910_v28 }
 0x4a2   : > { %v9800_v49 = vpop.f32.mrf.mxu1  ;;  %v5847_v15 = vpop.f32.mrf.mxu0 }
 0x4a3   : > { %v12998_v31 = vadd.f32 %v9800_v49, %v5901_v10  ;;  %v5902_v47 = vadd.f32 %v5847_v15, %v12913_v38 }
 0x4a4   : > { %v6143_v62 = vpop.f32.mrf.mxu1  ;;  %v9726_v37 = vpop.f32.mrf.mxu0 }
 0x4a5   : > { %v13001_v45 = vadd.f32 %v6143_v62, %v5900_v53  ;;  %v5905_v39 = vadd.f32 %v9726_v37, %v12915_v24 }
 0x4a6   : > { %v9803_v9 = vpop.f32.mrf.mxu1  ;;  %v5857_v2 = vpop.f32.mrf.mxu0 }
 0x4a7   : > { %v13004_v17 = vadd.f32 %v9803_v9, %v5903_v56  ;;  %v5904_v18 = vadd.f32 %v5857_v2, %v12917_v54 }
 0x4a8   : > { %v6153_v52 = vpop.f32.mrf.mxu1  ;;  %v9729_v28 = vpop.f32.mrf.mxu0 }
 0x4a9   : > { %v13007_v50 = vadd.f32 %v6153_v52, %v5902_v47  ;;  %v13010_v44 = vadd.f32 %v9729_v28, %v12920_v46 }
 0x4aa   : > { %v9806_v38 = vpop.f32.mrf.mxu1  ;;  %v5867_v21 = vpop.f32.mrf.mxu0 }
 0x4ab   : > { %v13012_v22 = vadd.f32 %v9806_v38, %v5905_v39  ;;  %v13015_v30 = vadd.f32 %v5867_v21, %v12923_v13 }
 0x4ac   : > { %v6163_v24 = vpop.f32.mrf.mxu1  ;;  %v9844_v8 = vpop.f32.mrf.mxu0 }
 0x4ad   : > { %v13017_v32 = vadd.f32 %v6163_v24, %v5904_v18  ;;  %v6490_v54 = vadd.f32 %v9844_v8, %v12926_v57 }
 0x4ae   : > { %v13020_v59 = vpop.f32.mrf.mxu1  ;;  %v6330_v4 = vpop.f32.mrf.mxu0 }
 0x4af   : > { %v6489_v35 = vadd.f32 %v6330_v4, %v12929_v20 }
 0x4b0   : > { %v13023_v46 = vpop.f32.mrf.mxu1  ;;  %v9847_v40 = vpop.f32.mrf.mxu0 }
 0x4b1   : > { %v6492_v11 = vadd.f32 %v9847_v40, %v12932_v6 }
 0x4b2   : > { %v9924_v36 = vpop.f32.mrf.mxu1  ;;  %v6340_v5 = vpop.f32.mrf.mxu0 }
 0x4b3   : > { %v13026_v13 = vadd.f32 %v9924_v36, %v6490_v54  ;;  %v6491_v10 = vadd.f32 %v6340_v5, %v12935_v41 }
 0x4b4   : > { %v6636_v27 = vpop.f32.mrf.mxu1  ;;  %v9850_v63 = vpop.f32.mrf.mxu0 }
 0x4b5   : > { %v13029_v53 = vadd.f32 %v6636_v27, %v6489_v35  ;;  %v6494_v57 = vadd.f32 %v9850_v63, %v12938_v51 }
 0x4b6   : > { %v9927_v58 = vpop.f32.mrf.mxu1  ;;  %v6350_v14 = vpop.f32.mrf.mxu0 }
 0x4b7   : > { %v13032_v20 = vadd.f32 %v9927_v58, %v6492_v11  ;;  %v6493_v56 = vadd.f32 %v6350_v14, %v12941_v43 }
 0x4b8   : > { %v6646_v49 = vpop.f32.mrf.mxu1  ;;  %v9853_v6 = vpop.f32.mrf.mxu0 }
 0x4b9   : > { %v13035_v15 = vadd.f32 %v6646_v49, %v6491_v10  ;;  %v6496_v47 = vadd.f32 %v9853_v6, %v12944_v16 }
 0x4ba   : > { %v9930_v62 = vpop.f32.mrf.mxu1  ;;  %v6360_v41 = vpop.f32.mrf.mxu0 }
 0x4bb   : > { %v13038_v37 = vadd.f32 %v9930_v62, %v6494_v57  ;;  %v6495_v39 = vadd.f32 %v6360_v41, %v12947_v23 }
 0x4bc   : > { %v6656_v9 = vpop.f32.mrf.mxu1  ;;  %v9856_v51 = vpop.f32.mrf.mxu0 }
 0x4bd   : > { %v13041_v2 = vadd.f32 %v6656_v9, %v6493_v56  ;;  %v13044_v18 = vadd.f32 %v9856_v51, %v12950_v19 }
 0x4be   : > { %v9933_v43 = vpop.f32.mrf.mxu1  ;;  %v6370_v52 = vpop.f32.mrf.mxu0 }
 0x4bf   : > { %v13046_v28 = vadd.f32 %v9933_v43, %v6496_v47  ;;  %v13049_v38 = vadd.f32 %v6370_v52, %v12953_v34 }
 0x4c0   : > { %v6666_v16 = vpop.f32.mrf.mxu1  ;;  %v9859_v21 = vpop.f32.mrf.mxu0 }
 0x4c1   : > { %v13051_v24 = vadd.f32 %v6666_v16, %v6495_v39  ;;  %v13054_v23 = vadd.f32 %v9859_v21, %v12956_v61 }
 0x4c2   : > { %v6380_v8 = vpop.f32.mrf.mxu0  ;;  %v13062_v35 = vpop.f32.mrf.mxu1 }
 0x4c3   : > { %v13057_v54 = vadd.f32 %v6380_v8, %v12959_v33 }
 0x4c4   : > { %v9862_v19 = vpop.f32.mrf.mxu0  ;;  %v13070_v61 = vpop.f32.mrf.mxu1 }
 0x4c5   : > { %v13060_v4 = vadd.f32 %v9862_v19, %v12962_v25 }
 0x4c6   : > { %v6390_v40 = vpop.f32.mrf.mxu0  ;;  %v13078_v27 = vpop.f32.mrf.mxu1 }
 0x4c7   : > { %v13065_v34 = vadd.f32 %v6390_v40, %v12965_v42 }
 0x4c8   : > { %v9865_v11 = vpop.f32.mrf.mxu0  ;;  %v13086_v58 = vpop.f32.mrf.mxu1 }
 0x4c9   : > { %v13068_v36 = vadd.f32 %v9865_v11, %v12968_v48 }
 0x4ca   : > { %v6400_v5 = vpop.f32.mrf.mxu0  ;;  %v13094_v49 = vpop.f32.mrf.mxu1 }
 0x4cb   : > { %v13073_v33 = vadd.f32 %v6400_v5, %v12971_v7 }
 0x4cc   : > { %v9868_v10 = vpop.f32.mrf.mxu0  ;;  %v13102_v62 = vpop.f32.mrf.mxu1 }
 0x4cd   : > { %v13076_v25 = vadd.f32 %v9868_v10, %v12974_v26 }
 0x4ce   : > { %v6410_v63 = vpop.f32.mrf.mxu0  ;;  %v13110_v9 = vpop.f32.mrf.mxu1 }
 0x4cf   : > { %v13081_v42 = vadd.f32 %v6410_v63, %v12977_v55 }
 0x4d0   : > { %v9871_v57 = vpop.f32.mrf.mxu0  ;;  %v13118_v52 = vpop.f32.mrf.mxu1 }
 0x4d1   : > { %v13084_v48 = vadd.f32 %v9871_v57, %v12980_v60 }
 0x4d2   : > { %v6420_v14 = vpop.f32.mrf.mxu0  ;;  %v13126_v8 = vpop.f32.mrf.mxu1 }
 0x4d3   : > { %v13089_v7 = vadd.f32 %v6420_v14, %v12983_v0 }
 0x4d4   : > { %v9874_v56 = vpop.f32.mrf.mxu0 }
 0x4d5   : > { %v13092_v26 = vadd.f32 %v9874_v56, %v12986_v3 }
 0x4d6   : > { %v6430_v6 = vpop.f32.mrf.mxu0 }
 0x4d7   : > { %v13097_v55 = vadd.f32 %v6430_v6, %v12989_v12 }
 0x4d8   : > { %v9877_v47 = vpop.f32.mrf.mxu0 }
 0x4d9   : > { %v13100_v60 = vadd.f32 %v9877_v47, %v12992_v1 }
 0x4da   : > { %v6440_v41 = vpop.f32.mrf.mxu0 }
 0x4db   : > { %v13105_v0 = vadd.f32 %v6440_v41, %v12995_v29 }
 0x4dc   : > { %v9880_v39 = vpop.f32.mrf.mxu0 }
 0x4dd   : > { %v13108_v3 = vadd.f32 %v9880_v39, %v12998_v31 }
 0x4de   : > { %v6450_v51 = vpop.f32.mrf.mxu0 }
 0x4df   : > { %v13113_v12 = vadd.f32 %v6450_v51, %v13001_v45 }
 0x4e0   : > { %v9883_v43 = vpop.f32.mrf.mxu0 }
 0x4e1   : > { %v13116_v1 = vadd.f32 %v9883_v43, %v13004_v17  ;;  %v6716_v17 = vpop.f32.mrf.mxu1 }
 0x4e2   : > { %v6460_v16 = vpop.f32.mrf.mxu0 }
 0x4e3   : > { %v13121_v29 = vadd.f32 %v6460_v16, %v13007_v50  ;;  %v9951_v50 = vpop.f32.mrf.mxu1 }
 0x4e4   : > { %v9886_v21 = vpop.f32.mrf.mxu0 }
 0x4e5   : > { %v13124_v31 = vadd.f32 %v9886_v21, %v13012_v22 }
 0x4e6   : > { %v6470_v19 = vpop.f32.mrf.mxu0 }
 0x4e7   : > { %v13129_v45 = vadd.f32 %v6470_v19, %v13017_v32  ;;  %v6726_v32 = vpop.f32.mrf.mxu1 }
 0x4e8   : > { %v13131_v40 = vpop.f32.mrf.mxu0 }
 0x4e9   : > { %13782 = vst [vmem:[#allocation55_spill] sm:$0xff] %v13129_v45 }
 0x4ea   : > { %v13133_v11 = vpop.f32.mrf.mxu0 }
 0x4ec   : > { %v10004_v5 = vpop.f32.mrf.mxu0 }
 0x4ed   : > { %v13136_v10 = vadd.f32 %v10004_v5, %v13026_v13  ;;  %v9954_v13 = vpop.f32.mrf.mxu1 }
 0x4ee   : > { %v6942_v63 = vpop.f32.mrf.mxu0 }
 0x4ef   : > { %13783 = vst [vmem:[#allocation21_spill] sm:$0xff] %v13136_v10  ;;  %v13139_v22 = vadd.f32 %v6942_v63, %v13029_v53 }
 0x4f0   : > { %v10007_v57 = vpop.f32.mrf.mxu0 }
 0x4f1   : > { %13784 = vst [vmem:[#allocation57_spill] sm:$0xff] %v13139_v22  ;;  %v13142_v14 = vadd.f32 %v10007_v57, %v13032_v20  ;;  %v6736_v20 = vpop.f32.mrf.mxu1 }
 0x4f2   : > { %v6952_v56 = vpop.f32.mrf.mxu0 }
 0x4f3   : > { %13785 = vst [vmem:[#allocation22_spill] sm:$0xff] %v13142_v14  ;;  %v13145_v6 = vadd.f32 %v6952_v56, %v13035_v15  ;;  %v9957_v19 = vpop.f32.mrf.mxu1 }
 0x4f4   : > { %v10010_v47 = vpop.f32.mrf.mxu0 }
 0x4f5   : > { %13786 = vst [vmem:[#allocation59_spill] sm:$0xff] %v13145_v6  ;;  %v13148_v41 = vadd.f32 %v10010_v47, %v13038_v37  ;;  %v6746_v37 = vpop.f32.mrf.mxu1 }
 0x4f6   : > { %v6962_v39 = vpop.f32.mrf.mxu0 }
 0x4f7   : > { %13787 = vst [vmem:[#allocation23_spill] sm:$0xff] %v13148_v41  ;;  %v13151_v51 = vadd.f32 %v6962_v39, %v13041_v2  ;;  %v9960_v47 = vpop.f32.mrf.mxu1 }
 0x4f8   : > { %v10013_v53 = vpop.f32.mrf.mxu0 }
 0x4f9   : > { %13788 = vst [vmem:[#allocation61_spill] sm:$0xff] %v13151_v51  ;;  %v13154_v43 = vadd.f32 %v10013_v53, %v13046_v28  ;;  %v6756_v22 = vpop.f32.mrf.mxu1 }
 0x4fa   : > { %v6972_v16 = vpop.f32.mrf.mxu0 }
 0x4fb   : > { %13789 = vst [vmem:[#allocation24_spill] sm:$0xff] %v13154_v43  ;;  %v13157_v21 = vadd.f32 %v6972_v16, %v13051_v24  ;;  %v9963_v10 = vpop.f32.mrf.mxu1 }
 0x4fc   : > { %v10016_v15 = vpop.f32.mrf.mxu0 }
 0x4fd   : > { %13790 = vst [vmem:[#allocation63_spill] sm:$0xff] %v13157_v21  ;;  %v6766_v16 = vpop.f32.mrf.mxu1 }
 0x4fe   : > { %v6982_v5 = vpop.f32.mrf.mxu0 }
 0x4ff   : > { %v9966_v51 = vpop.f32.mrf.mxu1 }
 0x500   : > { %v10019_v63 = vpop.f32.mrf.mxu0 }
 0x502   : > { %v6992_v57 = vpop.f32.mrf.mxu0 }
 0x504   : > { %v13159_v56 = vpop.f32.mrf.mxu0 }
 0x505   : > { %13791 = vst [vmem:[#allocation25_spill] sm:$0xff] %v13159_v56 }
 0x506   : > { %v13161_v2 = vpop.f32.mrf.mxu0 }
 0x507   : > { %13792 = vst [vmem:[#allocation65_spill] sm:$0xff] %v13161_v2  ;;  %v6776_v2 = vpop.f32.mrf.mxu1 }
 0x508   : > { %v10025_v39 = vpop.f32.mrf.mxu0 }
 0x50a   : > { %v7012_v28 = vpop.f32.mrf.mxu0 }
 0x50c   : > { %v13163_v53 = vpop.f32.mrf.mxu0 }
 0x50d   : > { %13793 = vst [vmem:[#allocation26_spill] sm:$0xff] %v13163_v53  ;;  %v6212_v53 = vadd.f32 %v13023_v46, %v13015_v30  ;;  %v6807_v30 = vadd.f32 %v13102_v62, %v13065_v34  ;;  %v6809_v46 = vadd.f32 %v13118_v52, %v13073_v33  ;;  %v13220_v34 = vadd.f32 %v6736_v20, %v13097_v55  ;;  %v13801_v55 = vld [vmem:[#allocation55_spill] sm:$0xff]  ;;  %v13806_v20 = vld [vmem:[#allocation24_spill] sm:$0xff] }
 0x50e   : > { %v13165_v6 = vpop.f32.mrf.mxu0  ;;  %v6820_v33 = vadd.f32 %v9960_v47, %v13108_v3 }
 0x50f   : > { %13794 = vst [vmem:[#allocation27_spill] sm:$0xff] %v13165_v6  ;;  %v6213_v6 = vadd.f32 %v13020_v59, %v13010_v44  ;;  %v6808_v44 = vadd.f32 %v13094_v49, %v13060_v4  ;;  %v6810_v59 = vadd.f32 %v13110_v9, %v13068_v36  ;;  %v13214_v4 = vadd.f32 %v6726_v32, %v13089_v7 }
 0x510   : > { %v13167_v24 = vpop.f32.mrf.mxu0  ;;  %v13223_v36 = vadd.f32 %v9957_v19, %v13100_v60  ;;  %v6519_v7 = vadd.f32 %v13133_v11, %v6212_v53  ;;  %v6824_v49 = vadd.f32 %v9966_v51, %v13124_v31  ;;  %v6823_v60 = vadd.f32 %v6776_v2, %v13801_v55 }
 0x511   : > { %13795 = vst [vmem:[#allocation28_spill] sm:$0xff] %v13167_v24  ;;  %v9969_v24 = vpop.f32.mrf.mxu1  ;;  %v7116_v62 = vadd.f32 %v10025_v39, %v6810_v59  ;;  %v7115_v31 = vadd.f32 %v7012_v28, %v6809_v46 }
 0x512   : > { %v13169_v21 = vpop.f32.mrf.mxu0 }
 0x513   : > { %13796 = vst [vmem:[#allocation30_spill] sm:$0xff] %v13169_v21  ;;  %v6804_v21 = vadd.f32 %v13062_v35, %v13044_v18  ;;  %v13205_v18 = vadd.f32 %v13126_v8, %v13076_v25  ;;  %v13217_v35 = vadd.f32 %v9954_v13, %v13092_v26  ;;  %v6786_v25 = vpop.f32.mrf.mxu1  ;;  %v6821_v26 = vadd.f32 %v6766_v16, %v13121_v29  ;;  %v13802_v8 = vld [vmem:[#allocation22_spill] sm:$0xff] }
 0x514   : > { %v13171_v43 = vpop.f32.mrf.mxu0  ;;  %v6825_v3 = vadd.f32 %v6786_v25, %v6519_v7 }
 0x515   : > { %13797 = vst [vmem:[#allocation32_spill] sm:$0xff] %v13171_v43 }
 0x516   : > { %v13173_v56 = vpop.f32.mrf.mxu0 }
 0x517   : > { %13798 = vst [vmem:[#allocation34_spill] sm:$0xff] %v13173_v56  ;;  %v6803_v56 = vadd.f32 %v13070_v61, %v13049_v38  ;;  %v13226_v61 = vadd.f32 %v6746_v37, %v13105_v0 }
 0x518   : > { %v13175_v41 = vpop.f32.mrf.mxu0 }
 0x519   : > { %13799 = vst [vmem:[#allocation37_spill] sm:$0xff] %v13175_v41  ;;  %v6805_v41 = vadd.f32 %v13086_v58, %v13057_v54  ;;  %v13211_v54 = vadd.f32 %v9951_v50, %v13084_v48  ;;  %v6822_v48 = vadd.f32 %v9963_v10, %v13116_v1  ;;  %v6520_v58 = vadd.f32 %v13131_v40, %v6213_v6  ;;  %v13803_v10 = vld [vmem:[#allocation23_spill] sm:$0xff]  ;;  %v13805_v6 = vld [vmem:[#allocation25_spill] sm:$0xff] }
 0x51a   : > { %v13177_v14 = vpop.f32.mrf.mxu0  ;;  %v7110_v1 = vadd.f32 %v10016_v15, %v6804_v21  ;;  %v7109_v52 = vadd.f32 %v6982_v5, %v6803_v56  ;;  %v7114_v13 = vadd.f32 %v13805_v6, %v6808_v44  ;;  %v13807_v15 = vld [vmem:[#allocation63_spill] sm:$0xff] }
 0x51b   : > { %13800 = vst [vmem:[#allocation15_spill] sm:$0xff] %v13177_v14  ;;  %v6806_v14 = vadd.f32 %v13078_v27, %v13054_v23  ;;  %v13208_v23 = vadd.f32 %v6716_v17, %v13081_v42  ;;  %v6819_v42 = vadd.f32 %v6756_v22, %v13113_v12  ;;  %v6826_v9 = vadd.f32 %v9969_v24, %v6520_v58  ;;  %v13239_v12 = vld [vmem:[%s13487_s7] ss:$0 sm:$0xff]  ;;  %v13804_v22 = vld [vmem:[#allocation61_spill] sm:$0xff] }
 0x51c   : > { %v13179_v45 = vpop.f32.mrf.mxu0  ;;  %v13243_v40 = vadd.f32 %v13239_v12, %v13802_v8  ;;  %v7111_v17 = vadd.f32 %v6992_v57, %v6805_v41  ;;  %v13247_v50 = vadd.f32 %v13239_v12, %v13803_v10  ;;  %v13251_v32 = vadd.f32 %v13239_v12, %v13804_v22  ;;  %v13808_v41 = vld [vmem:[#allocation65_spill] sm:$0xff] }
 0x51d   : > { %v7112_v29 = vadd.f32 %v10019_v63, %v6806_v14  ;;  %v13256_v21 = vadd.f32 %v13239_v12, %v13806_v20  ;;  %v13260_v14 = vadd.f32 %v13239_v12, %v13807_v15  ;;  %v7113_v19 = vadd.f32 %v13808_v41, %v6807_v30  ;;  %v13811_v41 = vld [vmem:[#allocation32_spill] sm:$0xff] }
 0x51e   : > { %v13187_v43 = vpop.f32.mrf.mxu0  ;;  %v7155_v5 = vadd.f32 %v13239_v12, %v7116_v62  ;;  %v13265_v37 = vadd.f32 %v13239_v12, %v7110_v1  ;;  %v13268_v57 = vadd.f32 %v13239_v12, %v7109_v52  ;;  %v13274_v39 = vadd.f32 %v13239_v12, %v7111_v17 }
 0x51f   : > { %v13271_v2 = vadd.f32 %v13239_v12, %v7112_v29  ;;  %v7154_v28 = vadd.f32 %v13239_v12, %v7115_v31  ;;  %v7153_v16 = vadd.f32 %v13239_v12, %v7114_v13  ;;  %v7152_v46 = vadd.f32 %v13239_v12, %v7113_v19 }
 0x520   : > { %v10043_v38 = vpop.f32.mrf.mxu0  ;;  %v7219_v25 = vmul.f32 0.2, %v7155_v5  ;;  %vm7187_vm2 = vcmp.ge.f32.partialorder %v7155_v5, 0.0  ;;  %v13809_v29 = vld [vmem:[#allocation37_spill] sm:$0xff]  ;;  %v7214_v20 = vmul.f32 0.2, %v13274_v39  ;;  %v7122_v19 = vadd.f32 %v13811_v41, %v13217_v35 }
 0x521   : > { %v7128_v53 = vadd.f32 %v10043_v38, %v6822_v48  ;;  %v7218_v38 = vmul.f32 0.2, %v7154_v28  ;;  %v7126_v48 = vadd.f32 %v13179_v45, %v6820_v33  ;;  %vm7186_vm4 = vcmp.ge.f32.partialorder %v7154_v28, 0.0 }
 0x522   : > { %v7072_v27 = vpop.f32.mrf.mxu0  ;;  %vm7185_vm7 = vcmp.ge.f32.partialorder %v7153_v16, 0.0  ;;  %v7216_v45 = vmul.f32 0.2, %v7152_v46  ;;  %vm7184_vm9 = vcmp.ge.f32.partialorder %v7152_v46, 0.0  ;;  %v7124_v17 = vadd.f32 %v13809_v29, %v13223_v36  ;;  %v13810_v22 = vld [vmem:[#allocation15_spill] sm:$0xff] }
 0x523   : > { %v7127_v58 = vadd.f32 %v7072_v27, %v6821_v26  ;;  %v7251_v27 = vsel %vm7187_vm2, %v7155_v5, %v7219_v25  ;;  %v7125_v26 = vadd.f32 %v13187_v43, %v6819_v42  ;;  %v7250_v33 = vsel %vm7186_vm4, %v7154_v28, %v7218_v38  ;;  %v13812_v28 = vld [vmem:[#allocation34_spill] sm:$0xff] }
 0x524   : > { %v10046_v0 = vpop.f32.mrf.mxu0  ;;  %v7165_v31 = vadd.f32 %v13239_v12, %v7126_v48  ;;  %v7215_v43 = vmul.f32 0.2, %v13271_v2  ;;  %vm7183_vm11 = vcmp.ge.f32.partialorder %v13271_v2, 0.0  ;;  %v7123_v6 = vadd.f32 %v13810_v22, %v13226_v61 }
 0x525   : > { %v7130_v51 = vadd.f32 %v10046_v0, %v6824_v49  ;;  %v7166_v1 = vadd.f32 %v13239_v12, %v7127_v58  ;;  %v7164_v13 = vadd.f32 %v13239_v12, %v7125_v26  ;;  %v7248_v15 = vsel %vm7184_vm9, %v7152_v46, %v7216_v45 }
 0x526   : > { %v7082_v11 = vpop.f32.mrf.mxu0  ;;  %vm7182_vm13 = vcmp.ge.f32.partialorder %v13274_v39, 0.0  ;;  %v7163_v5 = vadd.f32 %v13239_v12, %v7124_v17  ;;  %vm7197_vm14 = vcmp.ge.f32.partialorder %v7165_v31, 0.0  ;;  %vm7181_vm15 = vcmp.ge.f32.partialorder %v13265_v37, 0.0 }
 0x527   : > { %v7129_v56 = vadd.f32 %v7082_v11, %v6823_v60  ;;  %v7169_v44 = vadd.f32 %v13239_v12, %v7130_v51  ;;  %v7167_v60 = vadd.f32 %v13239_v12, %v7128_v53  ;;  %v7230_v51 = vmul.f32 0.2, %v7166_v1 }
 0x528   : > { %v10049_v63 = vpop.f32.mrf.mxu0  ;;  %vm7198_vm12 = vcmp.ge.f32.partialorder %v7166_v1, 0.0  ;;  %v7121_v53 = vadd.f32 %v13812_v28, %v13220_v34  ;;  %v7162_v35 = vadd.f32 %v13239_v12, %v7123_v6  ;;  %vm7196_vm0 = vcmp.ge.f32.partialorder %v7164_v13, 0.0  ;;  %v13819_v6 = vld [vmem:[#allocation57_spill] sm:$0xff] }
 0x529   : > { %v7132_v47 = vadd.f32 %v10049_v63, %v6826_v9  ;;  %v7168_v7 = vadd.f32 %v13239_v12, %v7129_v56  ;;  %v7233_v9 = vmul.f32 0.2, %v7169_v44  ;;  %vm7201_vm6 = vcmp.ge.f32.partialorder %v7169_v44, 0.0  ;;  %v10131_v28 = vld [vmem:[%s13481_s1 + $0x18] sm:$0xff] }
 0x52a   : > { %v7092_v24 = vpop.f32.mrf.mxu0  ;;  %v7231_v10 = vmul.f32 0.2, %v7167_v60  ;;  %vm7199_vm10 = vcmp.ge.f32.partialorder %v7167_v60, 0.0  ;;  %v7229_v63 = vmul.f32 0.2, %v7165_v31  ;;  %vm7180_vm1 = vcmp.ge.f32.partialorder %v13268_v57, 0.0 }
 0x52b   : > { %v7171_v30 = vadd.f32 %v13239_v12, %v7132_v47  ;;  %v7131_v59 = vadd.f32 %v7092_v24, %v6825_v3  ;;  %v7217_v3 = vmul.f32 0.2, %v7153_v16  ;;  %v7232_v8 = vmul.f32 0.2, %v7168_v7 }
 0x52c   : > { %vm7200_vm8 = vcmp.ge.f32.partialorder %v7168_v7, 0.0  ;;  %v7265_v11 = vsel %vm7201_vm6, %v7169_v44, %v7233_v9  ;;  %v7263_v61 = vsel %vm7199_vm10, %v7167_v60, %v7231_v10  ;;  %v7213_v56 = vmul.f32 0.2, %v13265_v37 }
 0x52d   : > { %v7170_v49 = vadd.f32 %v13239_v12, %v7131_v59  ;;  %vm7203_vm3 = vcmp.ge.f32.partialorder %v7171_v30, 0.0  ;;  %v7235_v55 = vmul.f32 0.2, %v7171_v30  ;;  %v7249_v42 = vsel %vm7185_vm7, %v7153_v16, %v7217_v3 }
 0x52e   : > { %v7264_v36 = vsel %vm7200_vm8, %v7168_v7, %v7232_v8  ;;  %v7247_v47 = vsel %vm7183_vm11, %v13271_v2, %v7215_v43  ;;  %v7262_v24 = vsel %vm7198_vm12, %v7166_v1, %v7230_v51  ;;  %v7228_v16 = vmul.f32 0.2, %v7164_v13  ;;  %v13813_v2 = vld [vmem:[#allocation28_spill] sm:$0xff]  ;;  %v13817_v8 = vld [vmem:[#allocation59_spill] sm:$0xff] }
 0x52f   : > { %v7267_v62 = vsel %vm7203_vm3, %v7171_v30, %v7235_v55  ;;  %vm7202_vm5 = vcmp.ge.f32.partialorder %v7170_v49, 0.0  ;;  %v7234_v0 = vmul.f32 0.2, %v7170_v49  ;;  %v7212_v44 = vmul.f32 0.2, %v13268_v57 }
 0x530   : > { %8670 = vmatprep.subr.mxu1 %v7267_v62  ;;  %v7246_v30 = vsel %vm7182_vm13, %v13274_v39, %v7214_v20  ;;  %v7120_v59 = vadd.f32 %v13813_v2, %v13211_v54  ;;  %v7161_v34 = vadd.f32 %v13239_v12, %v7122_v19  ;;  %v7261_v46 = vsel %vm7197_vm14, %v7165_v31, %v7229_v63  ;;  %v13814_v39 = vld [vmem:[#allocation30_spill] sm:$0xff]  ;;  %v13818_v31 = vld [vmem:[#allocation21_spill] sm:$0xff] }
 0x531   : > { %8671 = vmatpush3.msra.mxu1 %v7251_v27  ;;  %v7266_v52 = vsel %vm7202_vm5, %v7170_v49, %v7234_v0  ;;  %v7227_v25 = vmul.f32 0.2, %v7163_v5  ;;  %v7211_v58 = vmul.f32 0.2, %v13256_v21  ;;  %v7245_v7 = vsel %vm7181_vm15, %v13265_v37, %v7213_v56  ;;  %v13815_v37 = vld [vmem:[#allocation26_spill] sm:$0xff] }
 0x532   : > { %8672 = vmatprep.subr.mxu1 %v7266_v52  ;;  %vm7195_vm2 = vcmp.ge.f32.partialorder %v7163_v5, 0.0  ;;  %vm7179_vm3 = vcmp.ge.f32.partialorder %v13256_v21, 0.0  ;;  %v7119_v49 = vadd.f32 %v13814_v39, %v13214_v4  ;;  %v7160_v54 = vadd.f32 %v13239_v12, %v7121_v53  ;;  %v10132_v53 = vld [vmem:[%s13481_s1 + $0x10] sm:$0xff]  ;;  %v10138_v2 = vld [vmem:[%s13481_s1 + $0x40] sm:$0xff] }
 0x533   : > { %8673 = vmatpush3.msra.mxu1 %v7250_v33  ;;  %v7260_v55 = vsel %vm7196_vm0, %v7164_v13, %v7228_v16  ;;  %v7226_v38 = vmul.f32 0.2, %v7162_v35  ;;  %v7210_v48 = vmul.f32 0.2, %v13260_v14  ;;  %v7244_v60 = vsel %vm7180_vm1, %v13268_v57, %v7212_v44  ;;  %v13816_v57 = vld [vmem:[#allocation27_spill] sm:$0xff]  ;;  %v10135_v16 = vld [vmem:[%s13481_s1 + $0x38] sm:$0xff] }
 0x534   : > { %8674 = vmatprep.subr.mxu1 %v7265_v11  ;;  %vm7194_vm4 = vcmp.ge.f32.partialorder %v7162_v35, 0.0  ;;  %vm7178_vm5 = vcmp.ge.f32.partialorder %v13260_v14, 0.0  ;;  %v7118_v62 = vadd.f32 %v13815_v37, %v13205_v18  ;;  %v7159_v4 = vadd.f32 %v13239_v12, %v7120_v59  ;;  %v10136_v44 = vld [vmem:[%s13481_s1 + $0x30] sm:$0xff]  ;;  %v10139_v59 = vld [vmem:[%s13481_s1 + $0x58] sm:$0xff] }
 0x535   : > { %8675 = vmatpush3.msra.mxu1 %v7249_v42  ;;  %v7259_v0 = vsel %vm7195_vm2, %v7163_v5, %v7227_v25  ;;  %v7225_v9 = vmul.f32 0.2, %v7161_v34  ;;  %v7209_v3 = vmul.f32 0.2, %v13247_v50  ;;  %v7243_v27 = vsel %vm7179_vm3, %v13256_v21, %v7211_v58  ;;  %v10142_v25 = vld [vmem:[%s13481_s1 + $0x60] sm:$0xff]  ;;  %v10143_v58 = vld [vmem:[%s13481_s1 + $0x78] sm:$0xff] }
 0x536   : > { %8676 = vmatprep.subr.mxu1 %v7264_v36  ;;  %vm7193_vm6 = vcmp.ge.f32.partialorder %v7161_v34, 0.0  ;;  %vm7177_vm7 = vcmp.ge.f32.partialorder %v13247_v50, 0.0  ;;  %v7117_v26 = vadd.f32 %v13816_v57, %v13208_v23  ;;  %v7158_v18 = vadd.f32 %v13239_v12, %v7119_v49  ;;  %v7500_v49 = vld [vmem:[%s13483_s3] ss:$0 sm:$0xff] }
 0x537   : > { %8677 = vmatpush3.msra.mxu1 %v7248_v15  ;;  %v7258_v1 = vsel %vm7194_vm4, %v7162_v35, %v7226_v38  ;;  %v7224_v52 = vmul.f32 0.2, %v7160_v54  ;;  %v7142_v45 = vadd.f32 %v13239_v12, %v13817_v8  ;;  %v7208_v33 = vmul.f32 0.2, %v13251_v32  ;;  %v10133_v35 = vld [vmem:[%s13481_s1 + $0x28] sm:$0xff] }
 0x538   : > { %8678 = vmatprep.subr.mxu1 %v7263_v61  ;;  %v7242_v21 = vsel %vm7178_vm5, %v13260_v14, %v7210_v48  ;;  %vm7192_vm8 = vcmp.ge.f32.partialorder %v7160_v54, 0.0  ;;  %v7157_v29 = vadd.f32 %v13239_v12, %v7118_v62  ;;  %v7257_v23 = vsel %vm7193_vm6, %v7161_v34, %v7225_v9  ;;  %v10140_v34 = vld [vmem:[%s13481_s1 + $0x50] sm:$0xff] }
 0x539   : > { %8679 = vmatpush3.msra.mxu1 %v7247_v47  ;;  %vm7176_vm9 = vcmp.ge.f32.partialorder %v13251_v32, 0.0  ;;  %v7223_v17 = vmul.f32 0.2, %v7159_v4  ;;  %v7141_v11 = vadd.f32 %v13239_v12, %v13818_v31  ;;  %v7207_v10 = vmul.f32 0.2, %v13243_v40 }
 0x53a   : > { %8680 = vmatprep.subr.mxu1 %v7262_v24  ;;  %v7241_v43 = vsel %vm7177_vm7, %v13247_v50, %v7209_v3  ;;  %vm7191_vm10 = vcmp.ge.f32.partialorder %v7159_v4, 0.0  ;;  %v7156_v14 = vadd.f32 %v13239_v12, %v7117_v26  ;;  %v7256_v42 = vsel %vm7192_vm8, %v7160_v54, %v7224_v52  ;;  %v10134_v24 = vld [vmem:[%s13481_s1 + $0x20] sm:$0xff]  ;;  %v13822_v26 = vld [vmem:[#allocation16_spill] sm:$0xff] }
 0x53b   : > { %8681 = vmatpush3.msra.mxu1 %v7246_v30  ;;  %vm7175_vm11 = vcmp.ge.f32.partialorder %v13243_v40, 0.0  ;;  %v7222_v22 = vmul.f32 0.2, %v7158_v18  ;;  %v7140_v13 = vadd.f32 %v13239_v12, %v13819_v6  ;;  %v7206_v36 = vmul.f32 0.2, %v7142_v45  ;;  %v10137_v30 = vld [vmem:[%s13481_s1 + $0x48] sm:$0xff] }
 0x53c   : > { %8682 = vmatprep.subr.mxu1 %v7261_v46  ;;  %v7240_v51 = vsel %vm7176_vm9, %v13251_v32, %v7208_v33  ;;  %vm7190_vm12 = vcmp.ge.f32.partialorder %v7158_v18, 0.0  ;;  %v7255_v20 = vsel %vm7191_vm10, %v7159_v4, %v7223_v17  ;;  %vm7174_vm13 = vcmp.ge.f32.partialorder %v7142_v45, 0.0  ;;  %v10141_v46 = vld [vmem:[%s13481_s1 + $0x68] sm:$0xff]  ;;  %v13821_v4 = vld [vmem:[#allocation36_spill] sm:$0xff]  ;;  %v13825_v6 = vld [vmem:[#allocation17_spill] sm:$0xff] }
 0x53d   : > { %8683 = vmatpush3.msra.mxu1 %v7245_v7  ;;  %v7221_v50 = vmul.f32 0.2, %v7157_v29  ;;  %v7205_v15 = vmul.f32 0.2, %v7141_v11  ;;  %v7239_v41 = vsel %vm7175_vm11, %v13243_v40, %v7207_v10  ;;  %vm7189_vm14 = vcmp.ge.f32.partialorder %v7157_v29, 0.0  ;;  %v10130_v40 = vld [vmem:[%s13481_s1] sm:$0xff] }
 0x53e   : > { %8684 = vmatprep.subr.mxu1 %v7260_v55  ;;  %v7254_v19 = vsel %vm7190_vm12, %v7158_v18, %v7222_v22  ;;  %vm7173_vm15 = vcmp.ge.f32.partialorder %v7141_v11, 0.0  ;;  %v7220_v5 = vmul.f32 0.2, %v7156_v14  ;;  %v7204_v61 = vmul.f32 0.2, %v7140_v13  ;;  %v10144_v7 = vld [vmem:[%s13481_s1 + $0x70] sm:$0xff] }
 0x53f   : > { %8685 = vmatpush3.msra.mxu1 %v7244_v60  ;;  %v7238_v12 = vsel %vm7174_vm13, %v7142_v45, %v7206_v36  ;;  %vm7188_vm0 = vcmp.ge.f32.partialorder %v7156_v14, 0.0  ;;  %v7253_v32 = vsel %vm7189_vm14, %v7157_v29, %v7221_v50  ;;  %vm7172_vm1 = vcmp.ge.f32.partialorder %v7140_v13, 0.0  ;;  %v13820_v55 = vld [vmem:[#allocation14_spill] sm:$0xff]  ;;  %v13823_v33 = vld [vmem:[#allocation39_spill] sm:$0xff] }
 0x540   : > { %8686 = vmatprep.subr.mxu1 %v7259_v0  ;;  %v7237_v63 = vsel %vm7173_vm15, %v7141_v11, %v7205_v15  ;;  %v7252_v56 = vsel %vm7188_vm0, %v7156_v14, %v7220_v5  ;;  %v7236_v47 = vsel %vm7172_vm1, %v7140_v13, %v7204_v61  ;;  %v613_v38 = vadd.f32 %v7500_v49, %v13820_v55  ;;  %v13824_v11 = vld [vmem:[#allocation19_spill] sm:$0xff]  ;;  %v13826_v15 = vld [vmem:[#allocation42_spill] sm:$0xff] }
 0x541   : > { %8687 = vmatpush3.msra.mxu1 %v7243_v27  ;;  %v618_v0 = vadd.f32 %v13821_v4, %v7500_v49  ;;  %v623_v18 = vadd.f32 %v7500_v49, %v13822_v26  ;;  %v633_v10 = vadd.f32 %v7500_v49, %v13824_v11  ;;  %v638_v13 = vadd.f32 %v13825_v6, %v7500_v49 }
 0x542   : > { %8688 = vmatprep.subr.mxu1 %v7258_v1 }
 0x543   : > { %8689 = vmatpush3.msra.mxu1 %v7242_v21  ;;  %v628_v21 = vadd.f32 %v13823_v33, %v7500_v49 }
 0x544   : > { %8690 = vmatprep.subr.mxu1 %v7257_v23 }
 0x545   : > { %8691 = vmatpush3.msra.mxu1 %v7241_v43 }
 0x546   : > { %8692 = vmatprep.subr.mxu1 %v7256_v42 }
 0x547   : > { %8693 = vmatpush3.msra.mxu1 %v7240_v51 }
 0x548   : > { %8694 = vmatprep.subr.mxu1 %v7255_v20 }
 0x549   : > { %8695 = vmatpush3.msra.mxu1 %v7239_v41  ;;  %v643_v41 = vadd.f32 %v7500_v49, %v13826_v15 }
 0x54a   : > { %8696 = vmatprep.subr.mxu1 %v7254_v19 }
 0x54b   : > { %8697 = vmatpush3.msra.mxu1 %v7238_v12 }
 0x54c   : > { %8698 = vmatprep.subr.mxu1 %v7253_v32  ;;  %v13827_v32 = vld [vmem:[#allocation41_spill] sm:$0xff] }
 0x54d   : > { %8699 = vmatpush3.msra.mxu1 %v7237_v63  ;;  %v648_v63 = vadd.f32 %v13827_v32, %v7500_v49 }
 0x54e   : > { %8700 = vmatprep.subr.mxu1 %v7252_v56 }
 0x54f   : > { %8701 = vmatpush3.msra.mxu1 %v7236_v47 }
 0x550   : > { %7333 = vmatmul.mubr.f32.vlgmr.msra.gmra.mxu1 %v10130_v40 }
 0x551   : > { %7337 = vmatprep.mubr.f32.mxu1 %v10131_v28 }
 0x554   : > { %7338 = vmatmul.mubr.f32.gmra.mxu1 %v10132_v53 }
 0x555   : > { %7342 = vmatprep.mubr.f32.mxu1 %v10133_v35 }
 0x558   : > { %7343 = vmatmul.mubr.f32.gmra.mxu1 %v10134_v24 }
 0x559   : > { %7347 = vmatprep.mubr.f32.mxu1 %v10135_v16 }
 0x55c   : > { %7348 = vmatmul.mubr.f32.gmra.mxu1 %v10136_v44 }
 0x55d   : > { %7352 = vmatprep.mubr.f32.mxu1 %v10137_v30 }
 0x560   : > { %7353 = vmatmul.mubr.f32.gmra.mxu1 %v10138_v2 }
 0x561   : > { %7357 = vmatprep.mubr.f32.mxu1 %v10139_v59 }
 0x564   : > { %7358 = vmatmul.mubr.f32.gmra.mxu1 %v10140_v34 }
 0x565   : > { %7362 = vmatprep.mubr.f32.mxu1 %v10141_v46 }
 0x568   : > { %7363 = vmatmul.mubr.f32.gmra.mxu1 %v10142_v25 }
 0x569   : > { %7367 = vmatprep.mubr.f32.mxu1 %v10143_v58 }
 0x56c   : > { %7368 = vmatmul.mubr.f32.gmra.mxu1 %v10144_v7 }
 0x610   : > { %v8702_v39 = vpop.f32.mrf.mxu1 }
 0x612   : > { %v8703_v54 = vpop.f32.mrf.mxu1 }
 0x613   : > { %v8704_v48 = vadd.f32 %v8703_v54, %v8702_v39 }
 0x614   : > { %v8705_v60 = vpop.f32.mrf.mxu1 }
 0x615   : > { %v7335_v37 = vadd.f32 %v8704_v48, %v613_v38 }
 0x616   : > { %v8706_v62 = vpop.f32.mrf.mxu1 }
 0x617   : > { %7373 = vst [vmem:[%s13414_s25] sm:$0xff] %v7335_v37  ;;  %v8707_v9 = vadd.f32 %v8706_v62, %v8705_v60 }
 0x618   : > { %v8708_v3 = vpop.f32.mrf.mxu1 }
 0x619   : > { %v7340_v27 = vadd.f32 %v8707_v9, %v618_v0 }
 0x61a   : > { %v8709_v57 = vpop.f32.mrf.mxu1 }
 0x61b   : > { %7374 = vst [vmem:[%s13414_s25 + $0x8] sm:$0xff] %v7340_v27  ;;  %v8710_v1 = vadd.f32 %v8709_v57, %v8708_v3 }
 0x61c   : > { %v8711_v52 = vpop.f32.mrf.mxu1 }
 0x61d   : > { %v7345_v8 = vadd.f32 %v8710_v1, %v623_v18 }
 0x61e   : > { %v8712_v45 = vpop.f32.mrf.mxu1 }
 0x61f   : > { %7375 = vst [vmem:[%s13414_s25 + $0x10] sm:$0xff] %v7345_v8  ;;  %v8713_v29 = vadd.f32 %v8712_v45, %v8711_v52 }
 0x620   : > { %v8714_v23 = vpop.f32.mrf.mxu1 }
 0x621   : > { %v7350_v17 = vadd.f32 %v8713_v29, %v628_v21 }
 0x622   : > { %v8715_v31 = vpop.f32.mrf.mxu1 }
 0x623   : > { %7376 = vst [vmem:[%s13414_s25 + $0x18] sm:$0xff] %v7350_v17  ;;  %v8716_v43 = vadd.f32 %v8715_v31, %v8714_v23 }
 0x624   : > { %v8717_v14 = vpop.f32.mrf.mxu1 }
 0x625   : > { %v7355_v42 = vadd.f32 %v8716_v43, %v633_v10 }
 0x626   : > { %v8718_v22 = vpop.f32.mrf.mxu1 }
 0x627   : > { %7377 = vst [vmem:[%s13414_s25 + $0x20] sm:$0xff] %v7355_v42  ;;  %v8719_v36 = vadd.f32 %v8718_v22, %v8717_v14 }
 0x628   : > { %v8720_v51 = vpop.f32.mrf.mxu1 }
 0x629   : > { %v7360_v20 = vadd.f32 %v8719_v36, %v638_v13 }
 0x62a   : > { %v8721_v50 = vpop.f32.mrf.mxu1 }
 0x62b   : > { %7378 = vst [vmem:[%s13414_s25 + $0x28] sm:$0xff] %v7360_v20  ;;  %v8722_v19 = vadd.f32 %v8721_v50, %v8720_v51 }
 0x62c   : > { %v8723_v5 = vpop.f32.mrf.mxu1 }
 0x62d   : > { %v7365_v61 = vadd.f32 %v8722_v19, %v643_v41 }
 0x62e   : > { %v8724_v12 = vpop.f32.mrf.mxu1 }
 0x62f   : > { %7379 = vst [vmem:[%s13414_s25 + $0x30] sm:$0xff] %v7365_v61  ;;  %v8725_v56 = vadd.f32 %v8724_v12, %v8723_v5 }
 0x631   : > { %v7370_v47 = vadd.f32 %v8725_v56, %v648_v63 }
 0x633   : > { %7380 = vst [vmem:[%s13414_s25 + $0x38] sm:$0xff] %v7370_v47 }
 0x634   : > { %10238 = shalt.err (!%p10235_p3)
}
 0x635   : > { %s10239_s24 = scalar_lea.hbm %s13436_s18, 1024  ;;  %s10243_s20 = scalar_lea.hbm %s13488_s8, 2048 }
 0x636   : > { %p10240_p11 = scmp.ne.s32.totalorder %s13436_s18, %s10239_s24  ;;  %p10244_p4 = scmp.lt.s32.totalorder %s13436_s18, %s13488_s8 }
 0x637   : > { %p10245_p6 = scmp.lt.s32.totalorder %s10243_s20, %s10239_s24 }
 0x638   : > { %p10241_p9 = pnand %p10240_p11, %p13828_p2 }
 0x639   : > { %p10246_p8 = por %p10245_p6, %p10244_p4 }
 0x63a   : > { %p10242_p1 = pneg %p10241_p9 }
 0x63c   : > { %p10247_p5 = pnand %p10246_p8, %p10242_p1 }
 0x63e   : > { %10250 = shalt.err (!%p10247_p5)
}
 0x63f   : > { %s10302_s26 = smov 128   ;;  %s10303_s19 = smov 8  }
 0x640   : > { %10060 = dma.vmem_to_hbm [thread:$0]  (%p13828_p2), %s13430_s15, 1024, %s13436_s18, %s7382_s21, %s10302_s26, %s10302_s26, %s10303_s19  }
 0x641 PF: > { %s7410_s23 = sand.u32 1, %s10281_s27   ;;  %p13829_p7 = scmp.ne.s32.totalorder %s13505_s12, 0 }
 0x642   : > { %p13830_p12 = scmp.ge.s32.totalorder %s10293_s30, 2  ;;  %s7411_s9 = scalar_lea.sflag [#allocation6], %s7410_s23 }
 0x644   : > { %p10074_p13 = pnand %p13830_p12, %p13829_p7 }
 0x646   : > { %p10075_p0 = pneg %p10074_p13 }
 0x648   : > { %10276 = dma.done.wait (%p10075_p0), %s7411_s9, 1024  }
 0x649   : > { %10278 = vsyncadd (%p10075_p0), %s7411_s9, 4294966272  ;;  %p22_p10 = scmp.ge.s32.totalorder %s10427_s10, 4   ;;  %s13831_s27 = smov %s10285_s28 }
 0x64a   : > { %s13832_s28 = smov %s10289_s29  ;;  %s13833_s29 = smov %s10443_s17 }
 0x64b   : > { %s13834_s30 = smov %s10427_s10  ;;  %24 = sbr.rel (!%p22_p10) target bundleno = 9 (0x9), region = 125 }
 0x650   :  { %7416 = vsyncpa [#allocation5], 1 }
 0x651   :  { %7418 = vsyncpa [#allocation5 + $0x1], 1 }
 0x652   :  { %7419 = vsyncpa [#allocation8], 1 }
 0x653   :  { %7420 = vsyncpa [#allocation6], 1 }
 0x654   :  { %7422 = vsyncpa [#allocation6 + $0x1], 1 }

</bundles_post_ra>
